<compile_context>
chip_gen: v7x
topology: tpu7x:2x2x1
jax: 0.10.0
libtpu: 0.0.40
codegen_flags: <defaults>
</compile_context>

<pallas_src>
import jax
import jax.numpy as jnp
from jax import lax
from jax.experimental import pallas as pl
from jax.experimental.pallas import tpu as pltpu

_VMEM_LIMIT_BYTES = 32 * 1024 * 1024
MATMUL_DTYPE = jnp.float32      # set to jnp.bfloat16 on v6e/v7x for 2x MXU rate


def _round_up(x, m):
    return ((x + m - 1) // m) * m


# ---------------------------------------------------------------------------
# Pallas kernel 1: tiled matmul + bias  (the conv hot path, post-im2col)
# ---------------------------------------------------------------------------
def _matmul_bias_kernel(x_ref, w_ref, b_ref, o_ref, acc_ref):
    # grid = (M/tm, N/tn, K/tk); K axis is the reduction ("arbitrary") axis.
    @pl.when(pl.program_id(2) == 0)
    def _():
        acc_ref[...] = jnp.zeros_like(acc_ref)

    acc_ref[...] += jnp.dot(x_ref[...], w_ref[...],
                            preferred_element_type=jnp.float32)

    @pl.when(pl.program_id(2) == pl.num_programs(2) - 1)
    def _():
        o_ref[...] = (acc_ref[...] + b_ref[...].astype(jnp.float32)
                      ).astype(o_ref.dtype)


def matmul_bias_pallas(x, w, bias, out_dtype):
    """(M, K) @ (K, N) + bias with lane-dense padding on K and N."""
    M, K = x.shape
    _, N = w.shape

    # Lane-dense N (output stores) and K (input loads).
    N_pad = _round_up(N, 128)
    tn = 128
    tm = min(256, _round_up(M, 8))
    M_pad = _round_up(M, tm)
    K_128 = _round_up(K, 128)
    nk = -(-K_128 // 2048)                       # <= ~2048-wide K tiles
    tk = _round_up(-(-K_128 // nk), 128)
    K_pad = tk * nk

    xp = jnp.pad(x, ((0, M_pad - M), (0, K_pad - K))).astype(MATMUL_DTYPE)
    wp = jnp.pad(w, ((0, K_pad - K), (0, N_pad - N))).astype(MATMUL_DTYPE)
    bp = jnp.pad(bias.reshape(1, N), ((0, 0), (0, N_pad - N)))

    out = pl.pallas_call(
        _matmul_bias_kernel,
        out_shape=jax.ShapeDtypeStruct((M_pad, N_pad), out_dtype),
        grid=(M_pad // tm, N_pad // tn, K_pad // tk),
        in_specs=[
            pl.BlockSpec((tm, tk), lambda i, j, k: (i, k)),
            pl.BlockSpec((tk, tn), lambda i, j, k: (k, j)),
            pl.BlockSpec((1, tn), lambda i, j, k: (0, j)),
        ],
        out_specs=pl.BlockSpec((tm, tn), lambda i, j, k: (i, j)),
        scratch_shapes=[pltpu.VMEM((tm, tn), jnp.float32)],
        compiler_params=pltpu.CompilerParams(
            dimension_semantics=("parallel", "parallel", "arbitrary"),
            vmem_limit_bytes=_VMEM_LIMIT_BYTES),
    )(xp, wp, bp)
    return out[:M, :N]


# ---------------------------------------------------------------------------
# Pallas kernel 2: instance norm (+ optional ReLU, + optional residual add)
# ---------------------------------------------------------------------------
def _make_instance_norm_kernel(eps, relu, has_residual):
    def body(x_ref, g_ref, b_ref, o_ref, r_ref):
        x = x_ref[0].astype(jnp.float32)                  # (HW, C)
        mean = jnp.mean(x, axis=0, keepdims=True)         # (1, C)
        xc = x - mean
        var = jnp.mean(xc * xc, axis=0, keepdims=True)    # (1, C) biased var
        y = xc * lax.rsqrt(var + eps)
        y = y * g_ref[0].astype(jnp.float32) + b_ref[0].astype(jnp.float32)
        if r_ref is not None:
            y = y + r_ref[0].astype(jnp.float32)
        if relu:
            y = jnp.maximum(y, 0.0)
        o_ref[0] = y.astype(o_ref.dtype)

    if has_residual:
        def kernel(x_ref, g_ref, b_ref, r_ref, o_ref):
            body(x_ref, g_ref, b_ref, o_ref, r_ref)
    else:
        def kernel(x_ref, g_ref, b_ref, o_ref):
            body(x_ref, g_ref, b_ref, o_ref, None)
    return kernel


def instance_norm_pl(x, gamma_b1c, beta_b1c, *, relu, residual=None, eps=1e-5):
    """x: (B,H,W,C); gamma/beta: (B,1,C) per-sample affine (already mixed)."""
    B, H, W, C = x.shape
    HW = H * W
    x2 = x.reshape(B, HW, C)
    inputs = [x2, gamma_b1c, beta_b1c]
    in_specs = [
        pl.BlockSpec((1, HW, C), lambda b: (b, 0, 0)),
        pl.BlockSpec((1, 1, C), lambda b: (b, 0, 0)),
        pl.BlockSpec((1, 1, C), lambda b: (b, 0, 0)),
    ]
    if residual is not None:
        inputs.append(residual.reshape(B, HW, C))
        in_specs.append(pl.BlockSpec((1, HW, C), lambda b: (b, 0, 0)))

    kernel = _make_instance_norm_kernel(eps, relu, residual is not None)
    out = pl.pallas_call(
        kernel,
        out_shape=jax.ShapeDtypeStruct((B, HW, C), x.dtype),
        grid=(B,),
        in_specs=in_specs,
        out_specs=pl.BlockSpec((1, HW, C), lambda b: (b, 0, 0)),
        compiler_params=pltpu.CompilerParams(
            dimension_semantics=("parallel",),
            vmem_limit_bytes=_VMEM_LIMIT_BYTES),
    )(*inputs)
    return out.reshape(B, H, W, C)


# ---------------------------------------------------------------------------
# NHWC layer wrappers (Pallas path)
# ---------------------------------------------------------------------------
def conv_layer_pl(x, p, *, stride):
    """ReflectionPad2d(k//2) + Conv2d(k, stride) + bias, NHWC / HWIO."""
    w, bias = p["w"], p["b"]
    KH, KW, Cin, Cout = w.shape
    pad = KH // 2                      # odd kernels (9, 3) as in TransformerNet
    xp = jnp.pad(x, ((0, 0), (pad, pad), (pad, pad), (0, 0)), mode="reflect")
    B, Hp, Wp, _ = xp.shape
    Ho = (Hp - KH) // stride + 1
    Wo = (Wp - KW) // stride + 1

    # im2col glue: fold the KHxKW taps into one K = KH*KW*Cin contraction.
    # TODO(synk): for full-resolution frames, move this patch extraction into
    # the kernel (row-tile + halo BlockSpec) to avoid the KH*KW HBM blowup.
    cols = []
    for kh in range(KH):
        for kw in range(KW):
            cols.append(lax.slice(
                xp, (0, kh, kw, 0),
                (B, kh + (Ho - 1) * stride + 1, kw + (Wo - 1) * stride + 1, Cin),
                (1, stride, stride, 1)))
    patches = jnp.concatenate(cols, axis=-1).reshape(B * Ho * Wo, KH * KW * Cin)
    w2d = w.reshape(KH * KW * Cin, Cout)

    out = matmul_bias_pallas(patches, w2d, bias, x.dtype)
    return out.reshape(B, Ho, Wo, Cout)


def upsample_nearest_2x(x):
    # torch.nn.Upsample(mode="nearest", scale_factor=2), NHWC.
    return jnp.repeat(jnp.repeat(x, 2, axis=1), 2, axis=2)


def cond_instance_norm_pl(x, style_control, p, *, relu):
    """ConditionalInstanceNorm2d: mix per-style affine params analytically."""
    B = x.shape[0]
    R = style_control.shape[0]
    rows = style_control[jnp.arange(B) % R]                 # (B, S)
    total = jnp.sum(rows, axis=1, keepdims=True)            # (B, 1)
    g = (rows @ p["gamma"]) / total                         # (B, C)
    bt = (rows @ p["beta"]) / total                         # (B, C)
    return instance_norm_pl(x, g[:, None, :], bt[:, None, :], relu=relu)


def plain_instance_norm_pl(x, p, *, relu, residual=None):
    B, _, _, C = x.shape
    g = jnp.broadcast_to(p["gamma"][None, None, :], (B, 1, C))
    bt = jnp.broadcast_to(p["beta"][None, None, :], (B, 1, C))
    return instance_norm_pl(x, g, bt, relu=relu, residual=residual)


def residual_block_pl(x, p):
    h = conv_layer_pl(x, p["conv1"], stride=1)
    h = plain_instance_norm_pl(h, p["in1"], relu=True)
    h = conv_layer_pl(h, p["conv2"], stride=1)
    h = plain_instance_norm_pl(h, p["in2"], relu=False, residual=x)  # + x fused
    return h


def transformer_net_pl(x_nchw, style_control, params):
    x = jnp.transpose(x_nchw, (0, 2, 3, 1))                 # NCHW -> NHWC once
    y = conv_layer_pl(x, params["conv1"], stride=1)
    y = cond_instance_norm_pl(y, style_control, params["in1"], relu=True)
    y = conv_layer_pl(y, params["conv2"], stride=2)
    y = cond_instance_norm_pl(y, style_control, params["in2"], relu=True)
    y = conv_layer_pl(y, params["conv3"], stride=2)
    y = cond_instance_norm_pl(y, style_control, params["in3"], relu=True)
    for r in range(1, 6):
        y = residual_block_pl(y, params[f"res{r}"])
    y = conv_layer_pl(upsample_nearest_2x(y), params["deconv1"], stride=1)
    y = cond_instance_norm_pl(y, style_control, params["in4"], relu=True)
    y = conv_layer_pl(upsample_nearest_2x(y), params["deconv2"], stride=1)
    y = cond_instance_norm_pl(y, style_control, params["in5"], relu=True)
    y = conv_layer_pl(y, params["deconv3"], stride=1)
    return jnp.transpose(y, (0, 3, 1, 2))                   # NHWC -> NCHW once


# ---------------------------------------------------------------------------
# Pure-JAX reference (mirrors the PyTorch module literally) for verification
# ---------------------------------------------------------------------------
def _ref_conv(x, p, stride):
    k = p["w"].shape[0]
    pad = k // 2
    xp = jnp.pad(x, ((0, 0), (pad, pad), (pad, pad), (0, 0)), mode="reflect")
    y = lax.conv_general_dilated(
        xp, p["w"], window_strides=(stride, stride), padding="VALID",
        dimension_numbers=("NHWC", "HWIO", "NHWC"),
        precision=lax.Precision.HIGHEST)
    return y + p["b"]


def _ref_instance_norm(x, gamma, beta, eps=1e-5):
    mean = jnp.mean(x, axis=(1, 2), keepdims=True)
    var = jnp.mean(jnp.square(x - mean), axis=(1, 2), keepdims=True)
    return (x - mean) * lax.rsqrt(var + eps) * gamma + beta


def _ref_cond_instance_norm(x, style_control, p, eps=1e-5):
    # Literal translation of the PyTorch double loop.
    B = x.shape[0]
    R, S = style_control.shape
    outs = []
    for i in range(B):
        w_row = style_control[i % R]
        total = jnp.sum(w_row)
        xi = x[i:i + 1]
        acc = jnp.zeros_like(xi)
        for j in range(S):
            acc = acc + w_row[j] * _ref_instance_norm(
                xi, p["gamma"][j], p["beta"][j], eps)
        outs.append(acc / total)
    return jnp.concatenate(outs, axis=0)


def _ref_residual_block(x, p):
    h = jax.nn.relu(_ref_instance_norm(_ref_conv(x, p["conv1"], 1),
                                       p["in1"]["gamma"], p["in1"]["beta"]))
    h = _ref_instance_norm(_ref_conv(h, p["conv2"], 1),
                           p["in2"]["gamma"], p["in2"]["beta"])
    return h + x


def transformer_net_ref(x_nchw, style_control, params):
    x = jnp.transpose(x_nchw, (0, 2, 3, 1))
    y = jax.nn.relu(_ref_cond_instance_norm(
        _ref_conv(x, params["conv1"], 1), style_control, params["in1"]))
    y = jax.nn.relu(_ref_cond_instance_norm(
        _ref_conv(y, params["conv2"], 2), style_control, params["in2"]))
    y = jax.nn.relu(_ref_cond_instance_norm(
        _ref_conv(y, params["conv3"], 2), style_control, params["in3"]))
    for r in range(1, 6):
        y = _ref_residual_block(y, params[f"res{r}"])
    y = jax.nn.relu(_ref_cond_instance_norm(
        _ref_conv(upsample_nearest_2x(y), params["deconv1"], 1),
        style_control, params["in4"]))
    y = jax.nn.relu(_ref_cond_instance_norm(
        _ref_conv(upsample_nearest_2x(y), params["deconv2"], 1),
        style_control, params["in5"]))
    y = _ref_conv(y, params["deconv3"], 1)
    return jnp.transpose(y, (0, 3, 1, 2))


# ---------------------------------------------------------------------------
# Deterministic synthetic parameters (PyTorch-like init scales)
# ---------------------------------------------------------------------------
def init_params(key, style_num):
    keys = iter(jax.random.split(key, 80))

    def conv_init(cin, cout, k):
        bound = 1.0 / (cin * k * k) ** 0.5
        w = jax.random.uniform(next(keys), (k, k, cin, cout), jnp.float32,
                               minval=-bound, maxval=bound)       # HWIO
        b = jax.random.uniform(next(keys), (cout,), jnp.float32,
                               minval=-bound, maxval=bound)
        return {"w": w, "b": b}

    def cond_in_init(c):  # one affine set per style
        g = 1.0 + 0.1 * jax.random.normal(next(keys), (style_num, c), jnp.float32)
        bt = 0.1 * jax.random.normal(next(keys), (style_num, c), jnp.float32)
        return {"gamma": g, "beta": bt}

    def in_init(c):
        g = 1.0 + 0.1 * jax.random.normal(next(keys), (c,), jnp.float32)
        bt = 0.1 * jax.random.normal(next(keys), (c,), jnp.float32)
        return {"gamma": g, "beta": bt}

    params = {
        "conv1": conv_init(3, 32, 9), "in1": cond_in_init(32),
        "conv2": conv_init(32, 64, 3), "in2": cond_in_init(64),
        "conv3": conv_init(64, 128, 3), "in3": cond_in_init(128),
    }
    for r in range(1, 6):
        params[f"res{r}"] = {
            "conv1": conv_init(128, 128, 3), "in1": in_init(128),
            "conv2": conv_init(128, 128, 3), "in2": in_init(128),
        }
    params["deconv1"] = conv_init(128, 64, 3)
    params["in4"] = cond_in_init(64)
    params["deconv2"] = conv_init(64, 32, 3)
    params["in5"] = cond_in_init(32)
    params["deconv3"] = conv_init(32, 3, 9)
    return params


if __name__ == "__main__":
    B, H, W = 2, 16, 16          # small spatial (divisible by 4), RGB input
    STYLE_NUM = 4

    key = jax.random.PRNGKey(0)
    kx, ks, kp = jax.random.split(key, 3)
    x = jax.random.normal(kx, (B, 3, H, W), jnp.float32)
    style_control = jax.random.uniform(ks, (B, STYLE_NUM), jnp.float32,
                                       minval=0.1, maxval=1.0)
    params = init_params(kp, STYLE_NUM)

    fwd = jax.jit(transformer_net_pl)
    out = jax.block_until_ready(fwd(x, style_control, params))

    ref = jax.block_until_ready(transformer_net_ref(x, style_control, params))

    assert out.shape == ref.shape == (B, 3, H, W), (out.shape, ref.shape)
    max_err = float(jnp.max(jnp.abs(out - ref)))
    assert jnp.allclose(out, ref, atol=5e-3, rtol=5e-3), max_err
    print("KERNEL_OK")
</pallas_src>

<mosaic_0001>
module attributes {stable_mosaic.version = 11 : i64} {
  func.func @_matmul_bias_kernel(%arg0: i32, %arg1: i32, %arg2: i32, %arg3: memref<256x256xf32, #tpu.memory_space<vmem>>, %arg4: memref<256x128xf32, #tpu.memory_space<vmem>>, %arg5: memref<1x128xf32, #tpu.memory_space<vmem>>, %arg6: memref<256x128xf32, #tpu.memory_space<vmem>>, %arg7: memref<256x128xf32, #tpu.memory_space<vmem>>) attributes {dimension_semantics = [#tpu.dimension_semantics<parallel>, #tpu.dimension_semantics<parallel>, #tpu.dimension_semantics<arbitrary>], iteration_bounds = array<i64: 2, 1, 1>, scalar_prefetch = 0 : i64, scratch_operands = 1 : i64, tpu.core_type = #tpu.core_type<tc>, window_params = [{transform_indices = @transform_0, window_bounds = array<i64: 256, 256>}, {transform_indices = @transform_1, window_bounds = array<i64: 256, 128>}, {transform_indices = @transform_2, window_bounds = array<i64: 1, 128>}, {transform_indices = @transform_3, window_bounds = array<i64: 256, 128>}]} {
    %c0_i32 = arith.constant 0 : i32
    %0 = arith.cmpi eq, %arg2, %c0_i32 : i32
    %1 = arith.extui %0 : i1 to i32
    %c0_i32_0 = arith.constant 0 : i32
    %2 = arith.cmpi ne, %1, %c0_i32_0 : i32
    scf.if %2 {
      %cst_10 = arith.constant 0.000000e+00 : f32
      %12 = vector.broadcast %cst_10 : f32 to vector<256x128xf32>
      %c0_11 = arith.constant 0 : index
      %c0_12 = arith.constant 0 : index
      %13 = vector.load %arg7[%c0_11, %c0_12] : memref<256x128xf32, #tpu.memory_space<vmem>>, vector<256x128xf32>
      tpu.vector_store %arg7[%c0_11, %c0_12], %12 {strides = array<i32>} : memref<256x128xf32, #tpu.memory_space<vmem>>, vector<256x128xf32>,
    } else {
    }
    %c0 = arith.constant 0 : index
    %c0_1 = arith.constant 0 : index
    %3 = vector.load %arg7[%c0, %c0_1] : memref<256x128xf32, #tpu.memory_space<vmem>>, vector<256x128xf32>
    %c0_2 = arith.constant 0 : index
    %c0_3 = arith.constant 0 : index
    %4 = vector.load %arg3[%c0_2, %c0_3] : memref<256x256xf32, #tpu.memory_space<vmem>>, vector<256x256xf32>
    %c0_4 = arith.constant 0 : index
    %c0_5 = arith.constant 0 : index
    %5 = vector.load %arg4[%c0_4, %c0_5] : memref<256x128xf32, #tpu.memory_space<vmem>>, vector<256x128xf32>
    %cst = arith.constant dense<0.000000e+00> : vector<256x128xf32>
    %6 = tpu.matmul %4, %5, %cst {dimension_numbers = #tpu.dot_dimension_numbers<[1], [0], [0], [1], [0, 0, 1, 1], [], []>} : vector<256x256xf32>, vector<256x128xf32>, vector<256x128xf32> -> vector<256x128xf32>
    %7 = arith.addf %3, %6 : vector<256x128xf32>
    %c0_6 = arith.constant 0 : index
    %c0_7 = arith.constant 0 : index
    %8 = vector.load %arg7[%c0_6, %c0_7] : memref<256x128xf32, #tpu.memory_space<vmem>>, vector<256x128xf32>
    tpu.vector_store %arg7[%c0_6, %c0_7], %7 {strides = array<i32>} : memref<256x128xf32, #tpu.memory_space<vmem>>, vector<256x128xf32>,
    %c0_i32_8 = arith.constant 0 : i32
    %9 = arith.cmpi eq, %arg2, %c0_i32_8 : i32
    %10 = arith.extui %9 : i1 to i32
    %c0_i32_9 = arith.constant 0 : i32
    %11 = arith.cmpi ne, %10, %c0_i32_9 : i32
    scf.if %11 {
      %c0_10 = arith.constant 0 : index
      %c0_11 = arith.constant 0 : index
      %12 = vector.load %arg7[%c0_10, %c0_11] : memref<256x128xf32, #tpu.memory_space<vmem>>, vector<256x128xf32>
      %c0_12 = arith.constant 0 : index
      %c0_13 = arith.constant 0 : index
      %13 = vector.load %arg5[%c0_12, %c0_13] : memref<1x128xf32, #tpu.memory_space<vmem>>, vector<1x128xf32>
      %14 = vector.broadcast %13 : vector<1x128xf32> to vector<256x128xf32>
      %15 = arith.addf %12, %14 : vector<256x128xf32>
      %c0_14 = arith.constant 0 : index
      %c0_15 = arith.constant 0 : index
      %16 = vector.load %arg6[%c0_14, %c0_15] : memref<256x128xf32, #tpu.memory_space<vmem>>, vector<256x128xf32>
      tpu.vector_store %arg6[%c0_14, %c0_15], %15 {strides = array<i32>} : memref<256x128xf32, #tpu.memory_space<vmem>>, vector<256x128xf32>,
    } else {
    }
    return
  }
  func.func @transform_0(%arg0: i32, %arg1: i32, %arg2: i32) -> (i32, i32) {
    %c0_i32 = arith.constant 0 : i32
    return %arg0, %arg2 : i32, i32
  }
  func.func @transform_1(%arg0: i32, %arg1: i32, %arg2: i32) -> (i32, i32) {
    %c0_i32 = arith.constant 0 : i32
    return %arg2, %arg1 : i32, i32
  }
  func.func @transform_2(%arg0: i32, %arg1: i32, %arg2: i32) -> (i32, i32) {
    %c0_i32 = arith.constant 0 : i32
    %c0_i32_0 = arith.constant 0 : i32
    return %c0_i32, %arg1 : i32, i32
  }
  func.func @transform_3(%arg0: i32, %arg1: i32, %arg2: i32) -> (i32, i32) {
    %c0_i32 = arith.constant 0 : i32
    return %arg0, %arg1 : i32, i32
  }
}

module attributes {stable_mosaic.version = 11 : i64} {
  func.func @kernel(%arg0: i32, %arg1: memref<1x256x32xf32, #tpu.memory_space<vmem>>, %arg2: memref<1x1x32xf32, #tpu.memory_space<vmem>>, %arg3: memref<1x1x32xf32, #tpu.memory_space<vmem>>, %arg4: memref<1x256x32xf32, #tpu.memory_space<vmem>>) attributes {dimension_semantics = [#tpu.dimension_semantics<parallel>], iteration_bounds = array<i64: 2>, scalar_prefetch = 0 : i64, scratch_operands = 0 : i64, tpu.core_type = #tpu.core_type<tc>, window_params = [{transform_indices = @transform_0, window_bounds = array<i64: 1, 256, 32>}, {transform_indices = @transform_1, window_bounds = array<i64: 1, 1, 32>}, {transform_indices = @transform_2, window_bounds = array<i64: 1, 1, 32>}, {transform_indices = @transform_3, window_bounds = array<i64: 1, 256, 32>}]} {
    %c0 = arith.constant 0 : index
    %c0_0 = arith.constant 0 : index
    %c0_1 = arith.constant 0 : index
    %0 = vector.load %arg1[%c0, %c0_0, %c0_1] : memref<1x256x32xf32, #tpu.memory_space<vmem>>, vector<1x256x32xf32>
    %1 = vector.shape_cast %0 : vector<1x256x32xf32> to vector<256x32xf32>
    %cst = arith.constant dense<0.000000e+00> : vector<32xf32>
    %2 = vector.multi_reduction <add>, %1, %cst [0] : vector<256x32xf32> to vector<32xf32>
    %3 = vector.shape_cast %2 : vector<32xf32> to vector<1x32xf32>
    %cst_2 = arith.constant 2.560000e+02 : f32
    %4 = vector.broadcast %cst_2 : f32 to vector<1x32xf32>
    %5 = arith.divf %3, %4 : vector<1x32xf32>
    %6 = vector.broadcast %5 : vector<1x32xf32> to vector<256x32xf32>
    %7 = arith.subf %1, %6 : vector<256x32xf32>
    %8 = arith.mulf %7, %7 : vector<256x32xf32>
    %cst_3 = arith.constant dense<0.000000e+00> : vector<32xf32>
    %9 = vector.multi_reduction <add>, %8, %cst_3 [0] : vector<256x32xf32> to vector<32xf32>
    %10 = vector.shape_cast %9 : vector<32xf32> to vector<1x32xf32>
    %cst_4 = arith.constant 2.560000e+02 : f32
    %11 = vector.broadcast %cst_4 : f32 to vector<1x32xf32>
    %12 = arith.divf %10, %11 : vector<1x32xf32>
    %cst_5 = arith.constant 9.99999974E-6 : f32
    %13 = vector.broadcast %cst_5 : f32 to vector<1x32xf32>
    %14 = arith.addf %12, %13 : vector<1x32xf32>
    %15 = math.rsqrt %14 : vector<1x32xf32>
    %16 = vector.broadcast %15 : vector<1x32xf32> to vector<256x32xf32>
    %17 = arith.mulf %7, %16 : vector<256x32xf32>
    %c0_6 = arith.constant 0 : index
    %c0_7 = arith.constant 0 : index
    %c0_8 = arith.constant 0 : index
    %18 = vector.load %arg2[%c0_6, %c0_7, %c0_8] : memref<1x1x32xf32, #tpu.memory_space<vmem>>, vector<1x1x32xf32>
    %19 = vector.shape_cast %18 : vector<1x1x32xf32> to vector<1x32xf32>
    %20 = vector.broadcast %19 : vector<1x32xf32> to vector<256x32xf32>
    %21 = arith.mulf %17, %20 : vector<256x32xf32>
    %c0_9 = arith.constant 0 : index
    %c0_10 = arith.constant 0 : index
    %c0_11 = arith.constant 0 : index
    %22 = vector.load %arg3[%c0_9, %c0_10, %c0_11] : memref<1x1x32xf32, #tpu.memory_space<vmem>>, vector<1x1x32xf32>
    %23 = vector.shape_cast %22 : vector<1x1x32xf32> to vector<1x32xf32>
    %24 = vector.broadcast %23 : vector<1x32xf32> to vector<256x32xf32>
    %25 = arith.addf %21, %24 : vector<256x32xf32>
    %cst_12 = arith.constant 0.000000e+00 : f32
    %26 = vector.broadcast %cst_12 : f32 to vector<256x32xf32>
    %27 = arith.maximumf %25, %26 : vector<256x32xf32>
    %c0_13 = arith.constant 0 : index
    %c0_14 = arith.constant 0 : index
    %c0_15 = arith.constant 0 : index
    %28 = vector.load %arg4[%c0_13, %c0_14, %c0_15] : memref<1x256x32xf32, #tpu.memory_space<vmem>>, vector<1x256x32xf32>
    %29 = vector.shape_cast %28 : vector<1x256x32xf32> to vector<256x32xf32>
    %30 = vector.shape_cast %27 : vector<256x32xf32> to vector<1x256x32xf32>
    tpu.vector_store %arg4[%c0_13, %c0_14, %c0_15], %30 {strides = array<i32>} : memref<1x256x32xf32, #tpu.memory_space<vmem>>, vector<1x256x32xf32>,
    return
  }
  func.func @transform_0(%arg0: i32) -> (i32, i32, i32) {
    %c0_i32 = arith.constant 0 : i32
    %c0_i32_0 = arith.constant 0 : i32
    %c0_i32_1 = arith.constant 0 : i32
    return %arg0, %c0_i32, %c0_i32_0 : i32, i32, i32
  }
  func.func @transform_1(%arg0: i32) -> (i32, i32, i32) {
    %c0_i32 = arith.constant 0 : i32
    %c0_i32_0 = arith.constant 0 : i32
    %c0_i32_1 = arith.constant 0 : i32
    return %arg0, %c0_i32, %c0_i32_0 : i32, i32, i32
  }
  func.func @transform_2(%arg0: i32) -> (i32, i32, i32) {
    %c0_i32 = arith.constant 0 : i32
    %c0_i32_0 = arith.constant 0 : i32
    %c0_i32_1 = arith.constant 0 : i32
    return %arg0, %c0_i32, %c0_i32_0 : i32, i32, i32
  }
  func.func @transform_3(%arg0: i32) -> (i32, i32, i32) {
    %c0_i32 = arith.constant 0 : i32
    %c0_i32_0 = arith.constant 0 : i32
    %c0_i32_1 = arith.constant 0 : i32
    return %arg0, %c0_i32, %c0_i32_0 : i32, i32, i32
  }
}

module attributes {stable_mosaic.version = 11 : i64} {
  func.func @_matmul_bias_kernel(%arg0: i32, %arg1: i32, %arg2: i32, %arg3: memref<128x384xf32, #tpu.memory_space<vmem>>, %arg4: memref<384x128xf32, #tpu.memory_space<vmem>>, %arg5: memref<1x128xf32, #tpu.memory_space<vmem>>, %arg6: memref<128x128xf32, #tpu.memory_space<vmem>>, %arg7: memref<128x128xf32, #tpu.memory_space<vmem>>) attributes {dimension_semantics = [#tpu.dimension_semantics<parallel>, #tpu.dimension_semantics<parallel>, #tpu.dimension_semantics<arbitrary>], iteration_bounds = array<i64: 1, 1, 1>, scalar_prefetch = 0 : i64, scratch_operands = 1 : i64, tpu.core_type = #tpu.core_type<tc>, window_params = [{transform_indices = @transform_0, window_bounds = array<i64: 128, 384>}, {transform_indices = @transform_1, window_bounds = array<i64: 384, 128>}, {transform_indices = @transform_2, window_bounds = array<i64: 1, 128>}, {transform_indices = @transform_3, window_bounds = array<i64: 128, 128>}]} {
    %c0_i32 = arith.constant 0 : i32
    %0 = arith.cmpi eq, %arg2, %c0_i32 : i32
    %1 = arith.extui %0 : i1 to i32
    %c0_i32_0 = arith.constant 0 : i32
    %2 = arith.cmpi ne, %1, %c0_i32_0 : i32
    scf.if %2 {
      %cst_10 = arith.constant 0.000000e+00 : f32
      %12 = vector.broadcast %cst_10 : f32 to vector<128x128xf32>
      %c0_11 = arith.constant 0 : index
      %c0_12 = arith.constant 0 : index
      %13 = vector.load %arg7[%c0_11, %c0_12] : memref<128x128xf32, #tpu.memory_space<vmem>>, vector<128x128xf32>
      tpu.vector_store %arg7[%c0_11, %c0_12], %12 {strides = array<i32>} : memref<128x128xf32, #tpu.memory_space<vmem>>, vector<128x128xf32>,
    } else {
    }
    %c0 = arith.constant 0 : index
    %c0_1 = arith.constant 0 : index
    %3 = vector.load %arg7[%c0, %c0_1] : memref<128x128xf32, #tpu.memory_space<vmem>>, vector<128x128xf32>
    %c0_2 = arith.constant 0 : index
    %c0_3 = arith.constant 0 : index
    %4 = vector.load %arg3[%c0_2, %c0_3] : memref<128x384xf32, #tpu.memory_space<vmem>>, vector<128x384xf32>
    %c0_4 = arith.constant 0 : index
    %c0_5 = arith.constant 0 : index
    %5 = vector.load %arg4[%c0_4, %c0_5] : memref<384x128xf32, #tpu.memory_space<vmem>>, vector<384x128xf32>
    %cst = arith.constant dense<0.000000e+00> : vector<128x128xf32>
    %6 = tpu.matmul %4, %5, %cst {dimension_numbers = #tpu.dot_dimension_numbers<[1], [0], [0], [1], [0, 0, 1, 1], [], []>} : vector<128x384xf32>, vector<384x128xf32>, vector<128x128xf32> -> vector<128x128xf32>
    %7 = arith.addf %3, %6 : vector<128x128xf32>
    %c0_6 = arith.constant 0 : index
    %c0_7 = arith.constant 0 : index
    %8 = vector.load %arg7[%c0_6, %c0_7] : memref<128x128xf32, #tpu.memory_space<vmem>>, vector<128x128xf32>
    tpu.vector_store %arg7[%c0_6, %c0_7], %7 {strides = array<i32>} : memref<128x128xf32, #tpu.memory_space<vmem>>, vector<128x128xf32>,
    %c0_i32_8 = arith.constant 0 : i32
    %9 = arith.cmpi eq, %arg2, %c0_i32_8 : i32
    %10 = arith.extui %9 : i1 to i32
    %c0_i32_9 = arith.constant 0 : i32
    %11 = arith.cmpi ne, %10, %c0_i32_9 : i32
    scf.if %11 {
      %c0_10 = arith.constant 0 : index
      %c0_11 = arith.constant 0 : index
      %12 = vector.load %arg7[%c0_10, %c0_11] : memref<128x128xf32, #tpu.memory_space<vmem>>, vector<128x128xf32>
      %c0_12 = arith.constant 0 : index
      %c0_13 = arith.constant 0 : index
      %13 = vector.load %arg5[%c0_12, %c0_13] : memref<1x128xf32, #tpu.memory_space<vmem>>, vector<1x128xf32>
      %14 = vector.broadcast %13 : vector<1x128xf32> to vector<128x128xf32>
      %15 = arith.addf %12, %14 : vector<128x128xf32>
      %c0_14 = arith.constant 0 : index
      %c0_15 = arith.constant 0 : index
      %16 = vector.load %arg6[%c0_14, %c0_15] : memref<128x128xf32, #tpu.memory_space<vmem>>, vector<128x128xf32>
      tpu.vector_store %arg6[%c0_14, %c0_15], %15 {strides = array<i32>} : memref<128x128xf32, #tpu.memory_space<vmem>>, vector<128x128xf32>,
    } else {
    }
    return
  }
  func.func @transform_0(%arg0: i32, %arg1: i32, %arg2: i32) -> (i32, i32) {
    %c0_i32 = arith.constant 0 : i32
    return %arg0, %arg2 : i32, i32
  }
  func.func @transform_1(%arg0: i32, %arg1: i32, %arg2: i32) -> (i32, i32) {
    %c0_i32 = arith.constant 0 : i32
    return %arg2, %arg1 : i32, i32
  }
  func.func @transform_2(%arg0: i32, %arg1: i32, %arg2: i32) -> (i32, i32) {
    %c0_i32 = arith.constant 0 : i32
    %c0_i32_0 = arith.constant 0 : i32
    return %c0_i32, %arg1 : i32, i32
  }
  func.func @transform_3(%arg0: i32, %arg1: i32, %arg2: i32) -> (i32, i32) {
    %c0_i32 = arith.constant 0 : i32
    return %arg0, %arg1 : i32, i32
  }
}

module attributes {stable_mosaic.version = 11 : i64} {
  func.func @kernel(%arg0: i32, %arg1: memref<1x64x64xf32, #tpu.memory_space<vmem>>, %arg2: memref<1x1x64xf32, #tpu.memory_space<vmem>>, %arg3: memref<1x1x64xf32, #tpu.memory_space<vmem>>, %arg4: memref<1x64x64xf32, #tpu.memory_space<vmem>>) attributes {dimension_semantics = [#tpu.dimension_semantics<parallel>], iteration_bounds = array<i64: 2>, scalar_prefetch = 0 : i64, scratch_operands = 0 : i64, tpu.core_type = #tpu.core_type<tc>, window_params = [{transform_indices = @transform_0, window_bounds = array<i64: 1, 64, 64>}, {transform_indices = @transform_1, window_bounds = array<i64: 1, 1, 64>}, {transform_indices = @transform_2, window_bounds = array<i64: 1, 1, 64>}, {transform_indices = @transform_3, window_bounds = array<i64: 1, 64, 64>}]} {
    %c0 = arith.constant 0 : index
    %c0_0 = arith.constant 0 : index
    %c0_1 = arith.constant 0 : index
    %0 = vector.load %arg1[%c0, %c0_0, %c0_1] : memref<1x64x64xf32, #tpu.memory_space<vmem>>, vector<1x64x64xf32>
    %1 = vector.shape_cast %0 : vector<1x64x64xf32> to vector<64x64xf32>
    %cst = arith.constant dense<0.000000e+00> : vector<64xf32>
    %2 = vector.multi_reduction <add>, %1, %cst [0] : vector<64x64xf32> to vector<64xf32>
    %3 = vector.shape_cast %2 : vector<64xf32> to vector<1x64xf32>
    %cst_2 = arith.constant 6.400000e+01 : f32
    %4 = vector.broadcast %cst_2 : f32 to vector<1x64xf32>
    %5 = arith.divf %3, %4 : vector<1x64xf32>
    %6 = vector.broadcast %5 : vector<1x64xf32> to vector<64x64xf32>
    %7 = arith.subf %1, %6 : vector<64x64xf32>
    %8 = arith.mulf %7, %7 : vector<64x64xf32>
    %cst_3 = arith.constant dense<0.000000e+00> : vector<64xf32>
    %9 = vector.multi_reduction <add>, %8, %cst_3 [0] : vector<64x64xf32> to vector<64xf32>
    %10 = vector.shape_cast %9 : vector<64xf32> to vector<1x64xf32>
    %cst_4 = arith.constant 6.400000e+01 : f32
    %11 = vector.broadcast %cst_4 : f32 to vector<1x64xf32>
    %12 = arith.divf %10, %11 : vector<1x64xf32>
    %cst_5 = arith.constant 9.99999974E-6 : f32
    %13 = vector.broadcast %cst_5 : f32 to vector<1x64xf32>
    %14 = arith.addf %12, %13 : vector<1x64xf32>
    %15 = math.rsqrt %14 : vector<1x64xf32>
    %16 = vector.broadcast %15 : vector<1x64xf32> to vector<64x64xf32>
    %17 = arith.mulf %7, %16 : vector<64x64xf32>
    %c0_6 = arith.constant 0 : index
    %c0_7 = arith.constant 0 : index
    %c0_8 = arith.constant 0 : index
    %18 = vector.load %arg2[%c0_6, %c0_7, %c0_8] : memref<1x1x64xf32, #tpu.memory_space<vmem>>, vector<1x1x64xf32>
    %19 = vector.shape_cast %18 : vector<1x1x64xf32> to vector<1x64xf32>
    %20 = vector.broadcast %19 : vector<1x64xf32> to vector<64x64xf32>
    %21 = arith.mulf %17, %20 : vector<64x64xf32>
    %c0_9 = arith.constant 0 : index
    %c0_10 = arith.constant 0 : index
    %c0_11 = arith.constant 0 : index
    %22 = vector.load %arg3[%c0_9, %c0_10, %c0_11] : memref<1x1x64xf32, #tpu.memory_space<vmem>>, vector<1x1x64xf32>
    %23 = vector.shape_cast %22 : vector<1x1x64xf32> to vector<1x64xf32>
    %24 = vector.broadcast %23 : vector<1x64xf32> to vector<64x64xf32>
    %25 = arith.addf %21, %24 : vector<64x64xf32>
    %cst_12 = arith.constant 0.000000e+00 : f32
    %26 = vector.broadcast %cst_12 : f32 to vector<64x64xf32>
    %27 = arith.maximumf %25, %26 : vector<64x64xf32>
    %c0_13 = arith.constant 0 : index
    %c0_14 = arith.constant 0 : index
    %c0_15 = arith.constant 0 : index
    %28 = vector.load %arg4[%c0_13, %c0_14, %c0_15] : memref<1x64x64xf32, #tpu.memory_space<vmem>>, vector<1x64x64xf32>
    %29 = vector.shape_cast %28 : vector<1x64x64xf32> to vector<64x64xf32>
    %30 = vector.shape_cast %27 : vector<64x64xf32> to vector<1x64x64xf32>
    tpu.vector_store %arg4[%c0_13, %c0_14, %c0_15], %30 {strides = array<i32>} : memref<1x64x64xf32, #tpu.memory_space<vmem>>, vector<1x64x64xf32>,
    return
  }
  func.func @transform_0(%arg0: i32) -> (i32, i32, i32) {
    %c0_i32 = arith.constant 0 : i32
    %c0_i32_0 = arith.constant 0 : i32
    %c0_i32_1 = arith.constant 0 : i32
    return %arg0, %c0_i32, %c0_i32_0 : i32, i32, i32
  }
  func.func @transform_1(%arg0: i32) -> (i32, i32, i32) {
    %c0_i32 = arith.constant 0 : i32
    %c0_i32_0 = arith.constant 0 : i32
    %c0_i32_1 = arith.constant 0 : i32
    return %arg0, %c0_i32, %c0_i32_0 : i32, i32, i32
  }
  func.func @transform_2(%arg0: i32) -> (i32, i32, i32) {
    %c0_i32 = arith.constant 0 : i32
    %c0_i32_0 = arith.constant 0 : i32
    %c0_i32_1 = arith.constant 0 : i32
    return %arg0, %c0_i32, %c0_i32_0 : i32, i32, i32
  }
  func.func @transform_3(%arg0: i32) -> (i32, i32, i32) {
    %c0_i32 = arith.constant 0 : i32
    %c0_i32_0 = arith.constant 0 : i32
    %c0_i32_1 = arith.constant 0 : i32
    return %arg0, %c0_i32, %c0_i32_0 : i32, i32, i32
  }
}

module attributes {stable_mosaic.version = 11 : i64} {
  func.func @_matmul_bias_kernel(%arg0: i32, %arg1: i32, %arg2: i32, %arg3: memref<32x640xf32, #tpu.memory_space<vmem>>, %arg4: memref<640x128xf32, #tpu.memory_space<vmem>>, %arg5: memref<1x128xf32, #tpu.memory_space<vmem>>, %arg6: memref<32x128xf32, #tpu.memory_space<vmem>>, %arg7: memref<32x128xf32, #tpu.memory_space<vmem>>) attributes {dimension_semantics = [#tpu.dimension_semantics<parallel>, #tpu.dimension_semantics<parallel>, #tpu.dimension_semantics<arbitrary>], iteration_bounds = array<i64: 1, 1, 1>, scalar_prefetch = 0 : i64, scratch_operands = 1 : i64, tpu.core_type = #tpu.core_type<tc>, window_params = [{transform_indices = @transform_0, window_bounds = array<i64: 32, 640>}, {transform_indices = @transform_1, window_bounds = array<i64: 640, 128>}, {transform_indices = @transform_2, window_bounds = array<i64: 1, 128>}, {transform_indices = @transform_3, window_bounds = array<i64: 32, 128>}]} {
    %c0_i32 = arith.constant 0 : i32
    %0 = arith.cmpi eq, %arg2, %c0_i32 : i32
    %1 = arith.extui %0 : i1 to i32
    %c0_i32_0 = arith.constant 0 : i32
    %2 = arith.cmpi ne, %1, %c0_i32_0 : i32
    scf.if %2 {
      %cst_10 = arith.constant 0.000000e+00 : f32
      %12 = vector.broadcast %cst_10 : f32 to vector<32x128xf32>
      %c0_11 = arith.constant 0 : index
      %c0_12 = arith.constant 0 : index
      %13 = vector.load %arg7[%c0_11, %c0_12] : memref<32x128xf32, #tpu.memory_space<vmem>>, vector<32x128xf32>
      tpu.vector_store %arg7[%c0_11, %c0_12], %12 {strides = array<i32>} : memref<32x128xf32, #tpu.memory_space<vmem>>, vector<32x128xf32>,
    } else {
    }
    %c0 = arith.constant 0 : index
    %c0_1 = arith.constant 0 : index
    %3 = vector.load %arg7[%c0, %c0_1] : memref<32x128xf32, #tpu.memory_space<vmem>>, vector<32x128xf32>
    %c0_2 = arith.constant 0 : index
    %c0_3 = arith.constant 0 : index
    %4 = vector.load %arg3[%c0_2, %c0_3] : memref<32x640xf32, #tpu.memory_space<vmem>>, vector<32x640xf32>
    %c0_4 = arith.constant 0 : index
    %c0_5 = arith.constant 0 : index
    %5 = vector.load %arg4[%c0_4, %c0_5] : memref<640x128xf32, #tpu.memory_space<vmem>>, vector<640x128xf32>
    %cst = arith.constant dense<0.000000e+00> : vector<32x128xf32>
    %6 = tpu.matmul %4, %5, %cst {dimension_numbers = #tpu.dot_dimension_numbers<[1], [0], [0], [1], [0, 0, 1, 1], [], []>} : vector<32x640xf32>, vector<640x128xf32>, vector<32x128xf32> -> vector<32x128xf32>
    %7 = arith.addf %3, %6 : vector<32x128xf32>
    %c0_6 = arith.constant 0 : index
    %c0_7 = arith.constant 0 : index
    %8 = vector.load %arg7[%c0_6, %c0_7] : memref<32x128xf32, #tpu.memory_space<vmem>>, vector<32x128xf32>
    tpu.vector_store %arg7[%c0_6, %c0_7], %7 {strides = array<i32>} : memref<32x128xf32, #tpu.memory_space<vmem>>, vector<32x128xf32>,
    %c0_i32_8 = arith.constant 0 : i32
    %9 = arith.cmpi eq, %arg2, %c0_i32_8 : i32
    %10 = arith.extui %9 : i1 to i32
    %c0_i32_9 = arith.constant 0 : i32
    %11 = arith.cmpi ne, %10, %c0_i32_9 : i32
    scf.if %11 {
      %c0_10 = arith.constant 0 : index
      %c0_11 = arith.constant 0 : index
      %12 = vector.load %arg7[%c0_10, %c0_11] : memref<32x128xf32, #tpu.memory_space<vmem>>, vector<32x128xf32>
      %c0_12 = arith.constant 0 : index
      %c0_13 = arith.constant 0 : index
      %13 = vector.load %arg5[%c0_12, %c0_13] : memref<1x128xf32, #tpu.memory_space<vmem>>, vector<1x128xf32>
      %14 = vector.broadcast %13 : vector<1x128xf32> to vector<32x128xf32>
      %15 = arith.addf %12, %14 : vector<32x128xf32>
      %c0_14 = arith.constant 0 : index
      %c0_15 = arith.constant 0 : index
      %16 = vector.load %arg6[%c0_14, %c0_15] : memref<32x128xf32, #tpu.memory_space<vmem>>, vector<32x128xf32>
      tpu.vector_store %arg6[%c0_14, %c0_15], %15 {strides = array<i32>} : memref<32x128xf32, #tpu.memory_space<vmem>>, vector<32x128xf32>,
    } else {
    }
    return
  }
  func.func @transform_0(%arg0: i32, %arg1: i32, %arg2: i32) -> (i32, i32) {
    %c0_i32 = arith.constant 0 : i32
    return %arg0, %arg2 : i32, i32
  }
  func.func @transform_1(%arg0: i32, %arg1: i32, %arg2: i32) -> (i32, i32) {
    %c0_i32 = arith.constant 0 : i32
    return %arg2, %arg1 : i32, i32
  }
  func.func @transform_2(%arg0: i32, %arg1: i32, %arg2: i32) -> (i32, i32) {
    %c0_i32 = arith.constant 0 : i32
    %c0_i32_0 = arith.constant 0 : i32
    return %c0_i32, %arg1 : i32, i32
  }
  func.func @transform_3(%arg0: i32, %arg1: i32, %arg2: i32) -> (i32, i32) {
    %c0_i32 = arith.constant 0 : i32
    return %arg0, %arg1 : i32, i32
  }
}

module attributes {stable_mosaic.version = 11 : i64} {
  func.func @kernel(%arg0: i32, %arg1: memref<1x16x128xf32, #tpu.memory_space<vmem>>, %arg2: memref<1x1x128xf32, #tpu.memory_space<vmem>>, %arg3: memref<1x1x128xf32, #tpu.memory_space<vmem>>, %arg4: memref<1x16x128xf32, #tpu.memory_space<vmem>>) attributes {dimension_semantics = [#tpu.dimension_semantics<parallel>], iteration_bounds = array<i64: 2>, scalar_prefetch = 0 : i64, scratch_operands = 0 : i64, tpu.core_type = #tpu.core_type<tc>, window_params = [{transform_indices = @transform_0, window_bounds = array<i64: 1, 16, 128>}, {transform_indices = @transform_1, window_bounds = array<i64: 1, 1, 128>}, {transform_indices = @transform_2, window_bounds = array<i64: 1, 1, 128>}, {transform_indices = @transform_3, window_bounds = array<i64: 1, 16, 128>}]} {
    %c0 = arith.constant 0 : index
    %c0_0 = arith.constant 0 : index
    %c0_1 = arith.constant 0 : index
    %0 = vector.load %arg1[%c0, %c0_0, %c0_1] : memref<1x16x128xf32, #tpu.memory_space<vmem>>, vector<1x16x128xf32>
    %1 = vector.shape_cast %0 : vector<1x16x128xf32> to vector<16x128xf32>
    %cst = arith.constant dense<0.000000e+00> : vector<128xf32>
    %2 = vector.multi_reduction <add>, %1, %cst [0] : vector<16x128xf32> to vector<128xf32>
    %3 = vector.shape_cast %2 : vector<128xf32> to vector<1x128xf32>
    %cst_2 = arith.constant 1.600000e+01 : f32
    %4 = vector.broadcast %cst_2 : f32 to vector<1x128xf32>
    %5 = arith.divf %3, %4 : vector<1x128xf32>
    %6 = vector.broadcast %5 : vector<1x128xf32> to vector<16x128xf32>
    %7 = arith.subf %1, %6 : vector<16x128xf32>
    %8 = arith.mulf %7, %7 : vector<16x128xf32>
    %cst_3 = arith.constant dense<0.000000e+00> : vector<128xf32>
    %9 = vector.multi_reduction <add>, %8, %cst_3 [0] : vector<16x128xf32> to vector<128xf32>
    %10 = vector.shape_cast %9 : vector<128xf32> to vector<1x128xf32>
    %cst_4 = arith.constant 1.600000e+01 : f32
    %11 = vector.broadcast %cst_4 : f32 to vector<1x128xf32>
    %12 = arith.divf %10, %11 : vector<1x128xf32>
    %cst_5 = arith.constant 9.99999974E-6 : f32
    %13 = vector.broadcast %cst_5 : f32 to vector<1x128xf32>
    %14 = arith.addf %12, %13 : vector<1x128xf32>
    %15 = math.rsqrt %14 : vector<1x128xf32>
    %16 = vector.broadcast %15 : vector<1x128xf32> to vector<16x128xf32>
    %17 = arith.mulf %7, %16 : vector<16x128xf32>
    %c0_6 = arith.constant 0 : index
    %c0_7 = arith.constant 0 : index
    %c0_8 = arith.constant 0 : index
    %18 = vector.load %arg2[%c0_6, %c0_7, %c0_8] : memref<1x1x128xf32, #tpu.memory_space<vmem>>, vector<1x1x128xf32>
    %19 = vector.shape_cast %18 : vector<1x1x128xf32> to vector<1x128xf32>
    %20 = vector.broadcast %19 : vector<1x128xf32> to vector<16x128xf32>
    %21 = arith.mulf %17, %20 : vector<16x128xf32>
    %c0_9 = arith.constant 0 : index
    %c0_10 = arith.constant 0 : index
    %c0_11 = arith.constant 0 : index
    %22 = vector.load %arg3[%c0_9, %c0_10, %c0_11] : memref<1x1x128xf32, #tpu.memory_space<vmem>>, vector<1x1x128xf32>
    %23 = vector.shape_cast %22 : vector<1x1x128xf32> to vector<1x128xf32>
    %24 = vector.broadcast %23 : vector<1x128xf32> to vector<16x128xf32>
    %25 = arith.addf %21, %24 : vector<16x128xf32>
    %cst_12 = arith.constant 0.000000e+00 : f32
    %26 = vector.broadcast %cst_12 : f32 to vector<16x128xf32>
    %27 = arith.maximumf %25, %26 : vector<16x128xf32>
    %c0_13 = arith.constant 0 : index
    %c0_14 = arith.constant 0 : index
    %c0_15 = arith.constant 0 : index
    %28 = vector.load %arg4[%c0_13, %c0_14, %c0_15] : memref<1x16x128xf32, #tpu.memory_space<vmem>>, vector<1x16x128xf32>
    %29 = vector.shape_cast %28 : vector<1x16x128xf32> to vector<16x128xf32>
    %30 = vector.shape_cast %27 : vector<16x128xf32> to vector<1x16x128xf32>
    tpu.vector_store %arg4[%c0_13, %c0_14, %c0_15], %30 {strides = array<i32>} : memref<1x16x128xf32, #tpu.memory_space<vmem>>, vector<1x16x128xf32>,
    return
  }
  func.func @transform_0(%arg0: i32) -> (i32, i32, i32) {
    %c0_i32 = arith.constant 0 : i32
    %c0_i32_0 = arith.constant 0 : i32
    %c0_i32_1 = arith.constant 0 : i32
    return %arg0, %c0_i32, %c0_i32_0 : i32, i32, i32
  }
  func.func @transform_1(%arg0: i32) -> (i32, i32, i32) {
    %c0_i32 = arith.constant 0 : i32
    %c0_i32_0 = arith.constant 0 : i32
    %c0_i32_1 = arith.constant 0 : i32
    return %arg0, %c0_i32, %c0_i32_0 : i32, i32, i32
  }
  func.func @transform_2(%arg0: i32) -> (i32, i32, i32) {
    %c0_i32 = arith.constant 0 : i32
    %c0_i32_0 = arith.constant 0 : i32
    %c0_i32_1 = arith.constant 0 : i32
    return %arg0, %c0_i32, %c0_i32_0 : i32, i32, i32
  }
  func.func @transform_3(%arg0: i32) -> (i32, i32, i32) {
    %c0_i32 = arith.constant 0 : i32
    %c0_i32_0 = arith.constant 0 : i32
    %c0_i32_1 = arith.constant 0 : i32
    return %arg0, %c0_i32, %c0_i32_0 : i32, i32, i32
  }
}

module attributes {stable_mosaic.version = 11 : i64} {
  func.func @kernel(%arg0: i32, %arg1: memref<1x16x128xf32, #tpu.memory_space<vmem>>, %arg2: memref<1x1x128xf32, #tpu.memory_space<vmem>>, %arg3: memref<1x1x128xf32, #tpu.memory_space<vmem>>, %arg4: memref<1x16x128xf32, #tpu.memory_space<vmem>>, %arg5: memref<1x16x128xf32, #tpu.memory_space<vmem>>) attributes {dimension_semantics = [#tpu.dimension_semantics<parallel>], iteration_bounds = array<i64: 2>, scalar_prefetch = 0 : i64, scratch_operands = 0 : i64, tpu.core_type = #tpu.core_type<tc>, window_params = [{transform_indices = @transform_0, window_bounds = array<i64: 1, 16, 128>}, {transform_indices = @transform_1, window_bounds = array<i64: 1, 1, 128>}, {transform_indices = @transform_2, window_bounds = array<i64: 1, 1, 128>}, {transform_indices = @transform_3, window_bounds = array<i64: 1, 16, 128>}, {transform_indices = @transform_4, window_bounds = array<i64: 1, 16, 128>}]} {
    %c0 = arith.constant 0 : index
    %c0_0 = arith.constant 0 : index
    %c0_1 = arith.constant 0 : index
    %0 = vector.load %arg1[%c0, %c0_0, %c0_1] : memref<1x16x128xf32, #tpu.memory_space<vmem>>, vector<1x16x128xf32>
    %1 = vector.shape_cast %0 : vector<1x16x128xf32> to vector<16x128xf32>
    %cst = arith.constant dense<0.000000e+00> : vector<128xf32>
    %2 = vector.multi_reduction <add>, %1, %cst [0] : vector<16x128xf32> to vector<128xf32>
    %3 = vector.shape_cast %2 : vector<128xf32> to vector<1x128xf32>
    %cst_2 = arith.constant 1.600000e+01 : f32
    %4 = vector.broadcast %cst_2 : f32 to vector<1x128xf32>
    %5 = arith.divf %3, %4 : vector<1x128xf32>
    %6 = vector.broadcast %5 : vector<1x128xf32> to vector<16x128xf32>
    %7 = arith.subf %1, %6 : vector<16x128xf32>
    %8 = arith.mulf %7, %7 : vector<16x128xf32>
    %cst_3 = arith.constant dense<0.000000e+00> : vector<128xf32>
    %9 = vector.multi_reduction <add>, %8, %cst_3 [0] : vector<16x128xf32> to vector<128xf32>
    %10 = vector.shape_cast %9 : vector<128xf32> to vector<1x128xf32>
    %cst_4 = arith.constant 1.600000e+01 : f32
    %11 = vector.broadcast %cst_4 : f32 to vector<1x128xf32>
    %12 = arith.divf %10, %11 : vector<1x128xf32>
    %cst_5 = arith.constant 9.99999974E-6 : f32
    %13 = vector.broadcast %cst_5 : f32 to vector<1x128xf32>
    %14 = arith.addf %12, %13 : vector<1x128xf32>
    %15 = math.rsqrt %14 : vector<1x128xf32>
    %16 = vector.broadcast %15 : vector<1x128xf32> to vector<16x128xf32>
    %17 = arith.mulf %7, %16 : vector<16x128xf32>
    %c0_6 = arith.constant 0 : index
    %c0_7 = arith.constant 0 : index
    %c0_8 = arith.constant 0 : index
    %18 = vector.load %arg2[%c0_6, %c0_7, %c0_8] : memref<1x1x128xf32, #tpu.memory_space<vmem>>, vector<1x1x128xf32>
    %19 = vector.shape_cast %18 : vector<1x1x128xf32> to vector<1x128xf32>
    %20 = vector.broadcast %19 : vector<1x128xf32> to vector<16x128xf32>
    %21 = arith.mulf %17, %20 : vector<16x128xf32>
    %c0_9 = arith.constant 0 : index
    %c0_10 = arith.constant 0 : index
    %c0_11 = arith.constant 0 : index
    %22 = vector.load %arg3[%c0_9, %c0_10, %c0_11] : memref<1x1x128xf32, #tpu.memory_space<vmem>>, vector<1x1x128xf32>
    %23 = vector.shape_cast %22 : vector<1x1x128xf32> to vector<1x128xf32>
    %24 = vector.broadcast %23 : vector<1x128xf32> to vector<16x128xf32>
    %25 = arith.addf %21, %24 : vector<16x128xf32>
    %c0_12 = arith.constant 0 : index
    %c0_13 = arith.constant 0 : index
    %c0_14 = arith.constant 0 : index
    %26 = vector.load %arg4[%c0_12, %c0_13, %c0_14] : memref<1x16x128xf32, #tpu.memory_space<vmem>>, vector<1x16x128xf32>
    %27 = vector.shape_cast %26 : vector<1x16x128xf32> to vector<16x128xf32>
    %28 = arith.addf %25, %27 : vector<16x128xf32>
    %c0_15 = arith.constant 0 : index
    %c0_16 = arith.constant 0 : index
    %c0_17 = arith.constant 0 : index
    %29 = vector.load %arg5[%c0_15, %c0_16, %c0_17] : memref<1x16x128xf32, #tpu.memory_space<vmem>>, vector<1x16x128xf32>
    %30 = vector.shape_cast %29 : vector<1x16x128xf32> to vector<16x128xf32>
    %31 = vector.shape_cast %28 : vector<16x128xf32> to vector<1x16x128xf32>
    tpu.vector_store %arg5[%c0_15, %c0_16, %c0_17], %31 {strides = array<i32>} : memref<1x16x128xf32, #tpu.memory_space<vmem>>, vector<1x16x128xf32>,
    return
  }
  func.func @transform_0(%arg0: i32) -> (i32, i32, i32) {
    %c0_i32 = arith.constant 0 : i32
    %c0_i32_0 = arith.constant 0 : i32
    %c0_i32_1 = arith.constant 0 : i32
    return %arg0, %c0_i32, %c0_i32_0 : i32, i32, i32
  }
  func.func @transform_1(%arg0: i32) -> (i32, i32, i32) {
    %c0_i32 = arith.constant 0 : i32
    %c0_i32_0 = arith.constant 0 : i32
    %c0_i32_1 = arith.constant 0 : i32
    return %arg0, %c0_i32, %c0_i32_0 : i32, i32, i32
  }
  func.func @transform_2(%arg0: i32) -> (i32, i32, i32) {
    %c0_i32 = arith.constant 0 : i32
    %c0_i32_0 = arith.constant 0 : i32
    %c0_i32_1 = arith.constant 0 : i32
    return %arg0, %c0_i32, %c0_i32_0 : i32, i32, i32
  }
  func.func @transform_3(%arg0: i32) -> (i32, i32, i32) {
    %c0_i32 = arith.constant 0 : i32
    %c0_i32_0 = arith.constant 0 : i32
    %c0_i32_1 = arith.constant 0 : i32
    return %arg0, %c0_i32, %c0_i32_0 : i32, i32, i32
  }
  func.func @transform_4(%arg0: i32) -> (i32, i32, i32) {
    %c0_i32 = arith.constant 0 : i32
    %c0_i32_0 = arith.constant 0 : i32
    %c0_i32_1 = arith.constant 0 : i32
    return %arg0, %c0_i32, %c0_i32_0 : i32, i32, i32
  }
}

module attributes {stable_mosaic.version = 11 : i64} {
  func.func @_matmul_bias_kernel(%arg0: i32, %arg1: i32, %arg2: i32, %arg3: memref<32x1152xf32, #tpu.memory_space<vmem>>, %arg4: memref<1152x128xf32, #tpu.memory_space<vmem>>, %arg5: memref<1x128xf32, #tpu.memory_space<vmem>>, %arg6: memref<32x128xf32, #tpu.memory_space<vmem>>, %arg7: memref<32x128xf32, #tpu.memory_space<vmem>>) attributes {dimension_semantics = [#tpu.dimension_semantics<parallel>, #tpu.dimension_semantics<parallel>, #tpu.dimension_semantics<arbitrary>], iteration_bounds = array<i64: 1, 1, 1>, scalar_prefetch = 0 : i64, scratch_operands = 1 : i64, tpu.core_type = #tpu.core_type<tc>, window_params = [{transform_indices = @transform_0, window_bounds = array<i64: 32, 1152>}, {transform_indices = @transform_1, window_bounds = array<i64: 1152, 128>}, {transform_indices = @transform_2, window_bounds = array<i64: 1, 128>}, {transform_indices = @transform_3, window_bounds = array<i64: 32, 128>}]} {
    %c0_i32 = arith.constant 0 : i32
    %0 = arith.cmpi eq, %arg2, %c0_i32 : i32
    %1 = arith.extui %0 : i1 to i32
    %c0_i32_0 = arith.constant 0 : i32
    %2 = arith.cmpi ne, %1, %c0_i32_0 : i32
    scf.if %2 {
      %cst_10 = arith.constant 0.000000e+00 : f32
      %12 = vector.broadcast %cst_10 : f32 to vector<32x128xf32>
      %c0_11 = arith.constant 0 : index
      %c0_12 = arith.constant 0 : index
      %13 = vector.load %arg7[%c0_11, %c0_12] : memref<32x128xf32, #tpu.memory_space<vmem>>, vector<32x128xf32>
      tpu.vector_store %arg7[%c0_11, %c0_12], %12 {strides = array<i32>} : memref<32x128xf32, #tpu.memory_space<vmem>>, vector<32x128xf32>,
    } else {
    }
    %c0 = arith.constant 0 : index
    %c0_1 = arith.constant 0 : index
    %3 = vector.load %arg7[%c0, %c0_1] : memref<32x128xf32, #tpu.memory_space<vmem>>, vector<32x128xf32>
    %c0_2 = arith.constant 0 : index
    %c0_3 = arith.constant 0 : index
    %4 = vector.load %arg3[%c0_2, %c0_3] : memref<32x1152xf32, #tpu.memory_space<vmem>>, vector<32x1152xf32>
    %c0_4 = arith.constant 0 : index
    %c0_5 = arith.constant 0 : index
    %5 = vector.load %arg4[%c0_4, %c0_5] : memref<1152x128xf32, #tpu.memory_space<vmem>>, vector<1152x128xf32>
    %cst = arith.constant dense<0.000000e+00> : vector<32x128xf32>
    %6 = tpu.matmul %4, %5, %cst {dimension_numbers = #tpu.dot_dimension_numbers<[1], [0], [0], [1], [0, 0, 1, 1], [], []>} : vector<32x1152xf32>, vector<1152x128xf32>, vector<32x128xf32> -> vector<32x128xf32>
    %7 = arith.addf %3, %6 : vector<32x128xf32>
    %c0_6 = arith.constant 0 : index
    %c0_7 = arith.constant 0 : index
    %8 = vector.load %arg7[%c0_6, %c0_7] : memref<32x128xf32, #tpu.memory_space<vmem>>, vector<32x128xf32>
    tpu.vector_store %arg7[%c0_6, %c0_7], %7 {strides = array<i32>} : memref<32x128xf32, #tpu.memory_space<vmem>>, vector<32x128xf32>,
    %c0_i32_8 = arith.constant 0 : i32
    %9 = arith.cmpi eq, %arg2, %c0_i32_8 : i32
    %10 = arith.extui %9 : i1 to i32
    %c0_i32_9 = arith.constant 0 : i32
    %11 = arith.cmpi ne, %10, %c0_i32_9 : i32
    scf.if %11 {
      %c0_10 = arith.constant 0 : index
      %c0_11 = arith.constant 0 : index
      %12 = vector.load %arg7[%c0_10, %c0_11] : memref<32x128xf32, #tpu.memory_space<vmem>>, vector<32x128xf32>
      %c0_12 = arith.constant 0 : index
      %c0_13 = arith.constant 0 : index
      %13 = vector.load %arg5[%c0_12, %c0_13] : memref<1x128xf32, #tpu.memory_space<vmem>>, vector<1x128xf32>
      %14 = vector.broadcast %13 : vector<1x128xf32> to vector<32x128xf32>
      %15 = arith.addf %12, %14 : vector<32x128xf32>
      %c0_14 = arith.constant 0 : index
      %c0_15 = arith.constant 0 : index
      %16 = vector.load %arg6[%c0_14, %c0_15] : memref<32x128xf32, #tpu.memory_space<vmem>>, vector<32x128xf32>
      tpu.vector_store %arg6[%c0_14, %c0_15], %15 {strides = array<i32>} : memref<32x128xf32, #tpu.memory_space<vmem>>, vector<32x128xf32>,
    } else {
    }
    return
  }
  func.func @transform_0(%arg0: i32, %arg1: i32, %arg2: i32) -> (i32, i32) {
    %c0_i32 = arith.constant 0 : i32
    return %arg0, %arg2 : i32, i32
  }
  func.func @transform_1(%arg0: i32, %arg1: i32, %arg2: i32) -> (i32, i32) {
    %c0_i32 = arith.constant 0 : i32
    return %arg2, %arg1 : i32, i32
  }
  func.func @transform_2(%arg0: i32, %arg1: i32, %arg2: i32) -> (i32, i32) {
    %c0_i32 = arith.constant 0 : i32
    %c0_i32_0 = arith.constant 0 : i32
    return %c0_i32, %arg1 : i32, i32
  }
  func.func @transform_3(%arg0: i32, %arg1: i32, %arg2: i32) -> (i32, i32) {
    %c0_i32 = arith.constant 0 : i32
    return %arg0, %arg1 : i32, i32
  }
}

module attributes {stable_mosaic.version = 11 : i64} {
  func.func @_matmul_bias_kernel(%arg0: i32, %arg1: i32, %arg2: i32, %arg3: memref<128x1152xf32, #tpu.memory_space<vmem>>, %arg4: memref<1152x128xf32, #tpu.memory_space<vmem>>, %arg5: memref<1x128xf32, #tpu.memory_space<vmem>>, %arg6: memref<128x128xf32, #tpu.memory_space<vmem>>, %arg7: memref<128x128xf32, #tpu.memory_space<vmem>>) attributes {dimension_semantics = [#tpu.dimension_semantics<parallel>, #tpu.dimension_semantics<parallel>, #tpu.dimension_semantics<arbitrary>], iteration_bounds = array<i64: 1, 1, 1>, scalar_prefetch = 0 : i64, scratch_operands = 1 : i64, tpu.core_type = #tpu.core_type<tc>, window_params = [{transform_indices = @transform_0, window_bounds = array<i64: 128, 1152>}, {transform_indices = @transform_1, window_bounds = array<i64: 1152, 128>}, {transform_indices = @transform_2, window_bounds = array<i64: 1, 128>}, {transform_indices = @transform_3, window_bounds = array<i64: 128, 128>}]} {
    %c0_i32 = arith.constant 0 : i32
    %0 = arith.cmpi eq, %arg2, %c0_i32 : i32
    %1 = arith.extui %0 : i1 to i32
    %c0_i32_0 = arith.constant 0 : i32
    %2 = arith.cmpi ne, %1, %c0_i32_0 : i32
    scf.if %2 {
      %cst_10 = arith.constant 0.000000e+00 : f32
      %12 = vector.broadcast %cst_10 : f32 to vector<128x128xf32>
      %c0_11 = arith.constant 0 : index
      %c0_12 = arith.constant 0 : index
      %13 = vector.load %arg7[%c0_11, %c0_12] : memref<128x128xf32, #tpu.memory_space<vmem>>, vector<128x128xf32>
      tpu.vector_store %arg7[%c0_11, %c0_12], %12 {strides = array<i32>} : memref<128x128xf32, #tpu.memory_space<vmem>>, vector<128x128xf32>,
    } else {
    }
    %c0 = arith.constant 0 : index
    %c0_1 = arith.constant 0 : index
    %3 = vector.load %arg7[%c0, %c0_1] : memref<128x128xf32, #tpu.memory_space<vmem>>, vector<128x128xf32>
    %c0_2 = arith.constant 0 : index
    %c0_3 = arith.constant 0 : index
    %4 = vector.load %arg3[%c0_2, %c0_3] : memref<128x1152xf32, #tpu.memory_space<vmem>>, vector<128x1152xf32>
    %c0_4 = arith.constant 0 : index
    %c0_5 = arith.constant 0 : index
    %5 = vector.load %arg4[%c0_4, %c0_5] : memref<1152x128xf32, #tpu.memory_space<vmem>>, vector<1152x128xf32>
    %cst = arith.constant dense<0.000000e+00> : vector<128x128xf32>
    %6 = tpu.matmul %4, %5, %cst {dimension_numbers = #tpu.dot_dimension_numbers<[1], [0], [0], [1], [0, 0, 1, 1], [], []>} : vector<128x1152xf32>, vector<1152x128xf32>, vector<128x128xf32> -> vector<128x128xf32>
    %7 = arith.addf %3, %6 : vector<128x128xf32>
    %c0_6 = arith.constant 0 : index
    %c0_7 = arith.constant 0 : index
    %8 = vector.load %arg7[%c0_6, %c0_7] : memref<128x128xf32, #tpu.memory_space<vmem>>, vector<128x128xf32>
    tpu.vector_store %arg7[%c0_6, %c0_7], %7 {strides = array<i32>} : memref<128x128xf32, #tpu.memory_space<vmem>>, vector<128x128xf32>,
    %c0_i32_8 = arith.constant 0 : i32
    %9 = arith.cmpi eq, %arg2, %c0_i32_8 : i32
    %10 = arith.extui %9 : i1 to i32
    %c0_i32_9 = arith.constant 0 : i32
    %11 = arith.cmpi ne, %10, %c0_i32_9 : i32
    scf.if %11 {
      %c0_10 = arith.constant 0 : index
      %c0_11 = arith.constant 0 : index
      %12 = vector.load %arg7[%c0_10, %c0_11] : memref<128x128xf32, #tpu.memory_space<vmem>>, vector<128x128xf32>
      %c0_12 = arith.constant 0 : index
      %c0_13 = arith.constant 0 : index
      %13 = vector.load %arg5[%c0_12, %c0_13] : memref<1x128xf32, #tpu.memory_space<vmem>>, vector<1x128xf32>
      %14 = vector.broadcast %13 : vector<1x128xf32> to vector<128x128xf32>
      %15 = arith.addf %12, %14 : vector<128x128xf32>
      %c0_14 = arith.constant 0 : index
      %c0_15 = arith.constant 0 : index
      %16 = vector.load %arg6[%c0_14, %c0_15] : memref<128x128xf32, #tpu.memory_space<vmem>>, vector<128x128xf32>
      tpu.vector_store %arg6[%c0_14, %c0_15], %15 {strides = array<i32>} : memref<128x128xf32, #tpu.memory_space<vmem>>, vector<128x128xf32>,
    } else {
    }
    return
  }
  func.func @transform_0(%arg0: i32, %arg1: i32, %arg2: i32) -> (i32, i32) {
    %c0_i32 = arith.constant 0 : i32
    return %arg0, %arg2 : i32, i32
  }
  func.func @transform_1(%arg0: i32, %arg1: i32, %arg2: i32) -> (i32, i32) {
    %c0_i32 = arith.constant 0 : i32
    return %arg2, %arg1 : i32, i32
  }
  func.func @transform_2(%arg0: i32, %arg1: i32, %arg2: i32) -> (i32, i32) {
    %c0_i32 = arith.constant 0 : i32
    %c0_i32_0 = arith.constant 0 : i32
    return %c0_i32, %arg1 : i32, i32
  }
  func.func @transform_3(%arg0: i32, %arg1: i32, %arg2: i32) -> (i32, i32) {
    %c0_i32 = arith.constant 0 : i32
    return %arg0, %arg1 : i32, i32
  }
}

module attributes {stable_mosaic.version = 11 : i64} {
  func.func @_matmul_bias_kernel(%arg0: i32, %arg1: i32, %arg2: i32, %arg3: memref<256x640xf32, #tpu.memory_space<vmem>>, %arg4: memref<640x128xf32, #tpu.memory_space<vmem>>, %arg5: memref<1x128xf32, #tpu.memory_space<vmem>>, %arg6: memref<256x128xf32, #tpu.memory_space<vmem>>, %arg7: memref<256x128xf32, #tpu.memory_space<vmem>>) attributes {dimension_semantics = [#tpu.dimension_semantics<parallel>, #tpu.dimension_semantics<parallel>, #tpu.dimension_semantics<arbitrary>], iteration_bounds = array<i64: 2, 1, 1>, scalar_prefetch = 0 : i64, scratch_operands = 1 : i64, tpu.core_type = #tpu.core_type<tc>, window_params = [{transform_indices = @transform_0, window_bounds = array<i64: 256, 640>}, {transform_indices = @transform_1, window_bounds = array<i64: 640, 128>}, {transform_indices = @transform_2, window_bounds = array<i64: 1, 128>}, {transform_indices = @transform_3, window_bounds = array<i64: 256, 128>}]} {
    %c0_i32 = arith.constant 0 : i32
    %0 = arith.cmpi eq, %arg2, %c0_i32 : i32
    %1 = arith.extui %0 : i1 to i32
    %c0_i32_0 = arith.constant 0 : i32
    %2 = arith.cmpi ne, %1, %c0_i32_0 : i32
    scf.if %2 {
      %cst_10 = arith.constant 0.000000e+00 : f32
      %12 = vector.broadcast %cst_10 : f32 to vector<256x128xf32>
      %c0_11 = arith.constant 0 : index
      %c0_12 = arith.constant 0 : index
      %13 = vector.load %arg7[%c0_11, %c0_12] : memref<256x128xf32, #tpu.memory_space<vmem>>, vector<256x128xf32>
      tpu.vector_store %arg7[%c0_11, %c0_12], %12 {strides = array<i32>} : memref<256x128xf32, #tpu.memory_space<vmem>>, vector<256x128xf32>,
    } else {
    }
    %c0 = arith.constant 0 : index
    %c0_1 = arith.constant 0 : index
    %3 = vector.load %arg7[%c0, %c0_1] : memref<256x128xf32, #tpu.memory_space<vmem>>, vector<256x128xf32>
    %c0_2 = arith.constant 0 : index
    %c0_3 = arith.constant 0 : index
    %4 = vector.load %arg3[%c0_2, %c0_3] : memref<256x640xf32, #tpu.memory_space<vmem>>, vector<256x640xf32>
    %c0_4 = arith.constant 0 : index
    %c0_5 = arith.constant 0 : index
    %5 = vector.load %arg4[%c0_4, %c0_5] : memref<640x128xf32, #tpu.memory_space<vmem>>, vector<640x128xf32>
    %cst = arith.constant dense<0.000000e+00> : vector<256x128xf32>
    %6 = tpu.matmul %4, %5, %cst {dimension_numbers = #tpu.dot_dimension_numbers<[1], [0], [0], [1], [0, 0, 1, 1], [], []>} : vector<256x640xf32>, vector<640x128xf32>, vector<256x128xf32> -> vector<256x128xf32>
    %7 = arith.addf %3, %6 : vector<256x128xf32>
    %c0_6 = arith.constant 0 : index
    %c0_7 = arith.constant 0 : index
    %8 = vector.load %arg7[%c0_6, %c0_7] : memref<256x128xf32, #tpu.memory_space<vmem>>, vector<256x128xf32>
    tpu.vector_store %arg7[%c0_6, %c0_7], %7 {strides = array<i32>} : memref<256x128xf32, #tpu.memory_space<vmem>>, vector<256x128xf32>,
    %c0_i32_8 = arith.constant 0 : i32
    %9 = arith.cmpi eq, %arg2, %c0_i32_8 : i32
    %10 = arith.extui %9 : i1 to i32
    %c0_i32_9 = arith.constant 0 : i32
    %11 = arith.cmpi ne, %10, %c0_i32_9 : i32
    scf.if %11 {
      %c0_10 = arith.constant 0 : index
      %c0_11 = arith.constant 0 : index
      %12 = vector.load %arg7[%c0_10, %c0_11] : memref<256x128xf32, #tpu.memory_space<vmem>>, vector<256x128xf32>
      %c0_12 = arith.constant 0 : index
      %c0_13 = arith.constant 0 : index
      %13 = vector.load %arg5[%c0_12, %c0_13] : memref<1x128xf32, #tpu.memory_space<vmem>>, vector<1x128xf32>
      %14 = vector.broadcast %13 : vector<1x128xf32> to vector<256x128xf32>
      %15 = arith.addf %12, %14 : vector<256x128xf32>
      %c0_14 = arith.constant 0 : index
      %c0_15 = arith.constant 0 : index
      %16 = vector.load %arg6[%c0_14, %c0_15] : memref<256x128xf32, #tpu.memory_space<vmem>>, vector<256x128xf32>
      tpu.vector_store %arg6[%c0_14, %c0_15], %15 {strides = array<i32>} : memref<256x128xf32, #tpu.memory_space<vmem>>, vector<256x128xf32>,
    } else {
    }
    return
  }
  func.func @transform_0(%arg0: i32, %arg1: i32, %arg2: i32) -> (i32, i32) {
    %c0_i32 = arith.constant 0 : i32
    return %arg0, %arg2 : i32, i32
  }
  func.func @transform_1(%arg0: i32, %arg1: i32, %arg2: i32) -> (i32, i32) {
    %c0_i32 = arith.constant 0 : i32
    return %arg2, %arg1 : i32, i32
  }
  func.func @transform_2(%arg0: i32, %arg1: i32, %arg2: i32) -> (i32, i32) {
    %c0_i32 = arith.constant 0 : i32
    %c0_i32_0 = arith.constant 0 : i32
    return %c0_i32, %arg1 : i32, i32
  }
  func.func @transform_3(%arg0: i32, %arg1: i32, %arg2: i32) -> (i32, i32) {
    %c0_i32 = arith.constant 0 : i32
    return %arg0, %arg1 : i32, i32
  }
}

module attributes {stable_mosaic.version = 11 : i64} {
  func.func @_matmul_bias_kernel(%arg0: i32, %arg1: i32, %arg2: i32, %arg3: memref<256x1408xf32, #tpu.memory_space<vmem>>, %arg4: memref<1408x128xf32, #tpu.memory_space<vmem>>, %arg5: memref<1x128xf32, #tpu.memory_space<vmem>>, %arg6: memref<256x128xf32, #tpu.memory_space<vmem>>, %arg7: memref<256x128xf32, #tpu.memory_space<vmem>>) attributes {dimension_semantics = [#tpu.dimension_semantics<parallel>, #tpu.dimension_semantics<parallel>, #tpu.dimension_semantics<arbitrary>], iteration_bounds = array<i64: 2, 1, 2>, scalar_prefetch = 0 : i64, scratch_operands = 1 : i64, tpu.core_type = #tpu.core_type<tc>, window_params = [{transform_indices = @transform_0, window_bounds = array<i64: 256, 1408>}, {transform_indices = @transform_1, window_bounds = array<i64: 1408, 128>}, {transform_indices = @transform_2, window_bounds = array<i64: 1, 128>}, {transform_indices = @transform_3, window_bounds = array<i64: 256, 128>}]} {
    %c0_i32 = arith.constant 0 : i32
    %0 = arith.cmpi eq, %arg2, %c0_i32 : i32
    %1 = arith.extui %0 : i1 to i32
    %c0_i32_0 = arith.constant 0 : i32
    %2 = arith.cmpi ne, %1, %c0_i32_0 : i32
    scf.if %2 {
      %cst_9 = arith.constant 0.000000e+00 : f32
      %12 = vector.broadcast %cst_9 : f32 to vector<256x128xf32>
      %c0_10 = arith.constant 0 : index
      %c0_11 = arith.constant 0 : index
      %13 = vector.load %arg7[%c0_10, %c0_11] : memref<256x128xf32, #tpu.memory_space<vmem>>, vector<256x128xf32>
      tpu.vector_store %arg7[%c0_10, %c0_11], %12 {strides = array<i32>} : memref<256x128xf32, #tpu.memory_space<vmem>>, vector<256x128xf32>,
    } else {
    }
    %c0 = arith.constant 0 : index
    %c0_1 = arith.constant 0 : index
    %3 = vector.load %arg7[%c0, %c0_1] : memref<256x128xf32, #tpu.memory_space<vmem>>, vector<256x128xf32>
    %c0_2 = arith.constant 0 : index
    %c0_3 = arith.constant 0 : index
    %4 = vector.load %arg3[%c0_2, %c0_3] : memref<256x1408xf32, #tpu.memory_space<vmem>>, vector<256x1408xf32>
    %c0_4 = arith.constant 0 : index
    %c0_5 = arith.constant 0 : index
    %5 = vector.load %arg4[%c0_4, %c0_5] : memref<1408x128xf32, #tpu.memory_space<vmem>>, vector<1408x128xf32>
    %cst = arith.constant dense<0.000000e+00> : vector<256x128xf32>
    %6 = tpu.matmul %4, %5, %cst {dimension_numbers = #tpu.dot_dimension_numbers<[1], [0], [0], [1], [0, 0, 1, 1], [], []>} : vector<256x1408xf32>, vector<1408x128xf32>, vector<256x128xf32> -> vector<256x128xf32>
    %7 = arith.addf %3, %6 : vector<256x128xf32>
    %c0_6 = arith.constant 0 : index
    %c0_7 = arith.constant 0 : index
    %8 = vector.load %arg7[%c0_6, %c0_7] : memref<256x128xf32, #tpu.memory_space<vmem>>, vector<256x128xf32>
    tpu.vector_store %arg7[%c0_6, %c0_7], %7 {strides = array<i32>} : memref<256x128xf32, #tpu.memory_space<vmem>>, vector<256x128xf32>,
    %c1_i32 = arith.constant 1 : i32
    %9 = arith.cmpi eq, %arg2, %c1_i32 : i32
    %10 = arith.extui %9 : i1 to i32
    %c0_i32_8 = arith.constant 0 : i32
    %11 = arith.cmpi ne, %10, %c0_i32_8 : i32
    scf.if %11 {
      %c0_9 = arith.constant 0 : index
      %c0_10 = arith.constant 0 : index
      %12 = vector.load %arg7[%c0_9, %c0_10] : memref<256x128xf32, #tpu.memory_space<vmem>>, vector<256x128xf32>
      %c0_11 = arith.constant 0 : index
      %c0_12 = arith.constant 0 : index
      %13 = vector.load %arg5[%c0_11, %c0_12] : memref<1x128xf32, #tpu.memory_space<vmem>>, vector<1x128xf32>
      %14 = vector.broadcast %13 : vector<1x128xf32> to vector<256x128xf32>
      %15 = arith.addf %12, %14 : vector<256x128xf32>
      %c0_13 = arith.constant 0 : index
      %c0_14 = arith.constant 0 : index
      %16 = vector.load %arg6[%c0_13, %c0_14] : memref<256x128xf32, #tpu.memory_space<vmem>>, vector<256x128xf32>
      tpu.vector_store %arg6[%c0_13, %c0_14], %15 {strides = array<i32>} : memref<256x128xf32, #tpu.memory_space<vmem>>, vector<256x128xf32>,
    } else {
    }
    return
  }
  func.func @transform_0(%arg0: i32, %arg1: i32, %arg2: i32) -> (i32, i32) {
    %c0_i32 = arith.constant 0 : i32
    return %arg0, %arg2 : i32, i32
  }
  func.func @transform_1(%arg0: i32, %arg1: i32, %arg2: i32) -> (i32, i32) {
    %c0_i32 = arith.constant 0 : i32
    return %arg2, %arg1 : i32, i32
  }
  func.func @transform_2(%arg0: i32, %arg1: i32, %arg2: i32) -> (i32, i32) {
    %c0_i32 = arith.constant 0 : i32
    %c0_i32_0 = arith.constant 0 : i32
    return %c0_i32, %arg1 : i32, i32
  }
  func.func @transform_3(%arg0: i32, %arg1: i32, %arg2: i32) -> (i32, i32) {
    %c0_i32 = arith.constant 0 : i32
    return %arg0, %arg1 : i32, i32
  }
}

</mosaic_0001>

<bundles_post_ra>
// kernel: transformer_net_pl.32
= control target key start
LH: loop header
LB: loop body
LE: loop exit
PB: predicated region body
PF: predicated region fallthrough
CT: control target
= control target key end

     0   :  { %s739_s12 = smov 0   ;;  %s1359_s0 = inlined_call_operand.vmem [shape: f32[2,256,32], index: 0, kind: input, shape index: {}]   ;;  %s1360_s1 = inlined_call_operand.vmem [shape: f32[2,1,32], index: 1, kind: input, shape index: {}]   ;;  %s1361_s2 = inlined_call_operand.vmem [shape: f32[2,1,32], index: 2, kind: input, shape index: {}]   ;;  %s1362_s3 = inlined_call_operand.vmem [shape: f32[2,256,32], index: 3, kind: output, shape index: {}]  }
   0x1 LB: > { %s686_s13 = sadd.s32 4294967295, %s717_s12   ;;  %p690_p0 = scmp.ge.s32.totalorder %s717_s12, 1  ;;  %s717_s12 = sphi %s739_s12, %s13_s12  }
   0x2   : > { %p153_p1 = scmp.lt.s32.totalorder %s717_s12, 3 }
   0x4   : > { %p154_p2 = pnand %p690_p0, %p153_p1 }
   0x5   : > { %p183_p3 = scmp.lt.s32.totalorder (!%p154_p2), %s686_s13, 1  ;;  %vm231_vm0 = vcmask (!%p154_p2), 261120  }
   0x6   : > { %157 = sbr.rel (%p154_p2) target bundleno = 227 (0xe3), region = 32 }
   0xd   : > { %s1364_s13 = smov (!%p183_p3, %s686_s13), 1 }
   0xe   : > { %s699_s14 = sshll.u32 %s1364_s13, 8  ;;  %s190_s20 = scalar_lea.vmem %s1360_s1, %s1364_s13 }
   0xf   : > { %s755_s17 = scalar_lea.vmem %s1359_s0, %s699_s14  ;;  %s193_s23 = scalar_lea.vmem %s1361_s2, %s1364_s13 }
  0x10   : > { %v758_v0 = vld [vmem:[%s755_s17] sm:$0xff]  ;;  %v761_v1 = vld [vmem:[%s755_s17 + $0x8] sm:$0xff]  ;;  %v764_v2 = vld [vmem:[%s755_s17 + $0x10] sm:$0xff]  ;;  %s1190_s26 = scalar_lea.vmem %s1362_s3, %s699_s14 }
  0x11   : > { %v767_v3 = vld [vmem:[%s755_s17 + $0x18] sm:$0xff]  ;;  %v232_v4 = vsel %vm231_vm0, %v758_v0, 0.0  ;;  %v233_v5 = vsel %vm231_vm0, %v761_v1, 0.0  ;;  %v235_v6 = vsel %vm231_vm0, %v764_v2, 0.0  ;;  %v776_v7 = vld [vmem:[%s755_s17 + $0x20] sm:$0xff]  ;;  %v781_v10 = vld [vmem:[%s755_s17 + $0x28] sm:$0xff] }
  0x12   : > { %v234_v8 = vadd.f32 %v233_v5, %v232_v4  ;;  %v237_v9 = vsel %vm231_vm0, %v767_v3, 0.0  ;;  %v239_v12 = vsel %vm231_vm0, %v776_v7, 0.0  ;;  %v786_v13 = vld [vmem:[%s755_s17 + $0x30] sm:$0xff]  ;;  %v241_v15 = vsel %vm231_vm0, %v781_v10, 0.0  ;;  %v791_v16 = vld [vmem:[%s755_s17 + $0x38] sm:$0xff]  ;;  %v796_v19 = vld [vmem:[%s755_s17 + $0x40] sm:$0xff] }
  0x13   : > { %v243_v18 = vsel %vm231_vm0, %v786_v13, 0.0  ;;  %v245_v21 = vsel %vm231_vm0, %v791_v16, 0.0  ;;  %v801_v22 = vld [vmem:[%s755_s17 + $0x48] sm:$0xff]  ;;  %v247_v24 = vsel %vm231_vm0, %v796_v19, 0.0  ;;  %v806_v25 = vld [vmem:[%s755_s17 + $0x50] sm:$0xff]  ;;  %v811_v28 = vld [vmem:[%s755_s17 + $0x58] sm:$0xff] }
  0x14   : > { %v236_v11 = vadd.f32 %v235_v6, %v234_v8  ;;  %v249_v27 = vsel %vm231_vm0, %v801_v22, 0.0  ;;  %v251_v30 = vsel %vm231_vm0, %v806_v25, 0.0  ;;  %v816_v31 = vld [vmem:[%s755_s17 + $0x60] sm:$0xff]  ;;  %v253_v33 = vsel %vm231_vm0, %v811_v28, 0.0  ;;  %v821_v34 = vld [vmem:[%s755_s17 + $0x68] sm:$0xff]  ;;  %v826_v37 = vld [vmem:[%s755_s17 + $0x70] sm:$0xff] }
  0x15   : > { %v255_v36 = vsel %vm231_vm0, %v816_v31, 0.0  ;;  %v257_v39 = vsel %vm231_vm0, %v821_v34, 0.0  ;;  %v831_v40 = vld [vmem:[%s755_s17 + $0x78] sm:$0xff]  ;;  %v259_v42 = vsel %vm231_vm0, %v826_v37, 0.0  ;;  %v836_v43 = vld [vmem:[%s755_s17 + $0x80] sm:$0xff]  ;;  %v841_v46 = vld [vmem:[%s755_s17 + $0x88] sm:$0xff] }
  0x16   : > { %v238_v14 = vadd.f32 %v237_v9, %v236_v11  ;;  %v261_v45 = vsel %vm231_vm0, %v831_v40, 0.0  ;;  %v263_v48 = vsel %vm231_vm0, %v836_v43, 0.0  ;;  %v846_v49 = vld [vmem:[%s755_s17 + $0x90] sm:$0xff]  ;;  %v265_v51 = vsel %vm231_vm0, %v841_v46, 0.0  ;;  %v851_v52 = vld [vmem:[%s755_s17 + $0x98] sm:$0xff]  ;;  %v856_v55 = vld [vmem:[%s755_s17 + $0xa0] sm:$0xff] }
  0x17   : > { %v267_v54 = vsel %vm231_vm0, %v846_v49, 0.0  ;;  %v269_v57 = vsel %vm231_vm0, %v851_v52, 0.0  ;;  %v861_v58 = vld [vmem:[%s755_s17 + $0xa8] sm:$0xff]  ;;  %v271_v60 = vsel %vm231_vm0, %v856_v55, 0.0  ;;  %v866_v61 = vld [vmem:[%s755_s17 + $0xb0] sm:$0xff]  ;;  %v871_v4 = vld [vmem:[%s755_s17 + $0xb8] sm:$0xff] }
  0x18   : > { %v240_v17 = vadd.f32 %v239_v12, %v238_v14  ;;  %v273_v63 = vsel %vm231_vm0, %v861_v58, 0.0  ;;  %v275_v6 = vsel %vm231_vm0, %v866_v61, 0.0  ;;  %v876_v8 = vld [vmem:[%s755_s17 + $0xc0] sm:$0xff]  ;;  %v277_v11 = vsel %vm231_vm0, %v871_v4, 0.0  ;;  %v881_v12 = vld [vmem:[%s755_s17 + $0xc8] sm:$0xff] }
  0x1a   : > { %v242_v20 = vadd.f32 %v241_v15, %v240_v17  ;;  %v279_v15 = vsel %vm231_vm0, %v876_v8, 0.0  ;;  %v886_v17 = vld [vmem:[%s755_s17 + $0xd0] sm:$0xff] }
  0x1c   : > { %v244_v23 = vadd.f32 %v243_v18, %v242_v20  ;;  %v281_v20 = vsel %vm231_vm0, %v881_v12, 0.0 }
  0x1e   : > { %v246_v26 = vadd.f32 %v245_v21, %v244_v23  ;;  %v891_v21 = vld [vmem:[%s755_s17 + $0xd8] sm:$0xff] }
  0x20   : > { %v248_v29 = vadd.f32 %v247_v24, %v246_v26  ;;  %v283_v24 = vsel %vm231_vm0, %v886_v17, 0.0  ;;  %v896_v26 = vld [vmem:[%s755_s17 + $0xe0] sm:$0xff] }
  0x22   : > { %v250_v32 = vadd.f32 %v249_v27, %v248_v29  ;;  %v285_v29 = vsel %vm231_vm0, %v891_v21, 0.0 }
  0x24   : > { %v252_v35 = vadd.f32 %v251_v30, %v250_v32  ;;  %v901_v30 = vld [vmem:[%s755_s17 + $0xe8] sm:$0xff] }
  0x26   : > { %v254_v38 = vadd.f32 %v253_v33, %v252_v35  ;;  %v287_v33 = vsel %vm231_vm0, %v896_v26, 0.0  ;;  %v906_v35 = vld [vmem:[%s755_s17 + $0xf0] sm:$0xff] }
  0x28   : > { %v256_v41 = vadd.f32 %v255_v36, %v254_v38  ;;  %v289_v38 = vsel %vm231_vm0, %v901_v30, 0.0 }
  0x2a   : > { %v258_v44 = vadd.f32 %v257_v39, %v256_v41  ;;  %v911_v39 = vld [vmem:[%s755_s17 + $0xf8] sm:$0xff] }
  0x2c   : > { %v260_v47 = vadd.f32 %v259_v42, %v258_v44  ;;  %v291_v42 = vsel %vm231_vm0, %v906_v35, 0.0 }
  0x2e   : > { %v262_v50 = vadd.f32 %v261_v45, %v260_v47  ;;  %v293_v45 = vsel %vm231_vm0, %v911_v39, 0.0 }
  0x30   : > { %v264_v53 = vadd.f32 %v263_v48, %v262_v50 }
  0x32   : > { %v266_v56 = vadd.f32 %v265_v51, %v264_v53 }
  0x34   : > { %v268_v59 = vadd.f32 %v267_v54, %v266_v56 }
  0x36   : > { %v270_v62 = vadd.f32 %v269_v57, %v268_v59 }
  0x38   : > { %v272_v5 = vadd.f32 %v271_v60, %v270_v62 }
  0x3a   : > { %v274_v9 = vadd.f32 %v273_v63, %v272_v5 }
  0x3c   : > { %v276_v14 = vadd.f32 %v275_v6, %v274_v9 }
  0x3e   : > { %v278_v18 = vadd.f32 %v277_v11, %v276_v14 }
  0x40   : > { %v280_v23 = vadd.f32 %v279_v15, %v278_v18 }
  0x42   : > { %v282_v27 = vadd.f32 %v281_v20, %v280_v23 }
  0x44   : > { %v284_v32 = vadd.f32 %v283_v24, %v282_v27 }
  0x46   : > { %v286_v36 = vadd.f32 %v285_v29, %v284_v32 }
  0x48   : > { %v288_v41 = vadd.f32 %v287_v33, %v286_v36 }
  0x4a   : > { %v290_v44 = vadd.f32 %v289_v38, %v288_v41 }
  0x4c   : > { %v292_v47 = vadd.f32 %v291_v42, %v290_v44 }
  0x4e   : > { %v294_v48 = vadd.f32 %v293_v45, %v292_v47 }
  0x50   : > { %v295_v50 = vrot.slane %v294_v48, 4 }
  0x52   : > { %v296_v51 = vadd.f32 %v295_v50, %v294_v48 }
  0x54   : > { %v297_v53 = vrot.slane %v296_v51, 2 }
  0x56   : > { %v298_v54 = vadd.f32 %v297_v53, %v296_v51 }
  0x58   : > { %v299_v56 = vrot.slane %v298_v54, 1 }
  0x5a   : > { %v300_v57 = vadd.f32 %v299_v56, %v298_v54 }
  0x5c   : > { %v917_v59 = vmul.f32 0.00390625, %v300_v57 }
  0x5e   : > { %v921_v60 = vsub.f32 %v758_v0, %v917_v59  ;;  %v925_v62 = vsub.f32 %v761_v1, %v917_v59  ;;  %v929_v63 = vsub.f32 %v764_v2, %v917_v59  ;;  %v933_v5 = vsub.f32 %v767_v3, %v917_v59 }
  0x5f   : > { %v937_v6 = vsub.f32 %v776_v7, %v917_v59  ;;  %v947_v2 = vsub.f32 %v781_v10, %v917_v59  ;;  %v953_v7 = vsub.f32 %v786_v13, %v917_v59  ;;  %v962_v10 = vsub.f32 %v791_v16, %v917_v59 }
  0x60   : > { %v335_v0 = vmul.f32 %v921_v60, %v921_v60  ;;  %v336_v9 = vmul.f32 %v925_v62, %v925_v62  ;;  %v337_v1 = vmul.f32 %v929_v63, %v929_v63  ;;  %v338_v3 = vmul.f32 %v933_v5, %v933_v5 }
  0x61   : > { %v339_v11 = vmul.f32 %v937_v6, %v937_v6  ;;  %v340_v23 = vmul.f32 %v947_v2, %v947_v2  ;;  %v969_v27 = vsub.f32 %v796_v19, %v917_v59  ;;  %v341_v29 = vmul.f32 %v953_v7, %v953_v7 }
  0x62   : > { %v367_v14 = vsel %vm231_vm0, %v335_v0, 0.0  ;;  %v368_v15 = vsel %vm231_vm0, %v336_v9, 0.0  ;;  %v370_v18 = vsel %vm231_vm0, %v337_v1, 0.0  ;;  %v372_v13 = vsel %vm231_vm0, %v338_v3, 0.0 }
  0x63   : > { %v369_v20 = vadd.f32 %v368_v15, %v367_v14  ;;  %v374_v32 = vsel %vm231_vm0, %v339_v11, 0.0  ;;  %v976_v16 = vsub.f32 %v801_v22, %v917_v59  ;;  %v342_v36 = vmul.f32 %v962_v10, %v962_v10 }
  0x64   : > { %v376_v38 = vsel %vm231_vm0, %v340_v23, 0.0  ;;  %v983_v19 = vsub.f32 %v806_v25, %v917_v59  ;;  %v343_v42 = vmul.f32 %v969_v27, %v969_v27  ;;  %v378_v44 = vsel %vm231_vm0, %v341_v29, 0.0 }
  0x65   : > { %v371_v24 = vadd.f32 %v370_v18, %v369_v20  ;;  %v990_v22 = vsub.f32 %v811_v28, %v917_v59  ;;  %v344_v47 = vmul.f32 %v976_v16, %v976_v16  ;;  %v380_v48 = vsel %vm231_vm0, %v342_v36, 0.0 }
  0x66   : > { %v997_v25 = vsub.f32 %v816_v31, %v917_v59  ;;  %v345_v51 = vmul.f32 %v983_v19, %v983_v19  ;;  %v382_v53 = vsel %vm231_vm0, %v343_v42, 0.0  ;;  %v1004_v28 = vsub.f32 %v821_v34, %v917_v59 }
  0x67   : > { %v373_v33 = vadd.f32 %v372_v13, %v371_v24  ;;  %v346_v56 = vmul.f32 %v990_v22, %v990_v22  ;;  %v384_v57 = vsel %vm231_vm0, %v344_v47, 0.0  ;;  %v1011_v31 = vsub.f32 %v826_v37, %v917_v59 }
  0x68   : > { %v347_v9 = vmul.f32 %v997_v25, %v997_v25  ;;  %v386_v1 = vsel %vm231_vm0, %v345_v51, 0.0  ;;  %v1018_v34 = vsub.f32 %v831_v40, %v917_v59  ;;  %v348_v11 = vmul.f32 %v1004_v28, %v1004_v28 }
  0x69   : > { %v375_v41 = vadd.f32 %v374_v32, %v373_v33  ;;  %v388_v14 = vsel %vm231_vm0, %v346_v56, 0.0  ;;  %v1025_v37 = vsub.f32 %v836_v43, %v917_v59  ;;  %v349_v18 = vmul.f32 %v1011_v31, %v1011_v31 }
  0x6a   : > { %v390_v20 = vsel %vm231_vm0, %v347_v9, 0.0  ;;  %v1032_v40 = vsub.f32 %v841_v46, %v917_v59  ;;  %v350_v13 = vmul.f32 %v1018_v34, %v1018_v34  ;;  %v392_v24 = vsel %vm231_vm0, %v348_v11, 0.0 }
  0x6b   : > { %v377_v45 = vadd.f32 %v376_v38, %v375_v41  ;;  %v1039_v43 = vsub.f32 %v846_v49, %v917_v59  ;;  %v351_v32 = vmul.f32 %v1025_v37, %v1025_v37  ;;  %v394_v33 = vsel %vm231_vm0, %v349_v18, 0.0 }
  0x6c   : > { %v1046_v46 = vsub.f32 %v851_v52, %v917_v59  ;;  %v352_v38 = vmul.f32 %v1032_v40, %v1032_v40  ;;  %v396_v41 = vsel %vm231_vm0, %v350_v13, 0.0  ;;  %v1053_v49 = vsub.f32 %v856_v55, %v917_v59 }
  0x6d   : > { %v379_v50 = vadd.f32 %v378_v44, %v377_v45  ;;  %v353_v44 = vmul.f32 %v1039_v43, %v1039_v43  ;;  %v398_v45 = vsel %vm231_vm0, %v351_v32, 0.0  ;;  %v1060_v52 = vsub.f32 %v861_v58, %v917_v59 }
  0x6e   : > { %v1067_v55 = vsub.f32 %v866_v61, %v917_v59  ;;  %v1074_v58 = vsub.f32 %v871_v4, %v917_v59  ;;  %v1081_v61 = vsub.f32 %v876_v8, %v917_v59  ;;  %v1088_v4 = vsub.f32 %v881_v12, %v917_v59 }
  0x6f   : > { %v381_v54 = vadd.f32 %v380_v48, %v379_v50  ;;  %v354_v48 = vmul.f32 %v1046_v46, %v1046_v46  ;;  %v400_v50 = vsel %vm231_vm0, %v352_v38, 0.0  ;;  %v1095_v8 = vsub.f32 %v886_v17, %v917_v59 }
  0x70   : > { %v1102_v12 = vsub.f32 %v891_v21, %v917_v59  ;;  %v1109_v17 = vsub.f32 %v896_v26, %v917_v59  ;;  %v1116_v21 = vsub.f32 %v901_v30, %v917_v59  ;;  %v1123_v26 = vsub.f32 %v906_v35, %v917_v59 }
  0x71   : > { %v383_v0 = vadd.f32 %v382_v53, %v381_v54  ;;  %v355_v53 = vmul.f32 %v1053_v49, %v1053_v49  ;;  %v402_v54 = vsel %vm231_vm0, %v353_v44, 0.0  ;;  %v1130_v30 = vsub.f32 %v911_v39, %v917_v59 }
  0x72   : > { %v365_v35 = vmul.f32 %v1123_v26, %v1123_v26 }
  0x73   : > { %v385_v3 = vadd.f32 %v384_v57, %v383_v0  ;;  %v356_v57 = vmul.f32 %v1060_v52, %v1060_v52  ;;  %v404_v0 = vsel %vm231_vm0, %v354_v48, 0.0 }
  0x74   : > { %v426_v59 = vsel %vm231_vm0, %v365_v35, 0.0 }
  0x75   : > { %v387_v15 = vadd.f32 %v386_v1, %v385_v3  ;;  %v357_v1 = vmul.f32 %v1067_v55, %v1067_v55  ;;  %v406_v3 = vsel %vm231_vm0, %v355_v53, 0.0 }
  0x77   : > { %v389_v23 = vadd.f32 %v388_v14, %v387_v15  ;;  %v358_v14 = vmul.f32 %v1074_v58, %v1074_v58  ;;  %v408_v15 = vsel %vm231_vm0, %v356_v57, 0.0  ;;  %v366_v57 = vmul.f32 %v1130_v30, %v1130_v30 }
  0x79   : > { %v391_v29 = vadd.f32 %v390_v20, %v389_v23  ;;  %v359_v20 = vmul.f32 %v1081_v61, %v1081_v61  ;;  %v410_v23 = vsel %vm231_vm0, %v357_v1, 0.0  ;;  %v428_v1 = vsel %vm231_vm0, %v366_v57, 0.0 }
  0x7b   : > { %v393_v36 = vadd.f32 %v392_v24, %v391_v29  ;;  %v360_v24 = vmul.f32 %v1088_v4, %v1088_v4  ;;  %v412_v29 = vsel %vm231_vm0, %v358_v14, 0.0 }
  0x7d   : > { %v395_v42 = vadd.f32 %v394_v33, %v393_v36  ;;  %v361_v33 = vmul.f32 %v1095_v8, %v1095_v8  ;;  %v414_v36 = vsel %vm231_vm0, %v359_v20, 0.0 }
  0x7f   : > { %v397_v47 = vadd.f32 %v396_v41, %v395_v42  ;;  %v362_v41 = vmul.f32 %v1102_v12, %v1102_v12  ;;  %v416_v42 = vsel %vm231_vm0, %v360_v24, 0.0 }
  0x81   : > { %v399_v51 = vadd.f32 %v398_v45, %v397_v47  ;;  %v363_v45 = vmul.f32 %v1109_v17, %v1109_v17  ;;  %v418_v47 = vsel %vm231_vm0, %v361_v33, 0.0  ;;  %v1153_v33 = vld [vmem:[%s190_s20] ss:$0 sm:$0xff] }
  0x83   : > { %v401_v56 = vadd.f32 %v400_v50, %v399_v51  ;;  %v364_v50 = vmul.f32 %v1116_v21, %v1116_v21  ;;  %v420_v51 = vsel %vm231_vm0, %v362_v41, 0.0 }
  0x85   : > { %v403_v9 = vadd.f32 %v402_v54, %v401_v56  ;;  %v422_v54 = vsel %vm231_vm0, %v363_v45, 0.0 }
  0x87   : > { %v405_v11 = vadd.f32 %v404_v0, %v403_v9  ;;  %v424_v0 = vsel %vm231_vm0, %v364_v50, 0.0 }
  0x89   : > { %v407_v18 = vadd.f32 %v406_v3, %v405_v11 }
  0x8b   : > { %v409_v13 = vadd.f32 %v408_v15, %v407_v18 }
  0x8d   : > { %v411_v32 = vadd.f32 %v410_v23, %v409_v13 }
  0x8f   : > { %v413_v38 = vadd.f32 %v412_v29, %v411_v32 }
  0x91   : > { %v415_v44 = vadd.f32 %v414_v36, %v413_v38 }
  0x93   : > { %v417_v48 = vadd.f32 %v416_v42, %v415_v44  ;;  %v1163_v44 = vld [vmem:[%s193_s23] ss:$0 sm:$0xff] }
  0x95   : > { %v419_v53 = vadd.f32 %v418_v47, %v417_v48 }
  0x97   : > { %v421_v56 = vadd.f32 %v420_v51, %v419_v53 }
  0x99   : > { %v423_v39 = vadd.f32 %v422_v54, %v421_v56 }
  0x9b   : > { %v425_v9 = vadd.f32 %v424_v0, %v423_v39 }
  0x9d   : > { %v427_v3 = vadd.f32 %v426_v59, %v425_v9 }
  0x9f   : > { %v429_v11 = vadd.f32 %v428_v1, %v427_v3 }
  0xa1   : > { %v430_v14 = vrot.slane %v429_v11, 4 }
  0xa3   : > { %v431_v15 = vadd.f32 %v430_v14, %v429_v11 }
  0xa5   : > { %v432_v18 = vrot.slane %v431_v15, 2 }
  0xa7   : > { %v433_v20 = vadd.f32 %v432_v18, %v431_v15 }
  0xa9   : > { %v434_v23 = vrot.slane %v433_v20, 1 }
  0xab   : > { %v435_v13 = vadd.f32 %v434_v23, %v433_v20 }
  0xad   : > { %v436_v24 = vmul.f32 0.00390625, %v435_v13 }
  0xaf   : > { %v437_v29 = vadd.f32 1e-05, %v436_v24 }
  0xb1   : > { %709 = vrsqrt.f32 %v437_v29 }
  0xbb   : > { %v1151_v32 = vpop.eup %709 }
  0xbc   : > { %v439_v36 = vmul.f32 %v1151_v32, %v921_v60  ;;  %v440_v38 = vmul.f32 %v1151_v32, %v925_v62  ;;  %v441_v41 = vmul.f32 %v1151_v32, %v929_v63  ;;  %v442_v42 = vmul.f32 %v1151_v32, %v933_v5 }
  0xbd   : > { %v443_v45 = vmul.f32 %v1151_v32, %v937_v6  ;;  %v444_v47 = vmul.f32 %v1151_v32, %v947_v2  ;;  %v445_v60 = vmul.f32 %v1151_v32, %v953_v7  ;;  %v446_v62 = vmul.f32 %v1151_v32, %v962_v10 }
  0xbe   : > { %v478_v63 = vmul.f32 %v1153_v33, %v439_v36  ;;  %v479_v48 = vmul.f32 %v1153_v33, %v440_v38  ;;  %v480_v5 = vmul.f32 %v1153_v33, %v441_v41  ;;  %v481_v50 = vmul.f32 %v1153_v33, %v442_v42 }
  0xbf   : > { %v482_v6 = vmul.f32 %v1153_v33, %v443_v45  ;;  %v483_v51 = vmul.f32 %v1153_v33, %v444_v47  ;;  %v484_v2 = vmul.f32 %v1153_v33, %v445_v60  ;;  %v485_v53 = vmul.f32 %v1153_v33, %v446_v62 }
  0xc0   : > { %v517_v7 = vadd.f32 %v1163_v44, %v478_v63  ;;  %v518_v10 = vadd.f32 %v1163_v44, %v479_v48  ;;  %v519_v35 = vadd.f32 %v1163_v44, %v480_v5  ;;  %v520_v54 = vadd.f32 %v1163_v44, %v481_v50 }
  0xc1   : > { %v521_v56 = vadd.f32 %v1163_v44, %v482_v6  ;;  %v522_v57 = vadd.f32 %v1163_v44, %v483_v51  ;;  %v523_v0 = vadd.f32 %v1163_v44, %v484_v2  ;;  %v524_v39 = vadd.f32 %v1163_v44, %v485_v53 }
  0xc2   : > { %v549_v59 = vmax.f32 %v517_v7, 0.0  ;;  %v550_v9 = vmax.f32 %v518_v10, 0.0  ;;  %v551_v1 = vmax.f32 %v519_v35, 0.0  ;;  %v552_v3 = vmax.f32 %v520_v54, 0.0 }
  0xc3   : > { %v553_v11 = vmax.f32 %v521_v56, 0.0  ;;  %v554_v14 = vmax.f32 %v522_v57, 0.0  ;;  %v555_v15 = vmax.f32 %v523_v0, 0.0  ;;  %v556_v18 = vmax.f32 %v524_v39, 0.0 }
  0xc4   : > { %581 = vst.msk [vmem:[%s1190_s26] sm:$0xff] %vm231_vm0, %v549_v59  ;;  %582 = vst.msk [vmem:[%s1190_s26 + $0x8] sm:$0xff] %vm231_vm0, %v550_v9  ;;  %v447_v20 = vmul.f32 %v1151_v32, %v969_v27  ;;  %v448_v23 = vmul.f32 %v1151_v32, %v976_v16  ;;  %v449_v13 = vmul.f32 %v1151_v32, %v983_v19 }
  0xc5   : > { %583 = vst.msk [vmem:[%s1190_s26 + $0x10] sm:$0xff] %vm231_vm0, %v551_v1  ;;  %584 = vst.msk [vmem:[%s1190_s26 + $0x18] sm:$0xff] %vm231_vm0, %v552_v3  ;;  %v450_v24 = vmul.f32 %v1151_v32, %v990_v22  ;;  %v451_v27 = vmul.f32 %v1151_v32, %v997_v25  ;;  %v452_v16 = vmul.f32 %v1151_v32, %v1004_v28 }
  0xc6   : > { %585 = vst.msk [vmem:[%s1190_s26 + $0x20] sm:$0xff] %vm231_vm0, %v553_v11  ;;  %586 = vst.msk [vmem:[%s1190_s26 + $0x28] sm:$0xff] %vm231_vm0, %v554_v14  ;;  %v453_v19 = vmul.f32 %v1151_v32, %v1011_v31  ;;  %v454_v22 = vmul.f32 %v1151_v32, %v1018_v34  ;;  %v486_v29 = vmul.f32 %v1153_v33, %v447_v20 }
  0xc7   : > { %587 = vst.msk [vmem:[%s1190_s26 + $0x30] sm:$0xff] %vm231_vm0, %v555_v15  ;;  %588 = vst.msk [vmem:[%s1190_s26 + $0x38] sm:$0xff] %vm231_vm0, %v556_v18  ;;  %v487_v36 = vmul.f32 %v1153_v33, %v448_v23  ;;  %v488_v38 = vmul.f32 %v1153_v33, %v449_v13  ;;  %v489_v41 = vmul.f32 %v1153_v33, %v450_v24 }
  0xc8   : > { %v490_v42 = vmul.f32 %v1153_v33, %v451_v27  ;;  %v491_v25 = vmul.f32 %v1153_v33, %v452_v16  ;;  %v492_v28 = vmul.f32 %v1153_v33, %v453_v19  ;;  %v493_v45 = vmul.f32 %v1153_v33, %v454_v22 }
  0xc9   : > { %v525_v31 = vadd.f32 %v1163_v44, %v486_v29  ;;  %v526_v34 = vadd.f32 %v1163_v44, %v487_v36  ;;  %v527_v47 = vadd.f32 %v1163_v44, %v488_v38  ;;  %v528_v60 = vadd.f32 %v1163_v44, %v489_v41 }
  0xca   : > { %v529_v62 = vadd.f32 %v1163_v44, %v490_v42  ;;  %v530_v63 = vadd.f32 %v1163_v44, %v491_v25  ;;  %v531_v48 = vadd.f32 %v1163_v44, %v492_v28  ;;  %v532_v5 = vadd.f32 %v1163_v44, %v493_v45 }
  0xcb   : > { %v557_v50 = vmax.f32 %v525_v31, 0.0  ;;  %v558_v6 = vmax.f32 %v526_v34, 0.0  ;;  %v559_v51 = vmax.f32 %v527_v47, 0.0  ;;  %v560_v2 = vmax.f32 %v528_v60, 0.0 }
  0xcc   : > { %v561_v53 = vmax.f32 %v529_v62, 0.0  ;;  %v562_v7 = vmax.f32 %v530_v63, 0.0  ;;  %v563_v10 = vmax.f32 %v531_v48, 0.0  ;;  %v564_v35 = vmax.f32 %v532_v5, 0.0 }
  0xcd   : > { %589 = vst.msk [vmem:[%s1190_s26 + $0x40] sm:$0xff] %vm231_vm0, %v557_v50  ;;  %590 = vst.msk [vmem:[%s1190_s26 + $0x48] sm:$0xff] %vm231_vm0, %v558_v6  ;;  %v455_v54 = vmul.f32 %v1151_v32, %v1025_v37  ;;  %v456_v56 = vmul.f32 %v1151_v32, %v1032_v40  ;;  %v457_v57 = vmul.f32 %v1151_v32, %v1039_v43 }
  0xce   : > { %591 = vst.msk [vmem:[%s1190_s26 + $0x50] sm:$0xff] %vm231_vm0, %v559_v51  ;;  %592 = vst.msk [vmem:[%s1190_s26 + $0x58] sm:$0xff] %vm231_vm0, %v560_v2  ;;  %v458_v0 = vmul.f32 %v1151_v32, %v1046_v46  ;;  %v459_v37 = vmul.f32 %v1151_v32, %v1053_v49  ;;  %v460_v40 = vmul.f32 %v1151_v32, %v1060_v52 }
  0xcf   : > { %593 = vst.msk [vmem:[%s1190_s26 + $0x60] sm:$0xff] %vm231_vm0, %v561_v53  ;;  %594 = vst.msk [vmem:[%s1190_s26 + $0x68] sm:$0xff] %vm231_vm0, %v562_v7  ;;  %v461_v43 = vmul.f32 %v1151_v32, %v1067_v55  ;;  %v462_v46 = vmul.f32 %v1151_v32, %v1074_v58  ;;  %v494_v39 = vmul.f32 %v1153_v33, %v455_v54 }
  0xd0   : > { %595 = vst.msk [vmem:[%s1190_s26 + $0x70] sm:$0xff] %vm231_vm0, %v563_v10  ;;  %596 = vst.msk [vmem:[%s1190_s26 + $0x78] sm:$0xff] %vm231_vm0, %v564_v35  ;;  %v495_v59 = vmul.f32 %v1153_v33, %v456_v56  ;;  %v496_v9 = vmul.f32 %v1153_v33, %v457_v57  ;;  %v497_v1 = vmul.f32 %v1153_v33, %v458_v0 }
  0xd1   : > { %v498_v3 = vmul.f32 %v1153_v33, %v459_v37  ;;  %v499_v49 = vmul.f32 %v1153_v33, %v460_v40  ;;  %v500_v52 = vmul.f32 %v1153_v33, %v461_v43  ;;  %v501_v11 = vmul.f32 %v1153_v33, %v462_v46 }
  0xd2   : > { %v533_v55 = vadd.f32 %v1163_v44, %v494_v39  ;;  %v534_v58 = vadd.f32 %v1163_v44, %v495_v59  ;;  %v535_v14 = vadd.f32 %v1163_v44, %v496_v9  ;;  %v536_v15 = vadd.f32 %v1163_v44, %v497_v1 }
  0xd3   : > { %v537_v18 = vadd.f32 %v1163_v44, %v498_v3  ;;  %v538_v20 = vadd.f32 %v1163_v44, %v499_v49  ;;  %v539_v23 = vadd.f32 %v1163_v44, %v500_v52  ;;  %v540_v13 = vadd.f32 %v1163_v44, %v501_v11 }
  0xd4   : > { %v565_v24 = vmax.f32 %v533_v55, 0.0  ;;  %v566_v27 = vmax.f32 %v534_v58, 0.0  ;;  %v567_v16 = vmax.f32 %v535_v14, 0.0  ;;  %v568_v19 = vmax.f32 %v536_v15, 0.0 }
  0xd5   : > { %v569_v22 = vmax.f32 %v537_v18, 0.0  ;;  %v570_v29 = vmax.f32 %v538_v20, 0.0  ;;  %v571_v36 = vmax.f32 %v539_v23, 0.0  ;;  %v572_v38 = vmax.f32 %v540_v13, 0.0 }
  0xd6   : > { %597 = vst.msk [vmem:[%s1190_s26 + $0x80] sm:$0xff] %vm231_vm0, %v565_v24  ;;  %598 = vst.msk [vmem:[%s1190_s26 + $0x88] sm:$0xff] %vm231_vm0, %v566_v27  ;;  %v463_v41 = vmul.f32 %v1151_v32, %v1081_v61  ;;  %v464_v42 = vmul.f32 %v1151_v32, %v1088_v4  ;;  %v465_v25 = vmul.f32 %v1151_v32, %v1095_v8 }
  0xd7   : > { %599 = vst.msk [vmem:[%s1190_s26 + $0x90] sm:$0xff] %vm231_vm0, %v567_v16  ;;  %600 = vst.msk [vmem:[%s1190_s26 + $0x98] sm:$0xff] %vm231_vm0, %v568_v19  ;;  %v466_v28 = vmul.f32 %v1151_v32, %v1102_v12  ;;  %v467_v61 = vmul.f32 %v1151_v32, %v1109_v17  ;;  %v468_v4 = vmul.f32 %v1151_v32, %v1116_v21 }
  0xd8   : > { %601 = vst.msk [vmem:[%s1190_s26 + $0xa0] sm:$0xff] %vm231_vm0, %v569_v22  ;;  %602 = vst.msk [vmem:[%s1190_s26 + $0xa8] sm:$0xff] %vm231_vm0, %v570_v29  ;;  %v469_v8 = vmul.f32 %v1151_v32, %v1123_v26  ;;  %v470_v12 = vmul.f32 %v1151_v32, %v1130_v30  ;;  %v502_v45 = vmul.f32 %v1153_v33, %v463_v41 }
  0xd9   : > { %603 = vst.msk [vmem:[%s1190_s26 + $0xb0] sm:$0xff] %vm231_vm0, %v571_v36  ;;  %604 = vst.msk [vmem:[%s1190_s26 + $0xb8] sm:$0xff] %vm231_vm0, %v572_v38  ;;  %v503_v31 = vmul.f32 %v1153_v33, %v464_v42  ;;  %v504_v34 = vmul.f32 %v1153_v33, %v465_v25  ;;  %v505_v47 = vmul.f32 %v1153_v33, %v466_v28 }
  0xda   : > { %v506_v60 = vmul.f32 %v1153_v33, %v467_v61  ;;  %v507_v17 = vmul.f32 %v1153_v33, %v468_v4  ;;  %v508_v21 = vmul.f32 %v1153_v33, %v469_v8  ;;  %v509_v62 = vmul.f32 %v1153_v33, %v470_v12 }
  0xdb   : > { %v541_v26 = vadd.f32 %v1163_v44, %v502_v45  ;;  %v542_v30 = vadd.f32 %v1163_v44, %v503_v31  ;;  %v543_v32 = vadd.f32 %v1163_v44, %v504_v34  ;;  %v544_v63 = vadd.f32 %v1163_v44, %v505_v47 }
  0xdc   : > { %v545_v48 = vadd.f32 %v1163_v44, %v506_v60  ;;  %v546_v5 = vadd.f32 %v1163_v44, %v507_v17  ;;  %v547_v33 = vadd.f32 %v1163_v44, %v508_v21  ;;  %v548_v50 = vadd.f32 %v1163_v44, %v509_v62 }
  0xdd   : > { %v573_v6 = vmax.f32 %v541_v26, 0.0  ;;  %v574_v51 = vmax.f32 %v542_v30, 0.0  ;;  %v575_v2 = vmax.f32 %v543_v32, 0.0  ;;  %v576_v53 = vmax.f32 %v544_v63, 0.0 }
  0xde   : > { %v577_v7 = vmax.f32 %v545_v48, 0.0  ;;  %v578_v10 = vmax.f32 %v546_v5, 0.0  ;;  %v579_v35 = vmax.f32 %v547_v33, 0.0  ;;  %v580_v54 = vmax.f32 %v548_v50, 0.0 }
  0xdf   : > { %605 = vst.msk [vmem:[%s1190_s26 + $0xc0] sm:$0xff] %vm231_vm0, %v573_v6  ;;  %606 = vst.msk [vmem:[%s1190_s26 + $0xc8] sm:$0xff] %vm231_vm0, %v574_v51 }
  0xe0   : > { %607 = vst.msk [vmem:[%s1190_s26 + $0xd0] sm:$0xff] %vm231_vm0, %v575_v2  ;;  %608 = vst.msk [vmem:[%s1190_s26 + $0xd8] sm:$0xff] %vm231_vm0, %v576_v53 }
  0xe1   : > { %609 = vst.msk [vmem:[%s1190_s26 + $0xe0] sm:$0xff] %vm231_vm0, %v577_v7  ;;  %610 = vst.msk [vmem:[%s1190_s26 + $0xe8] sm:$0xff] %vm231_vm0, %v578_v10 }
  0xe2   : > { %611 = vst.msk [vmem:[%s1190_s26 + $0xf0] sm:$0xff] %vm231_vm0, %v579_v35  ;;  %612 = vst.msk [vmem:[%s1190_s26 + $0xf8] sm:$0xff] %vm231_vm0, %v580_v54 }
  0xe3 PF: > { %s13_s12 = sadd.s32 1, %s717_s12  }
  0xe4   : > { %p10_p4 = scmp.ge.s32.totalorder %s13_s12, 4  }
  0xe6   :  { %12 = sbr.rel (!%p10_p4) target bundleno = 1 (0x1), region = 68 }

// kernel: transformer_net_pl.31
= control target key start
LH: loop header
LB: loop body
LE: loop exit
PB: predicated region body
PF: predicated region fallthrough
CT: control target
= control target key end

     0   :  { %s1106_s12 = smov 0   ;;  %s1108_s13 = smov 0   ;;  %s1408_s0 = inlined_call_operand.vmem [shape: f32[512,256], index: 0, kind: input, shape index: {}]   ;;  %s1409_s1 = inlined_call_operand.vmem [shape: f32[256,128], index: 1, kind: input, shape index: {}]   ;;  %s1410_s2 = inlined_call_operand.vmem [shape: f32[1,128], index: 2, kind: input, shape index: {}]   ;;  %s1411_s3 = inlined_call_operand.vmem [shape: f32[512,128], index: 3, kind: output, shape index: {}]  }
   0x1   :  { %s1110_s14 = smov 0  }
   0x2 LB: > { %s32_s15 = sadd.s32 1, %s1079_s13  ;;  %p946_p0 = scmp.ge.s32.totalorder %s1083_s14, 1  ;;  %s1083_s14 = sphi %s1110_s14, %s13_s14   ;;  %s1079_s13 = sphi %s1108_s13, %s1413_s13   ;;  %s1075_s12 = sphi %s1106_s12, %s1412_s12  }
   0x3   : > { %p34_p1 = scmp.ge.s32.totalorder %s32_s15, 2  ;;  %p191_p2 = scmp.lt.s32.totalorder %s1083_s14, 3 }
   0x5   : > { %s1415_s15 = smov (%p34_p1, %s32_s15), 0  ;;  %p192_p3 = pnand %p946_p0, %p191_p2 }
   0x6   : > { %v399_v0 = vld [vmem:[%s1409_s1] sm:$0xff] (!%p192_p3)  ;;  %v400_v1 = vld [vmem:[%s1409_s1 + $0x8] sm:$0xff] (!%p192_p3)  ;;  %v401_v2 = vld [vmem:[%s1409_s1 + $0x10] sm:$0xff] (!%p192_p3)  ;;  %s947_s22 = sshll.u32 (!%p192_p3), %s1075_s12, 5  ;;  %v1085_v3 = vmov (!%p192_p3), 0.0|0.0  }
   0x7   : > { %195 = sbr.rel (%p192_p3) target bundleno = 347 (0x15b), region = 32  ;;  %956 = vmatprep.subr.bf16.mxu0 (!%p192_p3), %v1085_v3  ;;  %1004 = vmatprep.subr.bf16.mxu1 (!%p192_p3), %v1085_v3  ;;  %v957_v4 = vpack.c.bf16 (!%p192_p3), %v400_v1, %v399_v0  ;;  %v402_v5 = vld [vmem:[%s1409_s1 + $0x18] sm:$0xff] (!%p192_p3)  ;;  %p236_p4 = scmp.lt.s32.totalorder (!%p192_p3), %s947_s22, 63  ;;  %v403_v7 = vld [vmem:[%s1409_s1 + $0x20] sm:$0xff] (!%p192_p3)  ;;  %v404_v8 = vld [vmem:[%s1409_s1 + $0x28] sm:$0xff] (!%p192_p3) }
   0x8   : > { %v960_v6 = vpack.c.bf16 (!%p192_p3), %v402_v5, %v401_v2  ;;  %v963_v9 = vpack.c.bf16 (!%p192_p3), %v404_v8, %v403_v7  ;;  %v405_v10 = vld [vmem:[%s1409_s1 + $0x30] sm:$0xff] (!%p192_p3)  ;;  %v406_v11 = vld [vmem:[%s1409_s1 + $0x38] sm:$0xff] (!%p192_p3)  ;;  %v407_v15 = vld [vmem:[%s1409_s1 + $0x40] sm:$0xff] (!%p192_p3) }
   0x9   : > { %958 = vmatpush1.bf16.msra.mxu0 (!%p192_p3), %v957_v4  ;;  %1020 = vmatpush1.bf16.msra.mxu1 (!%p192_p3), %v957_v4  ;;  %v966_v13 = vpack.c.bf16 (!%p192_p3), %v406_v11, %v405_v10  ;;  %v408_v16 = vld [vmem:[%s1409_s1 + $0x48] sm:$0xff] (!%p192_p3)  ;;  %v409_v18 = vld [vmem:[%s1409_s1 + $0x50] sm:$0xff] (!%p192_p3)  ;;  %v410_v19 = vld [vmem:[%s1409_s1 + $0x58] sm:$0xff] (!%p192_p3) }
   0xa   : > { %959 = vmatprep.subr.bf16.mxu0 (!%p192_p3), %v1085_v3  ;;  %1005 = vmatprep.subr.bf16.mxu1 (!%p192_p3), %v1085_v3  ;;  %v969_v17 = vpack.c.bf16 (!%p192_p3), %v408_v16, %v407_v15  ;;  %v972_v20 = vpack.c.bf16 (!%p192_p3), %v410_v19, %v409_v18  ;;  %v411_v21 = vld [vmem:[%s1409_s1 + $0x60] sm:$0xff] (!%p192_p3)  ;;  %v412_v22 = vld [vmem:[%s1409_s1 + $0x68] sm:$0xff] (!%p192_p3)  ;;  %v413_v24 = vld [vmem:[%s1409_s1 + $0x70] sm:$0xff] (!%p192_p3) }
   0xb   : > { %v975_v23 = vpack.c.bf16 (!%p192_p3), %v412_v22, %v411_v21  ;;  %v414_v25 = vld [vmem:[%s1409_s1 + $0x78] sm:$0xff] (!%p192_p3)  ;;  %v415_v27 = vld [vmem:[%s1409_s1 + $0x80] sm:$0xff] (!%p192_p3)  ;;  %v416_v28 = vld [vmem:[%s1409_s1 + $0x88] sm:$0xff] (!%p192_p3) }
   0xc   : > { %v978_v26 = vpack.c.bf16 (!%p192_p3), %v414_v25, %v413_v24  ;;  %v981_v29 = vpack.c.bf16 (!%p192_p3), %v416_v28, %v415_v27  ;;  %v417_v30 = vld [vmem:[%s1409_s1 + $0x90] sm:$0xff] (!%p192_p3)  ;;  %v418_v31 = vld [vmem:[%s1409_s1 + $0x98] sm:$0xff] (!%p192_p3)  ;;  %v419_v33 = vld [vmem:[%s1409_s1 + $0xa0] sm:$0xff] (!%p192_p3) }
   0xd   : > { %961 = vmatpush1.bf16.msra.mxu0 (!%p192_p3), %v960_v6  ;;  %1021 = vmatpush1.bf16.msra.mxu1 (!%p192_p3), %v960_v6  ;;  %v984_v32 = vpack.c.bf16 (!%p192_p3), %v418_v31, %v417_v30  ;;  %v420_v34 = vld [vmem:[%s1409_s1 + $0xa8] sm:$0xff] (!%p192_p3)  ;;  %v421_v36 = vld [vmem:[%s1409_s1 + $0xb0] sm:$0xff] (!%p192_p3)  ;;  %v422_v37 = vld [vmem:[%s1409_s1 + $0xb8] sm:$0xff] (!%p192_p3) }
   0xe   : > { %s1417_s22 = smov (!%p236_p4, %s947_s22), 63  ;;  %962 = vmatprep.subr.bf16.mxu0 %v1085_v3  ;;  %1006 = vmatprep.subr.bf16.mxu1 %v1085_v3  ;;  %v987_v35 = vpack.c.bf16 %v420_v34, %v419_v33  ;;  %v990_v38 = vpack.c.bf16 %v422_v37, %v421_v36  ;;  %v423_v39 = vld [vmem:[%s1409_s1 + $0xc0] sm:$0xff]  ;;  %v424_v40 = vld [vmem:[%s1409_s1 + $0xc8] sm:$0xff]  ;;  %v425_v42 = vld [vmem:[%s1409_s1 + $0xd0] sm:$0xff] }
   0xf   : > { %s955_s29 = sshll.u32 %s1417_s22, 4  ;;  %v993_v41 = vpack.c.bf16 %v424_v40, %v423_v39  ;;  %v426_v43 = vld [vmem:[%s1409_s1 + $0xd8] sm:$0xff]  ;;  %v427_v45 = vld [vmem:[%s1409_s1 + $0xe0] sm:$0xff]  ;;  %v428_v46 = vld [vmem:[%s1409_s1 + $0xe8] sm:$0xff]  ;;  %s951_s17 = sshll.u32 %s1417_s22, 3 }
  0x10   : > { %s1152_s5 = scalar_lea.vmem %s1408_s0, %s955_s29  ;;  %v996_v44 = vpack.c.bf16 %v426_v43, %v425_v42  ;;  %v999_v47 = vpack.c.bf16 %v428_v46, %v427_v45  ;;  %v429_v48 = vld [vmem:[%s1409_s1 + $0xf0] sm:$0xff]  ;;  %v430_v49 = vld [vmem:[%s1409_s1 + $0xf8] sm:$0xff]  ;;  %s1333_s23 = scalar_lea.vmem %s1411_s3, %s951_s17 }
  0x11   : > { %v336_v12 = vld [vmem:[%s1152_s5 + $0x8] sm:$0xff]  ;;  %964 = vmatpush1.bf16.msra.mxu0 %v963_v9  ;;  %1022 = vmatpush1.bf16.msra.mxu1 %v963_v9  ;;  %v1002_v50 = vpack.c.bf16 %v430_v49, %v429_v48  ;;  %v335_v51 = vld [vmem:[%s1152_s5] sm:$0xff]  ;;  %v338_v53 = vld [vmem:[%s1152_s5 + $0x18] sm:$0xff] }
  0x12   : > { %v368_v14 = vld [vmem:[%s1152_s5 + $0x108] sm:$0xff]  ;;  %965 = vmatprep.subr.bf16.mxu0 %v1085_v3  ;;  %1007 = vmatprep.subr.bf16.mxu1 %v1085_v3  ;;  %v367_v52 = vld [vmem:[%s1152_s5 + $0x100] sm:$0xff]  ;;  %v370_v54 = vld [vmem:[%s1152_s5 + $0x118] sm:$0xff] }
  0x13   : > { %495 = vmatprep.mubr.f32.mxu0 %v336_v12  ;;  %575 = vmatprep.mubr.f32.mxu1 %v368_v14  ;;  %v337_v55 = vld [vmem:[%s1152_s5 + $0x10] sm:$0xff]  ;;  %v340_v57 = vld [vmem:[%s1152_s5 + $0x28] sm:$0xff]  ;;  %v339_v59 = vld [vmem:[%s1152_s5 + $0x20] sm:$0xff] }
  0x14   : > { %v369_v56 = vld [vmem:[%s1152_s5 + $0x110] sm:$0xff]  ;;  %v372_v58 = vld [vmem:[%s1152_s5 + $0x128] sm:$0xff]  ;;  %v371_v60 = vld [vmem:[%s1152_s5 + $0x120] sm:$0xff] }
  0x15   : > { %967 = vmatpush1.bf16.msra.mxu0 %v966_v13  ;;  %1023 = vmatpush1.bf16.msra.mxu1 %v966_v13  ;;  %v342_v61 = vld [vmem:[%s1152_s5 + $0x38] sm:$0xff]  ;;  %v341_v63 = vld [vmem:[%s1152_s5 + $0x30] sm:$0xff]  ;;  %v344_v1 = vld [vmem:[%s1152_s5 + $0x48] sm:$0xff] }
  0x16   : > { %968 = vmatprep.subr.bf16.mxu0 %v1085_v3  ;;  %1008 = vmatprep.subr.bf16.mxu1 %v1085_v3  ;;  %v374_v62 = vld [vmem:[%s1152_s5 + $0x138] sm:$0xff]  ;;  %v373_v0 = vld [vmem:[%s1152_s5 + $0x130] sm:$0xff]  ;;  %v376_v2 = vld [vmem:[%s1152_s5 + $0x148] sm:$0xff] }
  0x17   : > { %v375_v4 = vld [vmem:[%s1152_s5 + $0x140] sm:$0xff]  ;;  %v346_v5 = vld [vmem:[%s1152_s5 + $0x58] sm:$0xff]  ;;  %v345_v7 = vld [vmem:[%s1152_s5 + $0x50] sm:$0xff] }
  0x18   : > { %v378_v6 = vld [vmem:[%s1152_s5 + $0x158] sm:$0xff]  ;;  %v377_v8 = vld [vmem:[%s1152_s5 + $0x150] sm:$0xff]  ;;  %v348_v9 = vld [vmem:[%s1152_s5 + $0x68] sm:$0xff] }
  0x19   : > { %970 = vmatpush1.bf16.msra.mxu0 %v969_v17  ;;  %1024 = vmatpush1.bf16.msra.mxu1 %v969_v17  ;;  %v380_v10 = vld [vmem:[%s1152_s5 + $0x168] sm:$0xff]  ;;  %v347_v11 = vld [vmem:[%s1152_s5 + $0x60] sm:$0xff]  ;;  %v350_v13 = vld [vmem:[%s1152_s5 + $0x78] sm:$0xff] }
  0x1a   : > { %971 = vmatprep.subr.bf16.mxu0 %v1085_v3  ;;  %1009 = vmatprep.subr.bf16.mxu1 %v1085_v3  ;;  %v379_v12 = vld [vmem:[%s1152_s5 + $0x160] sm:$0xff]  ;;  %v382_v14 = vld [vmem:[%s1152_s5 + $0x178] sm:$0xff]  ;;  %v349_v15 = vld [vmem:[%s1152_s5 + $0x70] sm:$0xff] }
  0x1b   : > { %v381_v16 = vld [vmem:[%s1152_s5 + $0x170] sm:$0xff]  ;;  %v352_v17 = vld [vmem:[%s1152_s5 + $0x88] sm:$0xff]  ;;  %v351_v19 = vld [vmem:[%s1152_s5 + $0x80] sm:$0xff] }
  0x1c   : > { %v384_v18 = vld [vmem:[%s1152_s5 + $0x188] sm:$0xff]  ;;  %v354_v21 = vld [vmem:[%s1152_s5 + $0x98] sm:$0xff]  ;;  %v385_v24 = vld [vmem:[%s1152_s5 + $0x190] sm:$0xff] }
  0x1d   : > { %973 = vmatpush1.bf16.msra.mxu0 %v972_v20  ;;  %1025 = vmatpush1.bf16.msra.mxu1 %v972_v20  ;;  %v383_v20 = vld [vmem:[%s1152_s5 + $0x180] sm:$0xff]  ;;  %v386_v22 = vld [vmem:[%s1152_s5 + $0x198] sm:$0xff]  ;;  %v356_v25 = vld [vmem:[%s1152_s5 + $0xa8] sm:$0xff] }
  0x1e   : > { %974 = vmatprep.subr.bf16.mxu0 %v1085_v3  ;;  %1010 = vmatprep.subr.bf16.mxu1 %v1085_v3  ;;  %v355_v27 = vld [vmem:[%s1152_s5 + $0xa0] sm:$0xff]  ;;  %v390_v30 = vld [vmem:[%s1152_s5 + $0x1b8] sm:$0xff]  ;;  %v357_v31 = vld [vmem:[%s1152_s5 + $0xb0] sm:$0xff] }
  0x1f   : > { %v387_v28 = vld [vmem:[%s1152_s5 + $0x1a0] sm:$0xff]  ;;  %v360_v33 = vld [vmem:[%s1152_s5 + $0xc8] sm:$0xff]  ;;  %v362_v37 = vld [vmem:[%s1152_s5 + $0xd8] sm:$0xff] }
  0x20   : > { %v392_v34 = vld [vmem:[%s1152_s5 + $0x1c8] sm:$0xff]  ;;  %v391_v36 = vld [vmem:[%s1152_s5 + $0x1c0] sm:$0xff]  ;;  %v361_v39 = vld [vmem:[%s1152_s5 + $0xd0] sm:$0xff] }
  0x21   : > { %976 = vmatpush1.bf16.msra.mxu0 %v975_v23  ;;  %1026 = vmatpush1.bf16.msra.mxu1 %v975_v23  ;;  %v353_v23 = vld [vmem:[%s1152_s5 + $0x90] sm:$0xff]  ;;  %v396_v42 = vld [vmem:[%s1152_s5 + $0x1e8] sm:$0xff]  ;;  %v363_v43 = vld [vmem:[%s1152_s5 + $0xe0] sm:$0xff] }
  0x22   : > { %977 = vmatprep.subr.bf16.mxu0 %v1085_v3  ;;  %1011 = vmatprep.subr.bf16.mxu1 %v1085_v3  ;;  %v393_v40 = vld [vmem:[%s1152_s5 + $0x1d0] sm:$0xff]  ;;  %v366_v45 = vld [vmem:[%s1152_s5 + $0xf8] sm:$0xff]  ;;  %v1328_v49 = vld [vmem:[%s1410_s2] ss:$0 sm:$0xff] }
  0x23   : > { %v398_v46 = vld [vmem:[%s1152_s5 + $0x1f8] sm:$0xff]  ;;  %v397_v48 = vld [vmem:[%s1152_s5 + $0x1f0] sm:$0xff] }
  0x25   : > { %979 = vmatpush1.bf16.msra.mxu0 %v978_v26  ;;  %1027 = vmatpush1.bf16.msra.mxu1 %v978_v26  ;;  %v388_v26 = vld [vmem:[%s1152_s5 + $0x1a8] sm:$0xff] }
  0x26   : > { %980 = vmatprep.subr.bf16.mxu0 %v1085_v3  ;;  %1012 = vmatprep.subr.bf16.mxu1 %v1085_v3 }
  0x29   : > { %982 = vmatpush1.bf16.msra.mxu0 %v981_v29  ;;  %1028 = vmatpush1.bf16.msra.mxu1 %v981_v29  ;;  %v358_v29 = vld [vmem:[%s1152_s5 + $0xb8] sm:$0xff] }
  0x2a   : > { %983 = vmatprep.subr.bf16.mxu0 %v1085_v3  ;;  %1013 = vmatprep.subr.bf16.mxu1 %v1085_v3 }
  0x2d   : > { %985 = vmatpush1.bf16.msra.mxu0 %v984_v32  ;;  %1029 = vmatpush1.bf16.msra.mxu1 %v984_v32  ;;  %v389_v32 = vld [vmem:[%s1152_s5 + $0x1b0] sm:$0xff] }
  0x2e   : > { %986 = vmatprep.subr.bf16.mxu0 %v1085_v3  ;;  %1014 = vmatprep.subr.bf16.mxu1 %v1085_v3 }
  0x31   : > { %988 = vmatpush1.bf16.msra.mxu0 %v987_v35  ;;  %1030 = vmatpush1.bf16.msra.mxu1 %v987_v35  ;;  %v359_v35 = vld [vmem:[%s1152_s5 + $0xc0] sm:$0xff] }
  0x32   : > { %989 = vmatprep.subr.bf16.mxu0 %v1085_v3  ;;  %1015 = vmatprep.subr.bf16.mxu1 %v1085_v3 }
  0x35   : > { %991 = vmatpush1.bf16.msra.mxu0 %v990_v38  ;;  %1031 = vmatpush1.bf16.msra.mxu1 %v990_v38  ;;  %v394_v38 = vld [vmem:[%s1152_s5 + $0x1d8] sm:$0xff] }
  0x36   : > { %992 = vmatprep.subr.bf16.mxu0 %v1085_v3  ;;  %1016 = vmatprep.subr.bf16.mxu1 %v1085_v3 }
  0x39   : > { %994 = vmatpush1.bf16.msra.mxu0 %v993_v41  ;;  %1032 = vmatpush1.bf16.msra.mxu1 %v993_v41  ;;  %v364_v41 = vld [vmem:[%s1152_s5 + $0xe8] sm:$0xff] }
  0x3a   : > { %995 = vmatprep.subr.bf16.mxu0 %v1085_v3  ;;  %1017 = vmatprep.subr.bf16.mxu1 %v1085_v3 }
  0x3d   : > { %997 = vmatpush1.bf16.msra.mxu0 %v996_v44  ;;  %1033 = vmatpush1.bf16.msra.mxu1 %v996_v44  ;;  %v395_v44 = vld [vmem:[%s1152_s5 + $0x1e0] sm:$0xff] }
  0x3e   : > { %998 = vmatprep.subr.bf16.mxu0 %v1085_v3  ;;  %1018 = vmatprep.subr.bf16.mxu1 %v1085_v3 }
  0x41   : > { %1000 = vmatpush1.bf16.msra.mxu0 %v999_v47  ;;  %1034 = vmatpush1.bf16.msra.mxu1 %v999_v47  ;;  %v365_v47 = vld [vmem:[%s1152_s5 + $0xf0] sm:$0xff] }
  0x42   : > { %1001 = vmatprep.subr.bf16.mxu0 %v1085_v3  ;;  %1019 = vmatprep.subr.bf16.mxu1 %v1085_v3  ;;  %v343_v3 = vld [vmem:[%s1152_s5 + $0x40] sm:$0xff] }
  0x45   : > { %1003 = vmatpush1.bf16.msra.mxu0 %v1002_v50  ;;  %1035 = vmatpush1.bf16.msra.mxu1 %v1002_v50 }
  0x48   : > { %496 = vmatmul.mubr.f32.vlgmr.msra.gmra.mrb[0].mxu0 %v335_v51  ;;  %576 = vmatmul.mubr.f32.vlgmr.msra.gmra.mrb[0].mxu1 %v367_v52 }
  0x49   : > { %500 = vmatprep.mubr.f32.mxu0 %v338_v53  ;;  %580 = vmatprep.mubr.f32.mxu1 %v370_v54 }
  0x4c   : > { %501 = vmatmul.mubr.f32.gmra.mrb[2].mxu0 %v337_v55  ;;  %581 = vmatmul.mubr.f32.gmra.mrb[2].mxu1 %v369_v56 }
  0x4d   : > { %505 = vmatprep.mubr.f32.mxu0 %v340_v57  ;;  %585 = vmatprep.mubr.f32.mxu1 %v372_v58 }
  0x50   : > { %506 = vmatmul.mubr.f32.gmra.mrb[4].mxu0 %v339_v59  ;;  %586 = vmatmul.mubr.f32.gmra.mrb[4].mxu1 %v371_v60 }
  0x51   : > { %510 = vmatprep.mubr.f32.mxu0 %v342_v61  ;;  %590 = vmatprep.mubr.f32.mxu1 %v374_v62 }
  0x54   : > { %511 = vmatmul.mubr.f32.gmra.mrb[6].mxu0 %v341_v63  ;;  %591 = vmatmul.mubr.f32.gmra.mrb[6].mxu1 %v373_v0 }
  0x55   : > { %515 = vmatprep.mubr.f32.mxu0 %v344_v1  ;;  %595 = vmatprep.mubr.f32.mxu1 %v376_v2 }
  0x58   : > { %516 = vmatmul.mubr.f32.gmra.mrb[8].mxu0 %v343_v3  ;;  %596 = vmatmul.mubr.f32.gmra.mrb[8].mxu1 %v375_v4 }
  0x59   : > { %520 = vmatprep.mubr.f32.mxu0 %v346_v5  ;;  %600 = vmatprep.mubr.f32.mxu1 %v378_v6 }
  0x5c   : > { %521 = vmatmul.mubr.f32.gmra.mrb[10].mxu0 %v345_v7  ;;  %601 = vmatmul.mubr.f32.gmra.mrb[10].mxu1 %v377_v8 }
  0x5d   : > { %525 = vmatprep.mubr.f32.mxu0 %v348_v9  ;;  %605 = vmatprep.mubr.f32.mxu1 %v380_v10 }
  0x60   : > { %526 = vmatmul.mubr.f32.gmra.mrb[12].mxu0 %v347_v11  ;;  %606 = vmatmul.mubr.f32.gmra.mrb[12].mxu1 %v379_v12 }
  0x61   : > { %530 = vmatprep.mubr.f32.mxu0 %v350_v13  ;;  %610 = vmatprep.mubr.f32.mxu1 %v382_v14 }
  0x64   : > { %531 = vmatmul.mubr.f32.gmra.mrb[14].mxu0 %v349_v15  ;;  %611 = vmatmul.mubr.f32.gmra.mrb[14].mxu1 %v381_v16 }
  0x65   : > { %535 = vmatprep.mubr.f32.mxu0 %v352_v17  ;;  %615 = vmatprep.mubr.f32.mxu1 %v384_v18 }
  0x68   : > { %536 = vmatmul.mubr.f32.gmra.mrb[16].mxu0 %v351_v19  ;;  %616 = vmatmul.mubr.f32.gmra.mrb[16].mxu1 %v383_v20 }
  0x69   : > { %540 = vmatprep.mubr.f32.mxu0 %v354_v21  ;;  %620 = vmatprep.mubr.f32.mxu1 %v386_v22 }
  0x6c   : > { %541 = vmatmul.mubr.f32.gmra.mrb[18].mxu0 %v353_v23  ;;  %621 = vmatmul.mubr.f32.gmra.mrb[18].mxu1 %v385_v24 }
  0x6d   : > { %545 = vmatprep.mubr.f32.mxu0 %v356_v25  ;;  %625 = vmatprep.mubr.f32.mxu1 %v388_v26 }
  0x70   : > { %546 = vmatmul.mubr.f32.gmra.mrb[20].mxu0 %v355_v27  ;;  %626 = vmatmul.mubr.f32.gmra.mrb[20].mxu1 %v387_v28 }
  0x71   : > { %550 = vmatprep.mubr.f32.mxu0 %v358_v29  ;;  %630 = vmatprep.mubr.f32.mxu1 %v390_v30 }
  0x74   : > { %551 = vmatmul.mubr.f32.gmra.mrb[22].mxu0 %v357_v31  ;;  %631 = vmatmul.mubr.f32.gmra.mrb[22].mxu1 %v389_v32 }
  0x75   : > { %555 = vmatprep.mubr.f32.mxu0 %v360_v33  ;;  %635 = vmatprep.mubr.f32.mxu1 %v392_v34 }
  0x78   : > { %556 = vmatmul.mubr.f32.gmra.mrb[24].mxu0 %v359_v35  ;;  %636 = vmatmul.mubr.f32.gmra.mrb[24].mxu1 %v391_v36 }
  0x79   : > { %560 = vmatprep.mubr.f32.mxu0 %v362_v37  ;;  %640 = vmatprep.mubr.f32.mxu1 %v394_v38 }
  0x7c   : > { %561 = vmatmul.mubr.f32.gmra.mrb[26].mxu0 %v361_v39  ;;  %641 = vmatmul.mubr.f32.gmra.mrb[26].mxu1 %v393_v40 }
  0x7d   : > { %565 = vmatprep.mubr.f32.mxu0 %v364_v41  ;;  %645 = vmatprep.mubr.f32.mxu1 %v396_v42 }
  0x80   : > { %566 = vmatmul.mubr.f32.gmra.mrb[28].mxu0 %v363_v43  ;;  %646 = vmatmul.mubr.f32.gmra.mrb[28].mxu1 %v395_v44 }
  0x81   : > { %570 = vmatprep.mubr.f32.mxu0 %v366_v45  ;;  %650 = vmatprep.mubr.f32.mxu1 %v398_v46 }
  0x84   : > { %571 = vmatmul.mubr.f32.gmra.mrb[30].mxu0 %v365_v47  ;;  %651 = vmatmul.mubr.f32.gmra.mrb[30].mxu1 %v397_v48 }
 0x11b   : > { %v497_v50 = vpop.f32.mrb[0].mxu0  ;;  %v577_v51 = vpop.f32.mrb[0].mxu1 }
 0x11c   : > { %v762_v52 = vadd.f32 %v1328_v49, %v497_v50  ;;  %v778_v53 = vadd.f32 %v1328_v49, %v577_v51  ;;  %v499_v54 = vpop.f32.mrb[1].mxu0  ;;  %v579_v55 = vpop.f32.mrb[1].mxu1 }
 0x11e   : > { %794 = vst [vmem:[%s1333_s23] sm:$0xff] %v762_v52  ;;  %810 = vst [vmem:[%s1333_s23 + $0x80] sm:$0xff] %v778_v53 }
 0x11f   : > { %v502_v56 = vpop.f32.mrb[2].mxu0  ;;  %v582_v57 = vpop.f32.mrb[2].mxu1 }
 0x120   : > { %v763_v58 = vadd.f32 %v1328_v49, %v502_v56  ;;  %v779_v59 = vadd.f32 %v1328_v49, %v582_v57  ;;  %v504_v60 = vpop.f32.mrb[3].mxu0  ;;  %v584_v61 = vpop.f32.mrb[3].mxu1 }
 0x122   : > { %795 = vst [vmem:[%s1333_s23 + $0x8] sm:$0xff] %v763_v58  ;;  %811 = vst [vmem:[%s1333_s23 + $0x88] sm:$0xff] %v779_v59 }
 0x123   : > { %v507_v62 = vpop.f32.mrb[4].mxu0  ;;  %v587_v63 = vpop.f32.mrb[4].mxu1 }
 0x124   : > { %v764_v0 = vadd.f32 %v1328_v49, %v507_v62  ;;  %v780_v1 = vadd.f32 %v1328_v49, %v587_v63  ;;  %v509_v2 = vpop.f32.mrb[5].mxu0  ;;  %v589_v3 = vpop.f32.mrb[5].mxu1 }
 0x126   : > { %796 = vst [vmem:[%s1333_s23 + $0x10] sm:$0xff] %v764_v0  ;;  %812 = vst [vmem:[%s1333_s23 + $0x90] sm:$0xff] %v780_v1 }
 0x127   : > { %v512_v4 = vpop.f32.mrb[6].mxu0  ;;  %v592_v5 = vpop.f32.mrb[6].mxu1 }
 0x128   : > { %v765_v6 = vadd.f32 %v1328_v49, %v512_v4  ;;  %v781_v7 = vadd.f32 %v1328_v49, %v592_v5  ;;  %v514_v8 = vpop.f32.mrb[7].mxu0  ;;  %v594_v9 = vpop.f32.mrb[7].mxu1 }
 0x12a   : > { %797 = vst [vmem:[%s1333_s23 + $0x18] sm:$0xff] %v765_v6  ;;  %813 = vst [vmem:[%s1333_s23 + $0x98] sm:$0xff] %v781_v7 }
 0x12b   : > { %v517_v10 = vpop.f32.mrb[8].mxu0  ;;  %v597_v11 = vpop.f32.mrb[8].mxu1 }
 0x12c   : > { %v766_v12 = vadd.f32 %v1328_v49, %v517_v10  ;;  %v782_v13 = vadd.f32 %v1328_v49, %v597_v11  ;;  %v519_v14 = vpop.f32.mrb[9].mxu0  ;;  %v599_v15 = vpop.f32.mrb[9].mxu1 }
 0x12e   : > { %798 = vst [vmem:[%s1333_s23 + $0x20] sm:$0xff] %v766_v12  ;;  %814 = vst [vmem:[%s1333_s23 + $0xa0] sm:$0xff] %v782_v13 }
 0x12f   : > { %v522_v16 = vpop.f32.mrb[10].mxu0  ;;  %v602_v17 = vpop.f32.mrb[10].mxu1 }
 0x130   : > { %v767_v18 = vadd.f32 %v1328_v49, %v522_v16  ;;  %v783_v19 = vadd.f32 %v1328_v49, %v602_v17  ;;  %v524_v20 = vpop.f32.mrb[11].mxu0  ;;  %v604_v21 = vpop.f32.mrb[11].mxu1 }
 0x132   : > { %799 = vst [vmem:[%s1333_s23 + $0x28] sm:$0xff] %v767_v18  ;;  %815 = vst [vmem:[%s1333_s23 + $0xa8] sm:$0xff] %v783_v19 }
 0x133   : > { %v527_v22 = vpop.f32.mrb[12].mxu0  ;;  %v607_v23 = vpop.f32.mrb[12].mxu1 }
 0x134   : > { %v768_v24 = vadd.f32 %v1328_v49, %v527_v22  ;;  %v784_v25 = vadd.f32 %v1328_v49, %v607_v23  ;;  %v529_v26 = vpop.f32.mrb[13].mxu0  ;;  %v609_v27 = vpop.f32.mrb[13].mxu1 }
 0x136   : > { %800 = vst [vmem:[%s1333_s23 + $0x30] sm:$0xff] %v768_v24  ;;  %816 = vst [vmem:[%s1333_s23 + $0xb0] sm:$0xff] %v784_v25 }
 0x137   : > { %v532_v28 = vpop.f32.mrb[14].mxu0  ;;  %v612_v29 = vpop.f32.mrb[14].mxu1 }
 0x138   : > { %v769_v30 = vadd.f32 %v1328_v49, %v532_v28  ;;  %v785_v31 = vadd.f32 %v1328_v49, %v612_v29  ;;  %v534_v32 = vpop.f32.mrb[15].mxu0  ;;  %v614_v33 = vpop.f32.mrb[15].mxu1 }
 0x13a   : > { %801 = vst [vmem:[%s1333_s23 + $0x38] sm:$0xff] %v769_v30  ;;  %817 = vst [vmem:[%s1333_s23 + $0xb8] sm:$0xff] %v785_v31 }
 0x13b   : > { %v537_v34 = vpop.f32.mrb[16].mxu0  ;;  %v617_v35 = vpop.f32.mrb[16].mxu1 }
 0x13c   : > { %v770_v36 = vadd.f32 %v1328_v49, %v537_v34  ;;  %v786_v37 = vadd.f32 %v1328_v49, %v617_v35  ;;  %v539_v38 = vpop.f32.mrb[17].mxu0  ;;  %v619_v39 = vpop.f32.mrb[17].mxu1 }
 0x13e   : > { %802 = vst [vmem:[%s1333_s23 + $0x40] sm:$0xff] %v770_v36  ;;  %818 = vst [vmem:[%s1333_s23 + $0xc0] sm:$0xff] %v786_v37 }
 0x13f   : > { %v542_v40 = vpop.f32.mrb[18].mxu0  ;;  %v622_v41 = vpop.f32.mrb[18].mxu1 }
 0x140   : > { %v771_v42 = vadd.f32 %v1328_v49, %v542_v40  ;;  %v787_v43 = vadd.f32 %v1328_v49, %v622_v41  ;;  %v544_v44 = vpop.f32.mrb[19].mxu0  ;;  %v624_v45 = vpop.f32.mrb[19].mxu1 }
 0x142   : > { %803 = vst [vmem:[%s1333_s23 + $0x48] sm:$0xff] %v771_v42  ;;  %819 = vst [vmem:[%s1333_s23 + $0xc8] sm:$0xff] %v787_v43 }
 0x143   : > { %v547_v46 = vpop.f32.mrb[20].mxu0  ;;  %v627_v47 = vpop.f32.mrb[20].mxu1 }
 0x144   : > { %v772_v48 = vadd.f32 %v1328_v49, %v547_v46  ;;  %v788_v50 = vadd.f32 %v1328_v49, %v627_v47  ;;  %v549_v51 = vpop.f32.mrb[21].mxu0  ;;  %v629_v52 = vpop.f32.mrb[21].mxu1 }
 0x146   : > { %804 = vst [vmem:[%s1333_s23 + $0x50] sm:$0xff] %v772_v48  ;;  %820 = vst [vmem:[%s1333_s23 + $0xd0] sm:$0xff] %v788_v50 }
 0x147   : > { %v552_v53 = vpop.f32.mrb[22].mxu0  ;;  %v632_v54 = vpop.f32.mrb[22].mxu1 }
 0x148   : > { %v773_v55 = vadd.f32 %v1328_v49, %v552_v53  ;;  %v789_v56 = vadd.f32 %v1328_v49, %v632_v54  ;;  %v554_v57 = vpop.f32.mrb[23].mxu0  ;;  %v634_v58 = vpop.f32.mrb[23].mxu1 }
 0x14a   : > { %805 = vst [vmem:[%s1333_s23 + $0x58] sm:$0xff] %v773_v55  ;;  %821 = vst [vmem:[%s1333_s23 + $0xd8] sm:$0xff] %v789_v56 }
 0x14b   : > { %v557_v59 = vpop.f32.mrb[24].mxu0  ;;  %v637_v60 = vpop.f32.mrb[24].mxu1 }
 0x14c   : > { %v774_v61 = vadd.f32 %v1328_v49, %v557_v59  ;;  %v790_v62 = vadd.f32 %v1328_v49, %v637_v60  ;;  %v559_v63 = vpop.f32.mrb[25].mxu0  ;;  %v639_v0 = vpop.f32.mrb[25].mxu1 }
 0x14e   : > { %806 = vst [vmem:[%s1333_s23 + $0x60] sm:$0xff] %v774_v61  ;;  %822 = vst [vmem:[%s1333_s23 + $0xe0] sm:$0xff] %v790_v62 }
 0x14f   : > { %v562_v1 = vpop.f32.mrb[26].mxu0  ;;  %v642_v2 = vpop.f32.mrb[26].mxu1 }
 0x150   : > { %v775_v3 = vadd.f32 %v1328_v49, %v562_v1  ;;  %v791_v4 = vadd.f32 %v1328_v49, %v642_v2  ;;  %v564_v5 = vpop.f32.mrb[27].mxu0  ;;  %v644_v6 = vpop.f32.mrb[27].mxu1 }
 0x152   : > { %807 = vst [vmem:[%s1333_s23 + $0x68] sm:$0xff] %v775_v3  ;;  %823 = vst [vmem:[%s1333_s23 + $0xe8] sm:$0xff] %v791_v4 }
 0x153   : > { %v567_v7 = vpop.f32.mrb[28].mxu0  ;;  %v647_v8 = vpop.f32.mrb[28].mxu1 }
 0x154   : > { %v776_v9 = vadd.f32 %v1328_v49, %v567_v7  ;;  %v792_v10 = vadd.f32 %v1328_v49, %v647_v8  ;;  %v569_v11 = vpop.f32.mrb[29].mxu0  ;;  %v649_v12 = vpop.f32.mrb[29].mxu1 }
 0x156   : > { %808 = vst [vmem:[%s1333_s23 + $0x70] sm:$0xff] %v776_v9  ;;  %824 = vst [vmem:[%s1333_s23 + $0xf0] sm:$0xff] %v792_v10 }
 0x157   : > { %v572_v13 = vpop.f32.mrb[30].mxu0  ;;  %v652_v14 = vpop.f32.mrb[30].mxu1 }
 0x158   : > { %v777_v15 = vadd.f32 %v1328_v49, %v572_v13  ;;  %v793_v16 = vadd.f32 %v1328_v49, %v652_v14  ;;  %v574_v17 = vpop.f32.mrb[31].mxu0  ;;  %v654_v18 = vpop.f32.mrb[31].mxu1 }
 0x15a   : > { %809 = vst [vmem:[%s1333_s23 + $0x78] sm:$0xff] %v777_v15  ;;  %825 = vst [vmem:[%s1333_s23 + $0xf8] sm:$0xff] %v793_v16 }
 0x15b PF: > { %s13_s14 = sadd.s32 1, %s1083_s14   ;;  %s1412_s12 = smov %s1079_s13 }
 0x15c   : > { %p10_p5 = scmp.ge.s32.totalorder %s13_s14, 4   ;;  %s1413_s13 = smov %s1415_s15 }
 0x15e   :  { %12 = sbr.rel (!%p10_p5) target bundleno = 2 (0x2), region = 76 }

// kernel: transformer_net_pl.33
= control target key start
LH: loop header
LB: loop body
LE: loop exit
PB: predicated region body
PF: predicated region fallthrough
CT: control target
= control target key end

     0   :  { %s1140_s1 = inlined_call_operand.vmem [shape: f32[384,128], index: 1, kind: input, shape index: {}]   ;;  %s1141_s0 = inlined_call_operand.vmem [shape: f32[128,384], index: 0, kind: input, shape index: {}]   ;;  %s1142_s2 = inlined_call_operand.vmem [shape: f32[1,128], index: 2, kind: input, shape index: {}]   ;;  %s1143_s3 = inlined_call_operand.vmem [shape: f32[128,128], index: 3, kind: output, shape index: {}]  }
   0x1   :  { %v114_v0 = vld [vmem:[%s1140_s1 + $0x80] sm:$0xff]  ;;  %v115_v1 = vld [vmem:[%s1140_s1 + $0x88] sm:$0xff]  ;;  %v116_v9 = vld [vmem:[%s1140_s1 + $0x90] sm:$0xff] }
   0x2   :  { %v98_v2 = vld [vmem:[%s1140_s1] sm:$0xff]  ;;  %v699_v3 = vpack.c.bf16 %v115_v1, %v114_v0  ;;  %v99_v4 = vld [vmem:[%s1140_s1 + $0x8] sm:$0xff]  ;;  %v117_v10 = vld [vmem:[%s1140_s1 + $0x98] sm:$0xff] }
   0x3   :  { %v130_v5 = vld [vmem:[%s1140_s1 + $0x100] sm:$0xff]  ;;  %v131_v6 = vld [vmem:[%s1140_s1 + $0x108] sm:$0xff]  ;;  %v701_v7 = vpack.c.bf16 %v99_v4, %v98_v2  ;;  %v100_v11 = vld [vmem:[%s1140_s1 + $0x10] sm:$0xff]  ;;  %v703_v12 = vpack.c.bf16 %v117_v10, %v116_v9 }
   0x4   :  { %v731_v8 = vpack.c.bf16 %v131_v6, %v130_v5  ;;  %700 = vmatprep.subr.bf16.mxu0 %v699_v3  ;;  %v101_v13 = vld [vmem:[%s1140_s1 + $0x18] sm:$0xff]  ;;  %v132_v14 = vld [vmem:[%s1140_s1 + $0x110] sm:$0xff]  ;;  %v118_v18 = vld [vmem:[%s1140_s1 + $0xa0] sm:$0xff] }
   0x5   :  { %v133_v15 = vld [vmem:[%s1140_s1 + $0x118] sm:$0xff]  ;;  %702 = vmatpush3.bf16.msra.mxu0 %v701_v7  ;;  %v705_v16 = vpack.c.bf16 %v101_v13, %v100_v11  ;;  %v119_v19 = vld [vmem:[%s1140_s1 + $0xa8] sm:$0xff]  ;;  %v102_v20 = vld [vmem:[%s1140_s1 + $0x20] sm:$0xff] }
   0x6   :  { %732 = vmatprep.subr.bf16.mxu1 %v731_v8  ;;  %v735_v17 = vpack.c.bf16 %v133_v15, %v132_v14  ;;  %704 = vmatprep.subr.bf16.mxu0 %v703_v12  ;;  %v707_v21 = vpack.c.bf16 %v119_v19, %v118_v18  ;;  %v103_v22 = vld [vmem:[%s1140_s1 + $0x28] sm:$0xff]  ;;  %v134_v23 = vld [vmem:[%s1140_s1 + $0x120] sm:$0xff]  ;;  %v120_v26 = vld [vmem:[%s1140_s1 + $0xb0] sm:$0xff] }
   0x7   :  { %734 = vmatpush3.bf16.msra.mxu1 %v731_v8  ;;  %v135_v24 = vld [vmem:[%s1140_s1 + $0x128] sm:$0xff]  ;;  %v121_v27 = vld [vmem:[%s1140_s1 + $0xb8] sm:$0xff]  ;;  %v136_v28 = vld [vmem:[%s1140_s1 + $0x130] sm:$0xff]  ;;  %v709_v30 = vpack.c.bf16 %v103_v22, %v102_v20 }
   0x8   :  { %736 = vmatprep.subr.bf16.mxu1 %v735_v17  ;;  %v739_v25 = vpack.c.bf16 %v135_v24, %v134_v23  ;;  %v137_v29 = vld [vmem:[%s1140_s1 + $0x138] sm:$0xff]  ;;  %v711_v31 = vpack.c.bf16 %v121_v27, %v120_v26  ;;  %v104_v32 = vld [vmem:[%s1140_s1 + $0x30] sm:$0xff]  ;;  %v122_v35 = vld [vmem:[%s1140_s1 + $0xc0] sm:$0xff] }
   0x9   :  { %706 = vmatpush3.bf16.msra.mxu0 %v705_v16  ;;  %v105_v33 = vld [vmem:[%s1140_s1 + $0x38] sm:$0xff]  ;;  %v743_v34 = vpack.c.bf16 %v137_v29, %v136_v28  ;;  %v123_v36 = vld [vmem:[%s1140_s1 + $0xc8] sm:$0xff]  ;;  %v138_v37 = vld [vmem:[%s1140_s1 + $0x140] sm:$0xff] }
   0xa   :  { %708 = vmatprep.subr.bf16.mxu0 %v707_v21  ;;  %v139_v38 = vld [vmem:[%s1140_s1 + $0x148] sm:$0xff]  ;;  %v713_v39 = vpack.c.bf16 %v105_v33, %v104_v32  ;;  %v715_v40 = vpack.c.bf16 %v123_v36, %v122_v35  ;;  %v106_v41 = vld [vmem:[%s1140_s1 + $0x40] sm:$0xff]  ;;  %v124_v44 = vld [vmem:[%s1140_s1 + $0xd0] sm:$0xff] }
   0xb   :  { %738 = vmatpush3.bf16.msra.mxu1 %v735_v17  ;;  %v107_v42 = vld [vmem:[%s1140_s1 + $0x48] sm:$0xff]  ;;  %v747_v43 = vpack.c.bf16 %v139_v38, %v138_v37  ;;  %v125_v45 = vld [vmem:[%s1140_s1 + $0xd8] sm:$0xff]  ;;  %v140_v46 = vld [vmem:[%s1140_s1 + $0x150] sm:$0xff] }
   0xc   :  { %740 = vmatprep.subr.bf16.mxu1 %v739_v25  ;;  %v141_v47 = vld [vmem:[%s1140_s1 + $0x158] sm:$0xff]  ;;  %v717_v48 = vpack.c.bf16 %v107_v42, %v106_v41  ;;  %v51_v49 = vld [vmem:[%s1141_s0 + $0x8] sm:$0xff]  ;;  %v52_v50 = vld [vmem:[%s1141_s0 + $0x10] sm:$0xff]  ;;  %v719_v51 = vpack.c.bf16 %v125_v45, %v124_v44 }
   0xd   :  { %710 = vmatpush3.bf16.msra.mxu0 %v709_v30  ;;  %v108_v52 = vld [vmem:[%s1140_s1 + $0x50] sm:$0xff]  ;;  %v109_v53 = vld [vmem:[%s1140_s1 + $0x58] sm:$0xff]  ;;  %v751_v54 = vpack.c.bf16 %v141_v47, %v140_v46  ;;  %v126_v55 = vld [vmem:[%s1140_s1 + $0xe0] sm:$0xff]  ;;  %210 = vmatprep.mubr.f32.mxu0 %v51_v49 }
   0xe   :  { %712 = vmatprep.subr.bf16.mxu0 %v711_v31  ;;  %v127_v56 = vld [vmem:[%s1140_s1 + $0xe8] sm:$0xff]  ;;  %v142_v57 = vld [vmem:[%s1140_s1 + $0x160] sm:$0xff]  ;;  %675 = vmatprep.mubr.f32.mxu1 %v52_v50  ;;  %v721_v59 = vpack.c.bf16 %v109_v53, %v108_v52  ;;  %v128_v0 = vld [vmem:[%s1140_s1 + $0xf0] sm:$0xff] }
   0xf   :  { %742 = vmatpush3.bf16.msra.mxu1 %v739_v25  ;;  %v143_v58 = vld [vmem:[%s1140_s1 + $0x168] sm:$0xff]  ;;  %v723_v60 = vpack.c.bf16 %v127_v56, %v126_v55  ;;  %v110_v61 = vld [vmem:[%s1140_s1 + $0x60] sm:$0xff]  ;;  %v129_v1 = vld [vmem:[%s1140_s1 + $0xf8] sm:$0xff] }
  0x10   :  { %744 = vmatprep.subr.bf16.mxu1 %v743_v34  ;;  %v111_v62 = vld [vmem:[%s1140_s1 + $0x68] sm:$0xff]  ;;  %v755_v63 = vpack.c.bf16 %v143_v58, %v142_v57  ;;  %v144_v2 = vld [vmem:[%s1140_s1 + $0x170] sm:$0xff]  ;;  %v145_v3 = vld [vmem:[%s1140_s1 + $0x178] sm:$0xff]  ;;  %v727_v5 = vpack.c.bf16 %v129_v1, %v128_v0 }
  0x11   :  { %714 = vmatpush3.bf16.msra.mxu0 %v713_v39  ;;  %v725_v4 = vpack.c.bf16 %v111_v62, %v110_v61  ;;  %v112_v6 = vld [vmem:[%s1140_s1 + $0x70] sm:$0xff]  ;;  %v113_v7 = vld [vmem:[%s1140_s1 + $0x78] sm:$0xff]  ;;  %v759_v8 = vpack.c.bf16 %v145_v3, %v144_v2  ;;  %v50_v10 = vld [vmem:[%s1141_s0] sm:$0xff] }
  0x12   :  { %716 = vmatprep.subr.bf16.mxu0 %v715_v40  ;;  %v729_v9 = vpack.c.bf16 %v113_v7, %v112_v6  ;;  %v55_v11 = vld [vmem:[%s1141_s0 + $0x28] sm:$0xff]  ;;  %v54_v12 = vld [vmem:[%s1141_s0 + $0x20] sm:$0xff]  ;;  %v53_v14 = vld [vmem:[%s1141_s0 + $0x18] sm:$0xff] }
  0x13   :  { %746 = vmatpush3.bf16.msra.mxu1 %v743_v34  ;;  %v58_v13 = vld [vmem:[%s1141_s0 + $0x40] sm:$0xff]  ;;  %v57_v15 = vld [vmem:[%s1141_s0 + $0x38] sm:$0xff]  ;;  %v64_v17 = vld [vmem:[%s1141_s0 + $0x70] sm:$0xff] }
  0x14   :  { %748 = vmatprep.subr.bf16.mxu1 %v747_v43  ;;  %v61_v16 = vld [vmem:[%s1141_s0 + $0x58] sm:$0xff]  ;;  %v56_v18 = vld [vmem:[%s1141_s0 + $0x30] sm:$0xff]  ;;  %v67_v20 = vld [vmem:[%s1141_s0 + $0x88] sm:$0xff] }
  0x15   :  { %718 = vmatpush3.bf16.msra.mxu0 %v717_v48  ;;  %v60_v19 = vld [vmem:[%s1141_s0 + $0x50] sm:$0xff]  ;;  %v70_v21 = vld [vmem:[%s1141_s0 + $0xa0] sm:$0xff]  ;;  %v59_v22 = vld [vmem:[%s1141_s0 + $0x48] sm:$0xff] }
  0x16   :  { %720 = vmatprep.subr.bf16.mxu0 %v719_v51  ;;  %v63_v23 = vld [vmem:[%s1141_s0 + $0x68] sm:$0xff]  ;;  %v73_v24 = vld [vmem:[%s1141_s0 + $0xb8] sm:$0xff]  ;;  %v76_v25 = vld [vmem:[%s1141_s0 + $0xd0] sm:$0xff] }
  0x17   :  { %750 = vmatpush3.bf16.msra.mxu1 %v747_v43  ;;  %v62_v26 = vld [vmem:[%s1141_s0 + $0x60] sm:$0xff]  ;;  %v79_v28 = vld [vmem:[%s1141_s0 + $0xe8] sm:$0xff]  ;;  %v65_v30 = vld [vmem:[%s1141_s0 + $0x78] sm:$0xff] }
  0x18   :  { %752 = vmatprep.subr.bf16.mxu1 %v751_v54  ;;  %v66_v27 = vld [vmem:[%s1141_s0 + $0x80] sm:$0xff]  ;;  %v69_v31 = vld [vmem:[%s1141_s0 + $0x98] sm:$0xff]  ;;  %v88_v33 = vld [vmem:[%s1141_s0 + $0x130] sm:$0xff] }
  0x19   :  { %722 = vmatpush3.bf16.msra.mxu0 %v721_v59  ;;  %v82_v29 = vld [vmem:[%s1141_s0 + $0x100] sm:$0xff]  ;;  %v85_v32 = vld [vmem:[%s1141_s0 + $0x118] sm:$0xff]  ;;  %v68_v34 = vld [vmem:[%s1141_s0 + $0x90] sm:$0xff] }
  0x1a   :  { %724 = vmatprep.subr.bf16.mxu0 %v723_v60  ;;  %v72_v35 = vld [vmem:[%s1141_s0 + $0xb0] sm:$0xff]  ;;  %v91_v36 = vld [vmem:[%s1141_s0 + $0x148] sm:$0xff]  ;;  %v94_v37 = vld [vmem:[%s1141_s0 + $0x160] sm:$0xff] }
  0x1b   :  { %754 = vmatpush3.bf16.msra.mxu1 %v751_v54  ;;  %v71_v38 = vld [vmem:[%s1141_s0 + $0xa8] sm:$0xff]  ;;  %v97_v40 = vld [vmem:[%s1141_s0 + $0x178] sm:$0xff]  ;;  %v74_v41 = vld [vmem:[%s1141_s0 + $0xc0] sm:$0xff] }
  0x1c   :  { %756 = vmatprep.subr.bf16.mxu1 %v755_v63  ;;  %v75_v39 = vld [vmem:[%s1141_s0 + $0xc8] sm:$0xff]  ;;  %v78_v42 = vld [vmem:[%s1141_s0 + $0xe0] sm:$0xff]  ;;  %v77_v43 = vld [vmem:[%s1141_s0 + $0xd8] sm:$0xff] }
  0x1d   :  { %726 = vmatpush3.bf16.msra.mxu0 %v725_v4  ;;  %v81_v44 = vld [vmem:[%s1141_s0 + $0xf8] sm:$0xff]  ;;  %v80_v45 = vld [vmem:[%s1141_s0 + $0xf0] sm:$0xff]  ;;  %v83_v47 = vld [vmem:[%s1141_s0 + $0x108] sm:$0xff] }
  0x1e   :  { %728 = vmatprep.subr.bf16.mxu0 %v727_v5  ;;  %v84_v46 = vld [vmem:[%s1141_s0 + $0x110] sm:$0xff]  ;;  %v87_v48 = vld [vmem:[%s1141_s0 + $0x128] sm:$0xff]  ;;  %v86_v49 = vld [vmem:[%s1141_s0 + $0x120] sm:$0xff] }
  0x1f   :  { %758 = vmatpush3.bf16.msra.mxu1 %v755_v63  ;;  %v90_v50 = vld [vmem:[%s1141_s0 + $0x140] sm:$0xff]  ;;  %v89_v51 = vld [vmem:[%s1141_s0 + $0x138] sm:$0xff]  ;;  %v92_v53 = vld [vmem:[%s1141_s0 + $0x150] sm:$0xff] }
  0x20   :  { %760 = vmatprep.subr.bf16.mxu1 %v759_v8  ;;  %v93_v52 = vld [vmem:[%s1141_s0 + $0x158] sm:$0xff]  ;;  %v96_v54 = vld [vmem:[%s1141_s0 + $0x170] sm:$0xff]  ;;  %v95_v55 = vld [vmem:[%s1141_s0 + $0x168] sm:$0xff] }
  0x21   :  { %730 = vmatpush3.bf16.msra.mxu0 %v729_v9  ;;  %v1074_v61 = vld [vmem:[%s1142_s2] ss:$0 sm:$0xff] }
  0x23   :  { %762 = vmatpush3.bf16.msra.mxu1 %v759_v8 }
  0x24   :  { %211 = vmatmul.mubr.f32.vlgmr.msra.gmra.mrb[0].mxu0 %v50_v10 }
  0x25   :  { %215 = vmatprep.mubr.f32.mxu0 %v54_v12 }
  0x26   :  { %676 = vmatmul.mubr.f32.vlgmr.msra.gmra.mrb[0].mxu1 %v55_v11 }
  0x27   :  { %678 = vmatprep.mubr.f32.mxu1 %v58_v13 }
  0x28   :  { %216 = vmatmul.mubr.f32.gmra.mrb[2].mxu0 %v53_v14 }
  0x29   :  { %220 = vmatprep.mubr.f32.mxu0 %v57_v15 }
  0x2a   :  { %679 = vmatmul.mubr.f32.gmra.mrb[2].mxu1 %v61_v16 }
  0x2b   :  { %681 = vmatprep.mubr.f32.mxu1 %v64_v17 }
  0x2c   :  { %221 = vmatmul.mubr.f32.gmra.mrb[4].mxu0 %v56_v18 }
  0x2d   :  { %225 = vmatprep.mubr.f32.mxu0 %v60_v19 }
  0x2e   :  { %682 = vmatmul.mubr.f32.gmra.mrb[4].mxu1 %v67_v20 }
  0x2f   :  { %684 = vmatprep.mubr.f32.mxu1 %v70_v21 }
  0x30   :  { %226 = vmatmul.mubr.f32.gmra.mrb[6].mxu0 %v59_v22 }
  0x31   :  { %230 = vmatprep.mubr.f32.mxu0 %v63_v23 }
  0x32   :  { %685 = vmatmul.mubr.f32.gmra.mrb[6].mxu1 %v73_v24 }
  0x33   :  { %687 = vmatprep.mubr.f32.mxu1 %v76_v25 }
  0x34   :  { %231 = vmatmul.mubr.f32.gmra.mrb[8].mxu0 %v62_v26 }
  0x35   :  { %235 = vmatprep.mubr.f32.mxu0 %v66_v27 }
  0x36   :  { %688 = vmatmul.mubr.f32.gmra.mrb[8].mxu1 %v79_v28 }
  0x37   :  { %690 = vmatprep.mubr.f32.mxu1 %v82_v29 }
  0x38   :  { %236 = vmatmul.mubr.f32.gmra.mrb[10].mxu0 %v65_v30 }
  0x39   :  { %240 = vmatprep.mubr.f32.mxu0 %v69_v31 }
  0x3a   :  { %691 = vmatmul.mubr.f32.gmra.mrb[10].mxu1 %v85_v32 }
  0x3b   :  { %693 = vmatprep.mubr.f32.mxu1 %v88_v33 }
  0x3c   :  { %241 = vmatmul.mubr.f32.gmra.mrb[12].mxu0 %v68_v34 }
  0x3d   :  { %245 = vmatprep.mubr.f32.mxu0 %v72_v35 }
  0x3e   :  { %694 = vmatmul.mubr.f32.gmra.mrb[12].mxu1 %v91_v36 }
  0x3f   :  { %696 = vmatprep.mubr.f32.mxu1 %v94_v37 }
  0x40   :  { %246 = vmatmul.mubr.f32.gmra.mrb[14].mxu0 %v71_v38 }
  0x41   :  { %250 = vmatprep.mubr.f32.mxu0 %v75_v39 }
  0x42   :  { %697 = vmatmul.mubr.f32.gmra.mrb[14].mxu1 %v97_v40 }
  0x44   :  { %251 = vmatmul.mubr.f32.gmra.mrb[16].mxu0 %v74_v41 }
  0x45   :  { %255 = vmatprep.mubr.f32.mxu0 %v78_v42 }
  0x48   :  { %256 = vmatmul.mubr.f32.gmra.mrb[18].mxu0 %v77_v43 }
  0x49   :  { %260 = vmatprep.mubr.f32.mxu0 %v81_v44 }
  0x4c   :  { %261 = vmatmul.mubr.f32.gmra.mrb[20].mxu0 %v80_v45 }
  0x4d   :  { %265 = vmatprep.mubr.f32.mxu0 %v84_v46 }
  0x50   :  { %266 = vmatmul.mubr.f32.gmra.mrb[22].mxu0 %v83_v47 }
  0x51   :  { %270 = vmatprep.mubr.f32.mxu0 %v87_v48 }
  0x54   :  { %271 = vmatmul.mubr.f32.gmra.mrb[24].mxu0 %v86_v49 }
  0x55   :  { %275 = vmatprep.mubr.f32.mxu0 %v90_v50 }
  0x58   :  { %276 = vmatmul.mubr.f32.gmra.mrb[26].mxu0 %v89_v51 }
  0x59   :  { %280 = vmatprep.mubr.f32.mxu0 %v93_v52 }
  0x5c   :  { %281 = vmatmul.mubr.f32.gmra.mrb[28].mxu0 %v92_v53 }
  0x5d   :  { %285 = vmatprep.mubr.f32.mxu0 %v96_v54 }
  0x60   :  { %286 = vmatmul.mubr.f32.gmra.mrb[30].mxu0 %v95_v55 }
  0xf7   :  { %v563_v56 = vpop.f32.mrb[0].mxu0 }
  0xf8   :  { %v564_v57 = vpop.f32.mrb[1].mxu0 }
  0xf9   :  { %v677_v58 = vpop.f32.mrb[0].mxu1  ;;  %v565_v59 = vadd.f32 %v564_v57, %v563_v56 }
  0xfa   :  { %v357_v60 = vpop.f32.mrb[1].mxu1 }
  0xfb   :  { %v358_v62 = vadd.f32 %v565_v59, %v357_v60  ;;  %v566_v63 = vpop.f32.mrb[2].mxu0 }
  0xfc   :  { %v567_v0 = vpop.f32.mrb[3].mxu0 }
  0xfd   :  { %v680_v1 = vpop.f32.mrb[2].mxu1  ;;  %v494_v2 = vadd.f32 %v1074_v61, %v358_v62  ;;  %v568_v3 = vadd.f32 %v567_v0, %v566_v63 }
  0xfe   :  { %v367_v4 = vpop.f32.mrb[3].mxu1 }
  0xff   :  { %510 = vst [vmem:[%s1143_s3] sm:$0xff] %v494_v2  ;;  %v363_v5 = vadd.f32 %v677_v58, %v568_v3  ;;  %v569_v6 = vpop.f32.mrb[4].mxu0 }
 0x100   :  { %v570_v7 = vpop.f32.mrb[5].mxu0 }
 0x101   :  { %v683_v8 = vpop.f32.mrb[4].mxu1  ;;  %v495_v9 = vadd.f32 %v1074_v61, %v363_v5  ;;  %v571_v10 = vadd.f32 %v570_v7, %v569_v6 }
 0x102   :  { %v377_v11 = vpop.f32.mrb[5].mxu1 }
 0x103   :  { %511 = vst [vmem:[%s1143_s3 + $0x8] sm:$0xff] %v495_v9  ;;  %v368_v12 = vadd.f32 %v571_v10, %v367_v4  ;;  %v572_v13 = vpop.f32.mrb[6].mxu0 }
 0x104   :  { %v573_v14 = vpop.f32.mrb[7].mxu0 }
 0x105   :  { %v686_v15 = vpop.f32.mrb[6].mxu1  ;;  %v496_v16 = vadd.f32 %v1074_v61, %v368_v12  ;;  %v574_v17 = vadd.f32 %v573_v14, %v572_v13 }
 0x106   :  { %v387_v18 = vpop.f32.mrb[7].mxu1 }
 0x107   :  { %512 = vst [vmem:[%s1143_s3 + $0x10] sm:$0xff] %v496_v16  ;;  %v373_v19 = vadd.f32 %v680_v1, %v574_v17  ;;  %v575_v20 = vpop.f32.mrb[8].mxu0 }
 0x108   :  { %v576_v21 = vpop.f32.mrb[9].mxu0 }
 0x109   :  { %v689_v22 = vpop.f32.mrb[8].mxu1  ;;  %v497_v23 = vadd.f32 %v1074_v61, %v373_v19  ;;  %v577_v24 = vadd.f32 %v576_v21, %v575_v20 }
 0x10a   :  { %v397_v25 = vpop.f32.mrb[9].mxu1 }
 0x10b   :  { %513 = vst [vmem:[%s1143_s3 + $0x18] sm:$0xff] %v497_v23  ;;  %v378_v26 = vadd.f32 %v577_v24, %v377_v11  ;;  %v578_v27 = vpop.f32.mrb[10].mxu0 }
 0x10c   :  { %v579_v28 = vpop.f32.mrb[11].mxu0 }
 0x10d   :  { %v692_v29 = vpop.f32.mrb[10].mxu1  ;;  %v498_v30 = vadd.f32 %v1074_v61, %v378_v26  ;;  %v580_v31 = vadd.f32 %v579_v28, %v578_v27 }
 0x10e   :  { %v407_v32 = vpop.f32.mrb[11].mxu1 }
 0x10f   :  { %514 = vst [vmem:[%s1143_s3 + $0x20] sm:$0xff] %v498_v30  ;;  %v383_v33 = vadd.f32 %v683_v8, %v580_v31  ;;  %v581_v34 = vpop.f32.mrb[12].mxu0 }
 0x110   :  { %v582_v35 = vpop.f32.mrb[13].mxu0 }
 0x111   :  { %v695_v36 = vpop.f32.mrb[12].mxu1  ;;  %v499_v37 = vadd.f32 %v1074_v61, %v383_v33  ;;  %v583_v38 = vadd.f32 %v582_v35, %v581_v34 }
 0x112   :  { %v417_v39 = vpop.f32.mrb[13].mxu1 }
 0x113   :  { %515 = vst [vmem:[%s1143_s3 + $0x28] sm:$0xff] %v499_v37  ;;  %v388_v40 = vadd.f32 %v583_v38, %v387_v18  ;;  %v584_v41 = vpop.f32.mrb[14].mxu0 }
 0x114   :  { %v585_v42 = vpop.f32.mrb[15].mxu0 }
 0x115   :  { %v698_v43 = vpop.f32.mrb[14].mxu1  ;;  %v500_v44 = vadd.f32 %v1074_v61, %v388_v40  ;;  %v586_v45 = vadd.f32 %v585_v42, %v584_v41 }
 0x116   :  { %v427_v46 = vpop.f32.mrb[15].mxu1 }
 0x117   :  { %516 = vst [vmem:[%s1143_s3 + $0x30] sm:$0xff] %v500_v44  ;;  %v393_v47 = vadd.f32 %v686_v15, %v586_v45  ;;  %v587_v48 = vpop.f32.mrb[16].mxu0 }
 0x118   :  { %v588_v49 = vpop.f32.mrb[17].mxu0 }
 0x119   :  { %v501_v50 = vadd.f32 %v1074_v61, %v393_v47  ;;  %v589_v51 = vadd.f32 %v588_v49, %v587_v48 }
 0x11b   :  { %517 = vst [vmem:[%s1143_s3 + $0x38] sm:$0xff] %v501_v50  ;;  %v398_v52 = vadd.f32 %v589_v51, %v397_v25  ;;  %v590_v53 = vpop.f32.mrb[18].mxu0 }
 0x11c   :  { %v591_v54 = vpop.f32.mrb[19].mxu0 }
 0x11d   :  { %v502_v55 = vadd.f32 %v1074_v61, %v398_v52  ;;  %v592_v56 = vadd.f32 %v591_v54, %v590_v53 }
 0x11f   :  { %518 = vst [vmem:[%s1143_s3 + $0x40] sm:$0xff] %v502_v55  ;;  %v403_v57 = vadd.f32 %v689_v22, %v592_v56  ;;  %v593_v58 = vpop.f32.mrb[20].mxu0 }
 0x120   :  { %v594_v59 = vpop.f32.mrb[21].mxu0 }
 0x121   :  { %v503_v60 = vadd.f32 %v1074_v61, %v403_v57  ;;  %v595_v62 = vadd.f32 %v594_v59, %v593_v58 }
 0x123   :  { %519 = vst [vmem:[%s1143_s3 + $0x48] sm:$0xff] %v503_v60  ;;  %v408_v63 = vadd.f32 %v595_v62, %v407_v32  ;;  %v596_v0 = vpop.f32.mrb[22].mxu0 }
 0x124   :  { %v597_v1 = vpop.f32.mrb[23].mxu0 }
 0x125   :  { %v504_v2 = vadd.f32 %v1074_v61, %v408_v63  ;;  %v598_v3 = vadd.f32 %v597_v1, %v596_v0 }
 0x127   :  { %520 = vst [vmem:[%s1143_s3 + $0x50] sm:$0xff] %v504_v2  ;;  %v413_v4 = vadd.f32 %v692_v29, %v598_v3  ;;  %v599_v5 = vpop.f32.mrb[24].mxu0 }
 0x128   :  { %v600_v6 = vpop.f32.mrb[25].mxu0 }
 0x129   :  { %v505_v7 = vadd.f32 %v1074_v61, %v413_v4  ;;  %v601_v8 = vadd.f32 %v600_v6, %v599_v5 }
 0x12b   :  { %521 = vst [vmem:[%s1143_s3 + $0x58] sm:$0xff] %v505_v7  ;;  %v418_v9 = vadd.f32 %v601_v8, %v417_v39  ;;  %v602_v10 = vpop.f32.mrb[26].mxu0 }
 0x12c   :  { %v603_v11 = vpop.f32.mrb[27].mxu0 }
 0x12d   :  { %v506_v12 = vadd.f32 %v1074_v61, %v418_v9  ;;  %v604_v13 = vadd.f32 %v603_v11, %v602_v10 }
 0x12f   :  { %522 = vst [vmem:[%s1143_s3 + $0x60] sm:$0xff] %v506_v12  ;;  %v423_v14 = vadd.f32 %v695_v36, %v604_v13  ;;  %v605_v15 = vpop.f32.mrb[28].mxu0 }
 0x130   :  { %v606_v16 = vpop.f32.mrb[29].mxu0 }
 0x131   :  { %v507_v17 = vadd.f32 %v1074_v61, %v423_v14  ;;  %v607_v18 = vadd.f32 %v606_v16, %v605_v15 }
 0x133   :  { %523 = vst [vmem:[%s1143_s3 + $0x68] sm:$0xff] %v507_v17  ;;  %v428_v19 = vadd.f32 %v607_v18, %v427_v46  ;;  %v608_v20 = vpop.f32.mrb[30].mxu0 }
 0x134   :  { %v609_v21 = vpop.f32.mrb[31].mxu0 }
 0x135   :  { %v508_v22 = vadd.f32 %v1074_v61, %v428_v19  ;;  %v610_v23 = vadd.f32 %v609_v21, %v608_v20 }
 0x137   :  { %524 = vst [vmem:[%s1143_s3 + $0x70] sm:$0xff] %v508_v22  ;;  %v433_v24 = vadd.f32 %v698_v43, %v610_v23 }
 0x139   :  { %v509_v25 = vadd.f32 %v1074_v61, %v433_v24 }
 0x13b   :  { %525 = vst [vmem:[%s1143_s3 + $0x78] sm:$0xff] %v509_v25 }

// kernel: transformer_net_pl.34
= control target key start
LH: loop header
LB: loop body
LE: loop exit
PB: predicated region body
PF: predicated region fallthrough
CT: control target
= control target key end

     0   :  { %s451_s12 = smov 0   ;;  %s507_s0 = inlined_call_operand.vmem [shape: f32[2,64,64], index: 0, kind: input, shape index: {}]   ;;  %s508_s1 = inlined_call_operand.vmem [shape: f32[2,1,64], index: 1, kind: input, shape index: {}]   ;;  %s509_s2 = inlined_call_operand.vmem [shape: f32[2,1,64], index: 2, kind: input, shape index: {}]   ;;  %s510_s3 = inlined_call_operand.vmem [shape: f32[2,64,64], index: 3, kind: output, shape index: {}]  }
   0x1 LB: > { %s398_s13 = sadd.s32 4294967295, %s429_s12   ;;  %p402_p0 = scmp.ge.s32.totalorder %s429_s12, 1  ;;  %s429_s12 = sphi %s451_s12, %s13_s12  }
   0x2   : > { %p153_p1 = scmp.lt.s32.totalorder %s429_s12, 3 }
   0x4   : > { %p154_p2 = pnand %p402_p0, %p153_p1 }
   0x5   : > { %p183_p3 = scmp.lt.s32.totalorder (!%p154_p2), %s398_s13, 1  ;;  %vm207_vm0 = vcmask (!%p154_p2), 523264  }
   0x6   : > { %157 = sbr.rel (%p154_p2) target bundleno = 104 (0x68), region = 32 }
   0xd   : > { %s512_s13 = smov (!%p183_p3, %s398_s13), 1 }
   0xe   : > { %s411_s14 = sshll.u32 %s512_s13, 6  ;;  %s190_s20 = scalar_lea.vmem %s508_s1, %s512_s13 }
   0xf   : > { %s187_s17 = scalar_lea.vmem %s507_s0, %s411_s14  ;;  %s193_s23 = scalar_lea.vmem %s509_s2, %s512_s13 }
  0x10   : > { %v199_v0 = vld [vmem:[%s187_s17] sm:$0xff]  ;;  %v200_v1 = vld [vmem:[%s187_s17 + $0x8] sm:$0xff]  ;;  %v201_v2 = vld [vmem:[%s187_s17 + $0x10] sm:$0xff]  ;;  %s198_s26 = scalar_lea.vmem %s510_s3, %s411_s14 }
  0x11   : > { %v202_v3 = vld [vmem:[%s187_s17 + $0x18] sm:$0xff]  ;;  %v208_v4 = vsel %vm207_vm0, %v199_v0, 0.0  ;;  %v209_v5 = vsel %vm207_vm0, %v200_v1, 0.0  ;;  %v211_v6 = vsel %vm207_vm0, %v201_v2, 0.0  ;;  %v203_v7 = vld [vmem:[%s187_s17 + $0x20] sm:$0xff]  ;;  %v204_v10 = vld [vmem:[%s187_s17 + $0x28] sm:$0xff] }
  0x12   : > { %v210_v8 = vadd.f32 %v209_v5, %v208_v4  ;;  %v213_v9 = vsel %vm207_vm0, %v202_v3, 0.0  ;;  %v215_v12 = vsel %vm207_vm0, %v203_v7, 0.0  ;;  %v205_v13 = vld [vmem:[%s187_s17 + $0x30] sm:$0xff]  ;;  %v217_v15 = vsel %vm207_vm0, %v204_v10, 0.0  ;;  %v206_v16 = vld [vmem:[%s187_s17 + $0x38] sm:$0xff] }
  0x13   : > { %v219_v18 = vsel %vm207_vm0, %v205_v13, 0.0  ;;  %v221_v20 = vsel %vm207_vm0, %v206_v16, 0.0 }
  0x14   : > { %v212_v11 = vadd.f32 %v211_v6, %v210_v8  ;;  %v407_v6 = vld [vmem:[%s190_s20] ss:$0 sm:$0xff] }
  0x16   : > { %v214_v14 = vadd.f32 %v213_v9, %v212_v11  ;;  %v408_v11 = vld [vmem:[%s193_s23] ss:$0 sm:$0xff] }
  0x18   : > { %v216_v17 = vadd.f32 %v215_v12, %v214_v14 }
  0x1a   : > { %v218_v19 = vadd.f32 %v217_v15, %v216_v17 }
  0x1c   : > { %v220_v21 = vadd.f32 %v219_v18, %v218_v19 }
  0x1e   : > { %v222_v22 = vadd.f32 %v221_v20, %v220_v21 }
  0x20   : > { %v223_v23 = vrot.slane %v222_v22, 4 }
  0x22   : > { %v224_v24 = vadd.f32 %v223_v23, %v222_v22 }
  0x24   : > { %v225_v25 = vrot.slane %v224_v24, 2 }
  0x26   : > { %v226_v26 = vadd.f32 %v225_v25, %v224_v24 }
  0x28   : > { %v227_v27 = vrot.slane %v226_v26, 1 }
  0x2a   : > { %v228_v28 = vadd.f32 %v227_v27, %v226_v26 }
  0x2c   : > { %v230_v29 = vmul.f32 0.015625, %v228_v28 }
  0x2e   : > { %v231_v30 = vsub.f32 %v199_v0, %v230_v29  ;;  %v232_v31 = vsub.f32 %v200_v1, %v230_v29  ;;  %v233_v32 = vsub.f32 %v201_v2, %v230_v29  ;;  %v234_v33 = vsub.f32 %v202_v3, %v230_v29 }
  0x2f   : > { %v235_v34 = vsub.f32 %v203_v7, %v230_v29  ;;  %v236_v35 = vsub.f32 %v204_v10, %v230_v29  ;;  %v237_v40 = vsub.f32 %v205_v13, %v230_v29  ;;  %v238_v46 = vsub.f32 %v206_v16, %v230_v29 }
  0x30   : > { %v239_v36 = vmul.f32 %v231_v30, %v231_v30  ;;  %v240_v37 = vmul.f32 %v232_v31, %v232_v31  ;;  %v241_v38 = vmul.f32 %v233_v32, %v233_v32  ;;  %v242_v39 = vmul.f32 %v234_v33, %v234_v33 }
  0x31   : > { %v243_v41 = vmul.f32 %v235_v34, %v235_v34  ;;  %v244_v47 = vmul.f32 %v236_v35, %v236_v35  ;;  %v245_v50 = vmul.f32 %v237_v40, %v237_v40  ;;  %v246_v53 = vmul.f32 %v238_v46, %v238_v46 }
  0x32   : > { %v247_v42 = vsel %vm207_vm0, %v239_v36, 0.0  ;;  %v248_v43 = vsel %vm207_vm0, %v240_v37, 0.0  ;;  %v250_v44 = vsel %vm207_vm0, %v241_v38, 0.0  ;;  %v252_v48 = vsel %vm207_vm0, %v242_v39, 0.0 }
  0x33   : > { %v249_v45 = vadd.f32 %v248_v43, %v247_v42  ;;  %v254_v51 = vsel %vm207_vm0, %v243_v41, 0.0  ;;  %v256_v54 = vsel %vm207_vm0, %v244_v47, 0.0  ;;  %v258_v56 = vsel %vm207_vm0, %v245_v50, 0.0 }
  0x34   : > { %v260_v58 = vsel %vm207_vm0, %v246_v53, 0.0 }
  0x35   : > { %v251_v49 = vadd.f32 %v250_v44, %v249_v45 }
  0x37   : > { %v253_v52 = vadd.f32 %v252_v48, %v251_v49 }
  0x39   : > { %v255_v55 = vadd.f32 %v254_v51, %v253_v52 }
  0x3b   : > { %v257_v57 = vadd.f32 %v256_v54, %v255_v55 }
  0x3d   : > { %v259_v59 = vadd.f32 %v258_v56, %v257_v57 }
  0x3f   : > { %v261_v60 = vadd.f32 %v260_v58, %v259_v59 }
  0x41   : > { %v262_v61 = vrot.slane %v261_v60, 4 }
  0x43   : > { %v263_v62 = vadd.f32 %v262_v61, %v261_v60 }
  0x45   : > { %v264_v63 = vrot.slane %v263_v62, 2 }
  0x47   : > { %v265_v0 = vadd.f32 %v264_v63, %v263_v62 }
  0x49   : > { %v266_v1 = vrot.slane %v265_v0, 1 }
  0x4b   : > { %v267_v2 = vadd.f32 %v266_v1, %v265_v0 }
  0x4d   : > { %v268_v3 = vmul.f32 0.015625, %v267_v2 }
  0x4f   : > { %v269_v4 = vadd.f32 1e-05, %v268_v3 }
  0x51   : > { %421 = vrsqrt.f32 %v269_v4 }
  0x5b   : > { %v422_v5 = vpop.eup %421 }
  0x5c   : > { %v271_v7 = vmul.f32 %v422_v5, %v231_v30  ;;  %v272_v8 = vmul.f32 %v422_v5, %v232_v31  ;;  %v273_v9 = vmul.f32 %v422_v5, %v233_v32  ;;  %v274_v10 = vmul.f32 %v422_v5, %v234_v33 }
  0x5d   : > { %v275_v12 = vmul.f32 %v422_v5, %v235_v34  ;;  %v276_v13 = vmul.f32 %v422_v5, %v236_v35  ;;  %v277_v14 = vmul.f32 %v422_v5, %v237_v40  ;;  %v278_v15 = vmul.f32 %v422_v5, %v238_v46 }
  0x5e   : > { %v286_v16 = vmul.f32 %v407_v6, %v271_v7  ;;  %v287_v17 = vmul.f32 %v407_v6, %v272_v8  ;;  %v288_v18 = vmul.f32 %v407_v6, %v273_v9  ;;  %v289_v19 = vmul.f32 %v407_v6, %v274_v10 }
  0x5f   : > { %v290_v20 = vmul.f32 %v407_v6, %v275_v12  ;;  %v291_v21 = vmul.f32 %v407_v6, %v276_v13  ;;  %v292_v22 = vmul.f32 %v407_v6, %v277_v14  ;;  %v293_v23 = vmul.f32 %v407_v6, %v278_v15 }
  0x60   : > { %v301_v24 = vadd.f32 %v408_v11, %v286_v16  ;;  %v302_v25 = vadd.f32 %v408_v11, %v287_v17  ;;  %v303_v26 = vadd.f32 %v408_v11, %v288_v18  ;;  %v304_v27 = vadd.f32 %v408_v11, %v289_v19 }
  0x61   : > { %v305_v28 = vadd.f32 %v408_v11, %v290_v20  ;;  %v306_v29 = vadd.f32 %v408_v11, %v291_v21  ;;  %v307_v30 = vadd.f32 %v408_v11, %v292_v22  ;;  %v308_v31 = vadd.f32 %v408_v11, %v293_v23 }
  0x62   : > { %v309_v32 = vmax.f32 %v301_v24, 0.0  ;;  %v310_v33 = vmax.f32 %v302_v25, 0.0  ;;  %v311_v34 = vmax.f32 %v303_v26, 0.0  ;;  %v312_v35 = vmax.f32 %v304_v27, 0.0 }
  0x63   : > { %v313_v36 = vmax.f32 %v305_v28, 0.0  ;;  %v314_v37 = vmax.f32 %v306_v29, 0.0  ;;  %v315_v38 = vmax.f32 %v307_v30, 0.0  ;;  %v316_v39 = vmax.f32 %v308_v31, 0.0 }
  0x64   : > { %317 = vst.msk [vmem:[%s198_s26] sm:$0xff] %vm207_vm0, %v309_v32  ;;  %318 = vst.msk [vmem:[%s198_s26 + $0x8] sm:$0xff] %vm207_vm0, %v310_v33 }
  0x65   : > { %319 = vst.msk [vmem:[%s198_s26 + $0x10] sm:$0xff] %vm207_vm0, %v311_v34  ;;  %320 = vst.msk [vmem:[%s198_s26 + $0x18] sm:$0xff] %vm207_vm0, %v312_v35 }
  0x66   : > { %321 = vst.msk [vmem:[%s198_s26 + $0x20] sm:$0xff] %vm207_vm0, %v313_v36  ;;  %322 = vst.msk [vmem:[%s198_s26 + $0x28] sm:$0xff] %vm207_vm0, %v314_v37 }
  0x67   : > { %323 = vst.msk [vmem:[%s198_s26 + $0x30] sm:$0xff] %vm207_vm0, %v315_v38  ;;  %324 = vst.msk [vmem:[%s198_s26 + $0x38] sm:$0xff] %vm207_vm0, %v316_v39 }
  0x68 PF: > { %s13_s12 = sadd.s32 1, %s429_s12  }
  0x69   : > { %p10_p4 = scmp.ge.s32.totalorder %s13_s12, 4  }
  0x6b   :  { %12 = sbr.rel (!%p10_p4) target bundleno = 1 (0x1), region = 68 }

// kernel: transformer_net_pl.36
= control target key start
LH: loop header
LB: loop body
LE: loop exit
PB: predicated region body
PF: predicated region fallthrough
CT: control target
= control target key end

     0   :  { %s374_s12 = smov 0   ;;  %s406_s0 = inlined_call_operand.vmem [shape: f32[2,16,128], index: 0, kind: input, shape index: {}]   ;;  %s407_s1 = inlined_call_operand.vmem [shape: f32[2,1,128], index: 1, kind: input, shape index: {}]   ;;  %s408_s2 = inlined_call_operand.vmem [shape: f32[2,1,128], index: 2, kind: input, shape index: {}]   ;;  %s409_s3 = inlined_call_operand.vmem [shape: f32[2,16,128], index: 3, kind: output, shape index: {}]  }
   0x1 LB: > { %s321_s13 = sadd.s32 4294967295, %s352_s12   ;;  %p325_p0 = scmp.ge.s32.totalorder %s352_s12, 1  ;;  %s352_s12 = sphi %s374_s12, %s13_s12  }
   0x2   : > { %p153_p1 = scmp.lt.s32.totalorder %s352_s12, 3 }
   0x4   : > { %p154_p2 = pnand %p325_p0, %p153_p1 }
   0x5   : > { %p183_p3 = scmp.lt.s32.totalorder (!%p154_p2), %s321_s13, 1 }
   0x6   : > { %157 = sbr.rel (%p154_p2) target bundleno = 75 (0x4b), region = 32 }
   0xd   : > { %s411_s13 = smov (!%p183_p3, %s321_s13), 1 }
   0xe   : > { %s334_s14 = sshll.u32 %s411_s13, 4  ;;  %s190_s20 = scalar_lea.vmem %s407_s1, %s411_s13 }
   0xf   : > { %s187_s17 = scalar_lea.vmem %s406_s0, %s334_s14  ;;  %s193_s23 = scalar_lea.vmem %s408_s2, %s411_s13  ;;  %v330_v24 = vld [vmem:[%s190_s20] ss:$0 sm:$0xff] }
  0x10   : > { %v199_v0 = vld [vmem:[%s187_s17] sm:$0xff]  ;;  %v200_v1 = vld [vmem:[%s187_s17 + $0x8] sm:$0xff]  ;;  %s198_s26 = scalar_lea.vmem %s409_s3, %s334_s14 }
  0x11   : > { %v201_v2 = vadd.f32 %v200_v1, %v199_v0  ;;  %v331_v27 = vld [vmem:[%s193_s23] ss:$0 sm:$0xff] }
  0x13   : > { %v202_v3 = vrot.slane %v201_v2, 4 }
  0x15   : > { %v203_v4 = vadd.f32 %v202_v3, %v201_v2 }
  0x17   : > { %v204_v5 = vrot.slane %v203_v4, 2 }
  0x19   : > { %v205_v6 = vadd.f32 %v204_v5, %v203_v4 }
  0x1b   : > { %v206_v7 = vrot.slane %v205_v6, 1 }
  0x1d   : > { %v207_v8 = vadd.f32 %v206_v7, %v205_v6 }
  0x1f   : > { %v209_v9 = vmul.f32 0.0625, %v207_v8 }
  0x21   : > { %v210_v10 = vsub.f32 %v199_v0, %v209_v9  ;;  %v211_v11 = vsub.f32 %v200_v1, %v209_v9 }
  0x23   : > { %v212_v12 = vmul.f32 %v210_v10, %v210_v10  ;;  %v213_v13 = vmul.f32 %v211_v11, %v211_v11 }
  0x25   : > { %v214_v14 = vadd.f32 %v213_v13, %v212_v12 }
  0x27   : > { %v215_v15 = vrot.slane %v214_v14, 4 }
  0x29   : > { %v216_v16 = vadd.f32 %v215_v15, %v214_v14 }
  0x2b   : > { %v217_v17 = vrot.slane %v216_v16, 2 }
  0x2d   : > { %v218_v18 = vadd.f32 %v217_v17, %v216_v16 }
  0x2f   : > { %v219_v19 = vrot.slane %v218_v18, 1 }
  0x31   : > { %v220_v20 = vadd.f32 %v219_v19, %v218_v18 }
  0x33   : > { %v221_v21 = vmul.f32 0.0625, %v220_v20 }
  0x35   : > { %v222_v22 = vadd.f32 1e-05, %v221_v21 }
  0x37   : > { %344 = vrsqrt.f32 %v222_v22 }
  0x41   : > { %v345_v23 = vpop.eup %344 }
  0x42   : > { %v224_v25 = vmul.f32 %v345_v23, %v210_v10  ;;  %v225_v26 = vmul.f32 %v345_v23, %v211_v11 }
  0x44   : > { %v233_v28 = vmul.f32 %v330_v24, %v224_v25  ;;  %v234_v29 = vmul.f32 %v330_v24, %v225_v26 }
  0x46   : > { %v242_v30 = vadd.f32 %v331_v27, %v233_v28  ;;  %v243_v31 = vadd.f32 %v331_v27, %v234_v29 }
  0x48   : > { %v244_v32 = vmax.f32 %v242_v30, 0.0  ;;  %v245_v33 = vmax.f32 %v243_v31, 0.0 }
  0x4a   : > { %246 = vst [vmem:[%s198_s26] sm:$0xff] %v244_v32  ;;  %247 = vst [vmem:[%s198_s26 + $0x8] sm:$0xff] %v245_v33 }
  0x4b PF: > { %s13_s12 = sadd.s32 1, %s352_s12  }
  0x4c   : > { %p10_p4 = scmp.ge.s32.totalorder %s13_s12, 4  }
  0x4e   :  { %12 = sbr.rel (!%p10_p4) target bundleno = 1 (0x1), region = 68 }

// kernel: transformer_net_pl.35
= control target key start
LH: loop header
LB: loop body
LE: loop exit
PB: predicated region body
PF: predicated region fallthrough
CT: control target
= control target key end

     0   :  { %s1009_s1 = inlined_call_operand.vmem [shape: f32[640,128], index: 1, kind: input, shape index: {}]   ;;  %s1010_s0 = inlined_call_operand.vmem [shape: f32[32,640], index: 0, kind: input, shape index: {}]   ;;  %s1011_s2 = inlined_call_operand.vmem [shape: f32[1,128], index: 2, kind: input, shape index: {}]   ;;  %s1012_s3 = inlined_call_operand.vmem [shape: f32[32,128], index: 3, kind: output, shape index: {}]  }
   0x1   :  { %v62_v0 = vld [vmem:[%s1009_s1 + $0x80] sm:$0xff]  ;;  %v63_v1 = vld [vmem:[%s1009_s1 + $0x88] sm:$0xff]  ;;  %v64_v11 = vld [vmem:[%s1009_s1 + $0x90] sm:$0xff] }
   0x2   :  { %v94_v2 = vld [vmem:[%s1009_s1 + $0x180] sm:$0xff]  ;;  %v562_v3 = vpack.c.bf16 %v63_v1, %v62_v0  ;;  %v95_v4 = vld [vmem:[%s1009_s1 + $0x188] sm:$0xff]  ;;  %v65_v13 = vld [vmem:[%s1009_s1 + $0x98] sm:$0xff] }
   0x3   :  { %v46_v5 = vld [vmem:[%s1009_s1] sm:$0xff]  ;;  %v47_v6 = vld [vmem:[%s1009_s1 + $0x8] sm:$0xff]  ;;  %v594_v7 = vpack.c.bf16 %v95_v4, %v94_v2  ;;  %v96_v14 = vld [vmem:[%s1009_s1 + $0x190] sm:$0xff]  ;;  %v566_v16 = vpack.c.bf16 %v65_v13, %v64_v11 }
   0x4   :  { %v564_v8 = vpack.c.bf16 %v47_v6, %v46_v5  ;;  %v78_v9 = vld [vmem:[%s1009_s1 + $0x100] sm:$0xff]  ;;  %v79_v10 = vld [vmem:[%s1009_s1 + $0x108] sm:$0xff]  ;;  %563 = vmatprep.subr.bf16.mxu0 %v562_v3  ;;  %v97_v15 = vld [vmem:[%s1009_s1 + $0x198] sm:$0xff] }
   0x5   :  { %v596_v12 = vpack.c.bf16 %v79_v10, %v78_v9  ;;  %595 = vmatprep.subr.bf16.mxu1 %v594_v7  ;;  %v598_v17 = vpack.c.bf16 %v97_v15, %v96_v14  ;;  %v48_v18 = vld [vmem:[%s1009_s1 + $0x10] sm:$0xff]  ;;  %v49_v19 = vld [vmem:[%s1009_s1 + $0x18] sm:$0xff]  ;;  %v66_v23 = vld [vmem:[%s1009_s1 + $0xa0] sm:$0xff] }
   0x6   :  { %565 = vmatpush3.bf16.msra.mxu0 %v564_v8  ;;  %v80_v20 = vld [vmem:[%s1009_s1 + $0x110] sm:$0xff]  ;;  %v568_v21 = vpack.c.bf16 %v49_v19, %v48_v18  ;;  %v81_v22 = vld [vmem:[%s1009_s1 + $0x118] sm:$0xff]  ;;  %v67_v24 = vld [vmem:[%s1009_s1 + $0xa8] sm:$0xff] }
   0x7   :  { %597 = vmatpush3.bf16.msra.mxu1 %v596_v12  ;;  %567 = vmatprep.subr.bf16.mxu0 %v566_v16  ;;  %v600_v25 = vpack.c.bf16 %v81_v22, %v80_v20  ;;  %v570_v26 = vpack.c.bf16 %v67_v24, %v66_v23  ;;  %v98_v27 = vld [vmem:[%s1009_s1 + $0x1a0] sm:$0xff]  ;;  %v99_v28 = vld [vmem:[%s1009_s1 + $0x1a8] sm:$0xff]  ;;  %v68_v35 = vld [vmem:[%s1009_s1 + $0xb0] sm:$0xff] }
   0x8   :  { %599 = vmatprep.subr.bf16.mxu1 %v598_v17  ;;  %v50_v29 = vld [vmem:[%s1009_s1 + $0x20] sm:$0xff]  ;;  %v602_v30 = vpack.c.bf16 %v99_v28, %v98_v27  ;;  %v51_v31 = vld [vmem:[%s1009_s1 + $0x28] sm:$0xff]  ;;  %v69_v36 = vld [vmem:[%s1009_s1 + $0xb8] sm:$0xff] }
   0x9   :  { %v82_v32 = vld [vmem:[%s1009_s1 + $0x120] sm:$0xff]  ;;  %v83_v33 = vld [vmem:[%s1009_s1 + $0x128] sm:$0xff]  ;;  %v572_v34 = vpack.c.bf16 %v51_v31, %v50_v29  ;;  %v100_v37 = vld [vmem:[%s1009_s1 + $0x1b0] sm:$0xff]  ;;  %v574_v39 = vpack.c.bf16 %v69_v36, %v68_v35 }
   0xa   :  { %569 = vmatpush3.bf16.msra.mxu0 %v568_v21  ;;  %v604_v38 = vpack.c.bf16 %v83_v33, %v82_v32  ;;  %v101_v40 = vld [vmem:[%s1009_s1 + $0x1b8] sm:$0xff]  ;;  %v52_v41 = vld [vmem:[%s1009_s1 + $0x30] sm:$0xff]  ;;  %v70_v46 = vld [vmem:[%s1009_s1 + $0xc0] sm:$0xff] }
   0xb   :  { %601 = vmatpush3.bf16.msra.mxu1 %v600_v25  ;;  %571 = vmatprep.subr.bf16.mxu0 %v570_v26  ;;  %v53_v42 = vld [vmem:[%s1009_s1 + $0x38] sm:$0xff]  ;;  %v606_v43 = vpack.c.bf16 %v101_v40, %v100_v37  ;;  %v84_v44 = vld [vmem:[%s1009_s1 + $0x130] sm:$0xff]  ;;  %v71_v47 = vld [vmem:[%s1009_s1 + $0xc8] sm:$0xff] }
   0xc   :  { %603 = vmatprep.subr.bf16.mxu1 %v602_v30  ;;  %v85_v45 = vld [vmem:[%s1009_s1 + $0x138] sm:$0xff]  ;;  %v102_v48 = vld [vmem:[%s1009_s1 + $0x1c0] sm:$0xff]  ;;  %v103_v49 = vld [vmem:[%s1009_s1 + $0x1c8] sm:$0xff]  ;;  %v576_v50 = vpack.c.bf16 %v53_v42, %v52_v41  ;;  %v578_v52 = vpack.c.bf16 %v71_v47, %v70_v46 }
   0xd   :  { %v608_v51 = vpack.c.bf16 %v85_v45, %v84_v44  ;;  %v54_v53 = vld [vmem:[%s1009_s1 + $0x40] sm:$0xff]  ;;  %v55_v54 = vld [vmem:[%s1009_s1 + $0x48] sm:$0xff]  ;;  %v610_v56 = vpack.c.bf16 %v103_v49, %v102_v48  ;;  %v72_v58 = vld [vmem:[%s1009_s1 + $0xd0] sm:$0xff] }
   0xe   :  { %573 = vmatpush3.bf16.msra.mxu0 %v572_v34  ;;  %v86_v55 = vld [vmem:[%s1009_s1 + $0x140] sm:$0xff]  ;;  %v87_v57 = vld [vmem:[%s1009_s1 + $0x148] sm:$0xff]  ;;  %v73_v59 = vld [vmem:[%s1009_s1 + $0xd8] sm:$0xff]  ;;  %v580_v62 = vpack.c.bf16 %v55_v54, %v54_v53 }
   0xf   :  { %605 = vmatpush3.bf16.msra.mxu1 %v604_v38  ;;  %575 = vmatprep.subr.bf16.mxu0 %v574_v39  ;;  %v104_v60 = vld [vmem:[%s1009_s1 + $0x1d0] sm:$0xff]  ;;  %v105_v61 = vld [vmem:[%s1009_s1 + $0x1d8] sm:$0xff]  ;;  %v612_v63 = vpack.c.bf16 %v87_v57, %v86_v55  ;;  %v582_v0 = vpack.c.bf16 %v73_v59, %v72_v58  ;;  %v74_v6 = vld [vmem:[%s1009_s1 + $0xe0] sm:$0xff] }
  0x10   :  { %607 = vmatprep.subr.bf16.mxu1 %v606_v43  ;;  %v56_v1 = vld [vmem:[%s1009_s1 + $0x50] sm:$0xff]  ;;  %v57_v2 = vld [vmem:[%s1009_s1 + $0x58] sm:$0xff]  ;;  %v614_v4 = vpack.c.bf16 %v105_v61, %v104_v60  ;;  %v75_v7 = vld [vmem:[%s1009_s1 + $0xe8] sm:$0xff] }
  0x11   :  { %v88_v3 = vld [vmem:[%s1009_s1 + $0x150] sm:$0xff]  ;;  %v89_v5 = vld [vmem:[%s1009_s1 + $0x158] sm:$0xff]  ;;  %v106_v8 = vld [vmem:[%s1009_s1 + $0x1e0] sm:$0xff]  ;;  %v584_v10 = vpack.c.bf16 %v57_v2, %v56_v1  ;;  %v586_v14 = vpack.c.bf16 %v75_v7, %v74_v6 }
  0x12   :  { %577 = vmatpush3.bf16.msra.mxu0 %v576_v50  ;;  %v107_v9 = vld [vmem:[%s1009_s1 + $0x1e8] sm:$0xff]  ;;  %v58_v11 = vld [vmem:[%s1009_s1 + $0x60] sm:$0xff]  ;;  %v616_v13 = vpack.c.bf16 %v89_v5, %v88_v3  ;;  %v29_v17 = vld [vmem:[%s1010_s0 + $0x18] sm:$0xff] }
  0x13   :  { %609 = vmatpush3.bf16.msra.mxu1 %v608_v51  ;;  %579 = vmatprep.subr.bf16.mxu0 %v578_v52  ;;  %v59_v12 = vld [vmem:[%s1009_s1 + $0x68] sm:$0xff]  ;;  %v90_v15 = vld [vmem:[%s1009_s1 + $0x160] sm:$0xff]  ;;  %v618_v18 = vpack.c.bf16 %v107_v9, %v106_v8  ;;  %v76_v20 = vld [vmem:[%s1009_s1 + $0xf0] sm:$0xff] }
  0x14   :  { %611 = vmatprep.subr.bf16.mxu1 %v610_v56  ;;  %v27_v16 = vld [vmem:[%s1010_s0 + $0x8] sm:$0xff]  ;;  %v77_v21 = vld [vmem:[%s1009_s1 + $0xf8] sm:$0xff]  ;;  %v108_v22 = vld [vmem:[%s1009_s1 + $0x1f0] sm:$0xff]  ;;  %275 = vmatprep.mubr.f32.mxu1 %v29_v17  ;;  %v588_v24 = vpack.c.bf16 %v59_v12, %v58_v11 }
  0x15   :  { %v91_v19 = vld [vmem:[%s1009_s1 + $0x168] sm:$0xff]  ;;  %190 = vmatprep.mubr.f32.mxu0 %v27_v16  ;;  %v109_v23 = vld [vmem:[%s1009_s1 + $0x1f8] sm:$0xff]  ;;  %v590_v26 = vpack.c.bf16 %v77_v21, %v76_v20  ;;  %v60_v27 = vld [vmem:[%s1009_s1 + $0x70] sm:$0xff] }
  0x16   :  { %581 = vmatpush3.bf16.msra.mxu0 %v580_v62  ;;  %v620_v25 = vpack.c.bf16 %v91_v19, %v90_v15  ;;  %v61_v28 = vld [vmem:[%s1009_s1 + $0x78] sm:$0xff]  ;;  %v92_v29 = vld [vmem:[%s1009_s1 + $0x170] sm:$0xff]  ;;  %v622_v30 = vpack.c.bf16 %v109_v23, %v108_v22  ;;  %v110_v32 = vld [vmem:[%s1009_s1 + $0x200] sm:$0xff] }
  0x17   :  { %613 = vmatpush3.bf16.msra.mxu1 %v612_v63  ;;  %583 = vmatprep.subr.bf16.mxu0 %v582_v0  ;;  %v93_v31 = vld [vmem:[%s1009_s1 + $0x178] sm:$0xff]  ;;  %v111_v33 = vld [vmem:[%s1009_s1 + $0x208] sm:$0xff]  ;;  %v592_v34 = vpack.c.bf16 %v61_v28, %v60_v27  ;;  %v112_v37 = vld [vmem:[%s1009_s1 + $0x210] sm:$0xff] }
  0x18   :  { %615 = vmatprep.subr.bf16.mxu1 %v614_v4  ;;  %v624_v35 = vpack.c.bf16 %v93_v31, %v92_v29  ;;  %v626_v36 = vpack.c.bf16 %v111_v33, %v110_v32  ;;  %v113_v38 = vld [vmem:[%s1009_s1 + $0x218] sm:$0xff]  ;;  %v26_v39 = vld [vmem:[%s1010_s0] sm:$0xff]  ;;  %v28_v40 = vld [vmem:[%s1010_s0 + $0x10] sm:$0xff] }
  0x19   :  { %v630_v41 = vpack.c.bf16 %v113_v38, %v112_v37  ;;  %v114_v42 = vld [vmem:[%s1009_s1 + $0x220] sm:$0xff]  ;;  %v115_v43 = vld [vmem:[%s1009_s1 + $0x228] sm:$0xff]  ;;  %v32_v44 = vld [vmem:[%s1010_s0 + $0x30] sm:$0xff] }
  0x1a   :  { %585 = vmatpush3.bf16.msra.mxu0 %v584_v10  ;;  %v34_v45 = vld [vmem:[%s1010_s0 + $0x40] sm:$0xff]  ;;  %v31_v46 = vld [vmem:[%s1010_s0 + $0x28] sm:$0xff]  ;;  %v634_v47 = vpack.c.bf16 %v115_v43, %v114_v42  ;;  %v33_v48 = vld [vmem:[%s1010_s0 + $0x38] sm:$0xff] }
  0x1b   :  { %617 = vmatpush3.bf16.msra.mxu1 %v616_v13  ;;  %587 = vmatprep.subr.bf16.mxu0 %v586_v14  ;;  %v116_v49 = vld [vmem:[%s1009_s1 + $0x230] sm:$0xff]  ;;  %v117_v50 = vld [vmem:[%s1009_s1 + $0x238] sm:$0xff]  ;;  %v39_v52 = vld [vmem:[%s1010_s0 + $0x68] sm:$0xff] }
  0x1c   :  { %619 = vmatprep.subr.bf16.mxu1 %v618_v18  ;;  %v37_v51 = vld [vmem:[%s1010_s0 + $0x58] sm:$0xff]  ;;  %v36_v53 = vld [vmem:[%s1010_s0 + $0x50] sm:$0xff]  ;;  %v638_v54 = vpack.c.bf16 %v117_v50, %v116_v49  ;;  %v38_v55 = vld [vmem:[%s1010_s0 + $0x60] sm:$0xff] }
  0x1d   :  { %v118_v56 = vld [vmem:[%s1009_s1 + $0x240] sm:$0xff]  ;;  %v119_v57 = vld [vmem:[%s1009_s1 + $0x248] sm:$0xff]  ;;  %v44_v59 = vld [vmem:[%s1010_s0 + $0x90] sm:$0xff] }
  0x1e   :  { %589 = vmatpush3.bf16.msra.mxu0 %v588_v24  ;;  %v42_v58 = vld [vmem:[%s1010_s0 + $0x80] sm:$0xff]  ;;  %v41_v60 = vld [vmem:[%s1010_s0 + $0x78] sm:$0xff]  ;;  %v642_v61 = vpack.c.bf16 %v119_v57, %v118_v56  ;;  %v43_v62 = vld [vmem:[%s1010_s0 + $0x88] sm:$0xff] }
  0x1f   :  { %621 = vmatpush3.bf16.msra.mxu1 %v620_v25  ;;  %591 = vmatprep.subr.bf16.mxu0 %v590_v26  ;;  %v120_v63 = vld [vmem:[%s1009_s1 + $0x250] sm:$0xff]  ;;  %v121_v0 = vld [vmem:[%s1009_s1 + $0x258] sm:$0xff]  ;;  %v30_v1 = vld [vmem:[%s1010_s0 + $0x20] sm:$0xff] }
  0x20   :  { %623 = vmatprep.subr.bf16.mxu1 %v622_v30  ;;  %v40_v2 = vld [vmem:[%s1010_s0 + $0x70] sm:$0xff]  ;;  %v646_v3 = vpack.c.bf16 %v121_v0, %v120_v63  ;;  %v122_v4 = vld [vmem:[%s1009_s1 + $0x260] sm:$0xff]  ;;  %v123_v5 = vld [vmem:[%s1009_s1 + $0x268] sm:$0xff] }
  0x21   :  { %v650_v6 = vpack.c.bf16 %v123_v5, %v122_v4  ;;  %v124_v7 = vld [vmem:[%s1009_s1 + $0x270] sm:$0xff]  ;;  %v125_v8 = vld [vmem:[%s1009_s1 + $0x278] sm:$0xff]  ;;  %v35_v10 = vld [vmem:[%s1010_s0 + $0x48] sm:$0xff] }
  0x22   :  { %593 = vmatpush3.bf16.msra.mxu0 %v592_v34  ;;  %v654_v9 = vpack.c.bf16 %v125_v8, %v124_v7  ;;  %v45_v11 = vld [vmem:[%s1010_s0 + $0x98] sm:$0xff] }
  0x23   :  { %625 = vmatpush3.bf16.msra.mxu1 %v624_v35  ;;  %627 = vmatprep.subr.bf16.mxu0 %v626_v36 }
  0x24   :  { %658 = vmatprep.subr.bf16.mxu1 %v626_v36 }
  0x25   :  { %191 = vmatmul.mubr.f32.vlgmr.msra.gmra.mrb[0].mxu0 %v26_v39 }
  0x26   :  { %276 = vmatmul.mubr.f32.vlgmr.msra.gmra.mrb[0].mxu1 %v28_v40  ;;  %629 = vmatpush3.bf16.msra.mxu0 %v626_v36 }
  0x27   :  { %666 = vmatpush3.bf16.msra.mxu1 %v626_v36  ;;  %631 = vmatprep.subr.bf16.mxu0 %v630_v41 }
  0x28   :  { %659 = vmatprep.subr.bf16.mxu1 %v630_v41  ;;  %195 = vmatprep.mubr.f32.mxu0 %v32_v44 }
  0x29   :  { %280 = vmatprep.mubr.f32.mxu1 %v34_v45  ;;  %196 = vmatmul.mubr.f32.gmra.mrb[2].mxu0 %v31_v46 }
  0x2a   :  { %633 = vmatpush3.bf16.msra.mxu0 %v630_v41  ;;  %281 = vmatmul.mubr.f32.gmra.mrb[2].mxu1 %v33_v48 }
  0x2b   :  { %667 = vmatpush3.bf16.msra.mxu1 %v630_v41  ;;  %635 = vmatprep.subr.bf16.mxu0 %v634_v47  ;;  %v415_v41 = vld [vmem:[%s1011_s2] ss:$0 sm:$0xff] }
  0x2c   :  { %660 = vmatprep.subr.bf16.mxu1 %v634_v47  ;;  %200 = vmatprep.mubr.f32.mxu0 %v37_v51 }
  0x2d   :  { %285 = vmatprep.mubr.f32.mxu1 %v39_v52  ;;  %201 = vmatmul.mubr.f32.gmra.mrb[4].mxu0 %v36_v53 }
  0x2e   :  { %637 = vmatpush3.bf16.msra.mxu0 %v634_v47  ;;  %286 = vmatmul.mubr.f32.gmra.mrb[4].mxu1 %v38_v55 }
  0x2f   :  { %668 = vmatpush3.bf16.msra.mxu1 %v634_v47  ;;  %639 = vmatprep.subr.bf16.mxu0 %v638_v54 }
  0x30   :  { %661 = vmatprep.subr.bf16.mxu1 %v638_v54  ;;  %205 = vmatprep.mubr.f32.mxu0 %v42_v58 }
  0x31   :  { %290 = vmatprep.mubr.f32.mxu1 %v44_v59  ;;  %206 = vmatmul.mubr.f32.gmra.mrb[6].mxu0 %v41_v60 }
  0x32   :  { %641 = vmatpush3.bf16.msra.mxu0 %v638_v54  ;;  %291 = vmatmul.mubr.f32.gmra.mrb[6].mxu1 %v43_v62 }
  0x33   :  { %669 = vmatpush3.bf16.msra.mxu1 %v638_v54  ;;  %643 = vmatprep.subr.bf16.mxu0 %v642_v61 }
  0x34   :  { %662 = vmatprep.subr.bf16.mxu1 %v642_v61  ;;  %556 = vmatprep.mubr.f32.mxu0 %v30_v1 }
  0x35   :  { %559 = vmatprep.mubr.f32.mxu1 %v40_v2 }
  0x36   :  { %645 = vmatpush3.bf16.msra.mxu0 %v642_v61 }
  0x37   :  { %670 = vmatpush3.bf16.msra.mxu1 %v642_v61  ;;  %647 = vmatprep.subr.bf16.mxu0 %v646_v3 }
  0x38   :  { %663 = vmatprep.subr.bf16.mxu1 %v646_v3 }
  0x3a   :  { %649 = vmatpush3.bf16.msra.mxu0 %v646_v3 }
  0x3b   :  { %671 = vmatpush3.bf16.msra.mxu1 %v646_v3  ;;  %651 = vmatprep.subr.bf16.mxu0 %v650_v6 }
  0x3c   :  { %664 = vmatprep.subr.bf16.mxu1 %v650_v6 }
  0x3e   :  { %653 = vmatpush3.bf16.msra.mxu0 %v650_v6 }
  0x3f   :  { %672 = vmatpush3.bf16.msra.mxu1 %v650_v6  ;;  %655 = vmatprep.subr.bf16.mxu0 %v654_v9 }
  0x40   :  { %665 = vmatprep.subr.bf16.mxu1 %v654_v9 }
  0x42   :  { %657 = vmatpush3.bf16.msra.mxu0 %v654_v9 }
  0x43   :  { %673 = vmatpush3.bf16.msra.mxu1 %v654_v9 }
  0x45   :  { %557 = vmatmul.mubr.f32.vlgmr.msra.gmra.mrb[8].mxu0 %v35_v10 }
  0x46   :  { %560 = vmatmul.mubr.f32.vlgmr.msra.gmra.mrb[8].mxu1 %v45_v11 }
  0xf8   :  { %v448_v12 = vpop.f32.mrb[0].mxu0 }
  0xf9   :  { %v492_v13 = vpop.f32.mrb[0].mxu1  ;;  %v449_v14 = vpop.f32.mrb[1].mxu0 }
  0xfa   :  { %v450_v15 = vadd.f32 %v449_v14, %v448_v12  ;;  %v493_v16 = vpop.f32.mrb[1].mxu1 }
  0xfb   :  { %v494_v17 = vadd.f32 %v493_v16, %v492_v13 }
  0xfc   :  { %v451_v18 = vpop.f32.mrb[2].mxu0 }
  0xfd   :  { %v495_v19 = vpop.f32.mrb[2].mxu1  ;;  %v452_v20 = vpop.f32.mrb[3].mxu0  ;;  %v278_v21 = vadd.f32 %v494_v17, %v450_v15 }
  0xfe   :  { %v453_v22 = vadd.f32 %v452_v20, %v451_v18  ;;  %v496_v23 = vpop.f32.mrb[3].mxu1 }
  0xff   :  { %v497_v24 = vadd.f32 %v496_v23, %v495_v19 }
 0x100   :  { %v454_v25 = vpop.f32.mrb[4].mxu0 }
 0x101   :  { %v498_v26 = vpop.f32.mrb[4].mxu1  ;;  %v455_v27 = vpop.f32.mrb[5].mxu0  ;;  %v283_v28 = vadd.f32 %v497_v24, %v453_v22 }
 0x102   :  { %v456_v29 = vadd.f32 %v455_v27, %v454_v25  ;;  %v499_v30 = vpop.f32.mrb[5].mxu1 }
 0x103   :  { %v500_v31 = vadd.f32 %v499_v30, %v498_v26 }
 0x104   :  { %v457_v32 = vpop.f32.mrb[6].mxu0 }
 0x105   :  { %v501_v33 = vpop.f32.mrb[6].mxu1  ;;  %v458_v34 = vpop.f32.mrb[7].mxu0  ;;  %v288_v35 = vadd.f32 %v500_v31, %v456_v29 }
 0x106   :  { %v459_v36 = vadd.f32 %v458_v34, %v457_v32  ;;  %v502_v37 = vpop.f32.mrb[7].mxu1 }
 0x107   :  { %v503_v38 = vadd.f32 %v502_v37, %v501_v33 }
 0x109   :  { %v293_v39 = vadd.f32 %v503_v38, %v459_v36 }
 0x118   :  { %v558_v40 = vpop.f32.mrb[8].mxu0 }
 0x119   :  { %v368_v42 = vadd.f32 %v558_v40, %v283_v28  ;;  %v561_v43 = vpop.f32.mrb[8].mxu1  ;;  %v362_v44 = vpop.f32.mrb[9].mxu0 }
 0x11a   :  { %v378_v45 = vadd.f32 %v561_v43, %v293_v39  ;;  %v363_v46 = vadd.f32 %v362_v44, %v278_v21  ;;  %v372_v47 = vpop.f32.mrb[9].mxu1 }
 0x11b   :  { %v404_v48 = vadd.f32 %v415_v41, %v368_v42  ;;  %v373_v49 = vadd.f32 %v372_v47, %v288_v35 }
 0x11c   :  { %v406_v50 = vadd.f32 %v415_v41, %v378_v45  ;;  %v403_v51 = vadd.f32 %v415_v41, %v363_v46 }
 0x11d   :  { %408 = vst [vmem:[%s1012_s3 + $0x8] sm:$0xff] %v404_v48  ;;  %v405_v52 = vadd.f32 %v415_v41, %v373_v49 }
 0x11e   :  { %410 = vst [vmem:[%s1012_s3 + $0x18] sm:$0xff] %v406_v50  ;;  %407 = vst [vmem:[%s1012_s3] sm:$0xff] %v403_v51 }
 0x11f   :  { %409 = vst [vmem:[%s1012_s3 + $0x10] sm:$0xff] %v405_v52 }

// kernel: transformer_net_pl.40
= control target key start
LH: loop header
LB: loop body
LE: loop exit
PB: predicated region body
PF: predicated region fallthrough
CT: control target
= control target key end

     0   :  { %s443_s15 = smov 0   ;;  %s479_s0 = inlined_call_operand.vmem [shape: f32[2,16,128], index: 0, kind: input, shape index: {}]   ;;  %s480_s1 = inlined_call_operand.vmem [shape: f32[2,1,128], index: 1, kind: input, shape index: {}]   ;;  %s481_s2 = inlined_call_operand.vmem [shape: f32[2,1,128], index: 2, kind: input, shape index: {}]   ;;  %s482_s3 = inlined_call_operand.vmem [shape: f32[2,16,128], index: 3, kind: input, shape index: {}]   ;;  %s483_s4 = inlined_call_operand.vmem [shape: f32[2,16,128], index: 4, kind: output, shape index: {}]  }
   0x1 LB: > { %s382_s16 = sadd.s32 4294967295, %s416_s15   ;;  %p386_p0 = scmp.ge.s32.totalorder %s416_s15, 1  ;;  %s416_s15 = sphi %s443_s15, %s14_s15  }
   0x2   : > { %p188_p1 = scmp.lt.s32.totalorder %s416_s15, 3 }
   0x4   : > { %p189_p2 = pnand %p386_p0, %p188_p1 }
   0x5   : > { %p225_p3 = scmp.lt.s32.totalorder (!%p189_p2), %s382_s16, 1 }
   0x6   : > { %192 = sbr.rel (%p189_p2) target bundleno = 75 (0x4b), region = 36 }
   0xd   : > { %s485_s16 = smov (!%p225_p3, %s382_s16), 1 }
   0xe   : > { %s454_s17 = sshll.u32 %s485_s16, 4  ;;  %s232_s23 = scalar_lea.vmem %s480_s1, %s485_s16 }
   0xf   : > { %s229_s20 = scalar_lea.vmem %s479_s0, %s454_s17  ;;  %s235_s26 = scalar_lea.vmem %s481_s2, %s485_s16  ;;  %v393_v24 = vld [vmem:[%s232_s23] ss:$0 sm:$0xff] }
  0x10   : > { %v246_v0 = vld [vmem:[%s229_s20] sm:$0xff]  ;;  %v247_v1 = vld [vmem:[%s229_s20 + $0x8] sm:$0xff]  ;;  %s240_s29 = scalar_lea.vmem %s482_s3, %s454_s17  ;;  %s245_s6 = scalar_lea.vmem %s483_s4, %s454_s17 }
  0x11   : > { %v248_v2 = vadd.f32 %v247_v1, %v246_v0  ;;  %v394_v27 = vld [vmem:[%s235_s26] ss:$0 sm:$0xff]  ;;  %v292_v31 = vld [vmem:[%s240_s29 + $0x8] sm:$0xff] }
  0x12   : > { %v291_v30 = vld [vmem:[%s240_s29] sm:$0xff] }
  0x13   : > { %v249_v3 = vrot.slane %v248_v2, 4 }
  0x15   : > { %v250_v4 = vadd.f32 %v249_v3, %v248_v2 }
  0x17   : > { %v251_v5 = vrot.slane %v250_v4, 2 }
  0x19   : > { %v252_v6 = vadd.f32 %v251_v5, %v250_v4 }
  0x1b   : > { %v253_v7 = vrot.slane %v252_v6, 1 }
  0x1d   : > { %v254_v8 = vadd.f32 %v253_v7, %v252_v6 }
  0x1f   : > { %v256_v9 = vmul.f32 0.0625, %v254_v8 }
  0x21   : > { %v257_v10 = vsub.f32 %v246_v0, %v256_v9  ;;  %v258_v11 = vsub.f32 %v247_v1, %v256_v9 }
  0x23   : > { %v259_v12 = vmul.f32 %v257_v10, %v257_v10  ;;  %v260_v13 = vmul.f32 %v258_v11, %v258_v11 }
  0x25   : > { %v261_v14 = vadd.f32 %v260_v13, %v259_v12 }
  0x27   : > { %v262_v15 = vrot.slane %v261_v14, 4 }
  0x29   : > { %v263_v16 = vadd.f32 %v262_v15, %v261_v14 }
  0x2b   : > { %v264_v17 = vrot.slane %v263_v16, 2 }
  0x2d   : > { %v265_v18 = vadd.f32 %v264_v17, %v263_v16 }
  0x2f   : > { %v266_v19 = vrot.slane %v265_v18, 1 }
  0x31   : > { %v267_v20 = vadd.f32 %v266_v19, %v265_v18 }
  0x33   : > { %v268_v21 = vmul.f32 0.0625, %v267_v20 }
  0x35   : > { %v269_v22 = vadd.f32 1e-05, %v268_v21 }
  0x37   : > { %408 = vrsqrt.f32 %v269_v22 }
  0x41   : > { %v409_v23 = vpop.eup %408 }
  0x42   : > { %v271_v25 = vmul.f32 %v409_v23, %v257_v10  ;;  %v272_v26 = vmul.f32 %v409_v23, %v258_v11 }
  0x44   : > { %v280_v28 = vmul.f32 %v393_v24, %v271_v25  ;;  %v281_v29 = vmul.f32 %v393_v24, %v272_v26 }
  0x46   : > { %v289_v32 = vadd.f32 %v394_v27, %v280_v28  ;;  %v290_v33 = vadd.f32 %v394_v27, %v281_v29 }
  0x48   : > { %v293_v34 = vadd.f32 %v291_v30, %v289_v32  ;;  %v294_v35 = vadd.f32 %v292_v31, %v290_v33 }
  0x4a   : > { %295 = vst [vmem:[%s245_s6] sm:$0xff] %v293_v34  ;;  %296 = vst [vmem:[%s245_s6 + $0x8] sm:$0xff] %v294_v35 }
  0x4b PF: > { %s14_s15 = sadd.s32 1, %s416_s15  }
  0x4c   : > { %p11_p4 = scmp.ge.s32.totalorder %s14_s15, 4  }
  0x4e   :  { %13 = sbr.rel (!%p11_p4) target bundleno = 1 (0x1), region = 75 }

// kernel: transformer_net_pl.37
= control target key start
LH: loop header
LB: loop body
LE: loop exit
PB: predicated region body
PF: predicated region fallthrough
CT: control target
= control target key end

     0   :  { %s1651_s1 = inlined_call_operand.vmem [shape: f32[1152,128], index: 1, kind: input, shape index: {}]   ;;  %s1652_s0 = inlined_call_operand.vmem [shape: f32[32,1152], index: 0, kind: input, shape index: {}]   ;;  %s1653_s2 = inlined_call_operand.vmem [shape: f32[1,128], index: 2, kind: input, shape index: {}]   ;;  %s1654_s3 = inlined_call_operand.vmem [shape: f32[32,128], index: 3, kind: output, shape index: {}]  }
   0x1   :  { %v78_v0 = vld [vmem:[%s1651_s1 + $0x80] sm:$0xff]  ;;  %v79_v1 = vld [vmem:[%s1651_s1 + $0x88] sm:$0xff]  ;;  %v80_v11 = vld [vmem:[%s1651_s1 + $0x90] sm:$0xff] }
   0x2   :  { %v110_v2 = vld [vmem:[%s1651_s1 + $0x180] sm:$0xff]  ;;  %v900_v3 = vpack.c.bf16 %v79_v1, %v78_v0  ;;  %v111_v4 = vld [vmem:[%s1651_s1 + $0x188] sm:$0xff]  ;;  %v81_v13 = vld [vmem:[%s1651_s1 + $0x98] sm:$0xff] }
   0x3   :  { %v62_v5 = vld [vmem:[%s1651_s1] sm:$0xff]  ;;  %v63_v6 = vld [vmem:[%s1651_s1 + $0x8] sm:$0xff]  ;;  %v932_v7 = vpack.c.bf16 %v111_v4, %v110_v2  ;;  %v112_v14 = vld [vmem:[%s1651_s1 + $0x190] sm:$0xff]  ;;  %v904_v16 = vpack.c.bf16 %v81_v13, %v80_v11 }
   0x4   :  { %v902_v8 = vpack.c.bf16 %v63_v6, %v62_v5  ;;  %v94_v9 = vld [vmem:[%s1651_s1 + $0x100] sm:$0xff]  ;;  %v95_v10 = vld [vmem:[%s1651_s1 + $0x108] sm:$0xff]  ;;  %901 = vmatprep.subr.bf16.mxu0 %v900_v3  ;;  %v113_v15 = vld [vmem:[%s1651_s1 + $0x198] sm:$0xff] }
   0x5   :  { %v934_v12 = vpack.c.bf16 %v95_v10, %v94_v9  ;;  %933 = vmatprep.subr.bf16.mxu1 %v932_v7  ;;  %v936_v17 = vpack.c.bf16 %v113_v15, %v112_v14  ;;  %v64_v18 = vld [vmem:[%s1651_s1 + $0x10] sm:$0xff]  ;;  %v65_v19 = vld [vmem:[%s1651_s1 + $0x18] sm:$0xff]  ;;  %v82_v23 = vld [vmem:[%s1651_s1 + $0xa0] sm:$0xff] }
   0x6   :  { %903 = vmatpush3.bf16.msra.mxu0 %v902_v8  ;;  %v96_v20 = vld [vmem:[%s1651_s1 + $0x110] sm:$0xff]  ;;  %v906_v21 = vpack.c.bf16 %v65_v19, %v64_v18  ;;  %v97_v22 = vld [vmem:[%s1651_s1 + $0x118] sm:$0xff]  ;;  %v83_v24 = vld [vmem:[%s1651_s1 + $0xa8] sm:$0xff] }
   0x7   :  { %935 = vmatpush3.bf16.msra.mxu1 %v934_v12  ;;  %905 = vmatprep.subr.bf16.mxu0 %v904_v16  ;;  %v938_v25 = vpack.c.bf16 %v97_v22, %v96_v20  ;;  %v908_v26 = vpack.c.bf16 %v83_v24, %v82_v23  ;;  %v114_v27 = vld [vmem:[%s1651_s1 + $0x1a0] sm:$0xff]  ;;  %v115_v28 = vld [vmem:[%s1651_s1 + $0x1a8] sm:$0xff]  ;;  %v84_v35 = vld [vmem:[%s1651_s1 + $0xb0] sm:$0xff] }
   0x8   :  { %937 = vmatprep.subr.bf16.mxu1 %v936_v17  ;;  %v66_v29 = vld [vmem:[%s1651_s1 + $0x20] sm:$0xff]  ;;  %v940_v30 = vpack.c.bf16 %v115_v28, %v114_v27  ;;  %v67_v31 = vld [vmem:[%s1651_s1 + $0x28] sm:$0xff]  ;;  %v85_v36 = vld [vmem:[%s1651_s1 + $0xb8] sm:$0xff] }
   0x9   :  { %v98_v32 = vld [vmem:[%s1651_s1 + $0x120] sm:$0xff]  ;;  %v99_v33 = vld [vmem:[%s1651_s1 + $0x128] sm:$0xff]  ;;  %v910_v34 = vpack.c.bf16 %v67_v31, %v66_v29  ;;  %v116_v37 = vld [vmem:[%s1651_s1 + $0x1b0] sm:$0xff]  ;;  %v912_v39 = vpack.c.bf16 %v85_v36, %v84_v35 }
   0xa   :  { %907 = vmatpush3.bf16.msra.mxu0 %v906_v21  ;;  %v942_v38 = vpack.c.bf16 %v99_v33, %v98_v32  ;;  %v117_v40 = vld [vmem:[%s1651_s1 + $0x1b8] sm:$0xff]  ;;  %v68_v41 = vld [vmem:[%s1651_s1 + $0x30] sm:$0xff]  ;;  %v86_v46 = vld [vmem:[%s1651_s1 + $0xc0] sm:$0xff] }
   0xb   :  { %939 = vmatpush3.bf16.msra.mxu1 %v938_v25  ;;  %909 = vmatprep.subr.bf16.mxu0 %v908_v26  ;;  %v69_v42 = vld [vmem:[%s1651_s1 + $0x38] sm:$0xff]  ;;  %v944_v43 = vpack.c.bf16 %v117_v40, %v116_v37  ;;  %v100_v44 = vld [vmem:[%s1651_s1 + $0x130] sm:$0xff]  ;;  %v87_v47 = vld [vmem:[%s1651_s1 + $0xc8] sm:$0xff] }
   0xc   :  { %941 = vmatprep.subr.bf16.mxu1 %v940_v30  ;;  %v101_v45 = vld [vmem:[%s1651_s1 + $0x138] sm:$0xff]  ;;  %v118_v48 = vld [vmem:[%s1651_s1 + $0x1c0] sm:$0xff]  ;;  %v119_v49 = vld [vmem:[%s1651_s1 + $0x1c8] sm:$0xff]  ;;  %v914_v50 = vpack.c.bf16 %v69_v42, %v68_v41  ;;  %v916_v52 = vpack.c.bf16 %v87_v47, %v86_v46 }
   0xd   :  { %v946_v51 = vpack.c.bf16 %v101_v45, %v100_v44  ;;  %v70_v53 = vld [vmem:[%s1651_s1 + $0x40] sm:$0xff]  ;;  %v71_v54 = vld [vmem:[%s1651_s1 + $0x48] sm:$0xff]  ;;  %v948_v56 = vpack.c.bf16 %v119_v49, %v118_v48  ;;  %v88_v58 = vld [vmem:[%s1651_s1 + $0xd0] sm:$0xff] }
   0xe   :  { %911 = vmatpush3.bf16.msra.mxu0 %v910_v34  ;;  %v102_v55 = vld [vmem:[%s1651_s1 + $0x140] sm:$0xff]  ;;  %v103_v57 = vld [vmem:[%s1651_s1 + $0x148] sm:$0xff]  ;;  %v89_v59 = vld [vmem:[%s1651_s1 + $0xd8] sm:$0xff]  ;;  %v918_v62 = vpack.c.bf16 %v71_v54, %v70_v53 }
   0xf   :  { %943 = vmatpush3.bf16.msra.mxu1 %v942_v38  ;;  %913 = vmatprep.subr.bf16.mxu0 %v912_v39  ;;  %v120_v60 = vld [vmem:[%s1651_s1 + $0x1d0] sm:$0xff]  ;;  %v121_v61 = vld [vmem:[%s1651_s1 + $0x1d8] sm:$0xff]  ;;  %v950_v63 = vpack.c.bf16 %v103_v57, %v102_v55  ;;  %v920_v0 = vpack.c.bf16 %v89_v59, %v88_v58  ;;  %v90_v6 = vld [vmem:[%s1651_s1 + $0xe0] sm:$0xff] }
  0x10   :  { %945 = vmatprep.subr.bf16.mxu1 %v944_v43  ;;  %v72_v1 = vld [vmem:[%s1651_s1 + $0x50] sm:$0xff]  ;;  %v73_v2 = vld [vmem:[%s1651_s1 + $0x58] sm:$0xff]  ;;  %v952_v4 = vpack.c.bf16 %v121_v61, %v120_v60  ;;  %v91_v7 = vld [vmem:[%s1651_s1 + $0xe8] sm:$0xff] }
  0x11   :  { %v104_v3 = vld [vmem:[%s1651_s1 + $0x150] sm:$0xff]  ;;  %v105_v5 = vld [vmem:[%s1651_s1 + $0x158] sm:$0xff]  ;;  %v122_v8 = vld [vmem:[%s1651_s1 + $0x1e0] sm:$0xff]  ;;  %v922_v10 = vpack.c.bf16 %v73_v2, %v72_v1  ;;  %v924_v14 = vpack.c.bf16 %v91_v7, %v90_v6 }
  0x12   :  { %915 = vmatpush3.bf16.msra.mxu0 %v914_v50  ;;  %v123_v9 = vld [vmem:[%s1651_s1 + $0x1e8] sm:$0xff]  ;;  %v74_v11 = vld [vmem:[%s1651_s1 + $0x60] sm:$0xff]  ;;  %v954_v13 = vpack.c.bf16 %v105_v5, %v104_v3  ;;  %v29_v17 = vld [vmem:[%s1652_s0 + $0x18] sm:$0xff] }
  0x13   :  { %947 = vmatpush3.bf16.msra.mxu1 %v946_v51  ;;  %917 = vmatprep.subr.bf16.mxu0 %v916_v52  ;;  %v75_v12 = vld [vmem:[%s1651_s1 + $0x68] sm:$0xff]  ;;  %v106_v15 = vld [vmem:[%s1651_s1 + $0x160] sm:$0xff]  ;;  %v956_v18 = vpack.c.bf16 %v123_v9, %v122_v8  ;;  %v92_v20 = vld [vmem:[%s1651_s1 + $0xf0] sm:$0xff] }
  0x14   :  { %949 = vmatprep.subr.bf16.mxu1 %v948_v56  ;;  %v27_v16 = vld [vmem:[%s1652_s0 + $0x8] sm:$0xff]  ;;  %v93_v21 = vld [vmem:[%s1651_s1 + $0xf8] sm:$0xff]  ;;  %v124_v22 = vld [vmem:[%s1651_s1 + $0x1f0] sm:$0xff]  ;;  %355 = vmatprep.mubr.f32.mxu1 %v29_v17  ;;  %v926_v24 = vpack.c.bf16 %v75_v12, %v74_v11 }
  0x15   :  { %v107_v19 = vld [vmem:[%s1651_s1 + $0x168] sm:$0xff]  ;;  %270 = vmatprep.mubr.f32.mxu0 %v27_v16  ;;  %v125_v23 = vld [vmem:[%s1651_s1 + $0x1f8] sm:$0xff]  ;;  %v928_v26 = vpack.c.bf16 %v93_v21, %v92_v20  ;;  %v76_v27 = vld [vmem:[%s1651_s1 + $0x70] sm:$0xff] }
  0x16   :  { %919 = vmatpush3.bf16.msra.mxu0 %v918_v62  ;;  %v958_v25 = vpack.c.bf16 %v107_v19, %v106_v15  ;;  %v77_v28 = vld [vmem:[%s1651_s1 + $0x78] sm:$0xff]  ;;  %v108_v29 = vld [vmem:[%s1651_s1 + $0x170] sm:$0xff]  ;;  %v960_v30 = vpack.c.bf16 %v125_v23, %v124_v22  ;;  %v142_v32 = vld [vmem:[%s1651_s1 + $0x280] sm:$0xff] }
  0x17   :  { %951 = vmatpush3.bf16.msra.mxu1 %v950_v63  ;;  %921 = vmatprep.subr.bf16.mxu0 %v920_v0  ;;  %v109_v31 = vld [vmem:[%s1651_s1 + $0x178] sm:$0xff]  ;;  %v143_v33 = vld [vmem:[%s1651_s1 + $0x288] sm:$0xff]  ;;  %v174_v34 = vld [vmem:[%s1651_s1 + $0x380] sm:$0xff]  ;;  %v930_v36 = vpack.c.bf16 %v77_v28, %v76_v27 }
  0x18   :  { %953 = vmatprep.subr.bf16.mxu1 %v952_v4  ;;  %v175_v35 = vld [vmem:[%s1651_s1 + $0x388] sm:$0xff]  ;;  %v962_v37 = vpack.c.bf16 %v109_v31, %v108_v29  ;;  %v964_v38 = vpack.c.bf16 %v143_v33, %v142_v32  ;;  %v126_v39 = vld [vmem:[%s1651_s1 + $0x200] sm:$0xff]  ;;  %v144_v44 = vld [vmem:[%s1651_s1 + $0x290] sm:$0xff] }
  0x19   :  { %v127_v40 = vld [vmem:[%s1651_s1 + $0x208] sm:$0xff]  ;;  %v158_v41 = vld [vmem:[%s1651_s1 + $0x300] sm:$0xff]  ;;  %v996_v42 = vpack.c.bf16 %v175_v35, %v174_v34  ;;  %v145_v45 = vld [vmem:[%s1651_s1 + $0x298] sm:$0xff] }
  0x1a   :  { %923 = vmatpush3.bf16.msra.mxu0 %v922_v10  ;;  %v159_v43 = vld [vmem:[%s1651_s1 + $0x308] sm:$0xff]  ;;  %v176_v46 = vld [vmem:[%s1651_s1 + $0x390] sm:$0xff]  ;;  %v177_v47 = vld [vmem:[%s1651_s1 + $0x398] sm:$0xff]  ;;  %v966_v50 = vpack.c.bf16 %v127_v40, %v126_v39  ;;  %v968_v52 = vpack.c.bf16 %v145_v45, %v144_v44 }
  0x1b   :  { %955 = vmatpush3.bf16.msra.mxu1 %v954_v13  ;;  %925 = vmatprep.subr.bf16.mxu0 %v924_v14  ;;  %v26_v48 = vld [vmem:[%s1652_s0] sm:$0xff]  ;;  %v28_v49 = vld [vmem:[%s1652_s0 + $0x10] sm:$0xff]  ;;  %v998_v51 = vpack.c.bf16 %v159_v43, %v158_v41  ;;  %v129_v54 = vld [vmem:[%s1651_s1 + $0x218] sm:$0xff]  ;;  %v1000_v56 = vpack.c.bf16 %v177_v47, %v176_v46 }
  0x1c   :  { %957 = vmatprep.subr.bf16.mxu1 %v956_v18  ;;  %v128_v53 = vld [vmem:[%s1651_s1 + $0x210] sm:$0xff]  ;;  %v161_v57 = vld [vmem:[%s1651_s1 + $0x318] sm:$0xff]  ;;  %v146_v58 = vld [vmem:[%s1651_s1 + $0x2a0] sm:$0xff] }
  0x1d   :  { %v160_v55 = vld [vmem:[%s1651_s1 + $0x310] sm:$0xff]  ;;  %v147_v59 = vld [vmem:[%s1651_s1 + $0x2a8] sm:$0xff]  ;;  %v178_v60 = vld [vmem:[%s1651_s1 + $0x3a0] sm:$0xff]  ;;  %v970_v63 = vpack.c.bf16 %v129_v54, %v128_v53 }
  0x1e   :  { %927 = vmatpush3.bf16.msra.mxu0 %v926_v24  ;;  %v179_v61 = vld [vmem:[%s1651_s1 + $0x3a8] sm:$0xff]  ;;  %v130_v62 = vld [vmem:[%s1651_s1 + $0x220] sm:$0xff]  ;;  %v36_v0 = vld [vmem:[%s1652_s0 + $0x50] sm:$0xff]  ;;  %v1002_v3 = vpack.c.bf16 %v161_v57, %v160_v55  ;;  %v972_v4 = vpack.c.bf16 %v147_v59, %v146_v58 }
  0x1f   :  { %959 = vmatpush3.bf16.msra.mxu1 %v958_v25  ;;  %929 = vmatprep.subr.bf16.mxu0 %v928_v26  ;;  %v38_v1 = vld [vmem:[%s1652_s0 + $0x60] sm:$0xff]  ;;  %v35_v2 = vld [vmem:[%s1652_s0 + $0x48] sm:$0xff]  ;;  %v37_v7 = vld [vmem:[%s1652_s0 + $0x58] sm:$0xff]  ;;  %v1004_v8 = vpack.c.bf16 %v179_v61, %v178_v60 }
  0x20   :  { %961 = vmatprep.subr.bf16.mxu1 %v960_v30  ;;  %v131_v5 = vld [vmem:[%s1651_s1 + $0x228] sm:$0xff]  ;;  %v162_v6 = vld [vmem:[%s1651_s1 + $0x320] sm:$0xff]  ;;  %v148_v10 = vld [vmem:[%s1651_s1 + $0x2b0] sm:$0xff] }
  0x21   :  { %v163_v9 = vld [vmem:[%s1651_s1 + $0x328] sm:$0xff]  ;;  %v149_v11 = vld [vmem:[%s1651_s1 + $0x2b8] sm:$0xff]  ;;  %v180_v12 = vld [vmem:[%s1651_s1 + $0x3b0] sm:$0xff]  ;;  %v974_v15 = vpack.c.bf16 %v131_v5, %v130_v62 }
  0x22   :  { %931 = vmatpush3.bf16.msra.mxu0 %v930_v36  ;;  %v181_v13 = vld [vmem:[%s1651_s1 + $0x3b8] sm:$0xff]  ;;  %v132_v14 = vld [vmem:[%s1651_s1 + $0x230] sm:$0xff]  ;;  %v47_v17 = vld [vmem:[%s1652_s0 + $0xa8] sm:$0xff]  ;;  %v1006_v19 = vpack.c.bf16 %v163_v9, %v162_v6  ;;  %v976_v20 = vpack.c.bf16 %v149_v11, %v148_v10 }
  0x23   :  { %963 = vmatpush3.bf16.msra.mxu1 %v962_v37  ;;  %965 = vmatprep.subr.bf16.mxu0 %v964_v38  ;;  %v45_v16 = vld [vmem:[%s1652_s0 + $0x98] sm:$0xff]  ;;  %v44_v18 = vld [vmem:[%s1652_s0 + $0x90] sm:$0xff]  ;;  %v46_v23 = vld [vmem:[%s1652_s0 + $0xa0] sm:$0xff]  ;;  %v1008_v24 = vpack.c.bf16 %v181_v13, %v180_v12 }
  0x24   :  { %997 = vmatprep.subr.bf16.mxu1 %v996_v42  ;;  %v133_v21 = vld [vmem:[%s1651_s1 + $0x238] sm:$0xff]  ;;  %v164_v22 = vld [vmem:[%s1651_s1 + $0x330] sm:$0xff]  ;;  %v150_v26 = vld [vmem:[%s1651_s1 + $0x2c0] sm:$0xff] }
  0x25   :  { %271 = vmatmul.mubr.f32.vlgmr.msra.gmra.mrb[0].mxu0 %v26_v48  ;;  %v165_v25 = vld [vmem:[%s1651_s1 + $0x338] sm:$0xff]  ;;  %v151_v27 = vld [vmem:[%s1651_s1 + $0x2c8] sm:$0xff]  ;;  %v182_v28 = vld [vmem:[%s1651_s1 + $0x3c0] sm:$0xff]  ;;  %v978_v31 = vpack.c.bf16 %v133_v21, %v132_v14 }
  0x26   :  { %356 = vmatmul.mubr.f32.vlgmr.msra.gmra.mrb[0].mxu1 %v28_v49  ;;  %967 = vmatpush3.bf16.msra.mxu0 %v966_v50  ;;  %v183_v29 = vld [vmem:[%s1651_s1 + $0x3c8] sm:$0xff]  ;;  %v134_v30 = vld [vmem:[%s1651_s1 + $0x240] sm:$0xff]  ;;  %v56_v33 = vld [vmem:[%s1652_s0 + $0xf0] sm:$0xff]  ;;  %v1010_v35 = vpack.c.bf16 %v165_v25, %v164_v22  ;;  %v980_v36 = vpack.c.bf16 %v151_v27, %v150_v26 }
  0x27   :  { %999 = vmatpush3.bf16.msra.mxu1 %v998_v51  ;;  %969 = vmatprep.subr.bf16.mxu0 %v968_v52  ;;  %v54_v32 = vld [vmem:[%s1652_s0 + $0xe0] sm:$0xff]  ;;  %v53_v34 = vld [vmem:[%s1652_s0 + $0xd8] sm:$0xff]  ;;  %v135_v37 = vld [vmem:[%s1651_s1 + $0x248] sm:$0xff]  ;;  %v1012_v40 = vpack.c.bf16 %v183_v29, %v182_v28 }
  0x28   :  { %1001 = vmatprep.subr.bf16.mxu1 %v1000_v56  ;;  %275 = vmatprep.mubr.f32.mxu0 %v36_v0  ;;  %v166_v38 = vld [vmem:[%s1651_s1 + $0x340] sm:$0xff]  ;;  %v55_v39 = vld [vmem:[%s1652_s0 + $0xe8] sm:$0xff]  ;;  %v152_v42 = vld [vmem:[%s1651_s1 + $0x2d0] sm:$0xff]  ;;  %v982_v46 = vpack.c.bf16 %v135_v37, %v134_v30 }
  0x29   :  { %360 = vmatprep.mubr.f32.mxu1 %v38_v1  ;;  %276 = vmatmul.mubr.f32.gmra.mrb[2].mxu0 %v35_v2  ;;  %v167_v41 = vld [vmem:[%s1651_s1 + $0x348] sm:$0xff]  ;;  %v153_v43 = vld [vmem:[%s1651_s1 + $0x2d8] sm:$0xff]  ;;  %v184_v44 = vld [vmem:[%s1651_s1 + $0x3d0] sm:$0xff] }
  0x2a   :  { %971 = vmatpush3.bf16.msra.mxu0 %v970_v63  ;;  %361 = vmatmul.mubr.f32.gmra.mrb[2].mxu1 %v37_v7  ;;  %v185_v45 = vld [vmem:[%s1651_s1 + $0x3d8] sm:$0xff]  ;;  %v31_v47 = vld [vmem:[%s1652_s0 + $0x28] sm:$0xff]  ;;  %v1014_v49 = vpack.c.bf16 %v167_v41, %v166_v38  ;;  %v984_v50 = vpack.c.bf16 %v153_v43, %v152_v42  ;;  %v136_v51 = vld [vmem:[%s1651_s1 + $0x250] sm:$0xff] }
  0x2b   :  { %1003 = vmatpush3.bf16.msra.mxu1 %v1002_v3  ;;  %973 = vmatprep.subr.bf16.mxu0 %v972_v4  ;;  %v33_v48 = vld [vmem:[%s1652_s0 + $0x38] sm:$0xff]  ;;  %v168_v53 = vld [vmem:[%s1651_s1 + $0x350] sm:$0xff]  ;;  %v1016_v54 = vpack.c.bf16 %v185_v45, %v184_v44  ;;  %v154_v56 = vld [vmem:[%s1651_s1 + $0x2e0] sm:$0xff] }
  0x2c   :  { %1005 = vmatprep.subr.bf16.mxu1 %v1004_v8  ;;  %280 = vmatprep.mubr.f32.mxu0 %v45_v16  ;;  %v137_v52 = vld [vmem:[%s1651_s1 + $0x258] sm:$0xff]  ;;  %v155_v57 = vld [vmem:[%s1651_s1 + $0x2e8] sm:$0xff]  ;;  %v186_v58 = vld [vmem:[%s1651_s1 + $0x3e0] sm:$0xff] }
  0x2d   :  { %365 = vmatprep.mubr.f32.mxu1 %v47_v17  ;;  %281 = vmatmul.mubr.f32.gmra.mrb[4].mxu0 %v44_v18  ;;  %v169_v55 = vld [vmem:[%s1651_s1 + $0x358] sm:$0xff]  ;;  %v187_v59 = vld [vmem:[%s1651_s1 + $0x3e8] sm:$0xff]  ;;  %v986_v60 = vpack.c.bf16 %v137_v52, %v136_v51  ;;  %v988_v62 = vpack.c.bf16 %v155_v57, %v154_v56  ;;  %v138_v63 = vld [vmem:[%s1651_s1 + $0x260] sm:$0xff] }
  0x2e   :  { %975 = vmatpush3.bf16.msra.mxu0 %v974_v15  ;;  %366 = vmatmul.mubr.f32.gmra.mrb[4].mxu1 %v46_v23  ;;  %v1018_v61 = vpack.c.bf16 %v169_v55, %v168_v53  ;;  %v139_v0 = vld [vmem:[%s1651_s1 + $0x268] sm:$0xff]  ;;  %v170_v1 = vld [vmem:[%s1651_s1 + $0x360] sm:$0xff]  ;;  %v1020_v2 = vpack.c.bf16 %v187_v59, %v186_v58  ;;  %v156_v4 = vld [vmem:[%s1651_s1 + $0x2f0] sm:$0xff] }
  0x2f   :  { %1007 = vmatpush3.bf16.msra.mxu1 %v1006_v19  ;;  %977 = vmatprep.subr.bf16.mxu0 %v976_v20  ;;  %v171_v3 = vld [vmem:[%s1651_s1 + $0x368] sm:$0xff]  ;;  %v157_v5 = vld [vmem:[%s1651_s1 + $0x2f8] sm:$0xff]  ;;  %v188_v6 = vld [vmem:[%s1651_s1 + $0x3f0] sm:$0xff]  ;;  %v990_v8 = vpack.c.bf16 %v139_v0, %v138_v63 }
  0x30   :  { %1009 = vmatprep.subr.bf16.mxu1 %v1008_v24  ;;  %285 = vmatprep.mubr.f32.mxu0 %v54_v32  ;;  %v189_v7 = vld [vmem:[%s1651_s1 + $0x3f8] sm:$0xff]  ;;  %v1022_v9 = vpack.c.bf16 %v171_v3, %v170_v1  ;;  %v992_v10 = vpack.c.bf16 %v157_v5, %v156_v4  ;;  %v140_v11 = vld [vmem:[%s1651_s1 + $0x270] sm:$0xff]  ;;  %v190_v16 = vld [vmem:[%s1651_s1 + $0x400] sm:$0xff] }
  0x31   :  { %370 = vmatprep.mubr.f32.mxu1 %v56_v33  ;;  %286 = vmatmul.mubr.f32.gmra.mrb[6].mxu0 %v53_v34  ;;  %v141_v12 = vld [vmem:[%s1651_s1 + $0x278] sm:$0xff]  ;;  %v172_v13 = vld [vmem:[%s1651_s1 + $0x370] sm:$0xff]  ;;  %v1024_v14 = vpack.c.bf16 %v189_v7, %v188_v6  ;;  %v191_v17 = vld [vmem:[%s1651_s1 + $0x408] sm:$0xff] }
  0x32   :  { %979 = vmatpush3.bf16.msra.mxu0 %v978_v31  ;;  %371 = vmatmul.mubr.f32.gmra.mrb[6].mxu1 %v55_v39  ;;  %v173_v15 = vld [vmem:[%s1651_s1 + $0x378] sm:$0xff]  ;;  %v994_v18 = vpack.c.bf16 %v141_v12, %v140_v11  ;;  %v1028_v20 = vpack.c.bf16 %v191_v17, %v190_v16  ;;  %v192_v21 = vld [vmem:[%s1651_s1 + $0x410] sm:$0xff]  ;;  %v30_v23 = vld [vmem:[%s1652_s0 + $0x20] sm:$0xff] }
  0x33   :  { %1011 = vmatpush3.bf16.msra.mxu1 %v1010_v35  ;;  %981 = vmatprep.subr.bf16.mxu0 %v980_v36  ;;  %v1026_v19 = vpack.c.bf16 %v173_v15, %v172_v13  ;;  %v193_v22 = vld [vmem:[%s1651_s1 + $0x418] sm:$0xff]  ;;  %v32_v24 = vld [vmem:[%s1652_s0 + $0x30] sm:$0xff]  ;;  %v194_v27 = vld [vmem:[%s1651_s1 + $0x420] sm:$0xff] }
  0x34   :  { %1013 = vmatprep.subr.bf16.mxu1 %v1012_v40  ;;  %440 = vmatprep.mubr.f32.mxu0 %v31_v47  ;;  %v40_v25 = vld [vmem:[%s1652_s0 + $0x70] sm:$0xff]  ;;  %v1032_v26 = vpack.c.bf16 %v193_v22, %v192_v21  ;;  %v195_v28 = vld [vmem:[%s1651_s1 + $0x428] sm:$0xff]  ;;  %v42_v30 = vld [vmem:[%s1652_s0 + $0x80] sm:$0xff] }
  0x35   :  { %525 = vmatprep.mubr.f32.mxu1 %v33_v48  ;;  %v39_v29 = vld [vmem:[%s1652_s0 + $0x68] sm:$0xff]  ;;  %v41_v31 = vld [vmem:[%s1652_s0 + $0x78] sm:$0xff]  ;;  %v1036_v33 = vpack.c.bf16 %v195_v28, %v194_v27  ;;  %v196_v34 = vld [vmem:[%s1651_s1 + $0x430] sm:$0xff] }
  0x36   :  { %983 = vmatpush3.bf16.msra.mxu0 %v982_v46  ;;  %v49_v32 = vld [vmem:[%s1652_s0 + $0xb8] sm:$0xff]  ;;  %v48_v36 = vld [vmem:[%s1652_s0 + $0xb0] sm:$0xff]  ;;  %v51_v37 = vld [vmem:[%s1652_s0 + $0xc8] sm:$0xff] }
  0x37   :  { %1015 = vmatpush3.bf16.msra.mxu1 %v1014_v49  ;;  %985 = vmatprep.subr.bf16.mxu0 %v984_v50  ;;  %v197_v35 = vld [vmem:[%s1651_s1 + $0x438] sm:$0xff]  ;;  %v50_v38 = vld [vmem:[%s1652_s0 + $0xc0] sm:$0xff]  ;;  %v199_v42 = vld [vmem:[%s1651_s1 + $0x448] sm:$0xff] }
  0x38   :  { %1017 = vmatprep.subr.bf16.mxu1 %v1016_v54  ;;  %v58_v39 = vld [vmem:[%s1652_s0 + $0x100] sm:$0xff]  ;;  %v1040_v40 = vpack.c.bf16 %v197_v35, %v196_v34  ;;  %v57_v43 = vld [vmem:[%s1652_s0 + $0xf8] sm:$0xff]  ;;  %v60_v44 = vld [vmem:[%s1652_s0 + $0x110] sm:$0xff] }
  0x39   :  { %v198_v41 = vld [vmem:[%s1651_s1 + $0x440] sm:$0xff]  ;;  %v59_v45 = vld [vmem:[%s1652_s0 + $0x108] sm:$0xff]  ;;  %v200_v47 = vld [vmem:[%s1651_s1 + $0x450] sm:$0xff] }
  0x3a   :  { %987 = vmatpush3.bf16.msra.mxu0 %v986_v60  ;;  %v1044_v46 = vpack.c.bf16 %v199_v42, %v198_v41  ;;  %v201_v48 = vld [vmem:[%s1651_s1 + $0x458] sm:$0xff]  ;;  %v34_v49 = vld [vmem:[%s1652_s0 + $0x40] sm:$0xff]  ;;  %v52_v50 = vld [vmem:[%s1652_s0 + $0xd0] sm:$0xff] }
  0x3b   :  { %1019 = vmatpush3.bf16.msra.mxu1 %v1018_v61  ;;  %989 = vmatprep.subr.bf16.mxu0 %v988_v62  ;;  %v1048_v51 = vpack.c.bf16 %v201_v48, %v200_v47  ;;  %v202_v52 = vld [vmem:[%s1651_s1 + $0x460] sm:$0xff]  ;;  %v203_v53 = vld [vmem:[%s1651_s1 + $0x468] sm:$0xff]  ;;  %v204_v55 = vld [vmem:[%s1651_s1 + $0x470] sm:$0xff] }
  0x3c   :  { %1021 = vmatprep.subr.bf16.mxu1 %v1020_v2  ;;  %v1052_v54 = vpack.c.bf16 %v203_v53, %v202_v52  ;;  %v205_v56 = vld [vmem:[%s1651_s1 + $0x478] sm:$0xff]  ;;  %v43_v58 = vld [vmem:[%s1652_s0 + $0x88] sm:$0xff] }
  0x3d   :  { %v1056_v57 = vpack.c.bf16 %v205_v56, %v204_v55  ;;  %v61_v59 = vld [vmem:[%s1652_s0 + $0x118] sm:$0xff] }
  0x3e   :  { %991 = vmatpush3.bf16.msra.mxu0 %v990_v8 }
  0x3f   :  { %1023 = vmatpush3.bf16.msra.mxu1 %v1022_v9  ;;  %993 = vmatprep.subr.bf16.mxu0 %v992_v10 }
  0x40   :  { %1025 = vmatprep.subr.bf16.mxu1 %v1024_v14 }
  0x42   :  { %995 = vmatpush3.bf16.msra.mxu0 %v994_v18 }
  0x43   :  { %1027 = vmatpush3.bf16.msra.mxu1 %v1026_v19  ;;  %1029 = vmatprep.subr.bf16.mxu0 %v1028_v20 }
  0x44   :  { %1060 = vmatprep.subr.bf16.mxu1 %v1028_v20 }
  0x45   :  { %441 = vmatmul.mubr.f32.vlgmr.msra.gmra.mrb[8].mxu0 %v30_v23 }
  0x46   :  { %526 = vmatmul.mubr.f32.vlgmr.msra.gmra.mrb[8].mxu1 %v32_v24  ;;  %1031 = vmatpush3.bf16.msra.mxu0 %v1028_v20 }
  0x47   :  { %1068 = vmatpush3.bf16.msra.mxu1 %v1028_v20  ;;  %445 = vmatprep.mubr.f32.mxu0 %v40_v25 }
  0x48   :  { %1033 = vmatprep.subr.bf16.mxu0 %v1032_v26  ;;  %1061 = vmatprep.subr.bf16.mxu1 %v1032_v26 }
  0x49   :  { %446 = vmatmul.mubr.f32.gmra.mrb[10].mxu0 %v39_v29  ;;  %530 = vmatprep.mubr.f32.mxu1 %v42_v30 }
  0x4a   :  { %1035 = vmatpush3.bf16.msra.mxu0 %v1032_v26  ;;  %531 = vmatmul.mubr.f32.gmra.mrb[10].mxu1 %v41_v31 }
  0x4b   :  { %1069 = vmatpush3.bf16.msra.mxu1 %v1032_v26  ;;  %450 = vmatprep.mubr.f32.mxu0 %v49_v32 }
  0x4c   :  { %1037 = vmatprep.subr.bf16.mxu0 %v1036_v33  ;;  %1062 = vmatprep.subr.bf16.mxu1 %v1036_v33 }
  0x4d   :  { %451 = vmatmul.mubr.f32.gmra.mrb[12].mxu0 %v48_v36  ;;  %535 = vmatprep.mubr.f32.mxu1 %v51_v37 }
  0x4e   :  { %1039 = vmatpush3.bf16.msra.mxu0 %v1036_v33  ;;  %536 = vmatmul.mubr.f32.gmra.mrb[12].mxu1 %v50_v38 }
  0x4f   :  { %1070 = vmatpush3.bf16.msra.mxu1 %v1036_v33  ;;  %455 = vmatprep.mubr.f32.mxu0 %v58_v39 }
  0x50   :  { %1041 = vmatprep.subr.bf16.mxu0 %v1040_v40  ;;  %1063 = vmatprep.subr.bf16.mxu1 %v1040_v40 }
  0x51   :  { %456 = vmatmul.mubr.f32.gmra.mrb[14].mxu0 %v57_v43  ;;  %540 = vmatprep.mubr.f32.mxu1 %v60_v44 }
  0x52   :  { %1043 = vmatpush3.bf16.msra.mxu0 %v1040_v40  ;;  %541 = vmatmul.mubr.f32.gmra.mrb[14].mxu1 %v59_v45 }
  0x53   :  { %1071 = vmatpush3.bf16.msra.mxu1 %v1040_v40  ;;  %1045 = vmatprep.subr.bf16.mxu0 %v1044_v46 }
  0x54   :  { %1064 = vmatprep.subr.bf16.mxu1 %v1044_v46  ;;  %894 = vmatprep.mubr.f32.mxu0 %v34_v49 }
  0x55   :  { %897 = vmatprep.mubr.f32.mxu1 %v52_v50 }
  0x56   :  { %1047 = vmatpush3.bf16.msra.mxu0 %v1044_v46 }
  0x57   :  { %1072 = vmatpush3.bf16.msra.mxu1 %v1044_v46  ;;  %1049 = vmatprep.subr.bf16.mxu0 %v1048_v51 }
  0x58   :  { %1065 = vmatprep.subr.bf16.mxu1 %v1048_v51 }
  0x5a   :  { %1051 = vmatpush3.bf16.msra.mxu0 %v1048_v51 }
  0x5b   :  { %1073 = vmatpush3.bf16.msra.mxu1 %v1048_v51  ;;  %1053 = vmatprep.subr.bf16.mxu0 %v1052_v54 }
  0x5c   :  { %1066 = vmatprep.subr.bf16.mxu1 %v1052_v54 }
  0x5e   :  { %1055 = vmatpush3.bf16.msra.mxu0 %v1052_v54 }
  0x5f   :  { %1074 = vmatpush3.bf16.msra.mxu1 %v1052_v54  ;;  %1057 = vmatprep.subr.bf16.mxu0 %v1056_v57 }
  0x60   :  { %1067 = vmatprep.subr.bf16.mxu1 %v1056_v57 }
  0x62   :  { %1059 = vmatpush3.bf16.msra.mxu0 %v1056_v57 }
  0x63   :  { %1075 = vmatpush3.bf16.msra.mxu1 %v1056_v57  ;;  %v665_v57 = vld [vmem:[%s1653_s2] ss:$0 sm:$0xff] }
  0x65   :  { %895 = vmatmul.mubr.f32.vlgmr.msra.gmra.mrb[16].mxu0 %v43_v58 }
  0x66   :  { %898 = vmatmul.mubr.f32.vlgmr.msra.gmra.mrb[16].mxu1 %v61_v59 }
  0xf8   :  { %v698_v60 = vpop.f32.mrb[0].mxu0 }
  0xf9   :  { %v742_v61 = vpop.f32.mrb[0].mxu1  ;;  %v699_v62 = vpop.f32.mrb[1].mxu0 }
  0xfa   :  { %v700_v63 = vadd.f32 %v699_v62, %v698_v60  ;;  %v743_v0 = vpop.f32.mrb[1].mxu1 }
  0xfb   :  { %v744_v1 = vadd.f32 %v743_v0, %v742_v61 }
  0xfc   :  { %v701_v2 = vpop.f32.mrb[2].mxu0 }
  0xfd   :  { %v358_v3 = vadd.f32 %v744_v1, %v700_v63  ;;  %v745_v4 = vpop.f32.mrb[2].mxu1  ;;  %v702_v5 = vpop.f32.mrb[3].mxu0 }
  0xfe   :  { %v703_v6 = vadd.f32 %v702_v5, %v701_v2  ;;  %v746_v7 = vpop.f32.mrb[3].mxu1 }
  0xff   :  { %v747_v8 = vadd.f32 %v746_v7, %v745_v4 }
 0x100   :  { %v704_v9 = vpop.f32.mrb[4].mxu0 }
 0x101   :  { %v363_v10 = vadd.f32 %v747_v8, %v703_v6  ;;  %v748_v11 = vpop.f32.mrb[4].mxu1  ;;  %v705_v12 = vpop.f32.mrb[5].mxu0 }
 0x102   :  { %v706_v13 = vadd.f32 %v705_v12, %v704_v9  ;;  %v749_v14 = vpop.f32.mrb[5].mxu1 }
 0x103   :  { %v750_v15 = vadd.f32 %v749_v14, %v748_v11 }
 0x104   :  { %v707_v16 = vpop.f32.mrb[6].mxu0 }
 0x105   :  { %v368_v17 = vadd.f32 %v750_v15, %v706_v13  ;;  %v751_v18 = vpop.f32.mrb[6].mxu1  ;;  %v708_v19 = vpop.f32.mrb[7].mxu0 }
 0x106   :  { %v709_v20 = vadd.f32 %v708_v19, %v707_v16  ;;  %v752_v21 = vpop.f32.mrb[7].mxu1 }
 0x107   :  { %v753_v22 = vadd.f32 %v752_v21, %v751_v18 }
 0x109   :  { %v373_v23 = vadd.f32 %v753_v22, %v709_v20 }
 0x118   :  { %v786_v24 = vpop.f32.mrb[8].mxu0 }
 0x119   :  { %v830_v25 = vpop.f32.mrb[8].mxu1  ;;  %v787_v26 = vpop.f32.mrb[9].mxu0 }
 0x11a   :  { %v788_v27 = vadd.f32 %v787_v26, %v786_v24  ;;  %v831_v28 = vpop.f32.mrb[9].mxu1 }
 0x11b   :  { %v832_v29 = vadd.f32 %v831_v28, %v830_v25 }
 0x11c   :  { %v443_v30 = vadd.f32 %v788_v27, %v358_v3  ;;  %v789_v31 = vpop.f32.mrb[10].mxu0 }
 0x11d   :  { %v790_v32 = vpop.f32.mrb[11].mxu0  ;;  %v833_v33 = vpop.f32.mrb[10].mxu1 }
 0x11e   :  { %v791_v34 = vadd.f32 %v790_v32, %v789_v31  ;;  %v834_v35 = vpop.f32.mrb[11].mxu1  ;;  %v528_v36 = vadd.f32 %v832_v29, %v443_v30 }
 0x11f   :  { %v835_v37 = vadd.f32 %v834_v35, %v833_v33 }
 0x120   :  { %v448_v38 = vadd.f32 %v791_v34, %v363_v10  ;;  %v792_v39 = vpop.f32.mrb[12].mxu0 }
 0x121   :  { %v793_v40 = vpop.f32.mrb[13].mxu0  ;;  %v836_v41 = vpop.f32.mrb[12].mxu1 }
 0x122   :  { %v794_v42 = vadd.f32 %v793_v40, %v792_v39  ;;  %v837_v43 = vpop.f32.mrb[13].mxu1  ;;  %v533_v44 = vadd.f32 %v835_v37, %v448_v38 }
 0x123   :  { %v838_v45 = vadd.f32 %v837_v43, %v836_v41 }
 0x124   :  { %v453_v46 = vadd.f32 %v794_v42, %v368_v17  ;;  %v795_v47 = vpop.f32.mrb[14].mxu0 }
 0x125   :  { %v796_v48 = vpop.f32.mrb[15].mxu0  ;;  %v839_v49 = vpop.f32.mrb[14].mxu1 }
 0x126   :  { %v797_v50 = vadd.f32 %v796_v48, %v795_v47  ;;  %v840_v51 = vpop.f32.mrb[15].mxu1  ;;  %v538_v52 = vadd.f32 %v838_v45, %v453_v46 }
 0x127   :  { %v841_v53 = vadd.f32 %v840_v51, %v839_v49 }
 0x128   :  { %v458_v54 = vadd.f32 %v797_v50, %v373_v23 }
 0x12a   :  { %v543_v55 = vadd.f32 %v841_v53, %v458_v54 }
 0x138   :  { %v896_v56 = vpop.f32.mrb[16].mxu0 }
 0x139   :  { %v618_v58 = vadd.f32 %v896_v56, %v533_v44  ;;  %v899_v59 = vpop.f32.mrb[16].mxu1  ;;  %v612_v60 = vpop.f32.mrb[17].mxu0 }
 0x13a   :  { %v628_v61 = vadd.f32 %v899_v59, %v543_v55  ;;  %v613_v62 = vadd.f32 %v612_v60, %v528_v36  ;;  %v622_v63 = vpop.f32.mrb[17].mxu1 }
 0x13b   :  { %v654_v0 = vadd.f32 %v665_v57, %v618_v58  ;;  %v623_v1 = vadd.f32 %v622_v63, %v538_v52 }
 0x13c   :  { %v656_v2 = vadd.f32 %v665_v57, %v628_v61  ;;  %v653_v3 = vadd.f32 %v665_v57, %v613_v62 }
 0x13d   :  { %658 = vst [vmem:[%s1654_s3 + $0x8] sm:$0xff] %v654_v0  ;;  %v655_v4 = vadd.f32 %v665_v57, %v623_v1 }
 0x13e   :  { %660 = vst [vmem:[%s1654_s3 + $0x18] sm:$0xff] %v656_v2  ;;  %657 = vst [vmem:[%s1654_s3] sm:$0xff] %v653_v3 }
 0x13f   :  { %659 = vst [vmem:[%s1654_s3 + $0x10] sm:$0xff] %v655_v4 }

// kernel: transformer_net_pl.57
= control target key start
LH: loop header
LB: loop body
LE: loop exit
PB: predicated region body
PF: predicated region fallthrough
CT: control target
= control target key end

     0   :  { %s2764_s1 = inlined_call_operand.vmem [shape: f32[1152,128], index: 1, kind: input, shape index: {}]   ;;  %s2765_s0 = inlined_call_operand.vmem [shape: f32[128,1152], index: 0, kind: input, shape index: {}]   ;;  %s2766_s2 = inlined_call_operand.vmem [shape: f32[1,128], index: 2, kind: input, shape index: {}]   ;;  %s2767_s3 = inlined_call_operand.vmem [shape: f32[128,128], index: 3, kind: output, shape index: {}]  }
   0x1   :  { %v210_v0 = vld [vmem:[%s2764_s1 + $0x80] sm:$0xff]  ;;  %v211_v1 = vld [vmem:[%s2764_s1 + $0x88] sm:$0xff]  ;;  %v212_v11 = vld [vmem:[%s2764_s1 + $0x90] sm:$0xff] }
   0x2   :  { %v242_v2 = vld [vmem:[%s2764_s1 + $0x180] sm:$0xff]  ;;  %v1566_v3 = vpack.c.bf16 %v211_v1, %v210_v0  ;;  %v243_v4 = vld [vmem:[%s2764_s1 + $0x188] sm:$0xff]  ;;  %v213_v13 = vld [vmem:[%s2764_s1 + $0x98] sm:$0xff] }
   0x3   :  { %v194_v5 = vld [vmem:[%s2764_s1] sm:$0xff]  ;;  %v195_v6 = vld [vmem:[%s2764_s1 + $0x8] sm:$0xff]  ;;  %v1598_v7 = vpack.c.bf16 %v243_v4, %v242_v2  ;;  %v244_v14 = vld [vmem:[%s2764_s1 + $0x190] sm:$0xff]  ;;  %v1570_v16 = vpack.c.bf16 %v213_v13, %v212_v11 }
   0x4   :  { %v1568_v8 = vpack.c.bf16 %v195_v6, %v194_v5  ;;  %v226_v9 = vld [vmem:[%s2764_s1 + $0x100] sm:$0xff]  ;;  %v227_v10 = vld [vmem:[%s2764_s1 + $0x108] sm:$0xff]  ;;  %1567 = vmatprep.subr.bf16.mxu0 %v1566_v3  ;;  %v245_v15 = vld [vmem:[%s2764_s1 + $0x198] sm:$0xff] }
   0x5   :  { %v1600_v12 = vpack.c.bf16 %v227_v10, %v226_v9  ;;  %1599 = vmatprep.subr.bf16.mxu1 %v1598_v7  ;;  %v1602_v17 = vpack.c.bf16 %v245_v15, %v244_v14  ;;  %v196_v18 = vld [vmem:[%s2764_s1 + $0x10] sm:$0xff]  ;;  %v197_v19 = vld [vmem:[%s2764_s1 + $0x18] sm:$0xff]  ;;  %v214_v23 = vld [vmem:[%s2764_s1 + $0xa0] sm:$0xff] }
   0x6   :  { %1569 = vmatpush3.bf16.msra.mxu0 %v1568_v8  ;;  %v228_v20 = vld [vmem:[%s2764_s1 + $0x110] sm:$0xff]  ;;  %v1572_v21 = vpack.c.bf16 %v197_v19, %v196_v18  ;;  %v229_v22 = vld [vmem:[%s2764_s1 + $0x118] sm:$0xff]  ;;  %v215_v24 = vld [vmem:[%s2764_s1 + $0xa8] sm:$0xff] }
   0x7   :  { %1601 = vmatpush3.bf16.msra.mxu1 %v1600_v12  ;;  %1571 = vmatprep.subr.bf16.mxu0 %v1570_v16  ;;  %v1604_v25 = vpack.c.bf16 %v229_v22, %v228_v20  ;;  %v1574_v26 = vpack.c.bf16 %v215_v24, %v214_v23  ;;  %v246_v27 = vld [vmem:[%s2764_s1 + $0x1a0] sm:$0xff]  ;;  %v247_v28 = vld [vmem:[%s2764_s1 + $0x1a8] sm:$0xff]  ;;  %v216_v35 = vld [vmem:[%s2764_s1 + $0xb0] sm:$0xff] }
   0x8   :  { %1603 = vmatprep.subr.bf16.mxu1 %v1602_v17  ;;  %v198_v29 = vld [vmem:[%s2764_s1 + $0x20] sm:$0xff]  ;;  %v1606_v30 = vpack.c.bf16 %v247_v28, %v246_v27  ;;  %v199_v31 = vld [vmem:[%s2764_s1 + $0x28] sm:$0xff]  ;;  %v217_v36 = vld [vmem:[%s2764_s1 + $0xb8] sm:$0xff] }
   0x9   :  { %v230_v32 = vld [vmem:[%s2764_s1 + $0x120] sm:$0xff]  ;;  %v231_v33 = vld [vmem:[%s2764_s1 + $0x128] sm:$0xff]  ;;  %v1576_v34 = vpack.c.bf16 %v199_v31, %v198_v29  ;;  %v248_v37 = vld [vmem:[%s2764_s1 + $0x1b0] sm:$0xff]  ;;  %v1578_v39 = vpack.c.bf16 %v217_v36, %v216_v35 }
   0xa   :  { %1573 = vmatpush3.bf16.msra.mxu0 %v1572_v21  ;;  %v1608_v38 = vpack.c.bf16 %v231_v33, %v230_v32  ;;  %v249_v40 = vld [vmem:[%s2764_s1 + $0x1b8] sm:$0xff]  ;;  %v200_v41 = vld [vmem:[%s2764_s1 + $0x30] sm:$0xff]  ;;  %v218_v46 = vld [vmem:[%s2764_s1 + $0xc0] sm:$0xff] }
   0xb   :  { %1605 = vmatpush3.bf16.msra.mxu1 %v1604_v25  ;;  %1575 = vmatprep.subr.bf16.mxu0 %v1574_v26  ;;  %v201_v42 = vld [vmem:[%s2764_s1 + $0x38] sm:$0xff]  ;;  %v1610_v43 = vpack.c.bf16 %v249_v40, %v248_v37  ;;  %v232_v44 = vld [vmem:[%s2764_s1 + $0x130] sm:$0xff]  ;;  %v219_v47 = vld [vmem:[%s2764_s1 + $0xc8] sm:$0xff] }
   0xc   :  { %1607 = vmatprep.subr.bf16.mxu1 %v1606_v30  ;;  %v233_v45 = vld [vmem:[%s2764_s1 + $0x138] sm:$0xff]  ;;  %v250_v48 = vld [vmem:[%s2764_s1 + $0x1c0] sm:$0xff]  ;;  %v251_v49 = vld [vmem:[%s2764_s1 + $0x1c8] sm:$0xff]  ;;  %v1580_v50 = vpack.c.bf16 %v201_v42, %v200_v41  ;;  %v1582_v52 = vpack.c.bf16 %v219_v47, %v218_v46 }
   0xd   :  { %v1612_v51 = vpack.c.bf16 %v233_v45, %v232_v44  ;;  %v202_v53 = vld [vmem:[%s2764_s1 + $0x40] sm:$0xff]  ;;  %v203_v54 = vld [vmem:[%s2764_s1 + $0x48] sm:$0xff]  ;;  %v1614_v56 = vpack.c.bf16 %v251_v49, %v250_v48  ;;  %v220_v58 = vld [vmem:[%s2764_s1 + $0xd0] sm:$0xff] }
   0xe   :  { %1577 = vmatpush3.bf16.msra.mxu0 %v1576_v34  ;;  %v234_v55 = vld [vmem:[%s2764_s1 + $0x140] sm:$0xff]  ;;  %v235_v57 = vld [vmem:[%s2764_s1 + $0x148] sm:$0xff]  ;;  %v221_v59 = vld [vmem:[%s2764_s1 + $0xd8] sm:$0xff]  ;;  %v1584_v62 = vpack.c.bf16 %v203_v54, %v202_v53 }
   0xf   :  { %1609 = vmatpush3.bf16.msra.mxu1 %v1608_v38  ;;  %1579 = vmatprep.subr.bf16.mxu0 %v1578_v39  ;;  %v252_v60 = vld [vmem:[%s2764_s1 + $0x1d0] sm:$0xff]  ;;  %v253_v61 = vld [vmem:[%s2764_s1 + $0x1d8] sm:$0xff]  ;;  %v1616_v63 = vpack.c.bf16 %v235_v57, %v234_v55  ;;  %v1586_v0 = vpack.c.bf16 %v221_v59, %v220_v58  ;;  %v222_v6 = vld [vmem:[%s2764_s1 + $0xe0] sm:$0xff] }
  0x10   :  { %1611 = vmatprep.subr.bf16.mxu1 %v1610_v43  ;;  %v204_v1 = vld [vmem:[%s2764_s1 + $0x50] sm:$0xff]  ;;  %v205_v2 = vld [vmem:[%s2764_s1 + $0x58] sm:$0xff]  ;;  %v1618_v4 = vpack.c.bf16 %v253_v61, %v252_v60  ;;  %v223_v7 = vld [vmem:[%s2764_s1 + $0xe8] sm:$0xff] }
  0x11   :  { %v236_v3 = vld [vmem:[%s2764_s1 + $0x150] sm:$0xff]  ;;  %v237_v5 = vld [vmem:[%s2764_s1 + $0x158] sm:$0xff]  ;;  %v254_v8 = vld [vmem:[%s2764_s1 + $0x1e0] sm:$0xff]  ;;  %v1588_v10 = vpack.c.bf16 %v205_v2, %v204_v1  ;;  %v1590_v14 = vpack.c.bf16 %v223_v7, %v222_v6 }
  0x12   :  { %1581 = vmatpush3.bf16.msra.mxu0 %v1580_v50  ;;  %v255_v9 = vld [vmem:[%s2764_s1 + $0x1e8] sm:$0xff]  ;;  %v206_v11 = vld [vmem:[%s2764_s1 + $0x60] sm:$0xff]  ;;  %v1620_v13 = vpack.c.bf16 %v237_v5, %v236_v3  ;;  %v53_v17 = vld [vmem:[%s2765_s0 + $0x18] sm:$0xff] }
  0x13   :  { %1613 = vmatpush3.bf16.msra.mxu1 %v1612_v51  ;;  %1583 = vmatprep.subr.bf16.mxu0 %v1582_v52  ;;  %v207_v12 = vld [vmem:[%s2764_s1 + $0x68] sm:$0xff]  ;;  %v238_v15 = vld [vmem:[%s2764_s1 + $0x160] sm:$0xff]  ;;  %v1622_v18 = vpack.c.bf16 %v255_v9, %v254_v8  ;;  %v224_v20 = vld [vmem:[%s2764_s1 + $0xf0] sm:$0xff] }
  0x14   :  { %1615 = vmatprep.subr.bf16.mxu1 %v1614_v56  ;;  %v51_v16 = vld [vmem:[%s2765_s0 + $0x8] sm:$0xff]  ;;  %v225_v21 = vld [vmem:[%s2764_s1 + $0xf8] sm:$0xff]  ;;  %v256_v22 = vld [vmem:[%s2764_s1 + $0x1f0] sm:$0xff]  ;;  %547 = vmatprep.mubr.f32.mxu1 %v53_v17  ;;  %v1592_v24 = vpack.c.bf16 %v207_v12, %v206_v11 }
  0x15   :  { %v239_v19 = vld [vmem:[%s2764_s1 + $0x168] sm:$0xff]  ;;  %402 = vmatprep.mubr.f32.mxu0 %v51_v16  ;;  %v257_v23 = vld [vmem:[%s2764_s1 + $0x1f8] sm:$0xff]  ;;  %v1594_v26 = vpack.c.bf16 %v225_v21, %v224_v20  ;;  %v208_v27 = vld [vmem:[%s2764_s1 + $0x70] sm:$0xff] }
  0x16   :  { %1585 = vmatpush3.bf16.msra.mxu0 %v1584_v62  ;;  %v1624_v25 = vpack.c.bf16 %v239_v19, %v238_v15  ;;  %v209_v28 = vld [vmem:[%s2764_s1 + $0x78] sm:$0xff]  ;;  %v240_v29 = vld [vmem:[%s2764_s1 + $0x170] sm:$0xff]  ;;  %v1626_v30 = vpack.c.bf16 %v257_v23, %v256_v22  ;;  %v274_v32 = vld [vmem:[%s2764_s1 + $0x280] sm:$0xff] }
  0x17   :  { %1617 = vmatpush3.bf16.msra.mxu1 %v1616_v63  ;;  %1587 = vmatprep.subr.bf16.mxu0 %v1586_v0  ;;  %v241_v31 = vld [vmem:[%s2764_s1 + $0x178] sm:$0xff]  ;;  %v275_v33 = vld [vmem:[%s2764_s1 + $0x288] sm:$0xff]  ;;  %v306_v34 = vld [vmem:[%s2764_s1 + $0x380] sm:$0xff]  ;;  %v1596_v36 = vpack.c.bf16 %v209_v28, %v208_v27 }
  0x18   :  { %1619 = vmatprep.subr.bf16.mxu1 %v1618_v4  ;;  %v307_v35 = vld [vmem:[%s2764_s1 + $0x388] sm:$0xff]  ;;  %v1628_v37 = vpack.c.bf16 %v241_v31, %v240_v29  ;;  %v1630_v38 = vpack.c.bf16 %v275_v33, %v274_v32  ;;  %v258_v39 = vld [vmem:[%s2764_s1 + $0x200] sm:$0xff]  ;;  %v276_v44 = vld [vmem:[%s2764_s1 + $0x290] sm:$0xff] }
  0x19   :  { %v259_v40 = vld [vmem:[%s2764_s1 + $0x208] sm:$0xff]  ;;  %v1662_v41 = vpack.c.bf16 %v307_v35, %v306_v34  ;;  %v290_v42 = vld [vmem:[%s2764_s1 + $0x300] sm:$0xff]  ;;  %v277_v45 = vld [vmem:[%s2764_s1 + $0x298] sm:$0xff] }
  0x1a   :  { %1589 = vmatpush3.bf16.msra.mxu0 %v1588_v10  ;;  %v291_v43 = vld [vmem:[%s2764_s1 + $0x308] sm:$0xff]  ;;  %v50_v46 = vld [vmem:[%s2765_s0] sm:$0xff]  ;;  %v1632_v47 = vpack.c.bf16 %v259_v40, %v258_v39  ;;  %v308_v48 = vld [vmem:[%s2764_s1 + $0x390] sm:$0xff]  ;;  %v1634_v54 = vpack.c.bf16 %v277_v45, %v276_v44 }
  0x1b   :  { %1621 = vmatpush3.bf16.msra.mxu1 %v1620_v13  ;;  %1591 = vmatprep.subr.bf16.mxu0 %v1590_v14  ;;  %v309_v49 = vld [vmem:[%s2764_s1 + $0x398] sm:$0xff]  ;;  %v52_v50 = vld [vmem:[%s2765_s0 + $0x10] sm:$0xff]  ;;  %v1664_v51 = vpack.c.bf16 %v291_v43, %v290_v42  ;;  %v62_v53 = vld [vmem:[%s2765_s0 + $0x60] sm:$0xff] }
  0x1c   :  { %1623 = vmatprep.subr.bf16.mxu1 %v1622_v18  ;;  %v60_v52 = vld [vmem:[%s2765_s0 + $0x50] sm:$0xff]  ;;  %v261_v56 = vld [vmem:[%s2764_s1 + $0x218] sm:$0xff]  ;;  %v1666_v58 = vpack.c.bf16 %v309_v49, %v308_v48  ;;  %v278_v60 = vld [vmem:[%s2764_s1 + $0x2a0] sm:$0xff] }
  0x1d   :  { %v260_v55 = vld [vmem:[%s2764_s1 + $0x210] sm:$0xff]  ;;  %v293_v59 = vld [vmem:[%s2764_s1 + $0x318] sm:$0xff]  ;;  %v279_v61 = vld [vmem:[%s2764_s1 + $0x2a8] sm:$0xff] }
  0x1e   :  { %1593 = vmatpush3.bf16.msra.mxu0 %v1592_v24  ;;  %v292_v57 = vld [vmem:[%s2764_s1 + $0x310] sm:$0xff]  ;;  %v59_v62 = vld [vmem:[%s2765_s0 + $0x48] sm:$0xff]  ;;  %v310_v63 = vld [vmem:[%s2764_s1 + $0x3a0] sm:$0xff]  ;;  %v1636_v4 = vpack.c.bf16 %v261_v56, %v260_v55  ;;  %v1638_v6 = vpack.c.bf16 %v279_v61, %v278_v60 }
  0x1f   :  { %1625 = vmatpush3.bf16.msra.mxu1 %v1624_v25  ;;  %1595 = vmatprep.subr.bf16.mxu0 %v1594_v26  ;;  %v311_v0 = vld [vmem:[%s2764_s1 + $0x3a8] sm:$0xff]  ;;  %v61_v1 = vld [vmem:[%s2765_s0 + $0x58] sm:$0xff]  ;;  %v1668_v5 = vpack.c.bf16 %v293_v59, %v292_v57  ;;  %v262_v7 = vld [vmem:[%s2764_s1 + $0x220] sm:$0xff] }
  0x20   :  { %1627 = vmatprep.subr.bf16.mxu1 %v1626_v30  ;;  %v69_v2 = vld [vmem:[%s2765_s0 + $0x98] sm:$0xff]  ;;  %v71_v3 = vld [vmem:[%s2765_s0 + $0xa8] sm:$0xff]  ;;  %v294_v9 = vld [vmem:[%s2764_s1 + $0x320] sm:$0xff]  ;;  %v1670_v10 = vpack.c.bf16 %v311_v0, %v310_v63 }
  0x21   :  { %v263_v8 = vld [vmem:[%s2764_s1 + $0x228] sm:$0xff]  ;;  %v280_v12 = vld [vmem:[%s2764_s1 + $0x2b0] sm:$0xff]  ;;  %v281_v13 = vld [vmem:[%s2764_s1 + $0x2b8] sm:$0xff] }
  0x22   :  { %1597 = vmatpush3.bf16.msra.mxu0 %v1596_v36  ;;  %v295_v11 = vld [vmem:[%s2764_s1 + $0x328] sm:$0xff]  ;;  %v68_v14 = vld [vmem:[%s2765_s0 + $0x90] sm:$0xff]  ;;  %v313_v16 = vld [vmem:[%s2764_s1 + $0x3b8] sm:$0xff]  ;;  %v1640_v19 = vpack.c.bf16 %v263_v8, %v262_v7  ;;  %v1642_v22 = vpack.c.bf16 %v281_v13, %v280_v12 }
  0x23   :  { %1629 = vmatpush3.bf16.msra.mxu1 %v1628_v37  ;;  %1631 = vmatprep.subr.bf16.mxu0 %v1630_v38  ;;  %v312_v15 = vld [vmem:[%s2764_s1 + $0x3b0] sm:$0xff]  ;;  %v70_v17 = vld [vmem:[%s2765_s0 + $0xa0] sm:$0xff]  ;;  %v1672_v21 = vpack.c.bf16 %v295_v11, %v294_v9  ;;  %v265_v24 = vld [vmem:[%s2764_s1 + $0x238] sm:$0xff] }
  0x24   :  { %1663 = vmatprep.subr.bf16.mxu1 %v1662_v41  ;;  %v78_v18 = vld [vmem:[%s2765_s0 + $0xe0] sm:$0xff]  ;;  %v80_v20 = vld [vmem:[%s2765_s0 + $0xf0] sm:$0xff]  ;;  %v77_v25 = vld [vmem:[%s2765_s0 + $0xd8] sm:$0xff]  ;;  %v1674_v26 = vpack.c.bf16 %v313_v16, %v312_v15 }
  0x25   :  { %403 = vmatmul.mubr.f32.vlgmr.msra.gmra.mrb[0].mxu0 %v50_v46  ;;  %v264_v23 = vld [vmem:[%s2764_s1 + $0x230] sm:$0xff]  ;;  %v297_v28 = vld [vmem:[%s2764_s1 + $0x338] sm:$0xff]  ;;  %v282_v29 = vld [vmem:[%s2764_s1 + $0x2c0] sm:$0xff] }
  0x26   :  { %548 = vmatmul.mubr.f32.vlgmr.msra.gmra.mrb[0].mxu1 %v52_v50  ;;  %1633 = vmatpush3.bf16.msra.mxu0 %v1632_v47  ;;  %v296_v27 = vld [vmem:[%s2764_s1 + $0x330] sm:$0xff]  ;;  %v283_v30 = vld [vmem:[%s2764_s1 + $0x2c8] sm:$0xff]  ;;  %v314_v31 = vld [vmem:[%s2764_s1 + $0x3c0] sm:$0xff]  ;;  %v1644_v34 = vpack.c.bf16 %v265_v24, %v264_v23 }
  0x27   :  { %1665 = vmatpush3.bf16.msra.mxu1 %v1664_v51  ;;  %407 = vmatprep.mubr.f32.mxu0 %v60_v52  ;;  %v79_v32 = vld [vmem:[%s2765_s0 + $0xe8] sm:$0xff]  ;;  %v89_v36 = vld [vmem:[%s2765_s0 + $0x138] sm:$0xff]  ;;  %v1676_v37 = vpack.c.bf16 %v297_v28, %v296_v27  ;;  %v1646_v38 = vpack.c.bf16 %v283_v30, %v282_v29  ;;  %v266_v39 = vld [vmem:[%s2764_s1 + $0x240] sm:$0xff] }
  0x28   :  { %552 = vmatprep.mubr.f32.mxu1 %v62_v53  ;;  %1635 = vmatprep.subr.bf16.mxu0 %v1634_v54  ;;  %v87_v33 = vld [vmem:[%s2765_s0 + $0x128] sm:$0xff]  ;;  %v298_v42 = vld [vmem:[%s2764_s1 + $0x340] sm:$0xff]  ;;  %v88_v45 = vld [vmem:[%s2765_s0 + $0x130] sm:$0xff] }
  0x29   :  { %408 = vmatmul.mubr.f32.gmra.mrb[2].mxu0 %v59_v62  ;;  %1667 = vmatprep.subr.bf16.mxu1 %v1666_v58  ;;  %v315_v35 = vld [vmem:[%s2764_s1 + $0x3c8] sm:$0xff]  ;;  %v86_v44 = vld [vmem:[%s2765_s0 + $0x120] sm:$0xff]  ;;  %v96_v46 = vld [vmem:[%s2765_s0 + $0x170] sm:$0xff] }
  0x2a   :  { %553 = vmatmul.mubr.f32.gmra.mrb[2].mxu1 %v61_v1  ;;  %412 = vmatprep.mubr.f32.mxu0 %v69_v2  ;;  %v267_v40 = vld [vmem:[%s2764_s1 + $0x248] sm:$0xff]  ;;  %v1678_v41 = vpack.c.bf16 %v315_v35, %v314_v31  ;;  %v98_v47 = vld [vmem:[%s2765_s0 + $0x180] sm:$0xff]  ;;  %v284_v49 = vld [vmem:[%s2764_s1 + $0x2d0] sm:$0xff] }
  0x2b   :  { %557 = vmatprep.mubr.f32.mxu1 %v71_v3  ;;  %1637 = vmatpush3.bf16.msra.mxu0 %v1636_v4  ;;  %v299_v43 = vld [vmem:[%s2764_s1 + $0x348] sm:$0xff]  ;;  %v1648_v48 = vpack.c.bf16 %v267_v40, %v266_v39  ;;  %v285_v50 = vld [vmem:[%s2764_s1 + $0x2d8] sm:$0xff]  ;;  %v316_v53 = vld [vmem:[%s2764_s1 + $0x3d0] sm:$0xff] }
  0x2c   :  { %1669 = vmatpush3.bf16.msra.mxu1 %v1668_v5  ;;  %1639 = vmatprep.subr.bf16.mxu0 %v1638_v6  ;;  %v1680_v51 = vpack.c.bf16 %v299_v43, %v298_v42  ;;  %v1650_v52 = vpack.c.bf16 %v285_v50, %v284_v49  ;;  %v317_v54 = vld [vmem:[%s2764_s1 + $0x3d8] sm:$0xff]  ;;  %v268_v55 = vld [vmem:[%s2764_s1 + $0x250] sm:$0xff]  ;;  %v95_v60 = vld [vmem:[%s2765_s0 + $0x168] sm:$0xff] }
  0x2d   :  { %413 = vmatmul.mubr.f32.gmra.mrb[4].mxu0 %v68_v14  ;;  %1671 = vmatprep.subr.bf16.mxu1 %v1670_v10  ;;  %v1682_v56 = vpack.c.bf16 %v317_v54, %v316_v53  ;;  %v269_v57 = vld [vmem:[%s2764_s1 + $0x258] sm:$0xff]  ;;  %v300_v58 = vld [vmem:[%s2764_s1 + $0x350] sm:$0xff]  ;;  %v107_v0 = vld [vmem:[%s2765_s0 + $0x1c8] sm:$0xff] }
  0x2e   :  { %558 = vmatmul.mubr.f32.gmra.mrb[4].mxu1 %v70_v17  ;;  %417 = vmatprep.mubr.f32.mxu0 %v78_v18  ;;  %v301_v59 = vld [vmem:[%s2764_s1 + $0x358] sm:$0xff]  ;;  %v1652_v63 = vpack.c.bf16 %v269_v57, %v268_v55  ;;  %v104_v1 = vld [vmem:[%s2765_s0 + $0x1b0] sm:$0xff]  ;;  %v286_v3 = vld [vmem:[%s2764_s1 + $0x2e0] sm:$0xff] }
  0x2f   :  { %562 = vmatprep.mubr.f32.mxu1 %v80_v20  ;;  %1641 = vmatpush3.bf16.msra.mxu0 %v1640_v19  ;;  %v97_v61 = vld [vmem:[%s2765_s0 + $0x178] sm:$0xff]  ;;  %v1684_v2 = vpack.c.bf16 %v301_v59, %v300_v58  ;;  %v287_v4 = vld [vmem:[%s2764_s1 + $0x2e8] sm:$0xff]  ;;  %v318_v5 = vld [vmem:[%s2764_s1 + $0x3e0] sm:$0xff] }
  0x30   :  { %1673 = vmatpush3.bf16.msra.mxu1 %v1672_v21  ;;  %1643 = vmatprep.subr.bf16.mxu0 %v1642_v22  ;;  %v105_v62 = vld [vmem:[%s2765_s0 + $0x1b8] sm:$0xff]  ;;  %v319_v6 = vld [vmem:[%s2764_s1 + $0x3e8] sm:$0xff]  ;;  %v1654_v7 = vpack.c.bf16 %v287_v4, %v286_v3  ;;  %v270_v9 = vld [vmem:[%s2764_s1 + $0x260] sm:$0xff] }
  0x31   :  { %418 = vmatmul.mubr.f32.gmra.mrb[6].mxu0 %v77_v25  ;;  %1675 = vmatprep.subr.bf16.mxu1 %v1674_v26  ;;  %v1686_v8 = vpack.c.bf16 %v319_v6, %v318_v5  ;;  %v271_v10 = vld [vmem:[%s2764_s1 + $0x268] sm:$0xff]  ;;  %v302_v11 = vld [vmem:[%s2764_s1 + $0x360] sm:$0xff]  ;;  %v116_v16 = vld [vmem:[%s2765_s0 + $0x210] sm:$0xff] }
  0x32   :  { %563 = vmatmul.mubr.f32.gmra.mrb[6].mxu1 %v79_v32  ;;  %422 = vmatprep.mubr.f32.mxu0 %v87_v33  ;;  %v106_v12 = vld [vmem:[%s2765_s0 + $0x1c0] sm:$0xff]  ;;  %v1656_v14 = vpack.c.bf16 %v271_v10, %v270_v9  ;;  %v303_v15 = vld [vmem:[%s2764_s1 + $0x368] sm:$0xff]  ;;  %v113_v18 = vld [vmem:[%s2765_s0 + $0x1f8] sm:$0xff] }
  0x33   :  { %567 = vmatprep.mubr.f32.mxu1 %v89_v36  ;;  %1645 = vmatpush3.bf16.msra.mxu0 %v1644_v34  ;;  %v114_v13 = vld [vmem:[%s2765_s0 + $0x200] sm:$0xff]  ;;  %v1688_v17 = vpack.c.bf16 %v303_v15, %v302_v11  ;;  %v115_v19 = vld [vmem:[%s2765_s0 + $0x208] sm:$0xff]  ;;  %v288_v21 = vld [vmem:[%s2764_s1 + $0x2f0] sm:$0xff] }
  0x34   :  { %1677 = vmatpush3.bf16.msra.mxu1 %v1676_v37  ;;  %1647 = vmatprep.subr.bf16.mxu0 %v1646_v38  ;;  %v123_v20 = vld [vmem:[%s2765_s0 + $0x248] sm:$0xff]  ;;  %v289_v22 = vld [vmem:[%s2764_s1 + $0x2f8] sm:$0xff]  ;;  %v320_v23 = vld [vmem:[%s2764_s1 + $0x3f0] sm:$0xff] }
  0x35   :  { %423 = vmatmul.mubr.f32.gmra.mrb[8].mxu0 %v86_v44  ;;  %1679 = vmatprep.subr.bf16.mxu1 %v1678_v41  ;;  %v1658_v24 = vpack.c.bf16 %v289_v22, %v288_v21  ;;  %v321_v25 = vld [vmem:[%s2764_s1 + $0x3f8] sm:$0xff]  ;;  %v272_v26 = vld [vmem:[%s2764_s1 + $0x270] sm:$0xff]  ;;  %v122_v34 = vld [vmem:[%s2765_s0 + $0x240] sm:$0xff] }
  0x36   :  { %568 = vmatmul.mubr.f32.gmra.mrb[8].mxu1 %v88_v45  ;;  %427 = vmatprep.mubr.f32.mxu0 %v96_v46  ;;  %v273_v27 = vld [vmem:[%s2764_s1 + $0x278] sm:$0xff]  ;;  %v1690_v29 = vpack.c.bf16 %v321_v25, %v320_v23  ;;  %v304_v31 = vld [vmem:[%s2764_s1 + $0x370] sm:$0xff]  ;;  %v322_v37 = vld [vmem:[%s2764_s1 + $0x400] sm:$0xff] }
  0x37   :  { %572 = vmatprep.mubr.f32.mxu1 %v98_v47  ;;  %1649 = vmatpush3.bf16.msra.mxu0 %v1648_v48  ;;  %v125_v28 = vld [vmem:[%s2765_s0 + $0x258] sm:$0xff]  ;;  %v1660_v30 = vpack.c.bf16 %v273_v27, %v272_v26  ;;  %v124_v35 = vld [vmem:[%s2765_s0 + $0x250] sm:$0xff]  ;;  %v323_v38 = vld [vmem:[%s2764_s1 + $0x408] sm:$0xff] }
  0x38   :  { %1681 = vmatpush3.bf16.msra.mxu1 %v1680_v51  ;;  %1651 = vmatprep.subr.bf16.mxu0 %v1650_v52  ;;  %v305_v32 = vld [vmem:[%s2764_s1 + $0x378] sm:$0xff]  ;;  %v132_v36 = vld [vmem:[%s2765_s0 + $0x290] sm:$0xff]  ;;  %v134_v39 = vld [vmem:[%s2765_s0 + $0x2a0] sm:$0xff]  ;;  %v2266_v40 = vpack.c.bf16 %v323_v38, %v322_v37 }
  0x39   :  { %428 = vmatmul.mubr.f32.gmra.mrb[10].mxu0 %v95_v60  ;;  %1683 = vmatprep.subr.bf16.mxu1 %v1682_v56  ;;  %v1692_v33 = vpack.c.bf16 %v305_v32, %v304_v31  ;;  %v131_v41 = vld [vmem:[%s2765_s0 + $0x288] sm:$0xff]  ;;  %v133_v42 = vld [vmem:[%s2765_s0 + $0x298] sm:$0xff]  ;;  %v140_v45 = vld [vmem:[%s2765_s0 + $0x2d0] sm:$0xff] }
  0x3a   :  { %573 = vmatmul.mubr.f32.gmra.mrb[10].mxu1 %v97_v61  ;;  %432 = vmatprep.mubr.f32.mxu0 %v105_v62  ;;  %v141_v43 = vld [vmem:[%s2765_s0 + $0x2d8] sm:$0xff]  ;;  %v143_v44 = vld [vmem:[%s2765_s0 + $0x2e8] sm:$0xff]  ;;  %v142_v46 = vld [vmem:[%s2765_s0 + $0x2e0] sm:$0xff] }
  0x3b   :  { %577 = vmatprep.mubr.f32.mxu1 %v107_v0  ;;  %1653 = vmatpush3.bf16.msra.mxu0 %v1652_v63  ;;  %v150_v47 = vld [vmem:[%s2765_s0 + $0x320] sm:$0xff]  ;;  %v152_v48 = vld [vmem:[%s2765_s0 + $0x330] sm:$0xff]  ;;  %v149_v49 = vld [vmem:[%s2765_s0 + $0x318] sm:$0xff] }
  0x3c   :  { %1685 = vmatpush3.bf16.msra.mxu1 %v1684_v2  ;;  %1655 = vmatprep.subr.bf16.mxu0 %v1654_v7  ;;  %v151_v50 = vld [vmem:[%s2765_s0 + $0x328] sm:$0xff]  ;;  %v161_v52 = vld [vmem:[%s2765_s0 + $0x378] sm:$0xff]  ;;  %v158_v53 = vld [vmem:[%s2765_s0 + $0x360] sm:$0xff] }
  0x3d   :  { %433 = vmatmul.mubr.f32.gmra.mrb[12].mxu0 %v104_v1  ;;  %1687 = vmatprep.subr.bf16.mxu1 %v1686_v8  ;;  %v159_v51 = vld [vmem:[%s2765_s0 + $0x368] sm:$0xff]  ;;  %v160_v54 = vld [vmem:[%s2765_s0 + $0x370] sm:$0xff]  ;;  %v170_v56 = vld [vmem:[%s2765_s0 + $0x3c0] sm:$0xff] }
  0x3e   :  { %578 = vmatmul.mubr.f32.gmra.mrb[12].mxu1 %v106_v12  ;;  %437 = vmatprep.mubr.f32.mxu0 %v114_v13  ;;  %v168_v55 = vld [vmem:[%s2765_s0 + $0x3b0] sm:$0xff]  ;;  %v167_v57 = vld [vmem:[%s2765_s0 + $0x3a8] sm:$0xff]  ;;  %v169_v58 = vld [vmem:[%s2765_s0 + $0x3b8] sm:$0xff] }
  0x3f   :  { %582 = vmatprep.mubr.f32.mxu1 %v116_v16  ;;  %1657 = vmatpush3.bf16.msra.mxu0 %v1656_v14  ;;  %v177_v59 = vld [vmem:[%s2765_s0 + $0x3f8] sm:$0xff]  ;;  %v179_v60 = vld [vmem:[%s2765_s0 + $0x408] sm:$0xff]  ;;  %v176_v61 = vld [vmem:[%s2765_s0 + $0x3f0] sm:$0xff] }
  0x40   :  { %1689 = vmatpush3.bf16.msra.mxu1 %v1688_v17  ;;  %1659 = vmatprep.subr.bf16.mxu0 %v1658_v24  ;;  %v178_v62 = vld [vmem:[%s2765_s0 + $0x400] sm:$0xff]  ;;  %v188_v0 = vld [vmem:[%s2765_s0 + $0x450] sm:$0xff]  ;;  %v185_v1 = vld [vmem:[%s2765_s0 + $0x438] sm:$0xff] }
  0x41   :  { %438 = vmatmul.mubr.f32.gmra.mrb[14].mxu0 %v113_v18  ;;  %1691 = vmatprep.subr.bf16.mxu1 %v1690_v29  ;;  %v186_v63 = vld [vmem:[%s2765_s0 + $0x440] sm:$0xff]  ;;  %v187_v2 = vld [vmem:[%s2765_s0 + $0x448] sm:$0xff]  ;;  %v57_v4 = vld [vmem:[%s2765_s0 + $0x38] sm:$0xff] }
  0x42   :  { %583 = vmatmul.mubr.f32.gmra.mrb[14].mxu1 %v115_v19  ;;  %442 = vmatprep.mubr.f32.mxu0 %v123_v20  ;;  %v55_v3 = vld [vmem:[%s2765_s0 + $0x28] sm:$0xff]  ;;  %v324_v5 = vld [vmem:[%s2764_s1 + $0x410] sm:$0xff]  ;;  %v325_v6 = vld [vmem:[%s2764_s1 + $0x418] sm:$0xff] }
  0x43   :  { %587 = vmatprep.mubr.f32.mxu1 %v125_v28  ;;  %1661 = vmatpush3.bf16.msra.mxu0 %v1660_v30  ;;  %v54_v7 = vld [vmem:[%s2765_s0 + $0x20] sm:$0xff]  ;;  %v56_v8 = vld [vmem:[%s2765_s0 + $0x30] sm:$0xff]  ;;  %v1698_v10 = vpack.c.bf16 %v325_v6, %v324_v5  ;;  %v327_v13 = vld [vmem:[%s2764_s1 + $0x428] sm:$0xff] }
  0x44   :  { %1693 = vmatpush3.bf16.msra.mxu1 %v1692_v33  ;;  %1695 = vmatprep.subr.bf16.mxu0 %v2266_v40  ;;  %v64_v9 = vld [vmem:[%s2765_s0 + $0x70] sm:$0xff]  ;;  %v66_v11 = vld [vmem:[%s2765_s0 + $0x80] sm:$0xff]  ;;  %v63_v14 = vld [vmem:[%s2765_s0 + $0x68] sm:$0xff] }
  0x45   :  { %443 = vmatmul.mubr.f32.gmra.mrb[16].mxu0 %v122_v34  ;;  %1726 = vmatprep.subr.bf16.mxu1 %v2266_v40  ;;  %v326_v12 = vld [vmem:[%s2764_s1 + $0x420] sm:$0xff]  ;;  %v65_v15 = vld [vmem:[%s2765_s0 + $0x78] sm:$0xff]  ;;  %v75_v17 = vld [vmem:[%s2765_s0 + $0xc8] sm:$0xff] }
  0x46   :  { %588 = vmatmul.mubr.f32.gmra.mrb[16].mxu1 %v124_v35  ;;  %447 = vmatprep.mubr.f32.mxu0 %v132_v36  ;;  %v73_v16 = vld [vmem:[%s2765_s0 + $0xb8] sm:$0xff]  ;;  %v1702_v18 = vpack.c.bf16 %v327_v13, %v326_v12  ;;  %v328_v19 = vld [vmem:[%s2764_s1 + $0x430] sm:$0xff]  ;;  %v74_v22 = vld [vmem:[%s2765_s0 + $0xc0] sm:$0xff] }
  0x47   :  { %592 = vmatprep.mubr.f32.mxu1 %v134_v39  ;;  %v329_v20 = vld [vmem:[%s2764_s1 + $0x438] sm:$0xff]  ;;  %v72_v21 = vld [vmem:[%s2765_s0 + $0xb0] sm:$0xff]  ;;  %v82_v23 = vld [vmem:[%s2765_s0 + $0x100] sm:$0xff] }
  0x48   :  { %v84_v24 = vld [vmem:[%s2765_s0 + $0x110] sm:$0xff]  ;;  %v1706_v25 = vpack.c.bf16 %v329_v20, %v328_v19  ;;  %v330_v26 = vld [vmem:[%s2764_s1 + $0x440] sm:$0xff]  ;;  %v331_v27 = vld [vmem:[%s2764_s1 + $0x448] sm:$0xff] }
  0x49   :  { %448 = vmatmul.mubr.f32.gmra.mrb[18].mxu0 %v131_v41  ;;  %v81_v28 = vld [vmem:[%s2765_s0 + $0xf8] sm:$0xff]  ;;  %v83_v29 = vld [vmem:[%s2765_s0 + $0x108] sm:$0xff]  ;;  %v1710_v32 = vpack.c.bf16 %v331_v27, %v330_v26  ;;  %v332_v33 = vld [vmem:[%s2764_s1 + $0x450] sm:$0xff] }
  0x4a   :  { %593 = vmatmul.mubr.f32.gmra.mrb[18].mxu1 %v133_v42  ;;  %452 = vmatprep.mubr.f32.mxu0 %v141_v43  ;;  %v91_v30 = vld [vmem:[%s2765_s0 + $0x148] sm:$0xff]  ;;  %v93_v31 = vld [vmem:[%s2765_s0 + $0x158] sm:$0xff]  ;;  %v90_v35 = vld [vmem:[%s2765_s0 + $0x140] sm:$0xff] }
  0x4b   :  { %597 = vmatprep.mubr.f32.mxu1 %v143_v44  ;;  %v333_v34 = vld [vmem:[%s2764_s1 + $0x458] sm:$0xff]  ;;  %v92_v36 = vld [vmem:[%s2765_s0 + $0x150] sm:$0xff]  ;;  %v102_v38 = vld [vmem:[%s2765_s0 + $0x1a0] sm:$0xff] }
  0x4c   :  { %v100_v37 = vld [vmem:[%s2765_s0 + $0x190] sm:$0xff]  ;;  %v1714_v39 = vpack.c.bf16 %v333_v34, %v332_v33  ;;  %v335_v41 = vld [vmem:[%s2764_s1 + $0x468] sm:$0xff]  ;;  %v101_v43 = vld [vmem:[%s2765_s0 + $0x198] sm:$0xff] }
  0x4d   :  { %453 = vmatmul.mubr.f32.gmra.mrb[20].mxu0 %v140_v45  ;;  %v99_v42 = vld [vmem:[%s2765_s0 + $0x188] sm:$0xff]  ;;  %v109_v44 = vld [vmem:[%s2765_s0 + $0x1d8] sm:$0xff]  ;;  %v156_v5 = vld [vmem:[%s2765_s0 + $0x350] sm:$0xff] }
  0x4e   :  { %598 = vmatmul.mubr.f32.gmra.mrb[20].mxu1 %v142_v46  ;;  %457 = vmatprep.mubr.f32.mxu0 %v150_v47  ;;  %v111_v45 = vld [vmem:[%s2765_s0 + $0x1e8] sm:$0xff]  ;;  %v336_v47 = vld [vmem:[%s2764_s1 + $0x470] sm:$0xff]  ;;  %v153_v6 = vld [vmem:[%s2765_s0 + $0x338] sm:$0xff] }
  0x4f   :  { %602 = vmatprep.mubr.f32.mxu1 %v152_v48  ;;  %v337_v48 = vld [vmem:[%s2764_s1 + $0x478] sm:$0xff]  ;;  %v172_v12 = vld [vmem:[%s2765_s0 + $0x3d0] sm:$0xff]  ;;  %v174_v13 = vld [vmem:[%s2765_s0 + $0x3e0] sm:$0xff] }
  0x50   :  { %v182_v19 = vld [vmem:[%s2765_s0 + $0x420] sm:$0xff]  ;;  %v67_v26 = vld [vmem:[%s2765_s0 + $0x88] sm:$0xff] }
  0x51   :  { %458 = vmatmul.mubr.f32.gmra.mrb[22].mxu0 %v149_v49  ;;  %v108_v49 = vld [vmem:[%s2765_s0 + $0x1d0] sm:$0xff]  ;;  %v190_v20 = vld [vmem:[%s2765_s0 + $0x460] sm:$0xff]  ;;  %v139_v27 = vld [vmem:[%s2765_s0 + $0x2c8] sm:$0xff] }
  0x52   :  { %603 = vmatmul.mubr.f32.gmra.mrb[22].mxu1 %v151_v50  ;;  %462 = vmatprep.mubr.f32.mxu0 %v159_v51  ;;  %v110_v50 = vld [vmem:[%s2765_s0 + $0x1e0] sm:$0xff]  ;;  %v103_v34 = vld [vmem:[%s2765_s0 + $0x1a8] sm:$0xff] }
  0x53   :  { %607 = vmatprep.mubr.f32.mxu1 %v161_v52  ;;  %v118_v51 = vld [vmem:[%s2765_s0 + $0x220] sm:$0xff]  ;;  %v120_v52 = vld [vmem:[%s2765_s0 + $0x230] sm:$0xff] }
  0x54   :  { %v166_v33 = vld [vmem:[%s2765_s0 + $0x3a0] sm:$0xff] }
  0x55   :  { %463 = vmatmul.mubr.f32.gmra.mrb[24].mxu0 %v158_v53  ;;  %v1722_v53 = vpack.c.bf16 %v337_v48, %v336_v47 }
  0x56   :  { %608 = vmatmul.mubr.f32.gmra.mrb[24].mxu1 %v160_v54  ;;  %467 = vmatprep.mubr.f32.mxu0 %v168_v55  ;;  %v117_v54 = vld [vmem:[%s2765_s0 + $0x218] sm:$0xff]  ;;  %v119_v55 = vld [vmem:[%s2765_s0 + $0x228] sm:$0xff] }
  0x57   :  { %612 = vmatprep.mubr.f32.mxu1 %v170_v56  ;;  %v127_v56 = vld [vmem:[%s2765_s0 + $0x268] sm:$0xff] }
  0x59   :  { %468 = vmatmul.mubr.f32.gmra.mrb[26].mxu0 %v167_v57  ;;  %v129_v57 = vld [vmem:[%s2765_s0 + $0x278] sm:$0xff] }
  0x5a   :  { %613 = vmatmul.mubr.f32.gmra.mrb[26].mxu1 %v169_v58  ;;  %472 = vmatprep.mubr.f32.mxu0 %v177_v59  ;;  %v126_v58 = vld [vmem:[%s2765_s0 + $0x260] sm:$0xff]  ;;  %v128_v59 = vld [vmem:[%s2765_s0 + $0x270] sm:$0xff] }
  0x5b   :  { %617 = vmatprep.mubr.f32.mxu1 %v179_v60  ;;  %v136_v60 = vld [vmem:[%s2765_s0 + $0x2b0] sm:$0xff] }
  0x5d   :  { %473 = vmatmul.mubr.f32.gmra.mrb[28].mxu0 %v176_v61  ;;  %v138_v61 = vld [vmem:[%s2765_s0 + $0x2c0] sm:$0xff] }
  0x5e   :  { %618 = vmatmul.mubr.f32.gmra.mrb[28].mxu1 %v178_v62  ;;  %477 = vmatprep.mubr.f32.mxu0 %v186_v63  ;;  %v135_v62 = vld [vmem:[%s2765_s0 + $0x2a8] sm:$0xff]  ;;  %v137_v63 = vld [vmem:[%s2765_s0 + $0x2b8] sm:$0xff] }
  0x5f   :  { %622 = vmatprep.mubr.f32.mxu1 %v188_v0  ;;  %v145_v0 = vld [vmem:[%s2765_s0 + $0x2f8] sm:$0xff] }
  0x61   :  { %478 = vmatmul.mubr.f32.gmra.mrb[30].mxu0 %v185_v1  ;;  %v147_v1 = vld [vmem:[%s2765_s0 + $0x308] sm:$0xff] }
  0x62   :  { %623 = vmatmul.mubr.f32.gmra.mrb[30].mxu1 %v187_v2  ;;  %692 = vmatprep.mubr.f32.mxu0 %v55_v3  ;;  %v144_v2 = vld [vmem:[%s2765_s0 + $0x2f0] sm:$0xff]  ;;  %v146_v3 = vld [vmem:[%s2765_s0 + $0x300] sm:$0xff] }
  0x63   :  { %837 = vmatprep.mubr.f32.mxu1 %v57_v4  ;;  %v154_v4 = vld [vmem:[%s2765_s0 + $0x340] sm:$0xff] }
  0x65   :  { %693 = vmatmul.mubr.f32.vlgmr.msra.gmra.mrb[32].mxu0 %v54_v7  ;;  %v155_v7 = vld [vmem:[%s2765_s0 + $0x348] sm:$0xff] }
  0x66   :  { %838 = vmatmul.mubr.f32.vlgmr.msra.gmra.mrb[32].mxu1 %v56_v8  ;;  %1697 = vmatpush3.bf16.msra.mxu0 %v2266_v40  ;;  %v163_v8 = vld [vmem:[%s2765_s0 + $0x388] sm:$0xff] }
  0x67   :  { %1734 = vmatpush3.bf16.msra.mxu1 %v2266_v40  ;;  %697 = vmatprep.mubr.f32.mxu0 %v64_v9  ;;  %v334_v40 = vld [vmem:[%s2764_s1 + $0x460] sm:$0xff]  ;;  %v165_v9 = vld [vmem:[%s2765_s0 + $0x398] sm:$0xff] }
  0x68   :  { %842 = vmatprep.mubr.f32.mxu1 %v66_v11  ;;  %1699 = vmatprep.subr.bf16.mxu0 %v1698_v10  ;;  %v1718_v46 = vpack.c.bf16 %v335_v41, %v334_v40  ;;  %v164_v11 = vld [vmem:[%s2765_s0 + $0x390] sm:$0xff] }
  0x69   :  { %698 = vmatmul.mubr.f32.gmra.mrb[34].mxu0 %v63_v14  ;;  %1727 = vmatprep.subr.bf16.mxu1 %v1698_v10  ;;  %v171_v14 = vld [vmem:[%s2765_s0 + $0x3c8] sm:$0xff] }
  0x6a   :  { %843 = vmatmul.mubr.f32.gmra.mrb[34].mxu1 %v65_v15  ;;  %702 = vmatprep.mubr.f32.mxu0 %v73_v16  ;;  %v173_v15 = vld [vmem:[%s2765_s0 + $0x3d8] sm:$0xff] }
  0x6b   :  { %847 = vmatprep.mubr.f32.mxu1 %v75_v17  ;;  %1701 = vmatpush3.bf16.msra.mxu0 %v1698_v10  ;;  %v181_v16 = vld [vmem:[%s2765_s0 + $0x418] sm:$0xff]  ;;  %v183_v17 = vld [vmem:[%s2765_s0 + $0x428] sm:$0xff] }
  0x6c   :  { %1735 = vmatpush3.bf16.msra.mxu1 %v1698_v10  ;;  %1703 = vmatprep.subr.bf16.mxu0 %v1702_v18  ;;  %v162_v10 = vld [vmem:[%s2765_s0 + $0x380] sm:$0xff] }
  0x6d   :  { %703 = vmatmul.mubr.f32.gmra.mrb[36].mxu0 %v72_v21  ;;  %1728 = vmatprep.subr.bf16.mxu1 %v1702_v18  ;;  %v192_v21 = vld [vmem:[%s2765_s0 + $0x470] sm:$0xff] }
  0x6e   :  { %848 = vmatmul.mubr.f32.gmra.mrb[36].mxu1 %v74_v22  ;;  %707 = vmatprep.mubr.f32.mxu0 %v82_v23  ;;  %v189_v22 = vld [vmem:[%s2765_s0 + $0x458] sm:$0xff]  ;;  %v191_v23 = vld [vmem:[%s2765_s0 + $0x468] sm:$0xff] }
  0x6f   :  { %852 = vmatprep.mubr.f32.mxu1 %v84_v24  ;;  %1705 = vmatpush3.bf16.msra.mxu0 %v1702_v18  ;;  %v58_v24 = vld [vmem:[%s2765_s0 + $0x40] sm:$0xff] }
  0x70   :  { %1736 = vmatpush3.bf16.msra.mxu1 %v1702_v18  ;;  %1707 = vmatprep.subr.bf16.mxu0 %v1706_v25  ;;  %v180_v18 = vld [vmem:[%s2765_s0 + $0x410] sm:$0xff] }
  0x71   :  { %708 = vmatmul.mubr.f32.gmra.mrb[38].mxu0 %v81_v28  ;;  %1729 = vmatprep.subr.bf16.mxu1 %v1706_v25  ;;  %v76_v28 = vld [vmem:[%s2765_s0 + $0xd0] sm:$0xff] }
  0x72   :  { %853 = vmatmul.mubr.f32.gmra.mrb[38].mxu1 %v83_v29  ;;  %712 = vmatprep.mubr.f32.mxu0 %v91_v30  ;;  %v148_v29 = vld [vmem:[%s2765_s0 + $0x310] sm:$0xff]  ;;  %v85_v30 = vld [vmem:[%s2765_s0 + $0x118] sm:$0xff] }
  0x73   :  { %857 = vmatprep.mubr.f32.mxu1 %v93_v31  ;;  %1709 = vmatpush3.bf16.msra.mxu0 %v1706_v25  ;;  %v157_v31 = vld [vmem:[%s2765_s0 + $0x358] sm:$0xff] }
  0x74   :  { %1737 = vmatpush3.bf16.msra.mxu1 %v1706_v25  ;;  %1711 = vmatprep.subr.bf16.mxu0 %v1710_v32  ;;  %v130_v25 = vld [vmem:[%s2765_s0 + $0x280] sm:$0xff] }
  0x75   :  { %713 = vmatmul.mubr.f32.gmra.mrb[40].mxu0 %v90_v35  ;;  %1730 = vmatprep.subr.bf16.mxu1 %v1710_v32  ;;  %v175_v35 = vld [vmem:[%s2765_s0 + $0x3e8] sm:$0xff] }
  0x76   :  { %858 = vmatmul.mubr.f32.gmra.mrb[40].mxu1 %v92_v36  ;;  %717 = vmatprep.mubr.f32.mxu0 %v100_v37  ;;  %v112_v36 = vld [vmem:[%s2765_s0 + $0x1f0] sm:$0xff] }
  0x77   :  { %862 = vmatprep.mubr.f32.mxu1 %v102_v38  ;;  %1713 = vmatpush3.bf16.msra.mxu0 %v1710_v32  ;;  %v184_v37 = vld [vmem:[%s2765_s0 + $0x430] sm:$0xff]  ;;  %v121_v38 = vld [vmem:[%s2765_s0 + $0x238] sm:$0xff] }
  0x78   :  { %1738 = vmatpush3.bf16.msra.mxu1 %v1710_v32  ;;  %1715 = vmatprep.subr.bf16.mxu0 %v1714_v39  ;;  %v94_v32 = vld [vmem:[%s2765_s0 + $0x160] sm:$0xff] }
  0x79   :  { %718 = vmatmul.mubr.f32.gmra.mrb[42].mxu0 %v99_v42  ;;  %1731 = vmatprep.subr.bf16.mxu1 %v1714_v39 }
  0x7a   :  { %863 = vmatmul.mubr.f32.gmra.mrb[42].mxu1 %v101_v43  ;;  %722 = vmatprep.mubr.f32.mxu0 %v109_v44 }
  0x7b   :  { %867 = vmatprep.mubr.f32.mxu1 %v111_v45  ;;  %1717 = vmatpush3.bf16.msra.mxu0 %v1714_v39 }
  0x7c   :  { %1739 = vmatpush3.bf16.msra.mxu1 %v1714_v39  ;;  %1719 = vmatprep.subr.bf16.mxu0 %v1718_v46  ;;  %v193_v39 = vld [vmem:[%s2765_s0 + $0x478] sm:$0xff] }
  0x7d   :  { %723 = vmatmul.mubr.f32.gmra.mrb[44].mxu0 %v108_v49  ;;  %1732 = vmatprep.subr.bf16.mxu1 %v1718_v46 }
  0x7e   :  { %868 = vmatmul.mubr.f32.gmra.mrb[44].mxu1 %v110_v50  ;;  %727 = vmatprep.mubr.f32.mxu0 %v118_v51 }
  0x7f   :  { %872 = vmatprep.mubr.f32.mxu1 %v120_v52  ;;  %1721 = vmatpush3.bf16.msra.mxu0 %v1718_v46 }
  0x80   :  { %1740 = vmatpush3.bf16.msra.mxu1 %v1718_v46  ;;  %1723 = vmatprep.subr.bf16.mxu0 %v1722_v53 }
  0x81   :  { %728 = vmatmul.mubr.f32.gmra.mrb[46].mxu0 %v117_v54  ;;  %1733 = vmatprep.subr.bf16.mxu1 %v1722_v53 }
  0x82   :  { %873 = vmatmul.mubr.f32.gmra.mrb[46].mxu1 %v119_v55  ;;  %732 = vmatprep.mubr.f32.mxu0 %v127_v56 }
  0x83   :  { %877 = vmatprep.mubr.f32.mxu1 %v129_v57  ;;  %1725 = vmatpush3.bf16.msra.mxu0 %v1722_v53 }
  0x84   :  { %1741 = vmatpush3.bf16.msra.mxu1 %v1722_v53 }
  0x85   :  { %733 = vmatmul.mubr.f32.gmra.mrb[48].mxu0 %v126_v58 }
  0x86   :  { %878 = vmatmul.mubr.f32.gmra.mrb[48].mxu1 %v128_v59  ;;  %737 = vmatprep.mubr.f32.mxu0 %v136_v60 }
  0x87   :  { %882 = vmatprep.mubr.f32.mxu1 %v138_v61 }
  0x89   :  { %738 = vmatmul.mubr.f32.gmra.mrb[50].mxu0 %v135_v62 }
  0x8a   :  { %883 = vmatmul.mubr.f32.gmra.mrb[50].mxu1 %v137_v63  ;;  %742 = vmatprep.mubr.f32.mxu0 %v145_v0 }
  0x8b   :  { %887 = vmatprep.mubr.f32.mxu1 %v147_v1 }
  0x8d   :  { %743 = vmatmul.mubr.f32.gmra.mrb[52].mxu0 %v144_v2 }
  0x8e   :  { %888 = vmatmul.mubr.f32.gmra.mrb[52].mxu1 %v146_v3  ;;  %747 = vmatprep.mubr.f32.mxu0 %v154_v4 }
  0x8f   :  { %892 = vmatprep.mubr.f32.mxu1 %v156_v5 }
  0x91   :  { %748 = vmatmul.mubr.f32.gmra.mrb[54].mxu0 %v153_v6 }
  0x92   :  { %893 = vmatmul.mubr.f32.gmra.mrb[54].mxu1 %v155_v7  ;;  %752 = vmatprep.mubr.f32.mxu0 %v163_v8 }
  0x93   :  { %897 = vmatprep.mubr.f32.mxu1 %v165_v9 }
  0x95   :  { %753 = vmatmul.mubr.f32.gmra.mrb[56].mxu0 %v162_v10 }
  0x96   :  { %898 = vmatmul.mubr.f32.gmra.mrb[56].mxu1 %v164_v11  ;;  %757 = vmatprep.mubr.f32.mxu0 %v172_v12 }
  0x97   :  { %902 = vmatprep.mubr.f32.mxu1 %v174_v13 }
  0x99   :  { %758 = vmatmul.mubr.f32.gmra.mrb[58].mxu0 %v171_v14 }
  0x9a   :  { %903 = vmatmul.mubr.f32.gmra.mrb[58].mxu1 %v173_v15  ;;  %762 = vmatprep.mubr.f32.mxu0 %v181_v16 }
  0x9b   :  { %907 = vmatprep.mubr.f32.mxu1 %v183_v17 }
  0x9d   :  { %763 = vmatmul.mubr.f32.gmra.mrb[60].mxu0 %v180_v18 }
  0x9e   :  { %908 = vmatmul.mubr.f32.gmra.mrb[60].mxu1 %v182_v19  ;;  %767 = vmatprep.mubr.f32.mxu0 %v190_v20 }
  0x9f   :  { %912 = vmatprep.mubr.f32.mxu1 %v192_v21 }
  0xa1   :  { %768 = vmatmul.mubr.f32.gmra.mrb[62].mxu0 %v189_v22 }
  0xa2   :  { %913 = vmatmul.mubr.f32.gmra.mrb[62].mxu1 %v191_v23  ;;  %1542 = vmatprep.mubr.f32.mxu0 %v58_v24 }
  0xa3   :  { %1554 = vmatprep.mubr.f32.mxu1 %v130_v25 }
  0xa5   :  { %1543 = vmatmul.mubr.f32.vlgmr.msra.gmra.mrb[64].mxu0 %v67_v26 }
  0xa6   :  { %1555 = vmatmul.mubr.f32.vlgmr.msra.gmra.mrb[64].mxu1 %v139_v27  ;;  %1545 = vmatprep.mubr.f32.mxu0 %v76_v28 }
  0xa7   :  { %1557 = vmatprep.mubr.f32.mxu1 %v148_v29 }
  0xa9   :  { %1546 = vmatmul.mubr.f32.gmra.mrb[66].mxu0 %v85_v30 }
  0xaa   :  { %1558 = vmatmul.mubr.f32.gmra.mrb[66].mxu1 %v157_v31  ;;  %1548 = vmatprep.mubr.f32.mxu0 %v94_v32 }
  0xab   :  { %1560 = vmatprep.mubr.f32.mxu1 %v166_v33 }
  0xad   :  { %1549 = vmatmul.mubr.f32.gmra.mrb[68].mxu0 %v103_v34 }
  0xae   :  { %1561 = vmatmul.mubr.f32.gmra.mrb[68].mxu1 %v175_v35  ;;  %1551 = vmatprep.mubr.f32.mxu0 %v112_v36 }
  0xaf   :  { %1563 = vmatprep.mubr.f32.mxu1 %v184_v37 }
  0xb1   :  { %1552 = vmatmul.mubr.f32.gmra.mrb[70].mxu0 %v121_v38 }
  0xb2   :  { %1564 = vmatmul.mubr.f32.gmra.mrb[70].mxu1 %v193_v39 }
  0xf8   :  { %v1190_v40 = vpop.f32.mrb[0].mxu0 }
  0xf9   :  { %v1270_v41 = vpop.f32.mrb[0].mxu1  ;;  %v1191_v42 = vpop.f32.mrb[1].mxu0 }
  0xfa   :  { %v1192_v43 = vadd.f32 %v1191_v42, %v1190_v40  ;;  %v1271_v44 = vpop.f32.mrb[1].mxu1 }
  0xfb   :  { %v1272_v45 = vadd.f32 %v1271_v44, %v1270_v41 }
  0xfc   :  { %v1193_v46 = vpop.f32.mrb[2].mxu0 }
  0xfd   :  { %v2632_v47 = vadd.f32 %v1272_v45, %v1192_v43  ;;  %v1273_v48 = vpop.f32.mrb[2].mxu1  ;;  %v1194_v49 = vpop.f32.mrb[3].mxu0 }
  0xfe   :  { %v1195_v50 = vadd.f32 %v1194_v49, %v1193_v46  ;;  %v1274_v51 = vpop.f32.mrb[3].mxu1 }
  0xff   :  { %v1275_v52 = vadd.f32 %v1274_v51, %v1273_v48 }
 0x100   :  { %v1196_v53 = vpop.f32.mrb[4].mxu0 }
 0x101   :  { %v2634_v54 = vadd.f32 %v1275_v52, %v1195_v50  ;;  %v1276_v55 = vpop.f32.mrb[4].mxu1  ;;  %v1197_v56 = vpop.f32.mrb[5].mxu0 }
 0x102   :  { %v1198_v57 = vadd.f32 %v1197_v56, %v1196_v53  ;;  %v1277_v58 = vpop.f32.mrb[5].mxu1 }
 0x103   :  { %v1278_v59 = vadd.f32 %v1277_v58, %v1276_v55 }
 0x104   :  { %v1199_v60 = vpop.f32.mrb[6].mxu0 }
 0x105   :  { %v2636_v61 = vadd.f32 %v1278_v59, %v1198_v57  ;;  %v1279_v62 = vpop.f32.mrb[6].mxu1  ;;  %v1200_v63 = vpop.f32.mrb[7].mxu0 }
 0x106   :  { %v1201_v0 = vadd.f32 %v1200_v63, %v1199_v60  ;;  %v1280_v1 = vpop.f32.mrb[7].mxu1 }
 0x107   :  { %v1281_v2 = vadd.f32 %v1280_v1, %v1279_v62 }
 0x108   :  { %v1202_v3 = vpop.f32.mrb[8].mxu0 }
 0x109   :  { %v2638_v4 = vadd.f32 %v1281_v2, %v1201_v0  ;;  %v1282_v5 = vpop.f32.mrb[8].mxu1  ;;  %v1203_v6 = vpop.f32.mrb[9].mxu0 }
 0x10a   :  { %v1204_v7 = vadd.f32 %v1203_v6, %v1202_v3  ;;  %v1283_v8 = vpop.f32.mrb[9].mxu1 }
 0x10b   :  { %v1284_v9 = vadd.f32 %v1283_v8, %v1282_v5 }
 0x10c   :  { %v1205_v10 = vpop.f32.mrb[10].mxu0 }
 0x10d   :  { %v2640_v11 = vadd.f32 %v1284_v9, %v1204_v7  ;;  %v1285_v12 = vpop.f32.mrb[10].mxu1  ;;  %v1206_v13 = vpop.f32.mrb[11].mxu0 }
 0x10e   :  { %v1207_v14 = vadd.f32 %v1206_v13, %v1205_v10  ;;  %v1286_v15 = vpop.f32.mrb[11].mxu1 }
 0x10f   :  { %v1287_v16 = vadd.f32 %v1286_v15, %v1285_v12 }
 0x110   :  { %v1208_v17 = vpop.f32.mrb[12].mxu0 }
 0x111   :  { %v2642_v18 = vadd.f32 %v1287_v16, %v1207_v14  ;;  %v1288_v19 = vpop.f32.mrb[12].mxu1  ;;  %v1209_v20 = vpop.f32.mrb[13].mxu0 }
 0x112   :  { %v1210_v21 = vadd.f32 %v1209_v20, %v1208_v17  ;;  %v1289_v22 = vpop.f32.mrb[13].mxu1 }
 0x113   :  { %v1290_v23 = vadd.f32 %v1289_v22, %v1288_v19 }
 0x114   :  { %v1211_v24 = vpop.f32.mrb[14].mxu0 }
 0x115   :  { %v2644_v25 = vadd.f32 %v1290_v23, %v1210_v21  ;;  %v1291_v26 = vpop.f32.mrb[14].mxu1  ;;  %v1212_v27 = vpop.f32.mrb[15].mxu0 }
 0x116   :  { %v1213_v28 = vadd.f32 %v1212_v27, %v1211_v24  ;;  %v1292_v29 = vpop.f32.mrb[15].mxu1 }
 0x117   :  { %v1293_v30 = vadd.f32 %v1292_v29, %v1291_v26 }
 0x118   :  { %v1214_v31 = vpop.f32.mrb[16].mxu0 }
 0x119   :  { %v2646_v32 = vadd.f32 %v1293_v30, %v1213_v28  ;;  %v1294_v33 = vpop.f32.mrb[16].mxu1  ;;  %v1215_v34 = vpop.f32.mrb[17].mxu0 }
 0x11a   :  { %v1216_v35 = vadd.f32 %v1215_v34, %v1214_v31  ;;  %v1295_v36 = vpop.f32.mrb[17].mxu1 }
 0x11b   :  { %v1296_v37 = vadd.f32 %v1295_v36, %v1294_v33 }
 0x11c   :  { %v1217_v38 = vpop.f32.mrb[18].mxu0 }
 0x11d   :  { %v2648_v39 = vadd.f32 %v1296_v37, %v1216_v35  ;;  %v1297_v40 = vpop.f32.mrb[18].mxu1  ;;  %v1218_v41 = vpop.f32.mrb[19].mxu0 }
 0x11e   :  { %v1219_v42 = vadd.f32 %v1218_v41, %v1217_v38  ;;  %v1298_v43 = vpop.f32.mrb[19].mxu1 }
 0x11f   :  { %v1299_v44 = vadd.f32 %v1298_v43, %v1297_v40 }
 0x120   :  { %v1220_v45 = vpop.f32.mrb[20].mxu0 }
 0x121   :  { %v2650_v46 = vadd.f32 %v1299_v44, %v1219_v42  ;;  %v1300_v48 = vpop.f32.mrb[20].mxu1  ;;  %v1221_v49 = vpop.f32.mrb[21].mxu0 }
 0x122   :  { %v1222_v50 = vadd.f32 %v1221_v49, %v1220_v45  ;;  %v1301_v51 = vpop.f32.mrb[21].mxu1 }
 0x123   :  { %v1302_v52 = vadd.f32 %v1301_v51, %v1300_v48 }
 0x124   :  { %v1223_v53 = vpop.f32.mrb[22].mxu0 }
 0x125   :  { %v2652_v55 = vadd.f32 %v1302_v52, %v1222_v50  ;;  %v1303_v56 = vpop.f32.mrb[22].mxu1  ;;  %v1224_v57 = vpop.f32.mrb[23].mxu0 }
 0x126   :  { %v1225_v58 = vadd.f32 %v1224_v57, %v1223_v53  ;;  %v1304_v59 = vpop.f32.mrb[23].mxu1 }
 0x127   :  { %v1305_v60 = vadd.f32 %v1304_v59, %v1303_v56 }
 0x128   :  { %v1226_v62 = vpop.f32.mrb[24].mxu0 }
 0x129   :  { %v2654_v63 = vadd.f32 %v1305_v60, %v1225_v58  ;;  %v1306_v0 = vpop.f32.mrb[24].mxu1  ;;  %v1227_v1 = vpop.f32.mrb[25].mxu0 }
 0x12a   :  { %v1228_v2 = vadd.f32 %v1227_v1, %v1226_v62  ;;  %v1307_v3 = vpop.f32.mrb[25].mxu1 }
 0x12b   :  { %v1308_v5 = vadd.f32 %v1307_v3, %v1306_v0 }
 0x12c   :  { %v1229_v6 = vpop.f32.mrb[26].mxu0 }
 0x12d   :  { %v2656_v7 = vadd.f32 %v1308_v5, %v1228_v2  ;;  %v1309_v8 = vpop.f32.mrb[26].mxu1  ;;  %v1230_v9 = vpop.f32.mrb[27].mxu0 }
 0x12e   :  { %v1231_v10 = vadd.f32 %v1230_v9, %v1229_v6  ;;  %v1310_v12 = vpop.f32.mrb[27].mxu1 }
 0x12f   :  { %v1311_v13 = vadd.f32 %v1310_v12, %v1309_v8 }
 0x130   :  { %v1232_v14 = vpop.f32.mrb[28].mxu0 }
 0x131   :  { %v2658_v15 = vadd.f32 %v1311_v13, %v1231_v10  ;;  %v1312_v16 = vpop.f32.mrb[28].mxu1  ;;  %v1233_v17 = vpop.f32.mrb[29].mxu0 }
 0x132   :  { %v1234_v19 = vadd.f32 %v1233_v17, %v1232_v14  ;;  %v1313_v20 = vpop.f32.mrb[29].mxu1 }
 0x133   :  { %v1314_v21 = vadd.f32 %v1313_v20, %v1312_v16 }
 0x134   :  { %v1235_v22 = vpop.f32.mrb[30].mxu0 }
 0x135   :  { %v2660_v23 = vadd.f32 %v1314_v21, %v1234_v19  ;;  %v1315_v24 = vpop.f32.mrb[30].mxu1  ;;  %v1236_v26 = vpop.f32.mrb[31].mxu0 }
 0x136   :  { %v1237_v27 = vadd.f32 %v1236_v26, %v1235_v22  ;;  %v1316_v28 = vpop.f32.mrb[31].mxu1 }
 0x137   :  { %v1317_v29 = vadd.f32 %v1316_v28, %v1315_v24 }
 0x138   :  { %v1350_v30 = vpop.f32.mrb[32].mxu0 }
 0x139   :  { %v2662_v31 = vadd.f32 %v1317_v29, %v1237_v27  ;;  %v1430_v33 = vpop.f32.mrb[32].mxu1  ;;  %v1351_v34 = vpop.f32.mrb[33].mxu0 }
 0x13a   :  { %v1352_v35 = vadd.f32 %v1351_v34, %v1350_v30  ;;  %v1431_v36 = vpop.f32.mrb[33].mxu1 }
 0x13b   :  { %v1432_v37 = vadd.f32 %v1431_v36, %v1430_v33 }
 0x13c   :  { %v695_v38 = vadd.f32 %v1352_v35, %v2632_v47  ;;  %v1353_v40 = vpop.f32.mrb[34].mxu0 }
 0x13d   :  { %v1433_v41 = vpop.f32.mrb[34].mxu1  ;;  %v1354_v42 = vpop.f32.mrb[35].mxu0 }
 0x13e   :  { %v1355_v43 = vadd.f32 %v1354_v42, %v1353_v40  ;;  %v1434_v44 = vpop.f32.mrb[35].mxu1  ;;  %v2665_v45 = vadd.f32 %v1432_v37, %v695_v38 }
 0x13f   :  { %v1435_v48 = vadd.f32 %v1434_v44, %v1433_v41 }
 0x140   :  { %v700_v49 = vadd.f32 %v1355_v43, %v2634_v54  ;;  %v1356_v50 = vpop.f32.mrb[36].mxu0 }
 0x141   :  { %v1436_v51 = vpop.f32.mrb[36].mxu1  ;;  %v1357_v52 = vpop.f32.mrb[37].mxu0 }
 0x142   :  { %v1358_v53 = vadd.f32 %v1357_v52, %v1356_v50  ;;  %v1437_v56 = vpop.f32.mrb[37].mxu1  ;;  %v2668_v57 = vadd.f32 %v1435_v48, %v700_v49 }
 0x143   :  { %v1438_v58 = vadd.f32 %v1437_v56, %v1436_v51 }
 0x144   :  { %v705_v47 = vadd.f32 %v1358_v53, %v2636_v61  ;;  %v1359_v59 = vpop.f32.mrb[38].mxu0 }
 0x145   :  { %v1439_v60 = vpop.f32.mrb[38].mxu1  ;;  %v1360_v62 = vpop.f32.mrb[39].mxu0 }
 0x146   :  { %v1361_v0 = vadd.f32 %v1360_v62, %v1359_v59  ;;  %v1440_v1 = vpop.f32.mrb[39].mxu1  ;;  %v2671_v2 = vadd.f32 %v1438_v58, %v705_v47 }
 0x147   :  { %v1441_v3 = vadd.f32 %v1440_v1, %v1439_v60 }
 0x148   :  { %v710_v54 = vadd.f32 %v1361_v0, %v2638_v4  ;;  %v1362_v5 = vpop.f32.mrb[40].mxu0 }
 0x149   :  { %v1442_v6 = vpop.f32.mrb[40].mxu1  ;;  %v1363_v8 = vpop.f32.mrb[41].mxu0 }
 0x14a   :  { %v1364_v9 = vadd.f32 %v1363_v8, %v1362_v5  ;;  %v1443_v10 = vpop.f32.mrb[41].mxu1  ;;  %v2674_v12 = vadd.f32 %v1441_v3, %v710_v54 }
 0x14b   :  { %v1444_v13 = vadd.f32 %v1443_v10, %v1442_v6 }
 0x14c   :  { %v715_v61 = vadd.f32 %v1364_v9, %v2640_v11  ;;  %v1365_v14 = vpop.f32.mrb[42].mxu0 }
 0x14d   :  { %v1445_v16 = vpop.f32.mrb[42].mxu1  ;;  %v1366_v17 = vpop.f32.mrb[43].mxu0 }
 0x14e   :  { %v1367_v19 = vadd.f32 %v1366_v17, %v1365_v14  ;;  %v1446_v20 = vpop.f32.mrb[43].mxu1  ;;  %v2677_v21 = vadd.f32 %v1444_v13, %v715_v61 }
 0x14f   :  { %v1447_v22 = vadd.f32 %v1446_v20, %v1445_v16 }
 0x150   :  { %v720_v4 = vadd.f32 %v1367_v19, %v2642_v18  ;;  %v1368_v24 = vpop.f32.mrb[44].mxu0 }
 0x151   :  { %v1448_v26 = vpop.f32.mrb[44].mxu1  ;;  %v1369_v27 = vpop.f32.mrb[45].mxu0 }
 0x152   :  { %v1370_v28 = vadd.f32 %v1369_v27, %v1368_v24  ;;  %v1449_v29 = vpop.f32.mrb[45].mxu1  ;;  %v2680_v30 = vadd.f32 %v1447_v22, %v720_v4 }
 0x153   :  { %v1450_v33 = vadd.f32 %v1449_v29, %v1448_v26 }
 0x154   :  { %v725_v11 = vadd.f32 %v1370_v28, %v2644_v25  ;;  %v1371_v34 = vpop.f32.mrb[46].mxu0 }
 0x155   :  { %v1451_v35 = vpop.f32.mrb[46].mxu1  ;;  %v1372_v36 = vpop.f32.mrb[47].mxu0 }
 0x156   :  { %v1373_v37 = vadd.f32 %v1372_v36, %v1371_v34  ;;  %v1452_v38 = vpop.f32.mrb[47].mxu1  ;;  %v2683_v40 = vadd.f32 %v1450_v33, %v725_v11 }
 0x157   :  { %v1453_v41 = vadd.f32 %v1452_v38, %v1451_v35 }
 0x158   :  { %v730_v18 = vadd.f32 %v1373_v37, %v2646_v32  ;;  %v1374_v42 = vpop.f32.mrb[48].mxu0 }
 0x159   :  { %v1454_v43 = vpop.f32.mrb[48].mxu1  ;;  %v1375_v44 = vpop.f32.mrb[49].mxu0 }
 0x15a   :  { %v1376_v48 = vadd.f32 %v1375_v44, %v1374_v42  ;;  %v1455_v49 = vpop.f32.mrb[49].mxu1  ;;  %v2686_v50 = vadd.f32 %v1453_v41, %v730_v18 }
 0x15b   :  { %v1456_v51 = vadd.f32 %v1455_v49, %v1454_v43 }
 0x15c   :  { %v735_v25 = vadd.f32 %v1376_v48, %v2648_v39  ;;  %v1377_v52 = vpop.f32.mrb[50].mxu0 }
 0x15d   :  { %v1457_v53 = vpop.f32.mrb[50].mxu1  ;;  %v1378_v56 = vpop.f32.mrb[51].mxu0 }
 0x15e   :  { %v1379_v58 = vadd.f32 %v1378_v56, %v1377_v52  ;;  %v1458_v47 = vpop.f32.mrb[51].mxu1  ;;  %v2689_v59 = vadd.f32 %v1456_v51, %v735_v25 }
 0x15f   :  { %v1459_v60 = vadd.f32 %v1458_v47, %v1457_v53 }
 0x160   :  { %v740_v32 = vadd.f32 %v1379_v58, %v2650_v46  ;;  %v1380_v62 = vpop.f32.mrb[52].mxu0 }
 0x161   :  { %v1460_v0 = vpop.f32.mrb[52].mxu1  ;;  %v1381_v1 = vpop.f32.mrb[53].mxu0 }
 0x162   :  { %v1382_v3 = vadd.f32 %v1381_v1, %v1380_v62  ;;  %v1461_v54 = vpop.f32.mrb[53].mxu1  ;;  %v885_v5 = vadd.f32 %v1459_v60, %v740_v32 }
 0x163   :  { %v1462_v6 = vadd.f32 %v1461_v54, %v1460_v0 }
 0x164   :  { %v745_v8 = vadd.f32 %v1382_v3, %v2652_v55  ;;  %v1383_v39 = vpop.f32.mrb[54].mxu0 }
 0x165   :  { %v1463_v9 = vpop.f32.mrb[54].mxu1  ;;  %v1384_v10 = vpop.f32.mrb[55].mxu0 }
 0x166   :  { %v1385_v13 = vadd.f32 %v1384_v10, %v1383_v39  ;;  %v1464_v61 = vpop.f32.mrb[55].mxu1  ;;  %v2693_v14 = vadd.f32 %v1462_v6, %v745_v8 }
 0x167   :  { %v1465_v16 = vadd.f32 %v1464_v61, %v1463_v9 }
 0x168   :  { %v750_v17 = vadd.f32 %v1385_v13, %v2654_v63  ;;  %v1386_v46 = vpop.f32.mrb[56].mxu0 }
 0x169   :  { %v1466_v19 = vpop.f32.mrb[56].mxu1  ;;  %v1387_v20 = vpop.f32.mrb[57].mxu0 }
 0x16a   :  { %v1388_v22 = vadd.f32 %v1387_v20, %v1386_v46  ;;  %v1467_v4 = vpop.f32.mrb[57].mxu1  ;;  %v895_v24 = vadd.f32 %v1465_v16, %v750_v17 }
 0x16b   :  { %v1468_v26 = vadd.f32 %v1467_v4, %v1466_v19 }
 0x16c   :  { %v755_v27 = vadd.f32 %v1388_v22, %v2656_v7  ;;  %v1389_v55 = vpop.f32.mrb[58].mxu0 }
 0x16d   :  { %v1469_v28 = vpop.f32.mrb[58].mxu1  ;;  %v1390_v29 = vpop.f32.mrb[59].mxu0 }
 0x16e   :  { %v1391_v33 = vadd.f32 %v1390_v29, %v1389_v55  ;;  %v1470_v11 = vpop.f32.mrb[59].mxu1  ;;  %v2697_v34 = vadd.f32 %v1468_v26, %v755_v27 }
 0x16f   :  { %v1471_v35 = vadd.f32 %v1470_v11, %v1469_v28 }
 0x170   :  { %v760_v36 = vadd.f32 %v1391_v33, %v2658_v15  ;;  %v1392_v63 = vpop.f32.mrb[60].mxu0  ;;  %v1157_v15 = vld [vmem:[%s2766_s2] ss:$0 sm:$0xff] }
 0x171   :  { %v1472_v37 = vpop.f32.mrb[60].mxu1  ;;  %v1393_v38 = vpop.f32.mrb[61].mxu0 }
 0x172   :  { %v1394_v41 = vadd.f32 %v1393_v38, %v1392_v63  ;;  %v1473_v18 = vpop.f32.mrb[61].mxu1  ;;  %v905_v42 = vadd.f32 %v1471_v35, %v760_v36 }
 0x173   :  { %v1474_v43 = vadd.f32 %v1473_v18, %v1472_v37 }
 0x174   :  { %v765_v44 = vadd.f32 %v1394_v41, %v2660_v23  ;;  %v1395_v7 = vpop.f32.mrb[62].mxu0 }
 0x175   :  { %v1475_v48 = vpop.f32.mrb[62].mxu1  ;;  %v1396_v49 = vpop.f32.mrb[63].mxu0 }
 0x176   :  { %v1397_v51 = vadd.f32 %v1396_v49, %v1395_v7  ;;  %v1476_v25 = vpop.f32.mrb[63].mxu1  ;;  %v910_v52 = vadd.f32 %v1474_v43, %v765_v44 }
 0x177   :  { %v1477_v53 = vadd.f32 %v1476_v25, %v1475_v48 }
 0x178   :  { %v770_v56 = vadd.f32 %v1397_v51, %v2662_v31  ;;  %v1544_v58 = vpop.f32.mrb[64].mxu0 }
 0x179   :  { %v990_v47 = vadd.f32 %v1544_v58, %v2668_v57  ;;  %v1556_v60 = vpop.f32.mrb[64].mxu1  ;;  %v984_v32 = vpop.f32.mrb[65].mxu0 }
 0x17a   :  { %v1030_v62 = vadd.f32 %v1556_v60, %v885_v5  ;;  %v985_v23 = vadd.f32 %v984_v32, %v2665_v45  ;;  %v1024_v0 = vpop.f32.mrb[65].mxu1  ;;  %v915_v1 = vadd.f32 %v1477_v53, %v770_v56 }
 0x17b   :  { %v1122_v3 = vadd.f32 %v1157_v15, %v990_v47  ;;  %v1025_v54 = vadd.f32 %v1024_v0, %v2689_v59 }
 0x17c   :  { %v1130_v6 = vadd.f32 %v1157_v15, %v1030_v62  ;;  %v1121_v8 = vadd.f32 %v1157_v15, %v985_v23  ;;  %v1547_v31 = vpop.f32.mrb[66].mxu0 }
 0x17d   :  { %1138 = vst [vmem:[%s2767_s3 + $0x8] sm:$0xff] %v1122_v3  ;;  %v1129_v39 = vadd.f32 %v1157_v15, %v1025_v54  ;;  %v1000_v57 = vadd.f32 %v1547_v31, %v2674_v12  ;;  %v1559_v9 = vpop.f32.mrb[66].mxu1  ;;  %v994_v10 = vpop.f32.mrb[67].mxu0 }
 0x17e   :  { %1146 = vst [vmem:[%s2767_s3 + $0x48] sm:$0xff] %v1130_v6  ;;  %1137 = vst [vmem:[%s2767_s3] sm:$0xff] %v1121_v8  ;;  %v1040_v45 = vadd.f32 %v1559_v9, %v895_v24  ;;  %v995_v59 = vadd.f32 %v994_v10, %v2671_v2  ;;  %v1034_v5 = vpop.f32.mrb[67].mxu1 }
 0x17f   :  { %1145 = vst [vmem:[%s2767_s3 + $0x40] sm:$0xff] %v1129_v39  ;;  %v1124_v13 = vadd.f32 %v1157_v15, %v1000_v57  ;;  %v1035_v12 = vadd.f32 %v1034_v5, %v2693_v14 }
 0x180   :  { %v1132_v61 = vadd.f32 %v1157_v15, %v1040_v45  ;;  %v1123_v16 = vadd.f32 %v1157_v15, %v995_v59  ;;  %v1550_v17 = vpop.f32.mrb[68].mxu0 }
 0x181   :  { %1140 = vst [vmem:[%s2767_s3 + $0x18] sm:$0xff] %v1124_v13  ;;  %v1131_v46 = vadd.f32 %v1157_v15, %v1035_v12  ;;  %v1010_v19 = vadd.f32 %v1550_v17, %v2680_v30  ;;  %v1562_v20 = vpop.f32.mrb[68].mxu1  ;;  %v1004_v2 = vpop.f32.mrb[69].mxu0 }
 0x182   :  { %1148 = vst [vmem:[%s2767_s3 + $0x58] sm:$0xff] %v1132_v61  ;;  %1139 = vst [vmem:[%s2767_s3 + $0x10] sm:$0xff] %v1123_v16  ;;  %v1050_v14 = vadd.f32 %v1562_v20, %v905_v42  ;;  %v1005_v22 = vadd.f32 %v1004_v2, %v2677_v21  ;;  %v1044_v4 = vpop.f32.mrb[69].mxu1 }
 0x183   :  { %1147 = vst [vmem:[%s2767_s3 + $0x50] sm:$0xff] %v1131_v46  ;;  %v1126_v24 = vadd.f32 %v1157_v15, %v1010_v19  ;;  %v1045_v30 = vadd.f32 %v1044_v4, %v2697_v34 }
 0x184   :  { %v1134_v26 = vadd.f32 %v1157_v15, %v1050_v14  ;;  %v1125_v27 = vadd.f32 %v1157_v15, %v1005_v22  ;;  %v1553_v55 = vpop.f32.mrb[70].mxu0 }
 0x185   :  { %1142 = vst [vmem:[%s2767_s3 + $0x28] sm:$0xff] %v1126_v24  ;;  %v1133_v28 = vadd.f32 %v1157_v15, %v1045_v30  ;;  %v1020_v29 = vadd.f32 %v1553_v55, %v2686_v50  ;;  %v1565_v33 = vpop.f32.mrb[70].mxu1  ;;  %v1014_v21 = vpop.f32.mrb[71].mxu0 }
 0x186   :  { %1150 = vst [vmem:[%s2767_s3 + $0x68] sm:$0xff] %v1134_v26  ;;  %1141 = vst [vmem:[%s2767_s3 + $0x20] sm:$0xff] %v1125_v27  ;;  %v1060_v11 = vadd.f32 %v1565_v33, %v915_v1  ;;  %v1015_v34 = vadd.f32 %v1014_v21, %v2683_v40  ;;  %v1054_v35 = vpop.f32.mrb[71].mxu1 }
 0x187   :  { %1149 = vst [vmem:[%s2767_s3 + $0x60] sm:$0xff] %v1133_v28  ;;  %v1128_v36 = vadd.f32 %v1157_v15, %v1020_v29  ;;  %v1055_v50 = vadd.f32 %v1054_v35, %v910_v52 }
 0x188   :  { %v1136_v63 = vadd.f32 %v1157_v15, %v1060_v11  ;;  %v1127_v37 = vadd.f32 %v1157_v15, %v1015_v34 }
 0x189   :  { %1144 = vst [vmem:[%s2767_s3 + $0x38] sm:$0xff] %v1128_v36  ;;  %v1135_v38 = vadd.f32 %v1157_v15, %v1055_v50 }
 0x18a   :  { %1152 = vst [vmem:[%s2767_s3 + $0x78] sm:$0xff] %v1136_v63  ;;  %1143 = vst [vmem:[%s2767_s3 + $0x30] sm:$0xff] %v1127_v37 }
 0x18b   :  { %1151 = vst [vmem:[%s2767_s3 + $0x70] sm:$0xff] %v1135_v38 }

// kernel: transformer_net_pl.59
= control target key start
LH: loop header
LB: loop body
LE: loop exit
PB: predicated region body
PF: predicated region fallthrough
CT: control target
= control target key end

     0   :  { %s1947_s12 = smov 0   ;;  %s1949_s13 = smov 0   ;;  %s2665_s0 = inlined_call_operand.vmem [shape: f32[512,640], index: 0, kind: input, shape index: {}]   ;;  %s2666_s1 = inlined_call_operand.vmem [shape: f32[640,128], index: 1, kind: input, shape index: {}]   ;;  %s2667_s2 = inlined_call_operand.vmem [shape: f32[1,128], index: 2, kind: input, shape index: {}]   ;;  %s2668_s3 = inlined_call_operand.vmem [shape: f32[512,128], index: 3, kind: output, shape index: {}]  }
   0x1   :  { %s1951_s14 = smov 0  }
   0x2 LB: > { %s32_s15 = sadd.s32 1, %s1920_s13  ;;  %p1540_p0 = scmp.ge.s32.totalorder %s1924_s14, 1  ;;  %s1924_s14 = sphi %s1951_s14, %s13_s14   ;;  %s1920_s13 = sphi %s1949_s13, %s2670_s13   ;;  %s1916_s12 = sphi %s1947_s12, %s2669_s12  }
   0x3   : > { %p34_p1 = scmp.ge.s32.totalorder %s32_s15, 2  ;;  %p191_p2 = scmp.lt.s32.totalorder %s1924_s14, 3 }
   0x5   : > { %s2672_s15 = smov (%p34_p1, %s32_s15), 0  ;;  %p192_p3 = pnand %p1540_p0, %p191_p2 }
   0x6   : > { %v495_v0 = vld [vmem:[%s2666_s1] sm:$0xff] (!%p192_p3)  ;;  %v496_v1 = vld [vmem:[%s2666_s1 + $0x8] sm:$0xff] (!%p192_p3)  ;;  %v1926_v3 = vmov (!%p192_p3), 0.0|0.0   ;;  %v497_v6 = vld [vmem:[%s2666_s1 + $0x10] sm:$0xff] (!%p192_p3)  ;;  %s1541_s5 = sshll.u32 (!%p192_p3), %s1916_s12, 5 }
   0x7   : > { %195 = sbr.rel (%p192_p3) target bundleno = 447 (0x1bf), region = 32  ;;  %v527_v2 = vld [vmem:[%s2666_s1 + $0x100] sm:$0xff] (!%p192_p3)  ;;  %1676 = vmatprep.subr.bf16.mxu0 (!%p192_p3), %v1926_v3  ;;  %1804 = vmatprep.subr.bf16.mxu1 (!%p192_p3), %v1926_v3  ;;  %v1677_v4 = vpack.c.bf16 (!%p192_p3), %v496_v1, %v495_v0  ;;  %v528_v5 = vld [vmem:[%s2666_s1 + $0x108] sm:$0xff] (!%p192_p3)  ;;  %v498_v7 = vld [vmem:[%s2666_s1 + $0x18] sm:$0xff] (!%p192_p3)  ;;  %p236_p4 = scmp.lt.s32.totalorder (!%p192_p3), %s1541_s5, 63 }
   0x8   : > { %v1987_v8 = vpack.c.bf16 (!%p192_p3), %v528_v5, %v527_v2  ;;  %v529_v9 = vld [vmem:[%s2666_s1 + $0x110] sm:$0xff] (!%p192_p3)  ;;  %v530_v10 = vld [vmem:[%s2666_s1 + $0x118] sm:$0xff] (!%p192_p3)  ;;  %v1680_v11 = vpack.c.bf16 (!%p192_p3), %v498_v7, %v497_v6  ;;  %v499_v13 = vld [vmem:[%s2666_s1 + $0x20] sm:$0xff] (!%p192_p3) }
   0x9   : > { %1678 = vmatpush1.bf16.msra.mxu0 (!%p192_p3), %v1677_v4  ;;  %v1998_v12 = vpack.c.bf16 (!%p192_p3), %v530_v10, %v529_v9  ;;  %v500_v14 = vld [vmem:[%s2666_s1 + $0x28] sm:$0xff] (!%p192_p3)  ;;  %v531_v15 = vld [vmem:[%s2666_s1 + $0x120] sm:$0xff] (!%p192_p3)  ;;  %v501_v19 = vld [vmem:[%s2666_s1 + $0x30] sm:$0xff] (!%p192_p3) }
   0xa   : > { %1820 = vmatpush1.bf16.msra.mxu1 (!%p192_p3), %v1987_v8  ;;  %1679 = vmatprep.subr.bf16.mxu0 (!%p192_p3), %v1926_v3  ;;  %v532_v16 = vld [vmem:[%s2666_s1 + $0x128] sm:$0xff] (!%p192_p3)  ;;  %v1683_v17 = vpack.c.bf16 (!%p192_p3), %v500_v14, %v499_v13  ;;  %v502_v20 = vld [vmem:[%s2666_s1 + $0x38] sm:$0xff] (!%p192_p3)  ;;  %v533_v21 = vld [vmem:[%s2666_s1 + $0x130] sm:$0xff] (!%p192_p3) }
   0xb   : > { %1805 = vmatprep.subr.bf16.mxu1 (!%p192_p3), %v1926_v3  ;;  %v2015_v18 = vpack.c.bf16 (!%p192_p3), %v532_v16, %v531_v15  ;;  %v534_v22 = vld [vmem:[%s2666_s1 + $0x138] sm:$0xff] (!%p192_p3)  ;;  %v1686_v23 = vpack.c.bf16 (!%p192_p3), %v502_v20, %v501_v19  ;;  %v503_v25 = vld [vmem:[%s2666_s1 + $0x40] sm:$0xff] (!%p192_p3)  ;;  %v504_v26 = vld [vmem:[%s2666_s1 + $0x48] sm:$0xff] (!%p192_p3) }
   0xc   : > { %v2034_v24 = vpack.c.bf16 (!%p192_p3), %v534_v22, %v533_v21  ;;  %v535_v27 = vld [vmem:[%s2666_s1 + $0x140] sm:$0xff] (!%p192_p3)  ;;  %v536_v28 = vld [vmem:[%s2666_s1 + $0x148] sm:$0xff] (!%p192_p3)  ;;  %v1689_v29 = vpack.c.bf16 (!%p192_p3), %v504_v26, %v503_v25  ;;  %v505_v31 = vld [vmem:[%s2666_s1 + $0x50] sm:$0xff] (!%p192_p3) }
   0xd   : > { %1681 = vmatpush1.bf16.msra.mxu0 (!%p192_p3), %v1680_v11  ;;  %v2052_v30 = vpack.c.bf16 (!%p192_p3), %v536_v28, %v535_v27  ;;  %v506_v32 = vld [vmem:[%s2666_s1 + $0x58] sm:$0xff] (!%p192_p3)  ;;  %v537_v33 = vld [vmem:[%s2666_s1 + $0x150] sm:$0xff] (!%p192_p3)  ;;  %v507_v37 = vld [vmem:[%s2666_s1 + $0x60] sm:$0xff] (!%p192_p3) }
   0xe   : > { %1821 = vmatpush1.bf16.msra.mxu1 %v1998_v12  ;;  %1682 = vmatprep.subr.bf16.mxu0 %v1926_v3  ;;  %s2674_s5 = smov (!%p236_p4, %s1541_s5), 63  ;;  %v538_v34 = vld [vmem:[%s2666_s1 + $0x158] sm:$0xff]  ;;  %v1692_v35 = vpack.c.bf16 %v506_v32, %v505_v31  ;;  %v508_v38 = vld [vmem:[%s2666_s1 + $0x68] sm:$0xff]  ;;  %v539_v39 = vld [vmem:[%s2666_s1 + $0x160] sm:$0xff] }
   0xf   : > { %1806 = vmatprep.subr.bf16.mxu1 %v1926_v3  ;;  %s1876_s7 = smul.u32 40, %s2674_s5  ;;  %v2074_v36 = vpack.c.bf16 %v538_v34, %v537_v33  ;;  %v540_v40 = vld [vmem:[%s2666_s1 + $0x168] sm:$0xff]  ;;  %v1695_v43 = vpack.c.bf16 %v508_v38, %v507_v37  ;;  %v509_v45 = vld [vmem:[%s2666_s1 + $0x70] sm:$0xff]  ;;  %v510_v46 = vld [vmem:[%s2666_s1 + $0x78] sm:$0xff] }
  0x10   : > { %v2093_v44 = vpack.c.bf16 %v540_v40, %v539_v39  ;;  %v541_v47 = vld [vmem:[%s2666_s1 + $0x170] sm:$0xff]  ;;  %v542_v48 = vld [vmem:[%s2666_s1 + $0x178] sm:$0xff]  ;;  %v1698_v49 = vpack.c.bf16 %v510_v46, %v509_v45  ;;  %v511_v51 = vld [vmem:[%s2666_s1 + $0x80] sm:$0xff] }
  0x11   : > { %1684 = vmatpush1.bf16.msra.mxu0 %v1683_v17  ;;  %s2070_s21 = scalar_lea.vmem %s2665_s0, %s1876_s7  ;;  %v2110_v50 = vpack.c.bf16 %v542_v48, %v541_v47  ;;  %v512_v52 = vld [vmem:[%s2666_s1 + $0x88] sm:$0xff]  ;;  %v543_v53 = vld [vmem:[%s2666_s1 + $0x180] sm:$0xff]  ;;  %v513_v57 = vld [vmem:[%s2666_s1 + $0x90] sm:$0xff] }
  0x12   : > { %1822 = vmatpush1.bf16.msra.mxu1 %v2015_v18  ;;  %1685 = vmatprep.subr.bf16.mxu0 %v1926_v3  ;;  %v336_v41 = vld [vmem:[%s2070_s21 + $0x8] sm:$0xff]  ;;  %v378_v42 = vld [vmem:[%s2070_s21 + $0x158] sm:$0xff]  ;;  %v1701_v55 = vpack.c.bf16 %v512_v52, %v511_v51  ;;  %v545_v59 = vld [vmem:[%s2666_s1 + $0x190] sm:$0xff] }
  0x13   : > { %1807 = vmatprep.subr.bf16.mxu1 %v1926_v3  ;;  %639 = vmatprep.mubr.f32.mxu0 %v336_v41  ;;  %v544_v54 = vld [vmem:[%s2666_s1 + $0x188] sm:$0xff]  ;;  %v514_v58 = vld [vmem:[%s2666_s1 + $0x98] sm:$0xff]  ;;  %v515_v63 = vld [vmem:[%s2666_s1 + $0xa0] sm:$0xff] }
  0x14   : > { %904 = vmatprep.mubr.f32.mxu1 %v378_v42  ;;  %v2127_v56 = vpack.c.bf16 %v544_v54, %v543_v53  ;;  %v546_v60 = vld [vmem:[%s2666_s1 + $0x198] sm:$0xff]  ;;  %v1704_v61 = vpack.c.bf16 %v514_v58, %v513_v57  ;;  %v516_v0 = vld [vmem:[%s2666_s1 + $0xa8] sm:$0xff]  ;;  %v547_v1 = vld [vmem:[%s2666_s1 + $0x1a0] sm:$0xff] }
  0x15   : > { %1687 = vmatpush1.bf16.msra.mxu0 %v1686_v23  ;;  %v2144_v62 = vpack.c.bf16 %v546_v60, %v545_v59  ;;  %v548_v2 = vld [vmem:[%s2666_s1 + $0x1a8] sm:$0xff]  ;;  %v1707_v4 = vpack.c.bf16 %v516_v0, %v515_v63  ;;  %v517_v6 = vld [vmem:[%s2666_s1 + $0xb0] sm:$0xff]  ;;  %v518_v7 = vld [vmem:[%s2666_s1 + $0xb8] sm:$0xff] }
  0x16   : > { %1823 = vmatpush1.bf16.msra.mxu1 %v2034_v24  ;;  %1688 = vmatprep.subr.bf16.mxu0 %v1926_v3  ;;  %v2161_v5 = vpack.c.bf16 %v548_v2, %v547_v1  ;;  %v549_v9 = vld [vmem:[%s2666_s1 + $0x1b0] sm:$0xff]  ;;  %v550_v10 = vld [vmem:[%s2666_s1 + $0x1b8] sm:$0xff]  ;;  %v1710_v11 = vpack.c.bf16 %v518_v7, %v517_v6  ;;  %v519_v14 = vld [vmem:[%s2666_s1 + $0xc0] sm:$0xff] }
  0x17   : > { %1808 = vmatprep.subr.bf16.mxu1 %v1926_v3  ;;  %v2178_v13 = vpack.c.bf16 %v550_v10, %v549_v9  ;;  %v520_v15 = vld [vmem:[%s2666_s1 + $0xc8] sm:$0xff]  ;;  %v551_v16 = vld [vmem:[%s2666_s1 + $0x1c0] sm:$0xff]  ;;  %v521_v21 = vld [vmem:[%s2666_s1 + $0xd0] sm:$0xff] }
  0x18   : > { %v552_v17 = vld [vmem:[%s2666_s1 + $0x1c8] sm:$0xff]  ;;  %v1713_v19 = vpack.c.bf16 %v520_v15, %v519_v14  ;;  %v522_v22 = vld [vmem:[%s2666_s1 + $0xd8] sm:$0xff]  ;;  %v553_v23 = vld [vmem:[%s2666_s1 + $0x1d0] sm:$0xff] }
  0x19   : > { %1690 = vmatpush1.bf16.msra.mxu0 %v1689_v29  ;;  %v2195_v20 = vpack.c.bf16 %v552_v17, %v551_v16  ;;  %v554_v25 = vld [vmem:[%s2666_s1 + $0x1d8] sm:$0xff]  ;;  %v1716_v26 = vpack.c.bf16 %v522_v22, %v521_v21  ;;  %v523_v28 = vld [vmem:[%s2666_s1 + $0xe0] sm:$0xff]  ;;  %v524_v29 = vld [vmem:[%s2666_s1 + $0xe8] sm:$0xff] }
  0x1a   : > { %1824 = vmatpush1.bf16.msra.mxu1 %v2052_v30  ;;  %1691 = vmatprep.subr.bf16.mxu0 %v1926_v3  ;;  %v2212_v27 = vpack.c.bf16 %v554_v25, %v553_v23  ;;  %v555_v31 = vld [vmem:[%s2666_s1 + $0x1e0] sm:$0xff]  ;;  %v556_v32 = vld [vmem:[%s2666_s1 + $0x1e8] sm:$0xff]  ;;  %v1719_v33 = vpack.c.bf16 %v524_v29, %v523_v28  ;;  %v526_v37 = vld [vmem:[%s2666_s1 + $0xf8] sm:$0xff] }
  0x1b   : > { %1809 = vmatprep.subr.bf16.mxu1 %v1926_v3  ;;  %v2229_v34 = vpack.c.bf16 %v556_v32, %v555_v31  ;;  %v557_v38 = vld [vmem:[%s2666_s1 + $0x1f0] sm:$0xff]  ;;  %v558_v39 = vld [vmem:[%s2666_s1 + $0x1f8] sm:$0xff]  ;;  %v559_v40 = vld [vmem:[%s2666_s1 + $0x200] sm:$0xff] }
  0x1c   : > { %v560_v41 = vld [vmem:[%s2666_s1 + $0x208] sm:$0xff]  ;;  %v335_v46 = vld [vmem:[%s2070_s21] sm:$0xff]  ;;  %v561_v47 = vld [vmem:[%s2666_s1 + $0x210] sm:$0xff] }
  0x1d   : > { %1693 = vmatpush1.bf16.msra.mxu0 %v1692_v35  ;;  %v525_v35 = vld [vmem:[%s2666_s1 + $0xf0] sm:$0xff]  ;;  %v1772_v45 = vpack.c.bf16 %v560_v41, %v559_v40  ;;  %v562_v48 = vld [vmem:[%s2666_s1 + $0x218] sm:$0xff]  ;;  %v383_v52 = vld [vmem:[%s2070_s21 + $0x180] sm:$0xff] }
  0x1e   : > { %1825 = vmatpush1.bf16.msra.mxu1 %v2074_v36  ;;  %1694 = vmatprep.subr.bf16.mxu0 %v1926_v3  ;;  %v1722_v42 = vpack.c.bf16 %v526_v37, %v525_v35  ;;  %v341_v51 = vld [vmem:[%s2070_s21 + $0x30] sm:$0xff]  ;;  %v1776_v53 = vpack.c.bf16 %v562_v48, %v561_v47  ;;  %v340_v54 = vld [vmem:[%s2070_s21 + $0x28] sm:$0xff]  ;;  %v382_v58 = vld [vmem:[%s2070_s21 + $0x178] sm:$0xff] }
  0x1f   : > { %1810 = vmatprep.subr.bf16.mxu1 %v1926_v3  ;;  %v564_v57 = vld [vmem:[%s2666_s1 + $0x228] sm:$0xff]  ;;  %v346_v59 = vld [vmem:[%s2070_s21 + $0x58] sm:$0xff]  ;;  %v565_v63 = vld [vmem:[%s2666_s1 + $0x230] sm:$0xff] }
  0x20   : > { %v388_v60 = vld [vmem:[%s2070_s21 + $0x1a8] sm:$0xff]  ;;  %v566_v0 = vld [vmem:[%s2666_s1 + $0x238] sm:$0xff]  ;;  %v387_v1 = vld [vmem:[%s2070_s21 + $0x1a0] sm:$0xff] }
  0x21   : > { %1696 = vmatpush1.bf16.msra.mxu0 %v1695_v43  ;;  %v2252_v43 = vpack.c.bf16 %v558_v39, %v557_v38  ;;  %v351_v2 = vld [vmem:[%s2070_s21 + $0x80] sm:$0xff]  ;;  %v1784_v6 = vpack.c.bf16 %v566_v0, %v565_v63  ;;  %v350_v7 = vld [vmem:[%s2070_s21 + $0x78] sm:$0xff]  ;;  %v392_v10 = vld [vmem:[%s2070_s21 + $0x1c8] sm:$0xff] }
  0x22   : > { %1826 = vmatpush1.bf16.msra.mxu1 %v2093_v44  ;;  %1697 = vmatprep.subr.bf16.mxu0 %v1926_v3  ;;  %v567_v9 = vld [vmem:[%s2666_s1 + $0x240] sm:$0xff]  ;;  %v398_v14 = vld [vmem:[%s2070_s21 + $0x1f8] sm:$0xff]  ;;  %v569_v17 = vld [vmem:[%s2666_s1 + $0x250] sm:$0xff] }
  0x23   : > { %1811 = vmatprep.subr.bf16.mxu1 %v1926_v3  ;;  %v355_v16 = vld [vmem:[%s2070_s21 + $0xa0] sm:$0xff]  ;;  %v361_v21 = vld [vmem:[%s2070_s21 + $0xd0] sm:$0xff]  ;;  %v360_v25 = vld [vmem:[%s2070_s21 + $0xc8] sm:$0xff] }
  0x24   : > { %v403_v22 = vld [vmem:[%s2070_s21 + $0x220] sm:$0xff]  ;;  %v402_v28 = vld [vmem:[%s2070_s21 + $0x218] sm:$0xff]  ;;  %v408_v31 = vld [vmem:[%s2070_s21 + $0x248] sm:$0xff] }
  0x25   : > { %1699 = vmatpush1.bf16.msra.mxu0 %v1698_v49  ;;  %v377_v49 = vld [vmem:[%s2070_s21 + $0x150] sm:$0xff]  ;;  %v366_v29 = vld [vmem:[%s2070_s21 + $0xf8] sm:$0xff]  ;;  %v407_v37 = vld [vmem:[%s2070_s21 + $0x240] sm:$0xff] }
  0x26   : > { %1827 = vmatpush1.bf16.msra.mxu1 %v2110_v50  ;;  %1700 = vmatprep.subr.bf16.mxu0 %v1926_v3  ;;  %v573_v35 = vld [vmem:[%s2666_s1 + $0x270] sm:$0xff]  ;;  %v371_v38 = vld [vmem:[%s2070_s21 + $0x120] sm:$0xff]  ;;  %v370_v41 = vld [vmem:[%s2070_s21 + $0x118] sm:$0xff] }
  0x27   : > { %1812 = vmatprep.subr.bf16.mxu1 %v1926_v3  ;;  %v413_v39 = vld [vmem:[%s2070_s21 + $0x270] sm:$0xff]  ;;  %v443_v63 = vld [vmem:[%s2070_s21 + $0x360] sm:$0xff]  ;;  %v442_v0 = vld [vmem:[%s2070_s21 + $0x358] sm:$0xff] }
  0x28   : > { %v417_v47 = vld [vmem:[%s2070_s21 + $0x290] sm:$0xff] }
  0x29   : > { %1702 = vmatpush1.bf16.msra.mxu0 %v1701_v55  ;;  %v563_v55 = vld [vmem:[%s2666_s1 + $0x220] sm:$0xff]  ;;  %v381_v48 = vld [vmem:[%s2070_s21 + $0x170] sm:$0xff] }
  0x2a   : > { %1828 = vmatpush1.bf16.msra.mxu1 %v2127_v56  ;;  %1703 = vmatprep.subr.bf16.mxu0 %v1926_v3 }
  0x2b   : > { %1813 = vmatprep.subr.bf16.mxu1 %v1926_v3 }
  0x2d   : > { %1705 = vmatpush1.bf16.msra.mxu0 %v1704_v61  ;;  %v345_v61 = vld [vmem:[%s2070_s21 + $0x50] sm:$0xff] }
  0x2e   : > { %1829 = vmatpush1.bf16.msra.mxu1 %v2144_v62  ;;  %1706 = vmatprep.subr.bf16.mxu0 %v1926_v3 }
  0x2f   : > { %1814 = vmatprep.subr.bf16.mxu1 %v1926_v3 }
  0x31   : > { %1708 = vmatpush1.bf16.msra.mxu0 %v1707_v4  ;;  %v393_v4 = vld [vmem:[%s2070_s21 + $0x1d0] sm:$0xff] }
  0x32   : > { %1830 = vmatpush1.bf16.msra.mxu1 %v2161_v5  ;;  %1709 = vmatprep.subr.bf16.mxu0 %v1926_v3 }
  0x33   : > { %1815 = vmatprep.subr.bf16.mxu1 %v1926_v3 }
  0x35   : > { %1711 = vmatpush1.bf16.msra.mxu0 %v1710_v11  ;;  %v356_v11 = vld [vmem:[%s2070_s21 + $0xa8] sm:$0xff] }
  0x36   : > { %1831 = vmatpush1.bf16.msra.mxu1 %v2178_v13  ;;  %1712 = vmatprep.subr.bf16.mxu0 %v1926_v3 }
  0x37   : > { %1816 = vmatprep.subr.bf16.mxu1 %v1926_v3 }
  0x39   : > { %1714 = vmatpush1.bf16.msra.mxu0 %v1713_v19  ;;  %v397_v19 = vld [vmem:[%s2070_s21 + $0x1f0] sm:$0xff] }
  0x3a   : > { %1832 = vmatpush1.bf16.msra.mxu1 %v2195_v20  ;;  %1715 = vmatprep.subr.bf16.mxu0 %v1926_v3 }
  0x3b   : > { %1817 = vmatprep.subr.bf16.mxu1 %v1926_v3 }
  0x3d   : > { %1717 = vmatpush1.bf16.msra.mxu0 %v1716_v26  ;;  %v571_v26 = vld [vmem:[%s2666_s1 + $0x260] sm:$0xff] }
  0x3e   : > { %1833 = vmatpush1.bf16.msra.mxu1 %v2212_v27  ;;  %1718 = vmatprep.subr.bf16.mxu0 %v1926_v3 }
  0x3f   : > { %1818 = vmatprep.subr.bf16.mxu1 %v1926_v3 }
  0x41   : > { %1720 = vmatpush1.bf16.msra.mxu0 %v1719_v33  ;;  %v365_v33 = vld [vmem:[%s2070_s21 + $0xf0] sm:$0xff] }
  0x42   : > { %1834 = vmatpush1.bf16.msra.mxu1 %v2229_v34  ;;  %1721 = vmatprep.subr.bf16.mxu0 %v1926_v3 }
  0x43   : > { %1819 = vmatprep.subr.bf16.mxu1 %v1926_v3 }
  0x45   : > { %1723 = vmatpush1.bf16.msra.mxu0 %v1722_v42  ;;  %v412_v42 = vld [vmem:[%s2070_s21 + $0x268] sm:$0xff] }
  0x46   : > { %1835 = vmatpush1.bf16.msra.mxu1 %v2252_v43  ;;  %1724 = vmatprep.subr.bf16.mxu0 %v1926_v3 }
  0x47   : > { %1773 = vmatprep.subr.bf16.mxu1 %v1772_v45 }
  0x48   : > { %640 = vmatmul.mubr.f32.vlgmr.msra.gmra.mrb[0].mxu0 %v335_v46  ;;  %v375_v46 = vld [vmem:[%s2070_s21 + $0x140] sm:$0xff] }
  0x49   : > { %905 = vmatmul.mubr.f32.vlgmr.msra.gmra.mrb[0].mxu1 %v377_v49  ;;  %1726 = vmatpush1.bf16.msra.mxu0 %v1987_v8  ;;  %v1780_v8 = vpack.c.bf16 %v564_v57, %v563_v55  ;;  %v423_v49 = vld [vmem:[%s2070_s21 + $0x2c0] sm:$0xff]  ;;  %v433_v57 = vld [vmem:[%s2070_s21 + $0x310] sm:$0xff] }
  0x4a   : > { %1775 = vmatpush3.bf16.msra.mxu1 %v1772_v45  ;;  %644 = vmatprep.mubr.f32.mxu0 %v341_v51  ;;  %v376_v45 = vld [vmem:[%s2070_s21 + $0x148] sm:$0xff]  ;;  %v422_v51 = vld [vmem:[%s2070_s21 + $0x2b8] sm:$0xff]  ;;  %v391_v55 = vld [vmem:[%s2070_s21 + $0x1c0] sm:$0xff] }
  0x4b   : > { %909 = vmatprep.mubr.f32.mxu1 %v383_v52  ;;  %1727 = vmatprep.subr.bf16.mxu0 %v1926_v3  ;;  %v386_v52 = vld [vmem:[%s2070_s21 + $0x198] sm:$0xff] }
  0x4c   : > { %645 = vmatmul.mubr.f32.gmra.mrb[2].mxu0 %v340_v54  ;;  %1777 = vmatprep.subr.bf16.mxu1 %v1776_v53  ;;  %v427_v54 = vld [vmem:[%s2070_s21 + $0x2e0] sm:$0xff] }
  0x4d   : > { %910 = vmatmul.mubr.f32.gmra.mrb[2].mxu1 %v382_v58  ;;  %649 = vmatprep.mubr.f32.mxu0 %v346_v59  ;;  %v432_v58 = vld [vmem:[%s2070_s21 + $0x308] sm:$0xff] }
  0x4e   : > { %914 = vmatprep.mubr.f32.mxu1 %v388_v60  ;;  %1729 = vmatpush1.bf16.msra.mxu0 %v1998_v12  ;;  %v568_v12 = vld [vmem:[%s2666_s1 + $0x248] sm:$0xff]  ;;  %v438_v60 = vld [vmem:[%s2070_s21 + $0x338] sm:$0xff] }
  0x4f   : > { %1779 = vmatpush3.bf16.msra.mxu1 %v1776_v53  ;;  %1730 = vmatprep.subr.bf16.mxu0 %v1926_v3  ;;  %v1788_v15 = vpack.c.bf16 %v568_v12, %v567_v9  ;;  %v428_v53 = vld [vmem:[%s2070_s21 + $0x2e8] sm:$0xff] }
  0x50   : > { %650 = vmatmul.mubr.f32.gmra.mrb[4].mxu0 %v345_v61  ;;  %1781 = vmatprep.subr.bf16.mxu1 %v1780_v8  ;;  %v396_v59 = vld [vmem:[%s2070_s21 + $0x1e8] sm:$0xff]  ;;  %v401_v61 = vld [vmem:[%s2070_s21 + $0x210] sm:$0xff] }
  0x51   : > { %915 = vmatmul.mubr.f32.gmra.mrb[4].mxu1 %v387_v1  ;;  %654 = vmatprep.mubr.f32.mxu0 %v351_v2  ;;  %v406_v1 = vld [vmem:[%s2070_s21 + $0x238] sm:$0xff]  ;;  %v448_v2 = vld [vmem:[%s2070_s21 + $0x388] sm:$0xff] }
  0x52   : > { %919 = vmatprep.mubr.f32.mxu1 %v393_v4  ;;  %1732 = vmatpush1.bf16.msra.mxu0 %v2015_v18  ;;  %v570_v18 = vld [vmem:[%s2666_s1 + $0x258] sm:$0xff]  ;;  %v447_v4 = vld [vmem:[%s2070_s21 + $0x380] sm:$0xff]  ;;  %v452_v9 = vld [vmem:[%s2070_s21 + $0x3a8] sm:$0xff] }
  0x53   : > { %1733 = vmatprep.subr.bf16.mxu0 %v1926_v3  ;;  %1783 = vmatpush3.bf16.msra.mxu1 %v1780_v8  ;;  %v1792_v23 = vpack.c.bf16 %v570_v18, %v569_v17  ;;  %v437_v8 = vld [vmem:[%s2070_s21 + $0x330] sm:$0xff]  ;;  %v416_v12 = vld [vmem:[%s2070_s21 + $0x288] sm:$0xff] }
  0x54   : > { %655 = vmatmul.mubr.f32.gmra.mrb[6].mxu0 %v350_v7  ;;  %1785 = vmatprep.subr.bf16.mxu1 %v1784_v6  ;;  %v453_v7 = vld [vmem:[%s2070_s21 + $0x3b0] sm:$0xff]  ;;  %v468_v17 = vld [vmem:[%s2070_s21 + $0x428] sm:$0xff] }
  0x55   : > { %920 = vmatmul.mubr.f32.gmra.mrb[6].mxu1 %v392_v10  ;;  %659 = vmatprep.mubr.f32.mxu0 %v356_v11  ;;  %v458_v10 = vld [vmem:[%s2070_s21 + $0x3d8] sm:$0xff]  ;;  %v457_v11 = vld [vmem:[%s2070_s21 + $0x3d0] sm:$0xff] }
  0x56   : > { %924 = vmatprep.mubr.f32.mxu1 %v398_v14  ;;  %1735 = vmatpush1.bf16.msra.mxu0 %v2034_v24  ;;  %v572_v24 = vld [vmem:[%s2666_s1 + $0x268] sm:$0xff]  ;;  %v421_v14 = vld [vmem:[%s2070_s21 + $0x2b0] sm:$0xff] }
  0x57   : > { %1736 = vmatprep.subr.bf16.mxu0 %v1926_v3  ;;  %1787 = vmatpush3.bf16.msra.mxu1 %v1784_v6  ;;  %v1796_v32 = vpack.c.bf16 %v572_v24, %v571_v26  ;;  %v411_v6 = vld [vmem:[%s2070_s21 + $0x260] sm:$0xff]  ;;  %v425_v18 = vld [vmem:[%s2070_s21 + $0x2d0] sm:$0xff]  ;;  %v478_v26 = vld [vmem:[%s2070_s21 + $0x478] sm:$0xff] }
  0x58   : > { %660 = vmatmul.mubr.f32.gmra.mrb[8].mxu0 %v355_v16  ;;  %1789 = vmatprep.subr.bf16.mxu1 %v1788_v15  ;;  %v426_v16 = vld [vmem:[%s2070_s21 + $0x2d8] sm:$0xff]  ;;  %v435_v24 = vld [vmem:[%s2070_s21 + $0x320] sm:$0xff] }
  0x59   : > { %925 = vmatmul.mubr.f32.gmra.mrb[8].mxu1 %v397_v19  ;;  %664 = vmatprep.mubr.f32.mxu0 %v361_v21  ;;  %v431_v19 = vld [vmem:[%s2070_s21 + $0x300] sm:$0xff]  ;;  %v473_v21 = vld [vmem:[%s2070_s21 + $0x450] sm:$0xff] }
  0x5a   : > { %929 = vmatprep.mubr.f32.mxu1 %v403_v22  ;;  %1738 = vmatpush1.bf16.msra.mxu0 %v2052_v30  ;;  %v574_v30 = vld [vmem:[%s2666_s1 + $0x278] sm:$0xff] }
  0x5b   : > { %1739 = vmatprep.subr.bf16.mxu0 %v1926_v3  ;;  %1791 = vmatpush3.bf16.msra.mxu1 %v1788_v15  ;;  %v1800_v40 = vpack.c.bf16 %v574_v30, %v573_v35  ;;  %v463_v15 = vld [vmem:[%s2070_s21 + $0x400] sm:$0xff]  ;;  %v430_v22 = vld [vmem:[%s2070_s21 + $0x2f8] sm:$0xff]  ;;  %v488_v30 = vld [vmem:[%s2070_s21 + $0x4c8] sm:$0xff] }
  0x5c   : > { %665 = vmatmul.mubr.f32.gmra.mrb[10].mxu0 %v360_v25  ;;  %1793 = vmatprep.subr.bf16.mxu1 %v1792_v23  ;;  %v436_v25 = vld [vmem:[%s2070_s21 + $0x328] sm:$0xff]  ;;  %v446_v35 = vld [vmem:[%s2070_s21 + $0x378] sm:$0xff] }
  0x5d   : > { %930 = vmatmul.mubr.f32.gmra.mrb[10].mxu1 %v402_v28  ;;  %669 = vmatprep.mubr.f32.mxu0 %v366_v29  ;;  %v477_v28 = vld [vmem:[%s2070_s21 + $0x470] sm:$0xff] }
  0x5e   : > { %934 = vmatprep.mubr.f32.mxu1 %v408_v31  ;;  %1741 = vmatpush1.bf16.msra.mxu0 %v2074_v36  ;;  %v418_v36 = vld [vmem:[%s2070_s21 + $0x298] sm:$0xff]  ;;  %v441_v29 = vld [vmem:[%s2070_s21 + $0x350] sm:$0xff]  ;;  %v483_v31 = vld [vmem:[%s2070_s21 + $0x4a0] sm:$0xff] }
  0x5f   : > { %1742 = vmatprep.subr.bf16.mxu0 %v1926_v3  ;;  %1795 = vmatpush3.bf16.msra.mxu1 %v1792_v23  ;;  %v472_v23 = vld [vmem:[%s2070_s21 + $0x448] sm:$0xff] }
  0x60   : > { %670 = vmatmul.mubr.f32.gmra.mrb[12].mxu0 %v365_v33  ;;  %1797 = vmatprep.subr.bf16.mxu1 %v1796_v32  ;;  %v482_v33 = vld [vmem:[%s2070_s21 + $0x498] sm:$0xff] }
  0x61   : > { %935 = vmatmul.mubr.f32.gmra.mrb[12].mxu1 %v407_v37  ;;  %674 = vmatprep.mubr.f32.mxu0 %v371_v38  ;;  %v445_v37 = vld [vmem:[%s2070_s21 + $0x370] sm:$0xff]  ;;  %v487_v38 = vld [vmem:[%s2070_s21 + $0x4c0] sm:$0xff] }
  0x62   : > { %939 = vmatprep.mubr.f32.mxu1 %v413_v39  ;;  %1744 = vmatpush1.bf16.msra.mxu0 %v2093_v44  ;;  %v380_v44 = vld [vmem:[%s2070_s21 + $0x168] sm:$0xff]  ;;  %v451_v39 = vld [vmem:[%s2070_s21 + $0x3a0] sm:$0xff] }
  0x63   : > { %1745 = vmatprep.subr.bf16.mxu0 %v1926_v3  ;;  %1799 = vmatpush3.bf16.msra.mxu1 %v1796_v32  ;;  %v440_v32 = vld [vmem:[%s2070_s21 + $0x348] sm:$0xff] }
  0x64   : > { %675 = vmatmul.mubr.f32.gmra.mrb[14].mxu0 %v370_v41  ;;  %1801 = vmatprep.subr.bf16.mxu1 %v1800_v40  ;;  %v450_v41 = vld [vmem:[%s2070_s21 + $0x398] sm:$0xff] }
  0x65   : > { %940 = vmatmul.mubr.f32.gmra.mrb[14].mxu1 %v412_v42  ;;  %679 = vmatprep.mubr.f32.mxu0 %v376_v45  ;;  %v492_v42 = vld [vmem:[%s2070_s21 + $0x4e8] sm:$0xff] }
  0x66   : > { %944 = vmatprep.mubr.f32.mxu1 %v418_v36  ;;  %1747 = vmatpush1.bf16.msra.mxu0 %v2110_v50  ;;  %v385_v50 = vld [vmem:[%s2070_s21 + $0x190] sm:$0xff]  ;;  %v456_v45 = vld [vmem:[%s2070_s21 + $0x3c8] sm:$0xff]  ;;  %v339_v36 = vld [vmem:[%s2070_s21 + $0x20] sm:$0xff] }
  0x67   : > { %1748 = vmatprep.subr.bf16.mxu0 %v1926_v3  ;;  %1803 = vmatpush3.bf16.msra.mxu1 %v1800_v40  ;;  %v493_v40 = vld [vmem:[%s2070_s21 + $0x4f0] sm:$0xff] }
  0x68   : > { %680 = vmatmul.mubr.f32.gmra.mrb[16].mxu0 %v375_v46  ;;  %v455_v46 = vld [vmem:[%s2070_s21 + $0x3c0] sm:$0xff] }
  0x69   : > { %945 = vmatmul.mubr.f32.gmra.mrb[16].mxu1 %v417_v47  ;;  %684 = vmatprep.mubr.f32.mxu0 %v381_v48  ;;  %v344_v47 = vld [vmem:[%s2070_s21 + $0x48] sm:$0xff]  ;;  %v461_v48 = vld [vmem:[%s2070_s21 + $0x3f0] sm:$0xff] }
  0x6a   : > { %949 = vmatprep.mubr.f32.mxu1 %v423_v49  ;;  %1750 = vmatpush1.bf16.msra.mxu0 %v2127_v56  ;;  %v390_v56 = vld [vmem:[%s2070_s21 + $0x1b8] sm:$0xff]  ;;  %v349_v49 = vld [vmem:[%s2070_s21 + $0x70] sm:$0xff] }
  0x6b   : > { %1751 = vmatprep.subr.bf16.mxu0 %v1926_v3 }
  0x6c   : > { %685 = vmatmul.mubr.f32.gmra.mrb[18].mxu0 %v380_v44  ;;  %v460_v44 = vld [vmem:[%s2070_s21 + $0x3e8] sm:$0xff] }
  0x6d   : > { %950 = vmatmul.mubr.f32.gmra.mrb[18].mxu1 %v422_v51  ;;  %689 = vmatprep.mubr.f32.mxu0 %v386_v52  ;;  %v354_v51 = vld [vmem:[%s2070_s21 + $0x98] sm:$0xff] }
  0x6e   : > { %954 = vmatprep.mubr.f32.mxu1 %v428_v53  ;;  %1753 = vmatpush1.bf16.msra.mxu0 %v2144_v62  ;;  %v395_v62 = vld [vmem:[%s2070_s21 + $0x1e0] sm:$0xff]  ;;  %v466_v52 = vld [vmem:[%s2070_s21 + $0x418] sm:$0xff] }
  0x6f   : > { %1754 = vmatprep.subr.bf16.mxu0 %v1926_v3  ;;  %v359_v53 = vld [vmem:[%s2070_s21 + $0xc0] sm:$0xff] }
  0x70   : > { %690 = vmatmul.mubr.f32.gmra.mrb[20].mxu0 %v385_v50  ;;  %v465_v50 = vld [vmem:[%s2070_s21 + $0x410] sm:$0xff] }
  0x71   : > { %955 = vmatmul.mubr.f32.gmra.mrb[20].mxu1 %v427_v54  ;;  %694 = vmatprep.mubr.f32.mxu0 %v391_v55  ;;  %v364_v54 = vld [vmem:[%s2070_s21 + $0xe8] sm:$0xff]  ;;  %v471_v55 = vld [vmem:[%s2070_s21 + $0x440] sm:$0xff] }
  0x72   : > { %959 = vmatprep.mubr.f32.mxu1 %v433_v57  ;;  %1756 = vmatpush1.bf16.msra.mxu0 %v2161_v5  ;;  %v400_v5 = vld [vmem:[%s2070_s21 + $0x208] sm:$0xff]  ;;  %v369_v57 = vld [vmem:[%s2070_s21 + $0x110] sm:$0xff] }
  0x73   : > { %1757 = vmatprep.subr.bf16.mxu0 %v1926_v3 }
  0x74   : > { %695 = vmatmul.mubr.f32.gmra.mrb[22].mxu0 %v390_v56  ;;  %v470_v56 = vld [vmem:[%s2070_s21 + $0x438] sm:$0xff] }
  0x75   : > { %960 = vmatmul.mubr.f32.gmra.mrb[22].mxu1 %v432_v58  ;;  %699 = vmatprep.mubr.f32.mxu0 %v396_v59  ;;  %v374_v58 = vld [vmem:[%s2070_s21 + $0x138] sm:$0xff]  ;;  %v476_v59 = vld [vmem:[%s2070_s21 + $0x468] sm:$0xff] }
  0x76   : > { %964 = vmatprep.mubr.f32.mxu1 %v438_v60  ;;  %1759 = vmatpush1.bf16.msra.mxu0 %v2178_v13  ;;  %v405_v13 = vld [vmem:[%s2070_s21 + $0x230] sm:$0xff]  ;;  %v379_v60 = vld [vmem:[%s2070_s21 + $0x160] sm:$0xff] }
  0x77   : > { %1760 = vmatprep.subr.bf16.mxu0 %v1926_v3 }
  0x78   : > { %700 = vmatmul.mubr.f32.gmra.mrb[24].mxu0 %v395_v62  ;;  %v475_v62 = vld [vmem:[%s2070_s21 + $0x460] sm:$0xff] }
  0x79   : > { %965 = vmatmul.mubr.f32.gmra.mrb[24].mxu1 %v437_v8  ;;  %704 = vmatprep.mubr.f32.mxu0 %v401_v61  ;;  %v384_v8 = vld [vmem:[%s2070_s21 + $0x188] sm:$0xff]  ;;  %v481_v61 = vld [vmem:[%s2070_s21 + $0x490] sm:$0xff] }
  0x7a   : > { %969 = vmatprep.mubr.f32.mxu1 %v443_v63  ;;  %1762 = vmatpush1.bf16.msra.mxu0 %v2195_v20  ;;  %v410_v20 = vld [vmem:[%s2070_s21 + $0x258] sm:$0xff]  ;;  %v389_v63 = vld [vmem:[%s2070_s21 + $0x1b0] sm:$0xff] }
  0x7b   : > { %1763 = vmatprep.subr.bf16.mxu0 %v1926_v3 }
  0x7c   : > { %705 = vmatmul.mubr.f32.gmra.mrb[26].mxu0 %v400_v5  ;;  %v480_v5 = vld [vmem:[%s2070_s21 + $0x488] sm:$0xff] }
  0x7d   : > { %970 = vmatmul.mubr.f32.gmra.mrb[26].mxu1 %v442_v0  ;;  %709 = vmatprep.mubr.f32.mxu0 %v406_v1  ;;  %v394_v0 = vld [vmem:[%s2070_s21 + $0x1d8] sm:$0xff] }
  0x7e   : > { %974 = vmatprep.mubr.f32.mxu1 %v448_v2  ;;  %1765 = vmatpush1.bf16.msra.mxu0 %v2212_v27  ;;  %v415_v27 = vld [vmem:[%s2070_s21 + $0x280] sm:$0xff]  ;;  %v486_v1 = vld [vmem:[%s2070_s21 + $0x4b8] sm:$0xff] }
  0x7f   : > { %1766 = vmatprep.subr.bf16.mxu0 %v1926_v3  ;;  %v399_v2 = vld [vmem:[%s2070_s21 + $0x200] sm:$0xff] }
  0x80   : > { %710 = vmatmul.mubr.f32.gmra.mrb[28].mxu0 %v405_v13  ;;  %v485_v13 = vld [vmem:[%s2070_s21 + $0x4b0] sm:$0xff] }
  0x81   : > { %975 = vmatmul.mubr.f32.gmra.mrb[28].mxu1 %v447_v4  ;;  %714 = vmatprep.mubr.f32.mxu0 %v411_v6  ;;  %v404_v4 = vld [vmem:[%s2070_s21 + $0x228] sm:$0xff]  ;;  %v491_v6 = vld [vmem:[%s2070_s21 + $0x4e0] sm:$0xff] }
  0x82   : > { %979 = vmatprep.mubr.f32.mxu1 %v453_v7  ;;  %1768 = vmatpush1.bf16.msra.mxu0 %v2229_v34  ;;  %v462_v34 = vld [vmem:[%s2070_s21 + $0x3f8] sm:$0xff]  ;;  %v409_v7 = vld [vmem:[%s2070_s21 + $0x250] sm:$0xff] }
  0x83   : > { %1769 = vmatprep.subr.bf16.mxu0 %v1926_v3  ;;  %v420_v3 = vld [vmem:[%s2070_s21 + $0x2a8] sm:$0xff] }
  0x84   : > { %715 = vmatmul.mubr.f32.gmra.mrb[30].mxu0 %v410_v20  ;;  %v490_v20 = vld [vmem:[%s2070_s21 + $0x4d8] sm:$0xff] }
  0x85   : > { %980 = vmatmul.mubr.f32.gmra.mrb[30].mxu1 %v452_v9  ;;  %719 = vmatprep.mubr.f32.mxu0 %v416_v12  ;;  %v414_v9 = vld [vmem:[%s2070_s21 + $0x278] sm:$0xff] }
  0x86   : > { %984 = vmatprep.mubr.f32.mxu1 %v458_v10  ;;  %1771 = vmatpush1.bf16.msra.mxu0 %v2252_v43  ;;  %v467_v43 = vld [vmem:[%s2070_s21 + $0x420] sm:$0xff]  ;;  %v338_v12 = vld [vmem:[%s2070_s21 + $0x18] sm:$0xff] }
  0x87   : > { %v419_v10 = vld [vmem:[%s2070_s21 + $0x2a0] sm:$0xff] }
  0x88   : > { %720 = vmatmul.mubr.f32.gmra.mrb[32].mxu0 %v415_v27  ;;  %v337_v27 = vld [vmem:[%s2070_s21 + $0x10] sm:$0xff] }
  0x89   : > { %985 = vmatmul.mubr.f32.gmra.mrb[32].mxu1 %v457_v11  ;;  %724 = vmatprep.mubr.f32.mxu0 %v421_v14  ;;  %v424_v11 = vld [vmem:[%s2070_s21 + $0x2c8] sm:$0xff]  ;;  %v343_v14 = vld [vmem:[%s2070_s21 + $0x40] sm:$0xff] }
  0x8a   : > { %989 = vmatprep.mubr.f32.mxu1 %v463_v15  ;;  %v429_v15 = vld [vmem:[%s2070_s21 + $0x2f0] sm:$0xff] }
  0x8c   : > { %725 = vmatmul.mubr.f32.gmra.mrb[34].mxu0 %v420_v3  ;;  %v342_v3 = vld [vmem:[%s2070_s21 + $0x38] sm:$0xff] }
  0x8d   : > { %990 = vmatmul.mubr.f32.gmra.mrb[34].mxu1 %v462_v34  ;;  %729 = vmatprep.mubr.f32.mxu0 %v426_v16  ;;  %v434_v34 = vld [vmem:[%s2070_s21 + $0x318] sm:$0xff]  ;;  %v348_v16 = vld [vmem:[%s2070_s21 + $0x68] sm:$0xff] }
  0x8e   : > { %994 = vmatprep.mubr.f32.mxu1 %v468_v17  ;;  %v439_v17 = vld [vmem:[%s2070_s21 + $0x340] sm:$0xff] }
  0x90   : > { %730 = vmatmul.mubr.f32.gmra.mrb[36].mxu0 %v425_v18  ;;  %v347_v18 = vld [vmem:[%s2070_s21 + $0x60] sm:$0xff] }
  0x91   : > { %995 = vmatmul.mubr.f32.gmra.mrb[36].mxu1 %v467_v43  ;;  %734 = vmatprep.mubr.f32.mxu0 %v431_v19  ;;  %v444_v43 = vld [vmem:[%s2070_s21 + $0x368] sm:$0xff]  ;;  %v353_v19 = vld [vmem:[%s2070_s21 + $0x90] sm:$0xff] }
  0x92   : > { %999 = vmatprep.mubr.f32.mxu1 %v473_v21  ;;  %v449_v21 = vld [vmem:[%s2070_s21 + $0x390] sm:$0xff] }
  0x94   : > { %735 = vmatmul.mubr.f32.gmra.mrb[38].mxu0 %v430_v22  ;;  %v352_v22 = vld [vmem:[%s2070_s21 + $0x88] sm:$0xff] }
  0x95   : > { %1000 = vmatmul.mubr.f32.gmra.mrb[38].mxu1 %v472_v23  ;;  %739 = vmatprep.mubr.f32.mxu0 %v436_v25  ;;  %v454_v23 = vld [vmem:[%s2070_s21 + $0x3b8] sm:$0xff] }
  0x96   : > { %1004 = vmatprep.mubr.f32.mxu1 %v478_v26  ;;  %v358_v25 = vld [vmem:[%s2070_s21 + $0xb8] sm:$0xff]  ;;  %v459_v26 = vld [vmem:[%s2070_s21 + $0x3e0] sm:$0xff] }
  0x98   : > { %740 = vmatmul.mubr.f32.gmra.mrb[40].mxu0 %v435_v24  ;;  %v357_v24 = vld [vmem:[%s2070_s21 + $0xb0] sm:$0xff] }
  0x99   : > { %1005 = vmatmul.mubr.f32.gmra.mrb[40].mxu1 %v477_v28  ;;  %744 = vmatprep.mubr.f32.mxu0 %v441_v29  ;;  %v464_v28 = vld [vmem:[%s2070_s21 + $0x408] sm:$0xff]  ;;  %v363_v29 = vld [vmem:[%s2070_s21 + $0xe0] sm:$0xff] }
  0x9a   : > { %1009 = vmatprep.mubr.f32.mxu1 %v483_v31  ;;  %v469_v31 = vld [vmem:[%s2070_s21 + $0x430] sm:$0xff] }
  0x9c   : > { %745 = vmatmul.mubr.f32.gmra.mrb[42].mxu0 %v440_v32  ;;  %v362_v32 = vld [vmem:[%s2070_s21 + $0xd8] sm:$0xff] }
  0x9d   : > { %1010 = vmatmul.mubr.f32.gmra.mrb[42].mxu1 %v482_v33  ;;  %749 = vmatprep.mubr.f32.mxu0 %v446_v35  ;;  %v474_v33 = vld [vmem:[%s2070_s21 + $0x458] sm:$0xff]  ;;  %v368_v35 = vld [vmem:[%s2070_s21 + $0x108] sm:$0xff] }
  0x9e   : > { %1014 = vmatprep.mubr.f32.mxu1 %v488_v30  ;;  %v479_v30 = vld [vmem:[%s2070_s21 + $0x480] sm:$0xff] }
  0xa0   : > { %750 = vmatmul.mubr.f32.gmra.mrb[44].mxu0 %v445_v37  ;;  %v367_v37 = vld [vmem:[%s2070_s21 + $0x100] sm:$0xff] }
  0xa1   : > { %1015 = vmatmul.mubr.f32.gmra.mrb[44].mxu1 %v487_v38  ;;  %754 = vmatprep.mubr.f32.mxu0 %v451_v39  ;;  %v484_v38 = vld [vmem:[%s2070_s21 + $0x4a8] sm:$0xff]  ;;  %v373_v39 = vld [vmem:[%s2070_s21 + $0x130] sm:$0xff] }
  0xa2   : > { %1019 = vmatprep.mubr.f32.mxu1 %v493_v40  ;;  %v489_v40 = vld [vmem:[%s2070_s21 + $0x4d0] sm:$0xff] }
  0xa4   : > { %755 = vmatmul.mubr.f32.gmra.mrb[46].mxu0 %v450_v41  ;;  %v372_v41 = vld [vmem:[%s2070_s21 + $0x128] sm:$0xff] }
  0xa5   : > { %1020 = vmatmul.mubr.f32.gmra.mrb[46].mxu1 %v492_v42  ;;  %759 = vmatprep.mubr.f32.mxu0 %v456_v45  ;;  %v494_v42 = vld [vmem:[%s2070_s21 + $0x4f8] sm:$0xff]  ;;  %s1544_s21 = sshll.u32 %s2674_s5, 3 }
  0xa6   : > { %1628 = vmatprep.mubr.f32.mxu1 %v339_v36  ;;  %s2554_s28 = scalar_lea.vmem %s2668_s3, %s1544_s21 }
  0xa8   : > { %760 = vmatmul.mubr.f32.gmra.mrb[48].mxu0 %v455_v46 }
  0xa9   : > { %1629 = vmatmul.mubr.f32.vlgmr.msra.gmra.mrb[48].mxu1 %v344_v47  ;;  %764 = vmatprep.mubr.f32.mxu0 %v461_v48 }
  0xaa   : > { %1631 = vmatprep.mubr.f32.mxu1 %v349_v49 }
  0xac   : > { %765 = vmatmul.mubr.f32.gmra.mrb[50].mxu0 %v460_v44 }
  0xad   : > { %1632 = vmatmul.mubr.f32.gmra.mrb[50].mxu1 %v354_v51  ;;  %769 = vmatprep.mubr.f32.mxu0 %v466_v52 }
  0xae   : > { %1634 = vmatprep.mubr.f32.mxu1 %v359_v53 }
  0xb0   : > { %770 = vmatmul.mubr.f32.gmra.mrb[52].mxu0 %v465_v50 }
  0xb1   : > { %1635 = vmatmul.mubr.f32.gmra.mrb[52].mxu1 %v364_v54  ;;  %774 = vmatprep.mubr.f32.mxu0 %v471_v55 }
  0xb2   : > { %1637 = vmatprep.mubr.f32.mxu1 %v369_v57 }
  0xb4   : > { %775 = vmatmul.mubr.f32.gmra.mrb[54].mxu0 %v470_v56 }
  0xb5   : > { %1638 = vmatmul.mubr.f32.gmra.mrb[54].mxu1 %v374_v58  ;;  %779 = vmatprep.mubr.f32.mxu0 %v476_v59 }
  0xb6   : > { %1640 = vmatprep.mubr.f32.mxu1 %v379_v60 }
  0xb8   : > { %780 = vmatmul.mubr.f32.gmra.mrb[56].mxu0 %v475_v62 }
  0xb9   : > { %1641 = vmatmul.mubr.f32.gmra.mrb[56].mxu1 %v384_v8  ;;  %784 = vmatprep.mubr.f32.mxu0 %v481_v61 }
  0xba   : > { %1643 = vmatprep.mubr.f32.mxu1 %v389_v63 }
  0xbc   : > { %785 = vmatmul.mubr.f32.gmra.mrb[58].mxu0 %v480_v5 }
  0xbd   : > { %1644 = vmatmul.mubr.f32.gmra.mrb[58].mxu1 %v394_v0  ;;  %789 = vmatprep.mubr.f32.mxu0 %v486_v1 }
  0xbe   : > { %1646 = vmatprep.mubr.f32.mxu1 %v399_v2 }
  0xc0   : > { %790 = vmatmul.mubr.f32.gmra.mrb[60].mxu0 %v485_v13 }
  0xc1   : > { %1647 = vmatmul.mubr.f32.gmra.mrb[60].mxu1 %v404_v4  ;;  %794 = vmatprep.mubr.f32.mxu0 %v491_v6 }
  0xc2   : > { %1649 = vmatprep.mubr.f32.mxu1 %v409_v7 }
  0xc4   : > { %795 = vmatmul.mubr.f32.gmra.mrb[62].mxu0 %v490_v20 }
  0xc5   : > { %1650 = vmatmul.mubr.f32.gmra.mrb[62].mxu1 %v414_v9  ;;  %864 = vmatprep.mubr.f32.mxu0 %v338_v12 }
  0xc6   : > { %1652 = vmatprep.mubr.f32.mxu1 %v419_v10 }
  0xc8   : > { %865 = vmatmul.mubr.f32.vlgmr.msra.gmra.mrb[0].mxu0 %v337_v27 }
  0xc9   : > { %1653 = vmatmul.mubr.f32.gmra.mrb[64].mxu1 %v424_v11  ;;  %869 = vmatprep.mubr.f32.mxu0 %v343_v14 }
  0xca   : > { %1655 = vmatprep.mubr.f32.mxu1 %v429_v15 }
  0xcc   : > { %870 = vmatmul.mubr.f32.gmra.mrb[2].mxu0 %v342_v3 }
  0xcd   : > { %1656 = vmatmul.mubr.f32.gmra.mrb[66].mxu1 %v434_v34  ;;  %874 = vmatprep.mubr.f32.mxu0 %v348_v16 }
  0xce   : > { %1658 = vmatprep.mubr.f32.mxu1 %v439_v17 }
  0xd0   : > { %875 = vmatmul.mubr.f32.gmra.mrb[4].mxu0 %v347_v18 }
  0xd1   : > { %1659 = vmatmul.mubr.f32.gmra.mrb[68].mxu1 %v444_v43  ;;  %879 = vmatprep.mubr.f32.mxu0 %v353_v19 }
  0xd2   : > { %1661 = vmatprep.mubr.f32.mxu1 %v449_v21 }
  0xd4   : > { %880 = vmatmul.mubr.f32.gmra.mrb[6].mxu0 %v352_v22 }
  0xd5   : > { %1662 = vmatmul.mubr.f32.gmra.mrb[70].mxu1 %v454_v23  ;;  %884 = vmatprep.mubr.f32.mxu0 %v358_v25 }
  0xd6   : > { %1664 = vmatprep.mubr.f32.mxu1 %v459_v26 }
  0xd8   : > { %885 = vmatmul.mubr.f32.gmra.mrb[8].mxu0 %v357_v24 }
  0xd9   : > { %1665 = vmatmul.mubr.f32.gmra.mrb[72].mxu1 %v464_v28  ;;  %889 = vmatprep.mubr.f32.mxu0 %v363_v29 }
  0xda   : > { %1667 = vmatprep.mubr.f32.mxu1 %v469_v31 }
  0xdc   : > { %890 = vmatmul.mubr.f32.gmra.mrb[10].mxu0 %v362_v32 }
  0xdd   : > { %1668 = vmatmul.mubr.f32.gmra.mrb[74].mxu1 %v474_v33  ;;  %894 = vmatprep.mubr.f32.mxu0 %v368_v35 }
  0xde   : > { %1670 = vmatprep.mubr.f32.mxu1 %v479_v30 }
  0xe0   : > { %895 = vmatmul.mubr.f32.gmra.mrb[12].mxu0 %v367_v37 }
  0xe1   : > { %1671 = vmatmul.mubr.f32.gmra.mrb[76].mxu1 %v484_v38  ;;  %899 = vmatprep.mubr.f32.mxu0 %v373_v39 }
  0xe2   : > { %1673 = vmatprep.mubr.f32.mxu1 %v489_v40 }
  0xe4   : > { %900 = vmatmul.mubr.f32.gmra.mrb[14].mxu0 %v372_v41 }
  0xe5   : > { %1674 = vmatmul.mubr.f32.gmra.mrb[78].mxu1 %v494_v42 }
 0x11c   : > { %v906_v45 = vpop.f32.mrb[0].mxu1 }
 0x11d   : > { %v908_v36 = vpop.f32.mrb[1].mxu1 }
 0x120   : > { %v911_v46 = vpop.f32.mrb[2].mxu1 }
 0x121   : > { %v913_v47 = vpop.f32.mrb[3].mxu1 }
 0x124   : > { %v916_v48 = vpop.f32.mrb[4].mxu1 }
 0x125   : > { %v918_v49 = vpop.f32.mrb[5].mxu1 }
 0x128   : > { %v921_v44 = vpop.f32.mrb[6].mxu1 }
 0x129   : > { %v923_v51 = vpop.f32.mrb[7].mxu1 }
 0x12c   : > { %v926_v52 = vpop.f32.mrb[8].mxu1 }
 0x12d   : > { %v928_v53 = vpop.f32.mrb[9].mxu1 }
 0x130   : > { %v931_v50 = vpop.f32.mrb[10].mxu1 }
 0x131   : > { %v933_v54 = vpop.f32.mrb[11].mxu1 }
 0x134   : > { %v936_v55 = vpop.f32.mrb[12].mxu1 }
 0x135   : > { %v938_v57 = vpop.f32.mrb[13].mxu1 }
 0x138   : > { %v941_v56 = vpop.f32.mrb[14].mxu1 }
 0x139   : > { %v943_v58 = vpop.f32.mrb[15].mxu1 }
 0x13b   : > { %v681_v59 = vpop.f32.mrb[16].mxu0 }
 0x13c   : > { %v2488_v60 = vadd.f32 %v906_v45, %v681_v59  ;;  %v946_v62 = vpop.f32.mrb[16].mxu1  ;;  %v683_v8 = vpop.f32.mrb[17].mxu0 }
 0x13d   : > { %v948_v61 = vpop.f32.mrb[17].mxu1 }
 0x13f   : > { %v686_v63 = vpop.f32.mrb[18].mxu0 }
 0x140   : > { %v2490_v5 = vadd.f32 %v911_v46, %v686_v63  ;;  %v951_v0 = vpop.f32.mrb[18].mxu1  ;;  %v688_v1 = vpop.f32.mrb[19].mxu0 }
 0x141   : > { %v953_v2 = vpop.f32.mrb[19].mxu1 }
 0x143   : > { %v691_v13 = vpop.f32.mrb[20].mxu0 }
 0x144   : > { %v2492_v4 = vadd.f32 %v916_v48, %v691_v13  ;;  %v956_v6 = vpop.f32.mrb[20].mxu1  ;;  %v693_v7 = vpop.f32.mrb[21].mxu0 }
 0x145   : > { %v958_v20 = vpop.f32.mrb[21].mxu1 }
 0x147   : > { %v696_v9 = vpop.f32.mrb[22].mxu0 }
 0x148   : > { %v2494_v12 = vadd.f32 %v921_v44, %v696_v9  ;;  %v961_v10 = vpop.f32.mrb[22].mxu1  ;;  %v698_v27 = vpop.f32.mrb[23].mxu0 }
 0x149   : > { %v963_v11 = vpop.f32.mrb[23].mxu1 }
 0x14b   : > { %v701_v14 = vpop.f32.mrb[24].mxu0 }
 0x14c   : > { %v2496_v15 = vadd.f32 %v926_v52, %v701_v14  ;;  %v966_v3 = vpop.f32.mrb[24].mxu1  ;;  %v703_v34 = vpop.f32.mrb[25].mxu0 }
 0x14d   : > { %v968_v16 = vpop.f32.mrb[25].mxu1 }
 0x14f   : > { %v706_v17 = vpop.f32.mrb[26].mxu0 }
 0x150   : > { %v2498_v18 = vadd.f32 %v931_v50, %v706_v17  ;;  %v971_v43 = vpop.f32.mrb[26].mxu1  ;;  %v708_v19 = vpop.f32.mrb[27].mxu0 }
 0x151   : > { %v973_v21 = vpop.f32.mrb[27].mxu1 }
 0x153   : > { %v711_v22 = vpop.f32.mrb[28].mxu0 }
 0x154   : > { %v2500_v23 = vadd.f32 %v936_v55, %v711_v22  ;;  %v976_v25 = vpop.f32.mrb[28].mxu1  ;;  %v713_v26 = vpop.f32.mrb[29].mxu0 }
 0x155   : > { %v978_v24 = vpop.f32.mrb[29].mxu1 }
 0x157   : > { %v716_v28 = vpop.f32.mrb[30].mxu0 }
 0x158   : > { %v2502_v29 = vadd.f32 %v941_v56, %v716_v28  ;;  %v981_v31 = vpop.f32.mrb[30].mxu1  ;;  %v718_v32 = vpop.f32.mrb[31].mxu0 }
 0x159   : > { %v983_v33 = vpop.f32.mrb[31].mxu1 }
 0x15b   : > { %v721_v35 = vpop.f32.mrb[32].mxu0 }
 0x15c   : > { %v2504_v30 = vadd.f32 %v946_v62, %v721_v35  ;;  %v986_v37 = vpop.f32.mrb[32].mxu1  ;;  %v723_v38 = vpop.f32.mrb[33].mxu0 }
 0x15d   : > { %v988_v39 = vpop.f32.mrb[33].mxu1 }
 0x15f   : > { %v726_v40 = vpop.f32.mrb[34].mxu0 }
 0x160   : > { %v2506_v41 = vadd.f32 %v951_v0, %v726_v40  ;;  %v991_v42 = vpop.f32.mrb[34].mxu1  ;;  %v728_v45 = vpop.f32.mrb[35].mxu0 }
 0x161   : > { %v993_v36 = vpop.f32.mrb[35].mxu1 }
 0x162   : > { %v2548_v36 = vld [vmem:[%s2667_s2] ss:$0 sm:$0xff] }
 0x163   : > { %v731_v46 = vpop.f32.mrb[36].mxu0 }
 0x164   : > { %v2508_v47 = vadd.f32 %v956_v6, %v731_v46  ;;  %v996_v48 = vpop.f32.mrb[36].mxu1  ;;  %v733_v49 = vpop.f32.mrb[37].mxu0 }
 0x165   : > { %v998_v44 = vpop.f32.mrb[37].mxu1 }
 0x167   : > { %v736_v51 = vpop.f32.mrb[38].mxu0 }
 0x168   : > { %v2510_v52 = vadd.f32 %v961_v10, %v736_v51  ;;  %v1001_v53 = vpop.f32.mrb[38].mxu1  ;;  %v738_v50 = vpop.f32.mrb[39].mxu0 }
 0x169   : > { %v1003_v54 = vpop.f32.mrb[39].mxu1 }
 0x16b   : > { %v741_v55 = vpop.f32.mrb[40].mxu0 }
 0x16c   : > { %v2512_v57 = vadd.f32 %v966_v3, %v741_v55  ;;  %v1006_v56 = vpop.f32.mrb[40].mxu1  ;;  %v743_v58 = vpop.f32.mrb[41].mxu0 }
 0x16d   : > { %v1008_v59 = vpop.f32.mrb[41].mxu1 }
 0x16f   : > { %v746_v62 = vpop.f32.mrb[42].mxu0 }
 0x170   : > { %v2514_v8 = vadd.f32 %v971_v43, %v746_v62  ;;  %v1011_v61 = vpop.f32.mrb[42].mxu1  ;;  %v748_v63 = vpop.f32.mrb[43].mxu0 }
 0x171   : > { %v1013_v0 = vpop.f32.mrb[43].mxu1 }
 0x173   : > { %v751_v1 = vpop.f32.mrb[44].mxu0 }
 0x174   : > { %v2516_v2 = vadd.f32 %v976_v25, %v751_v1  ;;  %v1016_v13 = vpop.f32.mrb[44].mxu1  ;;  %v753_v6 = vpop.f32.mrb[45].mxu0 }
 0x175   : > { %v1018_v7 = vpop.f32.mrb[45].mxu1 }
 0x177   : > { %v756_v20 = vpop.f32.mrb[46].mxu0 }
 0x178   : > { %v2518_v9 = vadd.f32 %v981_v31, %v756_v20  ;;  %v1021_v10 = vpop.f32.mrb[46].mxu1  ;;  %v758_v27 = vpop.f32.mrb[47].mxu0 }
 0x179   : > { %v1023_v11 = vpop.f32.mrb[47].mxu1 }
 0x17b   : > { %v761_v14 = vpop.f32.mrb[48].mxu0 }
 0x17c   : > { %v2520_v3 = vadd.f32 %v986_v37, %v761_v14  ;;  %v2522_v34 = vpop.f32.mrb[48].mxu1  ;;  %v763_v16 = vpop.f32.mrb[49].mxu0 }
 0x17d   : > { %v1091_v17 = vpop.f32.mrb[49].mxu1 }
 0x17f   : > { %v766_v43 = vpop.f32.mrb[50].mxu0 }
 0x180   : > { %v2524_v19 = vadd.f32 %v991_v42, %v766_v43  ;;  %v2526_v21 = vpop.f32.mrb[50].mxu1  ;;  %v768_v22 = vpop.f32.mrb[51].mxu0 }
 0x181   : > { %v2528_v25 = vpop.f32.mrb[51].mxu1 }
 0x183   : > { %v771_v26 = vpop.f32.mrb[52].mxu0 }
 0x184   : > { %v2530_v24 = vadd.f32 %v996_v48, %v771_v26  ;;  %v2532_v28 = vpop.f32.mrb[52].mxu1  ;;  %v773_v31 = vpop.f32.mrb[53].mxu0 }
 0x185   : > { %v2534_v32 = vpop.f32.mrb[53].mxu1 }
 0x187   : > { %v776_v33 = vpop.f32.mrb[54].mxu0 }
 0x188   : > { %v2536_v35 = vadd.f32 %v1001_v53, %v776_v33  ;;  %v2538_v37 = vpop.f32.mrb[54].mxu1  ;;  %v778_v38 = vpop.f32.mrb[55].mxu0 }
 0x189   : > { %v2540_v39 = vpop.f32.mrb[55].mxu1 }
 0x18b   : > { %v781_v40 = vpop.f32.mrb[56].mxu0 }
 0x18c   : > { %v2543_v42 = vadd.f32 %v1006_v56, %v781_v40  ;;  %v1642_v45 = vpop.f32.mrb[56].mxu1  ;;  %v783_v46 = vpop.f32.mrb[57].mxu0 }
 0x18d   : > { %v1137_v48 = vadd.f32 %v1642_v45, %v2490_v5  ;;  %v1131_v49 = vpop.f32.mrb[57].mxu1 }
 0x18e   : > { %v1132_v44 = vadd.f32 %v1131_v49, %v2488_v60 }
 0x18f   : > { %v1365_v51 = vadd.f32 %v2548_v36, %v1137_v48  ;;  %v786_v53 = vpop.f32.mrb[58].mxu0 }
 0x190   : > { %v1364_v50 = vadd.f32 %v2548_v36, %v1132_v44  ;;  %v2559_v54 = vadd.f32 %v1011_v61, %v786_v53  ;;  %v1645_v55 = vpop.f32.mrb[58].mxu1  ;;  %v788_v5 = vpop.f32.mrb[59].mxu0 }
 0x191   : > { %1397 = vst [vmem:[%s2554_s28 + $0x48] sm:$0xff] %v1365_v51  ;;  %v1147_v56 = vadd.f32 %v1645_v55, %v2494_v12  ;;  %v1141_v58 = vpop.f32.mrb[59].mxu1 }
 0x192   : > { %1396 = vst [vmem:[%s2554_s28 + $0x40] sm:$0xff] %v1364_v50  ;;  %v1142_v59 = vadd.f32 %v1141_v58, %v2492_v4 }
 0x193   : > { %v1367_v60 = vadd.f32 %v2548_v36, %v1147_v56  ;;  %v791_v62 = vpop.f32.mrb[60].mxu0 }
 0x194   : > { %v1366_v63 = vadd.f32 %v2548_v36, %v1142_v59  ;;  %v2567_v0 = vadd.f32 %v1016_v13, %v791_v62  ;;  %v1648_v61 = vpop.f32.mrb[60].mxu1  ;;  %v793_v1 = vpop.f32.mrb[61].mxu0 }
 0x195   : > { %1399 = vst [vmem:[%s2554_s28 + $0x58] sm:$0xff] %v1367_v60  ;;  %v1157_v6 = vadd.f32 %v1648_v61, %v2498_v18  ;;  %v1151_v7 = vpop.f32.mrb[61].mxu1 }
 0x196   : > { %1398 = vst [vmem:[%s2554_s28 + $0x50] sm:$0xff] %v1366_v63  ;;  %v1152_v12 = vadd.f32 %v1151_v7, %v2496_v15 }
 0x197   : > { %v1369_v4 = vadd.f32 %v2548_v36, %v1157_v6  ;;  %v796_v20 = vpop.f32.mrb[62].mxu0 }
 0x198   : > { %v1368_v27 = vadd.f32 %v2548_v36, %v1152_v12  ;;  %v2575_v11 = vadd.f32 %v1021_v10, %v796_v20  ;;  %v1651_v13 = vpop.f32.mrb[62].mxu1  ;;  %v798_v14 = vpop.f32.mrb[63].mxu0 }
 0x199   : > { %1401 = vst [vmem:[%s2554_s28 + $0x68] sm:$0xff] %v1369_v4  ;;  %v1167_v16 = vadd.f32 %v1651_v13, %v2502_v29  ;;  %v1161_v43 = vpop.f32.mrb[63].mxu1 }
 0x19a   : > { %1400 = vst [vmem:[%s2554_s28 + $0x60] sm:$0xff] %v1368_v27  ;;  %v1162_v18 = vadd.f32 %v1161_v43, %v2500_v23 }
 0x19b   : > { %v1371_v15 = vadd.f32 %v2548_v36, %v1167_v16  ;;  %v866_v22 = vpop.f32.mrb[0].mxu0 }
 0x19c   : > { %v1370_v26 = vadd.f32 %v2548_v36, %v1162_v18  ;;  %v1092_v31 = vadd.f32 %v1091_v17, %v866_v22  ;;  %v1654_v10 = vpop.f32.mrb[64].mxu1  ;;  %v868_v33 = vpop.f32.mrb[1].mxu0 }
 0x19d   : > { %1403 = vst [vmem:[%s2554_s28 + $0x78] sm:$0xff] %v1371_v15  ;;  %v1177_v38 = vadd.f32 %v1654_v10, %v2506_v41  ;;  %v1171_v40 = vpop.f32.mrb[65].mxu1 }
 0x19e   : > { %1402 = vst [vmem:[%s2554_s28 + $0x70] sm:$0xff] %v1370_v26  ;;  %v1356_v29 = vadd.f32 %v2548_v36, %v1092_v31  ;;  %v1172_v45 = vadd.f32 %v1171_v40, %v2504_v30 }
 0x19f   : > { %v1373_v23 = vadd.f32 %v2548_v36, %v1177_v38  ;;  %v871_v46 = vpop.f32.mrb[2].mxu0 }
 0x1a0   : > { %1388 = vst [vmem:[%s2554_s28] sm:$0xff] %v1356_v29  ;;  %v1372_v17 = vadd.f32 %v2548_v36, %v1172_v45  ;;  %v1097_v48 = vadd.f32 %v2522_v34, %v871_v46  ;;  %v1657_v49 = vpop.f32.mrb[66].mxu1  ;;  %v873_v44 = vpop.f32.mrb[3].mxu0 }
 0x1a1   : > { %1405 = vst [vmem:[%s2554_s28 + $0x88] sm:$0xff] %v1373_v23  ;;  %v1187_v41 = vadd.f32 %v1657_v49, %v2510_v52  ;;  %v1181_v51 = vpop.f32.mrb[67].mxu1 }
 0x1a2   : > { %1404 = vst [vmem:[%s2554_s28 + $0x80] sm:$0xff] %v1372_v17  ;;  %v1357_v30 = vadd.f32 %v2548_v36, %v1097_v48  ;;  %v1182_v53 = vadd.f32 %v1181_v51, %v2508_v47 }
 0x1a3   : > { %v1375_v50 = vadd.f32 %v2548_v36, %v1187_v41  ;;  %v876_v55 = vpop.f32.mrb[4].mxu0 }
 0x1a4   : > { %1389 = vst [vmem:[%s2554_s28 + $0x8] sm:$0xff] %v1357_v30  ;;  %v1374_v34 = vadd.f32 %v2548_v36, %v1182_v53  ;;  %v1102_v5 = vadd.f32 %v2528_v25, %v876_v55  ;;  %v1660_v56 = vpop.f32.mrb[68].mxu1  ;;  %v878_v58 = vpop.f32.mrb[5].mxu0 }
 0x1a5   : > { %1407 = vst [vmem:[%s2554_s28 + $0x98] sm:$0xff] %v1375_v50  ;;  %v1197_v52 = vadd.f32 %v1660_v56, %v2514_v8  ;;  %v1191_v59 = vpop.f32.mrb[69].mxu1 }
 0x1a6   : > { %1406 = vst [vmem:[%s2554_s28 + $0x90] sm:$0xff] %v1374_v34  ;;  %v1358_v47 = vadd.f32 %v2548_v36, %v1102_v5  ;;  %v1192_v60 = vadd.f32 %v1191_v59, %v2512_v57 }
 0x1a7   : > { %v1377_v62 = vadd.f32 %v2548_v36, %v1197_v52  ;;  %v881_v63 = vpop.f32.mrb[6].mxu0 }
 0x1a8   : > { %1390 = vst [vmem:[%s2554_s28 + $0x10] sm:$0xff] %v1358_v47  ;;  %v1376_v25 = vadd.f32 %v2548_v36, %v1192_v60  ;;  %v1107_v61 = vadd.f32 %v2526_v21, %v881_v63  ;;  %v1663_v1 = vpop.f32.mrb[70].mxu1  ;;  %v883_v6 = vpop.f32.mrb[7].mxu0 }
 0x1a9   : > { %1409 = vst [vmem:[%s2554_s28 + $0xa8] sm:$0xff] %v1377_v62  ;;  %v1207_v8 = vadd.f32 %v1663_v1, %v2518_v9  ;;  %v1201_v7 = vpop.f32.mrb[71].mxu1 }
 0x1aa   : > { %1408 = vst [vmem:[%s2554_s28 + $0xa0] sm:$0xff] %v1376_v25  ;;  %v1359_v57 = vadd.f32 %v2548_v36, %v1107_v61  ;;  %v1202_v12 = vadd.f32 %v1201_v7, %v2516_v2 }
 0x1ab   : > { %v1379_v4 = vadd.f32 %v2548_v36, %v1207_v8  ;;  %v886_v20 = vpop.f32.mrb[8].mxu0 }
 0x1ac   : > { %1391 = vst [vmem:[%s2554_s28 + $0x18] sm:$0xff] %v1359_v57  ;;  %v1378_v21 = vadd.f32 %v2548_v36, %v1202_v12  ;;  %v1112_v27 = vadd.f32 %v2534_v32, %v886_v20  ;;  %v1666_v13 = vpop.f32.mrb[72].mxu1  ;;  %v888_v14 = vpop.f32.mrb[9].mxu0 }
 0x1ad   : > { %1411 = vst [vmem:[%s2554_s28 + $0xb8] sm:$0xff] %v1379_v4  ;;  %v1217_v9 = vadd.f32 %v1666_v13, %v2524_v19  ;;  %v1211_v16 = vpop.f32.mrb[73].mxu1 }
 0x1ae   : > { %1410 = vst [vmem:[%s2554_s28 + $0xb0] sm:$0xff] %v1378_v21  ;;  %v1360_v2 = vadd.f32 %v2548_v36, %v1112_v27  ;;  %v1212_v43 = vadd.f32 %v1211_v16, %v2520_v3 }
 0x1af   : > { %v1381_v18 = vadd.f32 %v2548_v36, %v1217_v9  ;;  %v891_v15 = vpop.f32.mrb[10].mxu0 }
 0x1b0   : > { %1392 = vst [vmem:[%s2554_s28 + $0x20] sm:$0xff] %v1360_v2  ;;  %v1380_v32 = vadd.f32 %v2548_v36, %v1212_v43  ;;  %v1117_v22 = vadd.f32 %v2532_v28, %v891_v15  ;;  %v1669_v26 = vpop.f32.mrb[74].mxu1  ;;  %v893_v31 = vpop.f32.mrb[11].mxu0 }
 0x1b1   : > { %1413 = vst [vmem:[%s2554_s28 + $0xc8] sm:$0xff] %v1381_v18  ;;  %v1227_v19 = vadd.f32 %v1669_v26, %v2536_v35  ;;  %v1221_v10 = vpop.f32.mrb[75].mxu1 }
 0x1b2   : > { %1412 = vst [vmem:[%s2554_s28 + $0xc0] sm:$0xff] %v1380_v32  ;;  %v1361_v3 = vadd.f32 %v2548_v36, %v1117_v22  ;;  %v1222_v33 = vadd.f32 %v1221_v10, %v2530_v24 }
 0x1b3   : > { %v1383_v38 = vadd.f32 %v2548_v36, %v1227_v19  ;;  %v896_v40 = vpop.f32.mrb[12].mxu0 }
 0x1b4   : > { %1393 = vst [vmem:[%s2554_s28 + $0x28] sm:$0xff] %v1361_v3  ;;  %v1382_v28 = vadd.f32 %v2548_v36, %v1222_v33  ;;  %v1122_v29 = vadd.f32 %v2540_v39, %v896_v40  ;;  %v1672_v45 = vpop.f32.mrb[76].mxu1  ;;  %v898_v23 = vpop.f32.mrb[13].mxu0 }
 0x1b5   : > { %1415 = vst [vmem:[%s2554_s28 + $0xd8] sm:$0xff] %v1383_v38  ;;  %v1237_v35 = vadd.f32 %v1672_v45, %v2559_v54  ;;  %v1231_v46 = vpop.f32.mrb[77].mxu1 }
 0x1b6   : > { %1414 = vst [vmem:[%s2554_s28 + $0xd0] sm:$0xff] %v1382_v28  ;;  %v1362_v24 = vadd.f32 %v2548_v36, %v1122_v29  ;;  %v1232_v17 = vadd.f32 %v1231_v46, %v2543_v42 }
 0x1b7   : > { %v1385_v48 = vadd.f32 %v2548_v36, %v1237_v35  ;;  %v901_v49 = vpop.f32.mrb[14].mxu0 }
 0x1b8   : > { %1394 = vst [vmem:[%s2554_s28 + $0x30] sm:$0xff] %v1362_v24  ;;  %v1384_v39 = vadd.f32 %v2548_v36, %v1232_v17  ;;  %v1127_v44 = vadd.f32 %v2538_v37, %v901_v49  ;;  %v1675_v41 = vpop.f32.mrb[78].mxu1  ;;  %v903_v51 = vpop.f32.mrb[15].mxu0 }
 0x1b9   : > { %1417 = vst [vmem:[%s2554_s28 + $0xe8] sm:$0xff] %v1385_v48  ;;  %v1247_v54 = vadd.f32 %v1675_v41, %v2575_v11  ;;  %v1241_v30 = vpop.f32.mrb[79].mxu1 }
 0x1ba   : > { %1416 = vst [vmem:[%s2554_s28 + $0xe0] sm:$0xff] %v1384_v39  ;;  %v1363_v53 = vadd.f32 %v2548_v36, %v1127_v44  ;;  %v1242_v42 = vadd.f32 %v1241_v30, %v2567_v0 }
 0x1bb   : > { %v1387_v50 = vadd.f32 %v2548_v36, %v1247_v54 }
 0x1bc   : > { %1395 = vst [vmem:[%s2554_s28 + $0x38] sm:$0xff] %v1363_v53  ;;  %v1386_v55 = vadd.f32 %v2548_v36, %v1242_v42 }
 0x1bd   : > { %1419 = vst [vmem:[%s2554_s28 + $0xf8] sm:$0xff] %v1387_v50 }
 0x1be   : > { %1418 = vst [vmem:[%s2554_s28 + $0xf0] sm:$0xff] %v1386_v55 }
 0x1bf PF: > { %s13_s14 = sadd.s32 1, %s1924_s14   ;;  %s2669_s12 = smov %s1920_s13 }
 0x1c0   : > { %p10_p5 = scmp.ge.s32.totalorder %s13_s14, 4   ;;  %s2670_s13 = smov %s2672_s15 }
 0x1c2   :  { %12 = sbr.rel (!%p10_p5) target bundleno = 2 (0x2), region = 76 }

// kernel: transformer_net_pl.61
= control target key start
LH: loop header
LB: loop body
LE: loop exit
PB: predicated region body
PF: predicated region fallthrough
CT: control target
= control target key end

     0   :  { %s4021_s12 = smov 0   ;;  %s4023_s13 = smov 0   ;;  %s5725_s0 = inlined_call_operand.vmem [shape: f32[512,2816], index: 0, kind: input, shape index: {}]   ;;  %s5726_s1 = inlined_call_operand.vmem [shape: f32[2816,128], index: 1, kind: input, shape index: {}]   ;;  %s5727_s2 = inlined_call_operand.vmem [shape: f32[1,128], index: 2, kind: input, shape index: {}]   ;;  %s5728_s3 = inlined_call_operand.vmem [shape: f32[512,128], index: 3, kind: output, shape index: {}]  }
   0x1   :  { %s4025_s14 = smov 0   ;;  %s4027_s15 = smov 0  }
   0x2   :  { %s4029_s16 = smov 0   ;;  %s4031_s17 = smov 0  }
   0x3   :  { %s4033_s18 = smov 0  }
   0x4 LB: > { %s25_s19 = sadd.s32 1, %s3989_s16  ;;  %s32_s20 = sadd.s32 1, %s3993_s17  ;;  %s3997_s18 = sphi %s4033_s18, %s13_s18   ;;  %s3993_s17 = sphi %s4031_s17, %s5734_s17   ;;  %s3989_s16 = sphi %s4029_s16, %s5733_s16   ;;  %s3985_s15 = sphi %s4027_s15, %s5732_s15   ;;  %s3981_s14 = sphi %s4025_s14, %s5731_s14   ;;  %s3977_s13 = sphi %s4023_s13, %s5730_s13   ;;  %s3973_s12 = sphi %s4021_s12, %s5729_s12  }
   0x5   : > { %p26_p0 = scmp.ge.s32.totalorder %s25_s19, 2  ;;  %p48_p1 = scmp.ne.s32.totalorder %s3977_s13, %s3973_s12 }
   0x6   : > { %p49_p2 = scmp.eq.s32.totalorder %s3997_s18, 0  ;;  %s41_s24 = sadd.s32 1, %s3977_s13 }
   0x7   : > { %s5736_s19 = smov (%p26_p0, %s25_s19), 0  ;;  %s5738_s20 = smov (!%p26_p0, %s32_s20), %s3993_s17 }
   0x8   : > { %p50_p3 = por %p49_p2, %p48_p1  ;;  %p34_p4 = scmp.ge.s32.totalorder %s5738_s20, 2 }
   0x9   : > { %s37_s21 = ssub.s32 %s3989_s16, %s5736_s19  ;;  %p3213_p6 = scmp.ge.s32.totalorder %s3997_s18, 4 }
   0xa   : > { %s5740_s20 = smov (%p34_p4, %s5738_s20), 0 }
   0xb   : > { %s36_s22 = ssub.s32 %s3993_s17, %s5740_s20  ;;  %162 = sbr.rel (%p3213_p6) target bundleno = 203 (0xcb), region = 20 }
   0xc   : > { %s38_s23 = sor.u32 %s37_s21, %s36_s22 }
   0xd   : > { %p39_p5 = scmp.eq.s32.totalorder %s38_s23, 0 }
   0xf   : > { %s4072_s25 = scalar_select %p39_p5, %s3977_s13, %s41_s24  }
  0x12   : > { %165 = sbr.rel (!%p50_p3) target bundleno = 203 (0xcb), region = 24  ;;  %s167_s26 = sand.u32 (%p50_p3), 1, %s3977_s13  }
  0x13   : > { %s171_s27 = smul.u32 (%p50_p3), 11, %s3989_s16 }
  0x14   : > { %s3882_s28 = smul.u32 (%p50_p3), 2816, %s167_s26 }
  0x15   : > { %s3883_s29 = smul.u32 (%p50_p3), 704, %s3993_s17 }
  0x16   : > { %s4086_s8 = scalar_lea.vmem (%p50_p3), [#allocation3], %s3882_s28 }
  0x17   : > { %s173_s30 = sadd.s32 (%p50_p3), %s3883_s29, %s171_s27 }
  0x18   : > { %s3216_s4 = sshll.u32 (%p50_p3), %s173_s30, 3 }
  0x19   : > { %s4081_s7 = scalar_lea.vmem %s5725_s0, %s3216_s4 }
  0x1a   : > { %v188_v0 = vld [vmem:[%s4081_s7] sm:$0xff]  ;;  %v190_v1 = vld [vmem:[%s4081_s7 + $0x8] sm:$0xff]  ;;  %v192_v2 = vld [vmem:[%s4081_s7 + $0x10] sm:$0xff] }
  0x1b   : > { %189 = vst [vmem:[%s4086_s8] sm:$0xff] %v188_v0  ;;  %191 = vst [vmem:[%s4086_s8 + $0x8] sm:$0xff] %v190_v1  ;;  %v194_v3 = vld [vmem:[%s4081_s7 + $0x18] sm:$0xff]  ;;  %v196_v4 = vld [vmem:[%s4081_s7 + $0x20] sm:$0xff] }
  0x1c   : > { %193 = vst [vmem:[%s4086_s8 + $0x10] sm:$0xff] %v192_v2  ;;  %v198_v5 = vld [vmem:[%s4081_s7 + $0x28] sm:$0xff]  ;;  %195 = vst [vmem:[%s4086_s8 + $0x18] sm:$0xff] %v194_v3  ;;  %v200_v6 = vld [vmem:[%s4081_s7 + $0x30] sm:$0xff] }
  0x1d   : > { %197 = vst [vmem:[%s4086_s8 + $0x20] sm:$0xff] %v196_v4  ;;  %199 = vst [vmem:[%s4086_s8 + $0x28] sm:$0xff] %v198_v5  ;;  %v202_v7 = vld [vmem:[%s4081_s7 + $0x38] sm:$0xff]  ;;  %v204_v8 = vld [vmem:[%s4081_s7 + $0x40] sm:$0xff] }
  0x1e   : > { %201 = vst [vmem:[%s4086_s8 + $0x30] sm:$0xff] %v200_v6  ;;  %203 = vst [vmem:[%s4086_s8 + $0x38] sm:$0xff] %v202_v7  ;;  %v206_v9 = vld [vmem:[%s4081_s7 + $0x48] sm:$0xff]  ;;  %v208_v10 = vld [vmem:[%s4081_s7 + $0x50] sm:$0xff] }
  0x1f   : > { %205 = vst [vmem:[%s4086_s8 + $0x40] sm:$0xff] %v204_v8  ;;  %v210_v11 = vld [vmem:[%s4081_s7 + $0xb0] sm:$0xff]  ;;  %207 = vst [vmem:[%s4086_s8 + $0x48] sm:$0xff] %v206_v9  ;;  %v212_v12 = vld [vmem:[%s4081_s7 + $0xb8] sm:$0xff] }
  0x20   : > { %209 = vst [vmem:[%s4086_s8 + $0x50] sm:$0xff] %v208_v10  ;;  %211 = vst [vmem:[%s4086_s8 + $0x58] sm:$0xff] %v210_v11  ;;  %v214_v13 = vld [vmem:[%s4081_s7 + $0xc0] sm:$0xff]  ;;  %v216_v14 = vld [vmem:[%s4081_s7 + $0xc8] sm:$0xff] }
  0x21   : > { %213 = vst [vmem:[%s4086_s8 + $0x60] sm:$0xff] %v212_v12  ;;  %215 = vst [vmem:[%s4086_s8 + $0x68] sm:$0xff] %v214_v13  ;;  %v218_v15 = vld [vmem:[%s4081_s7 + $0xd0] sm:$0xff]  ;;  %v220_v16 = vld [vmem:[%s4081_s7 + $0xd8] sm:$0xff] }
  0x22   : > { %217 = vst [vmem:[%s4086_s8 + $0x70] sm:$0xff] %v216_v14  ;;  %v222_v17 = vld [vmem:[%s4081_s7 + $0xe0] sm:$0xff]  ;;  %219 = vst [vmem:[%s4086_s8 + $0x78] sm:$0xff] %v218_v15  ;;  %v224_v18 = vld [vmem:[%s4081_s7 + $0xe8] sm:$0xff] }
  0x23   : > { %221 = vst [vmem:[%s4086_s8 + $0x80] sm:$0xff] %v220_v16  ;;  %223 = vst [vmem:[%s4086_s8 + $0x88] sm:$0xff] %v222_v17  ;;  %v226_v19 = vld [vmem:[%s4081_s7 + $0xf0] sm:$0xff]  ;;  %v228_v20 = vld [vmem:[%s4081_s7 + $0xf8] sm:$0xff] }
  0x24   : > { %225 = vst [vmem:[%s4086_s8 + $0x90] sm:$0xff] %v224_v18  ;;  %227 = vst [vmem:[%s4086_s8 + $0x98] sm:$0xff] %v226_v19  ;;  %v230_v21 = vld [vmem:[%s4081_s7 + $0x100] sm:$0xff]  ;;  %v234_v23 = vld [vmem:[%s4081_s7 + $0x168] sm:$0xff] }
  0x25   : > { %229 = vst [vmem:[%s4086_s8 + $0xa0] sm:$0xff] %v228_v20  ;;  %v232_v22 = vld [vmem:[%s4081_s7 + $0x160] sm:$0xff]  ;;  %231 = vst [vmem:[%s4086_s8 + $0xa8] sm:$0xff] %v230_v21  ;;  %v236_v24 = vld [vmem:[%s4081_s7 + $0x170] sm:$0xff] }
  0x26   : > { %233 = vst [vmem:[%s4086_s8 + $0xb0] sm:$0xff] %v232_v22  ;;  %235 = vst [vmem:[%s4086_s8 + $0xb8] sm:$0xff] %v234_v23  ;;  %v238_v25 = vld [vmem:[%s4081_s7 + $0x178] sm:$0xff]  ;;  %v240_v26 = vld [vmem:[%s4081_s7 + $0x180] sm:$0xff] }
  0x27   : > { %237 = vst [vmem:[%s4086_s8 + $0xc0] sm:$0xff] %v236_v24  ;;  %239 = vst [vmem:[%s4086_s8 + $0xc8] sm:$0xff] %v238_v25  ;;  %v242_v27 = vld [vmem:[%s4081_s7 + $0x188] sm:$0xff]  ;;  %v244_v28 = vld [vmem:[%s4081_s7 + $0x190] sm:$0xff] }
  0x28   : > { %241 = vst [vmem:[%s4086_s8 + $0xd0] sm:$0xff] %v240_v26  ;;  %v246_v29 = vld [vmem:[%s4081_s7 + $0x198] sm:$0xff]  ;;  %243 = vst [vmem:[%s4086_s8 + $0xd8] sm:$0xff] %v242_v27  ;;  %v248_v30 = vld [vmem:[%s4081_s7 + $0x1a0] sm:$0xff] }
  0x29   : > { %245 = vst [vmem:[%s4086_s8 + $0xe0] sm:$0xff] %v244_v28  ;;  %247 = vst [vmem:[%s4086_s8 + $0xe8] sm:$0xff] %v246_v29  ;;  %v250_v31 = vld [vmem:[%s4081_s7 + $0x1a8] sm:$0xff]  ;;  %v252_v32 = vld [vmem:[%s4081_s7 + $0x1b0] sm:$0xff] }
  0x2a   : > { %249 = vst [vmem:[%s4086_s8 + $0xf0] sm:$0xff] %v248_v30  ;;  %251 = vst [vmem:[%s4086_s8 + $0xf8] sm:$0xff] %v250_v31  ;;  %v254_v33 = vld [vmem:[%s4081_s7 + $0x210] sm:$0xff]  ;;  %v256_v34 = vld [vmem:[%s4081_s7 + $0x218] sm:$0xff] }
  0x2b   : > { %253 = vst [vmem:[%s4086_s8 + $0x100] sm:$0xff] %v252_v32  ;;  %v258_v35 = vld [vmem:[%s4081_s7 + $0x220] sm:$0xff]  ;;  %255 = vst [vmem:[%s4086_s8 + $0x108] sm:$0xff] %v254_v33  ;;  %v260_v36 = vld [vmem:[%s4081_s7 + $0x228] sm:$0xff] }
  0x2c   : > { %257 = vst [vmem:[%s4086_s8 + $0x110] sm:$0xff] %v256_v34  ;;  %259 = vst [vmem:[%s4086_s8 + $0x118] sm:$0xff] %v258_v35  ;;  %v262_v37 = vld [vmem:[%s4081_s7 + $0x230] sm:$0xff]  ;;  %v264_v38 = vld [vmem:[%s4081_s7 + $0x238] sm:$0xff] }
  0x2d   : > { %261 = vst [vmem:[%s4086_s8 + $0x120] sm:$0xff] %v260_v36  ;;  %263 = vst [vmem:[%s4086_s8 + $0x128] sm:$0xff] %v262_v37  ;;  %v266_v39 = vld [vmem:[%s4081_s7 + $0x240] sm:$0xff]  ;;  %v268_v40 = vld [vmem:[%s4081_s7 + $0x248] sm:$0xff] }
  0x2e   : > { %265 = vst [vmem:[%s4086_s8 + $0x130] sm:$0xff] %v264_v38  ;;  %v270_v41 = vld [vmem:[%s4081_s7 + $0x250] sm:$0xff]  ;;  %267 = vst [vmem:[%s4086_s8 + $0x138] sm:$0xff] %v266_v39  ;;  %v272_v42 = vld [vmem:[%s4081_s7 + $0x258] sm:$0xff] }
  0x2f   : > { %269 = vst [vmem:[%s4086_s8 + $0x140] sm:$0xff] %v268_v40  ;;  %271 = vst [vmem:[%s4086_s8 + $0x148] sm:$0xff] %v270_v41  ;;  %v274_v43 = vld [vmem:[%s4081_s7 + $0x260] sm:$0xff]  ;;  %v278_v45 = vld [vmem:[%s4081_s7 + $0x2c8] sm:$0xff] }
  0x30   : > { %v276_v44 = vld [vmem:[%s4081_s7 + $0x2c0] sm:$0xff]  ;;  %273 = vst [vmem:[%s4086_s8 + $0x150] sm:$0xff] %v272_v42  ;;  %275 = vst [vmem:[%s4086_s8 + $0x158] sm:$0xff] %v274_v43  ;;  %v280_v46 = vld [vmem:[%s4081_s7 + $0x2d0] sm:$0xff] }
  0x31   : > { %277 = vst [vmem:[%s4086_s8 + $0x160] sm:$0xff] %v276_v44  ;;  %v282_v47 = vld [vmem:[%s4081_s7 + $0x2d8] sm:$0xff]  ;;  %279 = vst [vmem:[%s4086_s8 + $0x168] sm:$0xff] %v278_v45  ;;  %v284_v48 = vld [vmem:[%s4081_s7 + $0x2e0] sm:$0xff] }
  0x32   : > { %281 = vst [vmem:[%s4086_s8 + $0x170] sm:$0xff] %v280_v46  ;;  %283 = vst [vmem:[%s4086_s8 + $0x178] sm:$0xff] %v282_v47  ;;  %v286_v49 = vld [vmem:[%s4081_s7 + $0x2e8] sm:$0xff]  ;;  %v288_v50 = vld [vmem:[%s4081_s7 + $0x2f0] sm:$0xff] }
  0x33   : > { %285 = vst [vmem:[%s4086_s8 + $0x180] sm:$0xff] %v284_v48  ;;  %287 = vst [vmem:[%s4086_s8 + $0x188] sm:$0xff] %v286_v49  ;;  %v290_v51 = vld [vmem:[%s4081_s7 + $0x2f8] sm:$0xff]  ;;  %v292_v52 = vld [vmem:[%s4081_s7 + $0x300] sm:$0xff] }
  0x34   : > { %289 = vst [vmem:[%s4086_s8 + $0x190] sm:$0xff] %v288_v50  ;;  %v294_v53 = vld [vmem:[%s4081_s7 + $0x308] sm:$0xff]  ;;  %291 = vst [vmem:[%s4086_s8 + $0x198] sm:$0xff] %v290_v51  ;;  %v296_v54 = vld [vmem:[%s4081_s7 + $0x310] sm:$0xff] }
  0x35   : > { %293 = vst [vmem:[%s4086_s8 + $0x1a0] sm:$0xff] %v292_v52  ;;  %295 = vst [vmem:[%s4086_s8 + $0x1a8] sm:$0xff] %v294_v53  ;;  %v298_v55 = vld [vmem:[%s4081_s7 + $0x370] sm:$0xff]  ;;  %v300_v56 = vld [vmem:[%s4081_s7 + $0x378] sm:$0xff] }
  0x36   : > { %297 = vst [vmem:[%s4086_s8 + $0x1b0] sm:$0xff] %v296_v54  ;;  %299 = vst [vmem:[%s4086_s8 + $0x1b8] sm:$0xff] %v298_v55  ;;  %v302_v57 = vld [vmem:[%s4081_s7 + $0x380] sm:$0xff]  ;;  %v304_v58 = vld [vmem:[%s4081_s7 + $0x388] sm:$0xff] }
  0x37   : > { %301 = vst [vmem:[%s4086_s8 + $0x1c0] sm:$0xff] %v300_v56  ;;  %v306_v59 = vld [vmem:[%s4081_s7 + $0x390] sm:$0xff]  ;;  %303 = vst [vmem:[%s4086_s8 + $0x1c8] sm:$0xff] %v302_v57  ;;  %v308_v60 = vld [vmem:[%s4081_s7 + $0x398] sm:$0xff] }
  0x38   : > { %305 = vst [vmem:[%s4086_s8 + $0x1d0] sm:$0xff] %v304_v58  ;;  %307 = vst [vmem:[%s4086_s8 + $0x1d8] sm:$0xff] %v306_v59  ;;  %v310_v61 = vld [vmem:[%s4081_s7 + $0x3a0] sm:$0xff]  ;;  %v312_v62 = vld [vmem:[%s4081_s7 + $0x3a8] sm:$0xff] }
  0x39   : > { %309 = vst [vmem:[%s4086_s8 + $0x1e0] sm:$0xff] %v308_v60  ;;  %311 = vst [vmem:[%s4086_s8 + $0x1e8] sm:$0xff] %v310_v61  ;;  %v314_v63 = vld [vmem:[%s4081_s7 + $0x3b0] sm:$0xff]  ;;  %v316_v0 = vld [vmem:[%s4081_s7 + $0x3b8] sm:$0xff] }
  0x3a   : > { %313 = vst [vmem:[%s4086_s8 + $0x1f0] sm:$0xff] %v312_v62  ;;  %v318_v1 = vld [vmem:[%s4081_s7 + $0x3c0] sm:$0xff]  ;;  %315 = vst [vmem:[%s4086_s8 + $0x1f8] sm:$0xff] %v314_v63  ;;  %v322_v3 = vld [vmem:[%s4081_s7 + $0x428] sm:$0xff] }
  0x3b   : > { %317 = vst [vmem:[%s4086_s8 + $0x200] sm:$0xff] %v316_v0  ;;  %319 = vst [vmem:[%s4086_s8 + $0x208] sm:$0xff] %v318_v1  ;;  %v320_v2 = vld [vmem:[%s4081_s7 + $0x420] sm:$0xff]  ;;  %v324_v4 = vld [vmem:[%s4081_s7 + $0x430] sm:$0xff] }
  0x3c   : > { %321 = vst [vmem:[%s4086_s8 + $0x210] sm:$0xff] %v320_v2  ;;  %323 = vst [vmem:[%s4086_s8 + $0x218] sm:$0xff] %v322_v3  ;;  %v326_v5 = vld [vmem:[%s4081_s7 + $0x438] sm:$0xff]  ;;  %v328_v6 = vld [vmem:[%s4081_s7 + $0x440] sm:$0xff] }
  0x3d   : > { %325 = vst [vmem:[%s4086_s8 + $0x220] sm:$0xff] %v324_v4  ;;  %v330_v7 = vld [vmem:[%s4081_s7 + $0x448] sm:$0xff]  ;;  %327 = vst [vmem:[%s4086_s8 + $0x228] sm:$0xff] %v326_v5  ;;  %v332_v8 = vld [vmem:[%s4081_s7 + $0x450] sm:$0xff] }
  0x3e   : > { %329 = vst [vmem:[%s4086_s8 + $0x230] sm:$0xff] %v328_v6  ;;  %331 = vst [vmem:[%s4086_s8 + $0x238] sm:$0xff] %v330_v7  ;;  %v334_v9 = vld [vmem:[%s4081_s7 + $0x458] sm:$0xff]  ;;  %v336_v10 = vld [vmem:[%s4081_s7 + $0x460] sm:$0xff] }
  0x3f   : > { %333 = vst [vmem:[%s4086_s8 + $0x240] sm:$0xff] %v332_v8  ;;  %335 = vst [vmem:[%s4086_s8 + $0x248] sm:$0xff] %v334_v9  ;;  %v338_v11 = vld [vmem:[%s4081_s7 + $0x468] sm:$0xff]  ;;  %v340_v12 = vld [vmem:[%s4081_s7 + $0x470] sm:$0xff] }
  0x40   : > { %337 = vst [vmem:[%s4086_s8 + $0x250] sm:$0xff] %v336_v10  ;;  %v342_v13 = vld [vmem:[%s4081_s7 + $0x4d0] sm:$0xff]  ;;  %339 = vst [vmem:[%s4086_s8 + $0x258] sm:$0xff] %v338_v11  ;;  %v344_v14 = vld [vmem:[%s4081_s7 + $0x4d8] sm:$0xff] }
  0x41   : > { %341 = vst [vmem:[%s4086_s8 + $0x260] sm:$0xff] %v340_v12  ;;  %343 = vst [vmem:[%s4086_s8 + $0x268] sm:$0xff] %v342_v13  ;;  %v346_v15 = vld [vmem:[%s4081_s7 + $0x4e0] sm:$0xff]  ;;  %v348_v16 = vld [vmem:[%s4081_s7 + $0x4e8] sm:$0xff] }
  0x42   : > { %345 = vst [vmem:[%s4086_s8 + $0x270] sm:$0xff] %v344_v14  ;;  %347 = vst [vmem:[%s4086_s8 + $0x278] sm:$0xff] %v346_v15  ;;  %v350_v17 = vld [vmem:[%s4081_s7 + $0x4f0] sm:$0xff]  ;;  %v352_v18 = vld [vmem:[%s4081_s7 + $0x4f8] sm:$0xff] }
  0x43   : > { %349 = vst [vmem:[%s4086_s8 + $0x280] sm:$0xff] %v348_v16  ;;  %v354_v19 = vld [vmem:[%s4081_s7 + $0x500] sm:$0xff]  ;;  %351 = vst [vmem:[%s4086_s8 + $0x288] sm:$0xff] %v350_v17  ;;  %v356_v20 = vld [vmem:[%s4081_s7 + $0x508] sm:$0xff] }
  0x44   : > { %353 = vst [vmem:[%s4086_s8 + $0x290] sm:$0xff] %v352_v18  ;;  %355 = vst [vmem:[%s4086_s8 + $0x298] sm:$0xff] %v354_v19  ;;  %v358_v21 = vld [vmem:[%s4081_s7 + $0x510] sm:$0xff]  ;;  %v360_v22 = vld [vmem:[%s4081_s7 + $0x518] sm:$0xff] }
  0x45   : > { %357 = vst [vmem:[%s4086_s8 + $0x2a0] sm:$0xff] %v356_v20  ;;  %359 = vst [vmem:[%s4086_s8 + $0x2a8] sm:$0xff] %v358_v21  ;;  %v362_v23 = vld [vmem:[%s4081_s7 + $0x520] sm:$0xff]  ;;  %v366_v25 = vld [vmem:[%s4081_s7 + $0x588] sm:$0xff] }
  0x46   : > { %361 = vst [vmem:[%s4086_s8 + $0x2b0] sm:$0xff] %v360_v22  ;;  %v364_v24 = vld [vmem:[%s4081_s7 + $0x580] sm:$0xff]  ;;  %363 = vst [vmem:[%s4086_s8 + $0x2b8] sm:$0xff] %v362_v23  ;;  %v368_v26 = vld [vmem:[%s4081_s7 + $0x590] sm:$0xff] }
  0x47   : > { %365 = vst [vmem:[%s4086_s8 + $0x2c0] sm:$0xff] %v364_v24  ;;  %367 = vst [vmem:[%s4086_s8 + $0x2c8] sm:$0xff] %v366_v25  ;;  %v370_v27 = vld [vmem:[%s4081_s7 + $0x598] sm:$0xff]  ;;  %v372_v28 = vld [vmem:[%s4081_s7 + $0x5a0] sm:$0xff] }
  0x48   : > { %369 = vst [vmem:[%s4086_s8 + $0x2d0] sm:$0xff] %v368_v26  ;;  %371 = vst [vmem:[%s4086_s8 + $0x2d8] sm:$0xff] %v370_v27  ;;  %v374_v29 = vld [vmem:[%s4081_s7 + $0x5a8] sm:$0xff]  ;;  %v376_v30 = vld [vmem:[%s4081_s7 + $0x5b0] sm:$0xff] }
  0x49   : > { %373 = vst [vmem:[%s4086_s8 + $0x2e0] sm:$0xff] %v372_v28  ;;  %v378_v31 = vld [vmem:[%s4081_s7 + $0x5b8] sm:$0xff]  ;;  %375 = vst [vmem:[%s4086_s8 + $0x2e8] sm:$0xff] %v374_v29  ;;  %v380_v32 = vld [vmem:[%s4081_s7 + $0x5c0] sm:$0xff] }
  0x4a   : > { %377 = vst [vmem:[%s4086_s8 + $0x2f0] sm:$0xff] %v376_v30  ;;  %379 = vst [vmem:[%s4086_s8 + $0x2f8] sm:$0xff] %v378_v31  ;;  %v382_v33 = vld [vmem:[%s4081_s7 + $0x5c8] sm:$0xff]  ;;  %v384_v34 = vld [vmem:[%s4081_s7 + $0x5d0] sm:$0xff] }
  0x4b   : > { %381 = vst [vmem:[%s4086_s8 + $0x300] sm:$0xff] %v380_v32  ;;  %383 = vst [vmem:[%s4086_s8 + $0x308] sm:$0xff] %v382_v33  ;;  %v386_v35 = vld [vmem:[%s4081_s7 + $0x630] sm:$0xff]  ;;  %v388_v36 = vld [vmem:[%s4081_s7 + $0x638] sm:$0xff] }
  0x4c   : > { %385 = vst [vmem:[%s4086_s8 + $0x310] sm:$0xff] %v384_v34  ;;  %v390_v37 = vld [vmem:[%s4081_s7 + $0x640] sm:$0xff]  ;;  %387 = vst [vmem:[%s4086_s8 + $0x318] sm:$0xff] %v386_v35  ;;  %v392_v38 = vld [vmem:[%s4081_s7 + $0x648] sm:$0xff] }
  0x4d   : > { %389 = vst [vmem:[%s4086_s8 + $0x320] sm:$0xff] %v388_v36  ;;  %391 = vst [vmem:[%s4086_s8 + $0x328] sm:$0xff] %v390_v37  ;;  %v394_v39 = vld [vmem:[%s4081_s7 + $0x650] sm:$0xff]  ;;  %v396_v40 = vld [vmem:[%s4081_s7 + $0x658] sm:$0xff] }
  0x4e   : > { %393 = vst [vmem:[%s4086_s8 + $0x330] sm:$0xff] %v392_v38  ;;  %395 = vst [vmem:[%s4086_s8 + $0x338] sm:$0xff] %v394_v39  ;;  %v398_v41 = vld [vmem:[%s4081_s7 + $0x660] sm:$0xff]  ;;  %v400_v42 = vld [vmem:[%s4081_s7 + $0x668] sm:$0xff] }
  0x4f   : > { %397 = vst [vmem:[%s4086_s8 + $0x340] sm:$0xff] %v396_v40  ;;  %v402_v43 = vld [vmem:[%s4081_s7 + $0x670] sm:$0xff]  ;;  %399 = vst [vmem:[%s4086_s8 + $0x348] sm:$0xff] %v398_v41  ;;  %v404_v44 = vld [vmem:[%s4081_s7 + $0x678] sm:$0xff] }
  0x50   : > { %401 = vst [vmem:[%s4086_s8 + $0x350] sm:$0xff] %v400_v42  ;;  %403 = vst [vmem:[%s4086_s8 + $0x358] sm:$0xff] %v402_v43  ;;  %v406_v45 = vld [vmem:[%s4081_s7 + $0x680] sm:$0xff]  ;;  %v410_v47 = vld [vmem:[%s4081_s7 + $0x6e8] sm:$0xff] }
  0x51   : > { %v408_v46 = vld [vmem:[%s4081_s7 + $0x6e0] sm:$0xff]  ;;  %405 = vst [vmem:[%s4086_s8 + $0x360] sm:$0xff] %v404_v44  ;;  %407 = vst [vmem:[%s4086_s8 + $0x368] sm:$0xff] %v406_v45  ;;  %v412_v48 = vld [vmem:[%s4081_s7 + $0x6f0] sm:$0xff] }
  0x52   : > { %409 = vst [vmem:[%s4086_s8 + $0x370] sm:$0xff] %v408_v46  ;;  %v414_v49 = vld [vmem:[%s4081_s7 + $0x6f8] sm:$0xff]  ;;  %411 = vst [vmem:[%s4086_s8 + $0x378] sm:$0xff] %v410_v47  ;;  %v416_v50 = vld [vmem:[%s4081_s7 + $0x700] sm:$0xff] }
  0x53   : > { %413 = vst [vmem:[%s4086_s8 + $0x380] sm:$0xff] %v412_v48  ;;  %415 = vst [vmem:[%s4086_s8 + $0x388] sm:$0xff] %v414_v49  ;;  %v418_v51 = vld [vmem:[%s4081_s7 + $0x708] sm:$0xff]  ;;  %v420_v52 = vld [vmem:[%s4081_s7 + $0x710] sm:$0xff] }
  0x54   : > { %417 = vst [vmem:[%s4086_s8 + $0x390] sm:$0xff] %v416_v50  ;;  %419 = vst [vmem:[%s4086_s8 + $0x398] sm:$0xff] %v418_v51  ;;  %v422_v53 = vld [vmem:[%s4081_s7 + $0x718] sm:$0xff]  ;;  %v424_v54 = vld [vmem:[%s4081_s7 + $0x720] sm:$0xff] }
  0x55   : > { %421 = vst [vmem:[%s4086_s8 + $0x3a0] sm:$0xff] %v420_v52  ;;  %v426_v55 = vld [vmem:[%s4081_s7 + $0x728] sm:$0xff]  ;;  %423 = vst [vmem:[%s4086_s8 + $0x3a8] sm:$0xff] %v422_v53  ;;  %v428_v56 = vld [vmem:[%s4081_s7 + $0x730] sm:$0xff] }
  0x56   : > { %425 = vst [vmem:[%s4086_s8 + $0x3b0] sm:$0xff] %v424_v54  ;;  %427 = vst [vmem:[%s4086_s8 + $0x3b8] sm:$0xff] %v426_v55  ;;  %v430_v57 = vld [vmem:[%s4081_s7 + $0x790] sm:$0xff]  ;;  %v432_v58 = vld [vmem:[%s4081_s7 + $0x798] sm:$0xff] }
  0x57   : > { %429 = vst [vmem:[%s4086_s8 + $0x3c0] sm:$0xff] %v428_v56  ;;  %431 = vst [vmem:[%s4086_s8 + $0x3c8] sm:$0xff] %v430_v57  ;;  %v434_v59 = vld [vmem:[%s4081_s7 + $0x7a0] sm:$0xff]  ;;  %v436_v60 = vld [vmem:[%s4081_s7 + $0x7a8] sm:$0xff] }
  0x58   : > { %433 = vst [vmem:[%s4086_s8 + $0x3d0] sm:$0xff] %v432_v58  ;;  %v438_v61 = vld [vmem:[%s4081_s7 + $0x7b0] sm:$0xff]  ;;  %435 = vst [vmem:[%s4086_s8 + $0x3d8] sm:$0xff] %v434_v59  ;;  %v440_v62 = vld [vmem:[%s4081_s7 + $0x7b8] sm:$0xff] }
  0x59   : > { %437 = vst [vmem:[%s4086_s8 + $0x3e0] sm:$0xff] %v436_v60  ;;  %439 = vst [vmem:[%s4086_s8 + $0x3e8] sm:$0xff] %v438_v61  ;;  %v442_v63 = vld [vmem:[%s4081_s7 + $0x7c0] sm:$0xff]  ;;  %v444_v0 = vld [vmem:[%s4081_s7 + $0x7c8] sm:$0xff] }
  0x5a   : > { %441 = vst [vmem:[%s4086_s8 + $0x3f0] sm:$0xff] %v440_v62  ;;  %443 = vst [vmem:[%s4086_s8 + $0x3f8] sm:$0xff] %v442_v63  ;;  %v446_v1 = vld [vmem:[%s4081_s7 + $0x7d0] sm:$0xff]  ;;  %v448_v2 = vld [vmem:[%s4081_s7 + $0x7d8] sm:$0xff] }
  0x5b   : > { %445 = vst [vmem:[%s4086_s8 + $0x400] sm:$0xff] %v444_v0  ;;  %v450_v3 = vld [vmem:[%s4081_s7 + $0x7e0] sm:$0xff]  ;;  %447 = vst [vmem:[%s4086_s8 + $0x408] sm:$0xff] %v446_v1  ;;  %v454_v5 = vld [vmem:[%s4081_s7 + $0x848] sm:$0xff] }
  0x5c   : > { %449 = vst [vmem:[%s4086_s8 + $0x410] sm:$0xff] %v448_v2  ;;  %451 = vst [vmem:[%s4086_s8 + $0x418] sm:$0xff] %v450_v3  ;;  %v452_v4 = vld [vmem:[%s4081_s7 + $0x840] sm:$0xff]  ;;  %v456_v6 = vld [vmem:[%s4081_s7 + $0x850] sm:$0xff] }
  0x5d   : > { %453 = vst [vmem:[%s4086_s8 + $0x420] sm:$0xff] %v452_v4  ;;  %455 = vst [vmem:[%s4086_s8 + $0x428] sm:$0xff] %v454_v5  ;;  %v458_v7 = vld [vmem:[%s4081_s7 + $0x858] sm:$0xff]  ;;  %v460_v8 = vld [vmem:[%s4081_s7 + $0x860] sm:$0xff] }
  0x5e   : > { %457 = vst [vmem:[%s4086_s8 + $0x430] sm:$0xff] %v456_v6  ;;  %v462_v9 = vld [vmem:[%s4081_s7 + $0x868] sm:$0xff]  ;;  %459 = vst [vmem:[%s4086_s8 + $0x438] sm:$0xff] %v458_v7  ;;  %v464_v10 = vld [vmem:[%s4081_s7 + $0x870] sm:$0xff] }
  0x5f   : > { %461 = vst [vmem:[%s4086_s8 + $0x440] sm:$0xff] %v460_v8  ;;  %463 = vst [vmem:[%s4086_s8 + $0x448] sm:$0xff] %v462_v9  ;;  %v466_v11 = vld [vmem:[%s4081_s7 + $0x878] sm:$0xff]  ;;  %v468_v12 = vld [vmem:[%s4081_s7 + $0x880] sm:$0xff] }
  0x60   : > { %465 = vst [vmem:[%s4086_s8 + $0x450] sm:$0xff] %v464_v10  ;;  %467 = vst [vmem:[%s4086_s8 + $0x458] sm:$0xff] %v466_v11  ;;  %v470_v13 = vld [vmem:[%s4081_s7 + $0x888] sm:$0xff]  ;;  %v472_v14 = vld [vmem:[%s4081_s7 + $0x890] sm:$0xff] }
  0x61   : > { %469 = vst [vmem:[%s4086_s8 + $0x460] sm:$0xff] %v468_v12  ;;  %v474_v15 = vld [vmem:[%s4081_s7 + $0x8f0] sm:$0xff]  ;;  %471 = vst [vmem:[%s4086_s8 + $0x468] sm:$0xff] %v470_v13  ;;  %v476_v16 = vld [vmem:[%s4081_s7 + $0x8f8] sm:$0xff] }
  0x62   : > { %473 = vst [vmem:[%s4086_s8 + $0x470] sm:$0xff] %v472_v14  ;;  %475 = vst [vmem:[%s4086_s8 + $0x478] sm:$0xff] %v474_v15  ;;  %v478_v17 = vld [vmem:[%s4081_s7 + $0x900] sm:$0xff]  ;;  %v480_v18 = vld [vmem:[%s4081_s7 + $0x908] sm:$0xff] }
  0x63   : > { %477 = vst [vmem:[%s4086_s8 + $0x480] sm:$0xff] %v476_v16  ;;  %479 = vst [vmem:[%s4086_s8 + $0x488] sm:$0xff] %v478_v17  ;;  %v482_v19 = vld [vmem:[%s4081_s7 + $0x910] sm:$0xff]  ;;  %v484_v20 = vld [vmem:[%s4081_s7 + $0x918] sm:$0xff] }
  0x64   : > { %481 = vst [vmem:[%s4086_s8 + $0x490] sm:$0xff] %v480_v18  ;;  %v486_v21 = vld [vmem:[%s4081_s7 + $0x920] sm:$0xff]  ;;  %483 = vst [vmem:[%s4086_s8 + $0x498] sm:$0xff] %v482_v19  ;;  %v488_v22 = vld [vmem:[%s4081_s7 + $0x928] sm:$0xff] }
  0x65   : > { %485 = vst [vmem:[%s4086_s8 + $0x4a0] sm:$0xff] %v484_v20  ;;  %487 = vst [vmem:[%s4086_s8 + $0x4a8] sm:$0xff] %v486_v21  ;;  %v490_v23 = vld [vmem:[%s4081_s7 + $0x930] sm:$0xff]  ;;  %v492_v24 = vld [vmem:[%s4081_s7 + $0x938] sm:$0xff] }
  0x66   : > { %489 = vst [vmem:[%s4086_s8 + $0x4b0] sm:$0xff] %v488_v22  ;;  %491 = vst [vmem:[%s4086_s8 + $0x4b8] sm:$0xff] %v490_v23  ;;  %v494_v25 = vld [vmem:[%s4081_s7 + $0x940] sm:$0xff]  ;;  %v498_v27 = vld [vmem:[%s4081_s7 + $0x9a8] sm:$0xff] }
  0x67   : > { %493 = vst [vmem:[%s4086_s8 + $0x4c0] sm:$0xff] %v492_v24  ;;  %v496_v26 = vld [vmem:[%s4081_s7 + $0x9a0] sm:$0xff]  ;;  %495 = vst [vmem:[%s4086_s8 + $0x4c8] sm:$0xff] %v494_v25  ;;  %v500_v28 = vld [vmem:[%s4081_s7 + $0x9b0] sm:$0xff] }
  0x68   : > { %497 = vst [vmem:[%s4086_s8 + $0x4d0] sm:$0xff] %v496_v26  ;;  %499 = vst [vmem:[%s4086_s8 + $0x4d8] sm:$0xff] %v498_v27  ;;  %v502_v29 = vld [vmem:[%s4081_s7 + $0x9b8] sm:$0xff]  ;;  %v504_v30 = vld [vmem:[%s4081_s7 + $0x9c0] sm:$0xff] }
  0x69   : > { %501 = vst [vmem:[%s4086_s8 + $0x4e0] sm:$0xff] %v500_v28  ;;  %503 = vst [vmem:[%s4086_s8 + $0x4e8] sm:$0xff] %v502_v29  ;;  %v506_v31 = vld [vmem:[%s4081_s7 + $0x9c8] sm:$0xff]  ;;  %v508_v32 = vld [vmem:[%s4081_s7 + $0x9d0] sm:$0xff] }
  0x6a   : > { %505 = vst [vmem:[%s4086_s8 + $0x4f0] sm:$0xff] %v504_v30  ;;  %v510_v33 = vld [vmem:[%s4081_s7 + $0x9d8] sm:$0xff]  ;;  %507 = vst [vmem:[%s4086_s8 + $0x4f8] sm:$0xff] %v506_v31  ;;  %v512_v34 = vld [vmem:[%s4081_s7 + $0x9e0] sm:$0xff] }
  0x6b   : > { %509 = vst [vmem:[%s4086_s8 + $0x500] sm:$0xff] %v508_v32  ;;  %511 = vst [vmem:[%s4086_s8 + $0x508] sm:$0xff] %v510_v33  ;;  %v514_v35 = vld [vmem:[%s4081_s7 + $0x9e8] sm:$0xff]  ;;  %v516_v36 = vld [vmem:[%s4081_s7 + $0x9f0] sm:$0xff] }
  0x6c   : > { %513 = vst [vmem:[%s4086_s8 + $0x510] sm:$0xff] %v512_v34  ;;  %515 = vst [vmem:[%s4086_s8 + $0x518] sm:$0xff] %v514_v35  ;;  %v518_v37 = vld [vmem:[%s4081_s7 + $0xa50] sm:$0xff]  ;;  %v520_v38 = vld [vmem:[%s4081_s7 + $0xa58] sm:$0xff] }
  0x6d   : > { %517 = vst [vmem:[%s4086_s8 + $0x520] sm:$0xff] %v516_v36  ;;  %v522_v39 = vld [vmem:[%s4081_s7 + $0xa60] sm:$0xff]  ;;  %519 = vst [vmem:[%s4086_s8 + $0x528] sm:$0xff] %v518_v37  ;;  %v524_v40 = vld [vmem:[%s4081_s7 + $0xa68] sm:$0xff] }
  0x6e   : > { %521 = vst [vmem:[%s4086_s8 + $0x530] sm:$0xff] %v520_v38  ;;  %523 = vst [vmem:[%s4086_s8 + $0x538] sm:$0xff] %v522_v39  ;;  %v526_v41 = vld [vmem:[%s4081_s7 + $0xa70] sm:$0xff]  ;;  %v528_v42 = vld [vmem:[%s4081_s7 + $0xa78] sm:$0xff] }
  0x6f   : > { %525 = vst [vmem:[%s4086_s8 + $0x540] sm:$0xff] %v524_v40  ;;  %527 = vst [vmem:[%s4086_s8 + $0x548] sm:$0xff] %v526_v41  ;;  %v530_v43 = vld [vmem:[%s4081_s7 + $0xa80] sm:$0xff]  ;;  %v532_v44 = vld [vmem:[%s4081_s7 + $0xa88] sm:$0xff] }
  0x70   : > { %529 = vst [vmem:[%s4086_s8 + $0x550] sm:$0xff] %v528_v42  ;;  %v534_v45 = vld [vmem:[%s4081_s7 + $0xa90] sm:$0xff]  ;;  %531 = vst [vmem:[%s4086_s8 + $0x558] sm:$0xff] %v530_v43  ;;  %v536_v46 = vld [vmem:[%s4081_s7 + $0xa98] sm:$0xff] }
  0x71   : > { %533 = vst [vmem:[%s4086_s8 + $0x560] sm:$0xff] %v532_v44  ;;  %535 = vst [vmem:[%s4086_s8 + $0x568] sm:$0xff] %v534_v45  ;;  %v538_v47 = vld [vmem:[%s4081_s7 + $0xaa0] sm:$0xff]  ;;  %v542_v49 = vld [vmem:[%s4081_s7 + $0xb08] sm:$0xff] }
  0x72   : > { %v540_v48 = vld [vmem:[%s4081_s7 + $0xb00] sm:$0xff]  ;;  %537 = vst [vmem:[%s4086_s8 + $0x570] sm:$0xff] %v536_v46  ;;  %539 = vst [vmem:[%s4086_s8 + $0x578] sm:$0xff] %v538_v47  ;;  %v544_v50 = vld [vmem:[%s4081_s7 + $0xb10] sm:$0xff] }
  0x73   : > { %541 = vst [vmem:[%s4086_s8 + $0x580] sm:$0xff] %v540_v48  ;;  %v546_v51 = vld [vmem:[%s4081_s7 + $0xb18] sm:$0xff]  ;;  %543 = vst [vmem:[%s4086_s8 + $0x588] sm:$0xff] %v542_v49  ;;  %v548_v52 = vld [vmem:[%s4081_s7 + $0xb20] sm:$0xff] }
  0x74   : > { %545 = vst [vmem:[%s4086_s8 + $0x590] sm:$0xff] %v544_v50  ;;  %547 = vst [vmem:[%s4086_s8 + $0x598] sm:$0xff] %v546_v51  ;;  %v550_v53 = vld [vmem:[%s4081_s7 + $0xb28] sm:$0xff]  ;;  %v552_v54 = vld [vmem:[%s4081_s7 + $0xb30] sm:$0xff] }
  0x75   : > { %549 = vst [vmem:[%s4086_s8 + $0x5a0] sm:$0xff] %v548_v52  ;;  %551 = vst [vmem:[%s4086_s8 + $0x5a8] sm:$0xff] %v550_v53  ;;  %v554_v55 = vld [vmem:[%s4081_s7 + $0xb38] sm:$0xff]  ;;  %v556_v56 = vld [vmem:[%s4081_s7 + $0xb40] sm:$0xff] }
  0x76   : > { %553 = vst [vmem:[%s4086_s8 + $0x5b0] sm:$0xff] %v552_v54  ;;  %v558_v57 = vld [vmem:[%s4081_s7 + $0xb48] sm:$0xff]  ;;  %555 = vst [vmem:[%s4086_s8 + $0x5b8] sm:$0xff] %v554_v55  ;;  %v560_v58 = vld [vmem:[%s4081_s7 + $0xb50] sm:$0xff] }
  0x77   : > { %557 = vst [vmem:[%s4086_s8 + $0x5c0] sm:$0xff] %v556_v56  ;;  %559 = vst [vmem:[%s4086_s8 + $0x5c8] sm:$0xff] %v558_v57  ;;  %v562_v59 = vld [vmem:[%s4081_s7 + $0xbb0] sm:$0xff]  ;;  %v564_v60 = vld [vmem:[%s4081_s7 + $0xbb8] sm:$0xff] }
  0x78   : > { %561 = vst [vmem:[%s4086_s8 + $0x5d0] sm:$0xff] %v560_v58  ;;  %563 = vst [vmem:[%s4086_s8 + $0x5d8] sm:$0xff] %v562_v59  ;;  %v566_v61 = vld [vmem:[%s4081_s7 + $0xbc0] sm:$0xff]  ;;  %v568_v62 = vld [vmem:[%s4081_s7 + $0xbc8] sm:$0xff] }
  0x79   : > { %565 = vst [vmem:[%s4086_s8 + $0x5e0] sm:$0xff] %v564_v60  ;;  %v570_v63 = vld [vmem:[%s4081_s7 + $0xbd0] sm:$0xff]  ;;  %567 = vst [vmem:[%s4086_s8 + $0x5e8] sm:$0xff] %v566_v61  ;;  %v572_v0 = vld [vmem:[%s4081_s7 + $0xbd8] sm:$0xff] }
  0x7a   : > { %569 = vst [vmem:[%s4086_s8 + $0x5f0] sm:$0xff] %v568_v62  ;;  %571 = vst [vmem:[%s4086_s8 + $0x5f8] sm:$0xff] %v570_v63  ;;  %v574_v1 = vld [vmem:[%s4081_s7 + $0xbe0] sm:$0xff]  ;;  %v576_v2 = vld [vmem:[%s4081_s7 + $0xbe8] sm:$0xff] }
  0x7b   : > { %573 = vst [vmem:[%s4086_s8 + $0x600] sm:$0xff] %v572_v0  ;;  %575 = vst [vmem:[%s4086_s8 + $0x608] sm:$0xff] %v574_v1  ;;  %v578_v3 = vld [vmem:[%s4081_s7 + $0xbf0] sm:$0xff]  ;;  %v580_v4 = vld [vmem:[%s4081_s7 + $0xbf8] sm:$0xff] }
  0x7c   : > { %577 = vst [vmem:[%s4086_s8 + $0x610] sm:$0xff] %v576_v2  ;;  %v582_v5 = vld [vmem:[%s4081_s7 + $0xc00] sm:$0xff]  ;;  %579 = vst [vmem:[%s4086_s8 + $0x618] sm:$0xff] %v578_v3  ;;  %v586_v7 = vld [vmem:[%s4081_s7 + $0xc68] sm:$0xff] }
  0x7d   : > { %581 = vst [vmem:[%s4086_s8 + $0x620] sm:$0xff] %v580_v4  ;;  %583 = vst [vmem:[%s4086_s8 + $0x628] sm:$0xff] %v582_v5  ;;  %v584_v6 = vld [vmem:[%s4081_s7 + $0xc60] sm:$0xff]  ;;  %v588_v8 = vld [vmem:[%s4081_s7 + $0xc70] sm:$0xff] }
  0x7e   : > { %585 = vst [vmem:[%s4086_s8 + $0x630] sm:$0xff] %v584_v6  ;;  %587 = vst [vmem:[%s4086_s8 + $0x638] sm:$0xff] %v586_v7  ;;  %v590_v9 = vld [vmem:[%s4081_s7 + $0xc78] sm:$0xff]  ;;  %v592_v10 = vld [vmem:[%s4081_s7 + $0xc80] sm:$0xff] }
  0x7f   : > { %589 = vst [vmem:[%s4086_s8 + $0x640] sm:$0xff] %v588_v8  ;;  %v594_v11 = vld [vmem:[%s4081_s7 + $0xc88] sm:$0xff]  ;;  %591 = vst [vmem:[%s4086_s8 + $0x648] sm:$0xff] %v590_v9  ;;  %v596_v12 = vld [vmem:[%s4081_s7 + $0xc90] sm:$0xff] }
  0x80   : > { %593 = vst [vmem:[%s4086_s8 + $0x650] sm:$0xff] %v592_v10  ;;  %595 = vst [vmem:[%s4086_s8 + $0x658] sm:$0xff] %v594_v11  ;;  %v598_v13 = vld [vmem:[%s4081_s7 + $0xc98] sm:$0xff]  ;;  %v600_v14 = vld [vmem:[%s4081_s7 + $0xca0] sm:$0xff] }
  0x81   : > { %597 = vst [vmem:[%s4086_s8 + $0x660] sm:$0xff] %v596_v12  ;;  %599 = vst [vmem:[%s4086_s8 + $0x668] sm:$0xff] %v598_v13  ;;  %v602_v15 = vld [vmem:[%s4081_s7 + $0xca8] sm:$0xff]  ;;  %v604_v16 = vld [vmem:[%s4081_s7 + $0xcb0] sm:$0xff] }
  0x82   : > { %601 = vst [vmem:[%s4086_s8 + $0x670] sm:$0xff] %v600_v14  ;;  %v606_v17 = vld [vmem:[%s4081_s7 + $0xd10] sm:$0xff]  ;;  %603 = vst [vmem:[%s4086_s8 + $0x678] sm:$0xff] %v602_v15  ;;  %v608_v18 = vld [vmem:[%s4081_s7 + $0xd18] sm:$0xff] }
  0x83   : > { %605 = vst [vmem:[%s4086_s8 + $0x680] sm:$0xff] %v604_v16  ;;  %607 = vst [vmem:[%s4086_s8 + $0x688] sm:$0xff] %v606_v17  ;;  %v610_v19 = vld [vmem:[%s4081_s7 + $0xd20] sm:$0xff]  ;;  %v612_v20 = vld [vmem:[%s4081_s7 + $0xd28] sm:$0xff] }
  0x84   : > { %609 = vst [vmem:[%s4086_s8 + $0x690] sm:$0xff] %v608_v18  ;;  %611 = vst [vmem:[%s4086_s8 + $0x698] sm:$0xff] %v610_v19  ;;  %v614_v21 = vld [vmem:[%s4081_s7 + $0xd30] sm:$0xff]  ;;  %v616_v22 = vld [vmem:[%s4081_s7 + $0xd38] sm:$0xff] }
  0x85   : > { %613 = vst [vmem:[%s4086_s8 + $0x6a0] sm:$0xff] %v612_v20  ;;  %v618_v23 = vld [vmem:[%s4081_s7 + $0xd40] sm:$0xff]  ;;  %615 = vst [vmem:[%s4086_s8 + $0x6a8] sm:$0xff] %v614_v21  ;;  %v620_v24 = vld [vmem:[%s4081_s7 + $0xd48] sm:$0xff] }
  0x86   : > { %617 = vst [vmem:[%s4086_s8 + $0x6b0] sm:$0xff] %v616_v22  ;;  %619 = vst [vmem:[%s4086_s8 + $0x6b8] sm:$0xff] %v618_v23  ;;  %v622_v25 = vld [vmem:[%s4081_s7 + $0xd50] sm:$0xff]  ;;  %v624_v26 = vld [vmem:[%s4081_s7 + $0xd58] sm:$0xff] }
  0x87   : > { %621 = vst [vmem:[%s4086_s8 + $0x6c0] sm:$0xff] %v620_v24  ;;  %623 = vst [vmem:[%s4086_s8 + $0x6c8] sm:$0xff] %v622_v25  ;;  %v626_v27 = vld [vmem:[%s4081_s7 + $0xd60] sm:$0xff]  ;;  %v630_v29 = vld [vmem:[%s4081_s7 + $0xdc8] sm:$0xff] }
  0x88   : > { %625 = vst [vmem:[%s4086_s8 + $0x6d0] sm:$0xff] %v624_v26  ;;  %v628_v28 = vld [vmem:[%s4081_s7 + $0xdc0] sm:$0xff]  ;;  %627 = vst [vmem:[%s4086_s8 + $0x6d8] sm:$0xff] %v626_v27  ;;  %v632_v30 = vld [vmem:[%s4081_s7 + $0xdd0] sm:$0xff] }
  0x89   : > { %629 = vst [vmem:[%s4086_s8 + $0x6e0] sm:$0xff] %v628_v28  ;;  %631 = vst [vmem:[%s4086_s8 + $0x6e8] sm:$0xff] %v630_v29  ;;  %v634_v31 = vld [vmem:[%s4081_s7 + $0xdd8] sm:$0xff]  ;;  %v636_v32 = vld [vmem:[%s4081_s7 + $0xde0] sm:$0xff] }
  0x8a   : > { %633 = vst [vmem:[%s4086_s8 + $0x6f0] sm:$0xff] %v632_v30  ;;  %635 = vst [vmem:[%s4086_s8 + $0x6f8] sm:$0xff] %v634_v31  ;;  %v638_v33 = vld [vmem:[%s4081_s7 + $0xde8] sm:$0xff]  ;;  %v640_v34 = vld [vmem:[%s4081_s7 + $0xdf0] sm:$0xff] }
  0x8b   : > { %637 = vst [vmem:[%s4086_s8 + $0x700] sm:$0xff] %v636_v32  ;;  %v642_v35 = vld [vmem:[%s4081_s7 + $0xdf8] sm:$0xff]  ;;  %639 = vst [vmem:[%s4086_s8 + $0x708] sm:$0xff] %v638_v33  ;;  %v644_v36 = vld [vmem:[%s4081_s7 + $0xe00] sm:$0xff] }
  0x8c   : > { %641 = vst [vmem:[%s4086_s8 + $0x710] sm:$0xff] %v640_v34  ;;  %643 = vst [vmem:[%s4086_s8 + $0x718] sm:$0xff] %v642_v35  ;;  %v646_v37 = vld [vmem:[%s4081_s7 + $0xe08] sm:$0xff]  ;;  %v648_v38 = vld [vmem:[%s4081_s7 + $0xe10] sm:$0xff] }
  0x8d   : > { %645 = vst [vmem:[%s4086_s8 + $0x720] sm:$0xff] %v644_v36  ;;  %647 = vst [vmem:[%s4086_s8 + $0x728] sm:$0xff] %v646_v37  ;;  %v650_v39 = vld [vmem:[%s4081_s7 + $0xe70] sm:$0xff]  ;;  %v652_v40 = vld [vmem:[%s4081_s7 + $0xe78] sm:$0xff] }
  0x8e   : > { %649 = vst [vmem:[%s4086_s8 + $0x730] sm:$0xff] %v648_v38  ;;  %v654_v41 = vld [vmem:[%s4081_s7 + $0xe80] sm:$0xff]  ;;  %651 = vst [vmem:[%s4086_s8 + $0x738] sm:$0xff] %v650_v39  ;;  %v656_v42 = vld [vmem:[%s4081_s7 + $0xe88] sm:$0xff] }
  0x8f   : > { %653 = vst [vmem:[%s4086_s8 + $0x740] sm:$0xff] %v652_v40  ;;  %655 = vst [vmem:[%s4086_s8 + $0x748] sm:$0xff] %v654_v41  ;;  %v658_v43 = vld [vmem:[%s4081_s7 + $0xe90] sm:$0xff]  ;;  %v660_v44 = vld [vmem:[%s4081_s7 + $0xe98] sm:$0xff] }
  0x90   : > { %657 = vst [vmem:[%s4086_s8 + $0x750] sm:$0xff] %v656_v42  ;;  %659 = vst [vmem:[%s4086_s8 + $0x758] sm:$0xff] %v658_v43  ;;  %v662_v45 = vld [vmem:[%s4081_s7 + $0xea0] sm:$0xff]  ;;  %v664_v46 = vld [vmem:[%s4081_s7 + $0xea8] sm:$0xff] }
  0x91   : > { %661 = vst [vmem:[%s4086_s8 + $0x760] sm:$0xff] %v660_v44  ;;  %v666_v47 = vld [vmem:[%s4081_s7 + $0xeb0] sm:$0xff]  ;;  %663 = vst [vmem:[%s4086_s8 + $0x768] sm:$0xff] %v662_v45  ;;  %v668_v48 = vld [vmem:[%s4081_s7 + $0xeb8] sm:$0xff] }
  0x92   : > { %665 = vst [vmem:[%s4086_s8 + $0x770] sm:$0xff] %v664_v46  ;;  %667 = vst [vmem:[%s4086_s8 + $0x778] sm:$0xff] %v666_v47  ;;  %v670_v49 = vld [vmem:[%s4081_s7 + $0xec0] sm:$0xff]  ;;  %v674_v51 = vld [vmem:[%s4081_s7 + $0xf28] sm:$0xff] }
  0x93   : > { %v672_v50 = vld [vmem:[%s4081_s7 + $0xf20] sm:$0xff]  ;;  %669 = vst [vmem:[%s4086_s8 + $0x780] sm:$0xff] %v668_v48  ;;  %671 = vst [vmem:[%s4086_s8 + $0x788] sm:$0xff] %v670_v49  ;;  %v676_v52 = vld [vmem:[%s4081_s7 + $0xf30] sm:$0xff] }
  0x94   : > { %673 = vst [vmem:[%s4086_s8 + $0x790] sm:$0xff] %v672_v50  ;;  %v678_v53 = vld [vmem:[%s4081_s7 + $0xf38] sm:$0xff]  ;;  %675 = vst [vmem:[%s4086_s8 + $0x798] sm:$0xff] %v674_v51  ;;  %v680_v54 = vld [vmem:[%s4081_s7 + $0xf40] sm:$0xff] }
  0x95   : > { %677 = vst [vmem:[%s4086_s8 + $0x7a0] sm:$0xff] %v676_v52  ;;  %679 = vst [vmem:[%s4086_s8 + $0x7a8] sm:$0xff] %v678_v53  ;;  %v682_v55 = vld [vmem:[%s4081_s7 + $0xf48] sm:$0xff]  ;;  %v684_v56 = vld [vmem:[%s4081_s7 + $0xf50] sm:$0xff] }
  0x96   : > { %681 = vst [vmem:[%s4086_s8 + $0x7b0] sm:$0xff] %v680_v54  ;;  %683 = vst [vmem:[%s4086_s8 + $0x7b8] sm:$0xff] %v682_v55  ;;  %v686_v57 = vld [vmem:[%s4081_s7 + $0xf58] sm:$0xff]  ;;  %v688_v58 = vld [vmem:[%s4081_s7 + $0xf60] sm:$0xff] }
  0x97   : > { %685 = vst [vmem:[%s4086_s8 + $0x7c0] sm:$0xff] %v684_v56  ;;  %v690_v59 = vld [vmem:[%s4081_s7 + $0xf68] sm:$0xff]  ;;  %687 = vst [vmem:[%s4086_s8 + $0x7c8] sm:$0xff] %v686_v57  ;;  %v692_v60 = vld [vmem:[%s4081_s7 + $0xf70] sm:$0xff] }
  0x98   : > { %689 = vst [vmem:[%s4086_s8 + $0x7d0] sm:$0xff] %v688_v58  ;;  %691 = vst [vmem:[%s4086_s8 + $0x7d8] sm:$0xff] %v690_v59  ;;  %v694_v61 = vld [vmem:[%s4081_s7 + $0xfd0] sm:$0xff]  ;;  %v696_v62 = vld [vmem:[%s4081_s7 + $0xfd8] sm:$0xff] }
  0x99   : > { %693 = vst [vmem:[%s4086_s8 + $0x7e0] sm:$0xff] %v692_v60  ;;  %695 = vst [vmem:[%s4086_s8 + $0x7e8] sm:$0xff] %v694_v61  ;;  %v698_v63 = vld [vmem:[%s4081_s7 + $0xfe0] sm:$0xff]  ;;  %v700_v0 = vld [vmem:[%s4081_s7 + $0xfe8] sm:$0xff] }
  0x9a   : > { %697 = vst [vmem:[%s4086_s8 + $0x7f0] sm:$0xff] %v696_v62  ;;  %v702_v1 = vld [vmem:[%s4081_s7 + $0xff0] sm:$0xff]  ;;  %699 = vst [vmem:[%s4086_s8 + $0x7f8] sm:$0xff] %v698_v63  ;;  %v704_v2 = vld [vmem:[%s4081_s7 + $0xff8] sm:$0xff] }
  0x9b   : > { %701 = vst [vmem:[%s4086_s8 + $0x800] sm:$0xff] %v700_v0  ;;  %703 = vst [vmem:[%s4086_s8 + $0x808] sm:$0xff] %v702_v1  ;;  %v706_v3 = vld [vmem:[%s4081_s7 + $0x1000] sm:$0xff]  ;;  %v708_v4 = vld [vmem:[%s4081_s7 + $0x1008] sm:$0xff] }
  0x9c   : > { %705 = vst [vmem:[%s4086_s8 + $0x810] sm:$0xff] %v704_v2  ;;  %707 = vst [vmem:[%s4086_s8 + $0x818] sm:$0xff] %v706_v3  ;;  %v710_v5 = vld [vmem:[%s4081_s7 + $0x1010] sm:$0xff]  ;;  %v712_v6 = vld [vmem:[%s4081_s7 + $0x1018] sm:$0xff] }
  0x9d   : > { %709 = vst [vmem:[%s4086_s8 + $0x820] sm:$0xff] %v708_v4  ;;  %v714_v7 = vld [vmem:[%s4081_s7 + $0x1020] sm:$0xff]  ;;  %711 = vst [vmem:[%s4086_s8 + $0x828] sm:$0xff] %v710_v5  ;;  %v718_v9 = vld [vmem:[%s4081_s7 + $0x1088] sm:$0xff] }
  0x9e   : > { %713 = vst [vmem:[%s4086_s8 + $0x830] sm:$0xff] %v712_v6  ;;  %715 = vst [vmem:[%s4086_s8 + $0x838] sm:$0xff] %v714_v7  ;;  %v716_v8 = vld [vmem:[%s4081_s7 + $0x1080] sm:$0xff]  ;;  %v720_v10 = vld [vmem:[%s4081_s7 + $0x1090] sm:$0xff] }
  0x9f   : > { %717 = vst [vmem:[%s4086_s8 + $0x840] sm:$0xff] %v716_v8  ;;  %719 = vst [vmem:[%s4086_s8 + $0x848] sm:$0xff] %v718_v9  ;;  %v722_v11 = vld [vmem:[%s4081_s7 + $0x1098] sm:$0xff]  ;;  %v724_v12 = vld [vmem:[%s4081_s7 + $0x10a0] sm:$0xff] }
  0xa0   : > { %721 = vst [vmem:[%s4086_s8 + $0x850] sm:$0xff] %v720_v10  ;;  %v726_v13 = vld [vmem:[%s4081_s7 + $0x10a8] sm:$0xff]  ;;  %723 = vst [vmem:[%s4086_s8 + $0x858] sm:$0xff] %v722_v11  ;;  %v728_v14 = vld [vmem:[%s4081_s7 + $0x10b0] sm:$0xff] }
  0xa1   : > { %725 = vst [vmem:[%s4086_s8 + $0x860] sm:$0xff] %v724_v12  ;;  %727 = vst [vmem:[%s4086_s8 + $0x868] sm:$0xff] %v726_v13  ;;  %v730_v15 = vld [vmem:[%s4081_s7 + $0x10b8] sm:$0xff]  ;;  %v732_v16 = vld [vmem:[%s4081_s7 + $0x10c0] sm:$0xff] }
  0xa2   : > { %729 = vst [vmem:[%s4086_s8 + $0x870] sm:$0xff] %v728_v14  ;;  %731 = vst [vmem:[%s4086_s8 + $0x878] sm:$0xff] %v730_v15  ;;  %v734_v17 = vld [vmem:[%s4081_s7 + $0x10c8] sm:$0xff]  ;;  %v736_v18 = vld [vmem:[%s4081_s7 + $0x10d0] sm:$0xff] }
  0xa3   : > { %733 = vst [vmem:[%s4086_s8 + $0x880] sm:$0xff] %v732_v16  ;;  %v738_v19 = vld [vmem:[%s4081_s7 + $0x1130] sm:$0xff]  ;;  %735 = vst [vmem:[%s4086_s8 + $0x888] sm:$0xff] %v734_v17  ;;  %v740_v20 = vld [vmem:[%s4081_s7 + $0x1138] sm:$0xff] }
  0xa4   : > { %737 = vst [vmem:[%s4086_s8 + $0x890] sm:$0xff] %v736_v18  ;;  %739 = vst [vmem:[%s4086_s8 + $0x898] sm:$0xff] %v738_v19  ;;  %v742_v21 = vld [vmem:[%s4081_s7 + $0x1140] sm:$0xff]  ;;  %v744_v22 = vld [vmem:[%s4081_s7 + $0x1148] sm:$0xff] }
  0xa5   : > { %741 = vst [vmem:[%s4086_s8 + $0x8a0] sm:$0xff] %v740_v20  ;;  %743 = vst [vmem:[%s4086_s8 + $0x8a8] sm:$0xff] %v742_v21  ;;  %v746_v23 = vld [vmem:[%s4081_s7 + $0x1150] sm:$0xff]  ;;  %v748_v24 = vld [vmem:[%s4081_s7 + $0x1158] sm:$0xff] }
  0xa6   : > { %745 = vst [vmem:[%s4086_s8 + $0x8b0] sm:$0xff] %v744_v22  ;;  %v750_v25 = vld [vmem:[%s4081_s7 + $0x1160] sm:$0xff]  ;;  %747 = vst [vmem:[%s4086_s8 + $0x8b8] sm:$0xff] %v746_v23  ;;  %v752_v26 = vld [vmem:[%s4081_s7 + $0x1168] sm:$0xff] }
  0xa7   : > { %749 = vst [vmem:[%s4086_s8 + $0x8c0] sm:$0xff] %v748_v24  ;;  %751 = vst [vmem:[%s4086_s8 + $0x8c8] sm:$0xff] %v750_v25  ;;  %v754_v27 = vld [vmem:[%s4081_s7 + $0x1170] sm:$0xff]  ;;  %v756_v28 = vld [vmem:[%s4081_s7 + $0x1178] sm:$0xff] }
  0xa8   : > { %753 = vst [vmem:[%s4086_s8 + $0x8d0] sm:$0xff] %v752_v26  ;;  %755 = vst [vmem:[%s4086_s8 + $0x8d8] sm:$0xff] %v754_v27  ;;  %v758_v29 = vld [vmem:[%s4081_s7 + $0x1180] sm:$0xff]  ;;  %v762_v31 = vld [vmem:[%s4081_s7 + $0x11e8] sm:$0xff] }
  0xa9   : > { %757 = vst [vmem:[%s4086_s8 + $0x8e0] sm:$0xff] %v756_v28  ;;  %v760_v30 = vld [vmem:[%s4081_s7 + $0x11e0] sm:$0xff]  ;;  %759 = vst [vmem:[%s4086_s8 + $0x8e8] sm:$0xff] %v758_v29  ;;  %v764_v32 = vld [vmem:[%s4081_s7 + $0x11f0] sm:$0xff] }
  0xaa   : > { %761 = vst [vmem:[%s4086_s8 + $0x8f0] sm:$0xff] %v760_v30  ;;  %763 = vst [vmem:[%s4086_s8 + $0x8f8] sm:$0xff] %v762_v31  ;;  %v766_v33 = vld [vmem:[%s4081_s7 + $0x11f8] sm:$0xff]  ;;  %v768_v34 = vld [vmem:[%s4081_s7 + $0x1200] sm:$0xff] }
  0xab   : > { %765 = vst [vmem:[%s4086_s8 + $0x900] sm:$0xff] %v764_v32  ;;  %767 = vst [vmem:[%s4086_s8 + $0x908] sm:$0xff] %v766_v33  ;;  %v770_v35 = vld [vmem:[%s4081_s7 + $0x1208] sm:$0xff]  ;;  %v772_v36 = vld [vmem:[%s4081_s7 + $0x1210] sm:$0xff] }
  0xac   : > { %769 = vst [vmem:[%s4086_s8 + $0x910] sm:$0xff] %v768_v34  ;;  %v774_v37 = vld [vmem:[%s4081_s7 + $0x1218] sm:$0xff]  ;;  %771 = vst [vmem:[%s4086_s8 + $0x918] sm:$0xff] %v770_v35  ;;  %v776_v38 = vld [vmem:[%s4081_s7 + $0x1220] sm:$0xff] }
  0xad   : > { %773 = vst [vmem:[%s4086_s8 + $0x920] sm:$0xff] %v772_v36  ;;  %775 = vst [vmem:[%s4086_s8 + $0x928] sm:$0xff] %v774_v37  ;;  %v778_v39 = vld [vmem:[%s4081_s7 + $0x1228] sm:$0xff]  ;;  %v780_v40 = vld [vmem:[%s4081_s7 + $0x1230] sm:$0xff] }
  0xae   : > { %777 = vst [vmem:[%s4086_s8 + $0x930] sm:$0xff] %v776_v38  ;;  %779 = vst [vmem:[%s4086_s8 + $0x938] sm:$0xff] %v778_v39  ;;  %v782_v41 = vld [vmem:[%s4081_s7 + $0x1290] sm:$0xff]  ;;  %v784_v42 = vld [vmem:[%s4081_s7 + $0x1298] sm:$0xff] }
  0xaf   : > { %781 = vst [vmem:[%s4086_s8 + $0x940] sm:$0xff] %v780_v40  ;;  %v786_v43 = vld [vmem:[%s4081_s7 + $0x12a0] sm:$0xff]  ;;  %783 = vst [vmem:[%s4086_s8 + $0x948] sm:$0xff] %v782_v41  ;;  %v788_v44 = vld [vmem:[%s4081_s7 + $0x12a8] sm:$0xff] }
  0xb0   : > { %785 = vst [vmem:[%s4086_s8 + $0x950] sm:$0xff] %v784_v42  ;;  %787 = vst [vmem:[%s4086_s8 + $0x958] sm:$0xff] %v786_v43  ;;  %v790_v45 = vld [vmem:[%s4081_s7 + $0x12b0] sm:$0xff]  ;;  %v792_v46 = vld [vmem:[%s4081_s7 + $0x12b8] sm:$0xff] }
  0xb1   : > { %789 = vst [vmem:[%s4086_s8 + $0x960] sm:$0xff] %v788_v44  ;;  %791 = vst [vmem:[%s4086_s8 + $0x968] sm:$0xff] %v790_v45  ;;  %v794_v47 = vld [vmem:[%s4081_s7 + $0x12c0] sm:$0xff]  ;;  %v796_v48 = vld [vmem:[%s4081_s7 + $0x12c8] sm:$0xff] }
  0xb2   : > { %793 = vst [vmem:[%s4086_s8 + $0x970] sm:$0xff] %v792_v46  ;;  %v798_v49 = vld [vmem:[%s4081_s7 + $0x12d0] sm:$0xff]  ;;  %795 = vst [vmem:[%s4086_s8 + $0x978] sm:$0xff] %v794_v47  ;;  %v800_v50 = vld [vmem:[%s4081_s7 + $0x12d8] sm:$0xff] }
  0xb3   : > { %797 = vst [vmem:[%s4086_s8 + $0x980] sm:$0xff] %v796_v48  ;;  %799 = vst [vmem:[%s4086_s8 + $0x988] sm:$0xff] %v798_v49  ;;  %v802_v51 = vld [vmem:[%s4081_s7 + $0x12e0] sm:$0xff]  ;;  %v806_v53 = vld [vmem:[%s4081_s7 + $0x1348] sm:$0xff] }
  0xb4   : > { %v804_v52 = vld [vmem:[%s4081_s7 + $0x1340] sm:$0xff]  ;;  %801 = vst [vmem:[%s4086_s8 + $0x990] sm:$0xff] %v800_v50  ;;  %803 = vst [vmem:[%s4086_s8 + $0x998] sm:$0xff] %v802_v51  ;;  %v808_v54 = vld [vmem:[%s4081_s7 + $0x1350] sm:$0xff] }
  0xb5   : > { %805 = vst [vmem:[%s4086_s8 + $0x9a0] sm:$0xff] %v804_v52  ;;  %v810_v55 = vld [vmem:[%s4081_s7 + $0x1358] sm:$0xff]  ;;  %807 = vst [vmem:[%s4086_s8 + $0x9a8] sm:$0xff] %v806_v53  ;;  %v812_v56 = vld [vmem:[%s4081_s7 + $0x1360] sm:$0xff] }
  0xb6   : > { %809 = vst [vmem:[%s4086_s8 + $0x9b0] sm:$0xff] %v808_v54  ;;  %811 = vst [vmem:[%s4086_s8 + $0x9b8] sm:$0xff] %v810_v55  ;;  %v814_v57 = vld [vmem:[%s4081_s7 + $0x1368] sm:$0xff]  ;;  %v816_v58 = vld [vmem:[%s4081_s7 + $0x1370] sm:$0xff] }
  0xb7   : > { %813 = vst [vmem:[%s4086_s8 + $0x9c0] sm:$0xff] %v812_v56  ;;  %815 = vst [vmem:[%s4086_s8 + $0x9c8] sm:$0xff] %v814_v57  ;;  %v818_v59 = vld [vmem:[%s4081_s7 + $0x1378] sm:$0xff]  ;;  %v820_v60 = vld [vmem:[%s4081_s7 + $0x1380] sm:$0xff] }
  0xb8   : > { %817 = vst [vmem:[%s4086_s8 + $0x9d0] sm:$0xff] %v816_v58  ;;  %v822_v61 = vld [vmem:[%s4081_s7 + $0x1388] sm:$0xff]  ;;  %819 = vst [vmem:[%s4086_s8 + $0x9d8] sm:$0xff] %v818_v59  ;;  %v824_v62 = vld [vmem:[%s4081_s7 + $0x1390] sm:$0xff] }
  0xb9   : > { %821 = vst [vmem:[%s4086_s8 + $0x9e0] sm:$0xff] %v820_v60  ;;  %823 = vst [vmem:[%s4086_s8 + $0x9e8] sm:$0xff] %v822_v61  ;;  %v826_v63 = vld [vmem:[%s4081_s7 + $0x13f0] sm:$0xff]  ;;  %v828_v0 = vld [vmem:[%s4081_s7 + $0x13f8] sm:$0xff] }
  0xba   : > { %825 = vst [vmem:[%s4086_s8 + $0x9f0] sm:$0xff] %v824_v62  ;;  %827 = vst [vmem:[%s4086_s8 + $0x9f8] sm:$0xff] %v826_v63  ;;  %v830_v1 = vld [vmem:[%s4081_s7 + $0x1400] sm:$0xff]  ;;  %v832_v2 = vld [vmem:[%s4081_s7 + $0x1408] sm:$0xff] }
  0xbb   : > { %829 = vst [vmem:[%s4086_s8 + $0xa00] sm:$0xff] %v828_v0  ;;  %v834_v3 = vld [vmem:[%s4081_s7 + $0x1410] sm:$0xff]  ;;  %831 = vst [vmem:[%s4086_s8 + $0xa08] sm:$0xff] %v830_v1  ;;  %v836_v4 = vld [vmem:[%s4081_s7 + $0x1418] sm:$0xff] }
  0xbc   : > { %833 = vst [vmem:[%s4086_s8 + $0xa10] sm:$0xff] %v832_v2  ;;  %835 = vst [vmem:[%s4086_s8 + $0xa18] sm:$0xff] %v834_v3  ;;  %v838_v5 = vld [vmem:[%s4081_s7 + $0x1420] sm:$0xff]  ;;  %v840_v6 = vld [vmem:[%s4081_s7 + $0x1428] sm:$0xff] }
  0xbd   : > { %837 = vst [vmem:[%s4086_s8 + $0xa20] sm:$0xff] %v836_v4  ;;  %839 = vst [vmem:[%s4086_s8 + $0xa28] sm:$0xff] %v838_v5  ;;  %v842_v7 = vld [vmem:[%s4081_s7 + $0x1430] sm:$0xff]  ;;  %v844_v8 = vld [vmem:[%s4081_s7 + $0x1438] sm:$0xff] }
  0xbe   : > { %841 = vst [vmem:[%s4086_s8 + $0xa30] sm:$0xff] %v840_v6  ;;  %v846_v9 = vld [vmem:[%s4081_s7 + $0x1440] sm:$0xff]  ;;  %843 = vst [vmem:[%s4086_s8 + $0xa38] sm:$0xff] %v842_v7  ;;  %v850_v11 = vld [vmem:[%s4081_s7 + $0x14a8] sm:$0xff] }
  0xbf   : > { %845 = vst [vmem:[%s4086_s8 + $0xa40] sm:$0xff] %v844_v8  ;;  %847 = vst [vmem:[%s4086_s8 + $0xa48] sm:$0xff] %v846_v9  ;;  %v848_v10 = vld [vmem:[%s4081_s7 + $0x14a0] sm:$0xff]  ;;  %v852_v12 = vld [vmem:[%s4081_s7 + $0x14b0] sm:$0xff] }
  0xc0   : > { %849 = vst [vmem:[%s4086_s8 + $0xa50] sm:$0xff] %v848_v10  ;;  %851 = vst [vmem:[%s4086_s8 + $0xa58] sm:$0xff] %v850_v11  ;;  %v854_v13 = vld [vmem:[%s4081_s7 + $0x14b8] sm:$0xff]  ;;  %v856_v14 = vld [vmem:[%s4081_s7 + $0x14c0] sm:$0xff] }
  0xc1   : > { %853 = vst [vmem:[%s4086_s8 + $0xa60] sm:$0xff] %v852_v12  ;;  %v858_v15 = vld [vmem:[%s4081_s7 + $0x14c8] sm:$0xff]  ;;  %855 = vst [vmem:[%s4086_s8 + $0xa68] sm:$0xff] %v854_v13  ;;  %v860_v16 = vld [vmem:[%s4081_s7 + $0x14d0] sm:$0xff] }
  0xc2   : > { %857 = vst [vmem:[%s4086_s8 + $0xa70] sm:$0xff] %v856_v14  ;;  %859 = vst [vmem:[%s4086_s8 + $0xa78] sm:$0xff] %v858_v15  ;;  %v862_v17 = vld [vmem:[%s4081_s7 + $0x14d8] sm:$0xff]  ;;  %v864_v18 = vld [vmem:[%s4081_s7 + $0x14e0] sm:$0xff] }
  0xc3   : > { %861 = vst [vmem:[%s4086_s8 + $0xa80] sm:$0xff] %v860_v16  ;;  %863 = vst [vmem:[%s4086_s8 + $0xa88] sm:$0xff] %v862_v17  ;;  %v866_v19 = vld [vmem:[%s4081_s7 + $0x14e8] sm:$0xff]  ;;  %v868_v20 = vld [vmem:[%s4081_s7 + $0x14f0] sm:$0xff] }
  0xc4   : > { %865 = vst [vmem:[%s4086_s8 + $0xa90] sm:$0xff] %v864_v18  ;;  %v870_v21 = vld [vmem:[%s4081_s7 + $0x1550] sm:$0xff]  ;;  %867 = vst [vmem:[%s4086_s8 + $0xa98] sm:$0xff] %v866_v19  ;;  %v872_v22 = vld [vmem:[%s4081_s7 + $0x1558] sm:$0xff] }
  0xc5   : > { %869 = vst [vmem:[%s4086_s8 + $0xaa0] sm:$0xff] %v868_v20  ;;  %871 = vst [vmem:[%s4086_s8 + $0xaa8] sm:$0xff] %v870_v21  ;;  %v874_v23 = vld [vmem:[%s4081_s7 + $0x1560] sm:$0xff]  ;;  %v876_v24 = vld [vmem:[%s4081_s7 + $0x1568] sm:$0xff] }
  0xc6   : > { %873 = vst [vmem:[%s4086_s8 + $0xab0] sm:$0xff] %v872_v22  ;;  %875 = vst [vmem:[%s4086_s8 + $0xab8] sm:$0xff] %v874_v23  ;;  %v878_v25 = vld [vmem:[%s4081_s7 + $0x1570] sm:$0xff]  ;;  %v880_v26 = vld [vmem:[%s4081_s7 + $0x1578] sm:$0xff] }
  0xc7   : > { %877 = vst [vmem:[%s4086_s8 + $0xac0] sm:$0xff] %v876_v24  ;;  %v882_v27 = vld [vmem:[%s4081_s7 + $0x1580] sm:$0xff]  ;;  %879 = vst [vmem:[%s4086_s8 + $0xac8] sm:$0xff] %v878_v25  ;;  %v884_v28 = vld [vmem:[%s4081_s7 + $0x1588] sm:$0xff] }
  0xc8   : > { %881 = vst [vmem:[%s4086_s8 + $0xad0] sm:$0xff] %v880_v26  ;;  %883 = vst [vmem:[%s4086_s8 + $0xad8] sm:$0xff] %v882_v27  ;;  %v886_v29 = vld [vmem:[%s4081_s7 + $0x1590] sm:$0xff]  ;;  %v888_v30 = vld [vmem:[%s4081_s7 + $0x1598] sm:$0xff] }
  0xc9   : > { %885 = vst [vmem:[%s4086_s8 + $0xae0] sm:$0xff] %v884_v28  ;;  %887 = vst [vmem:[%s4086_s8 + $0xae8] sm:$0xff] %v886_v29  ;;  %v890_v31 = vld [vmem:[%s4081_s7 + $0x15a0] sm:$0xff] }
  0xca   : > { %889 = vst [vmem:[%s4086_s8 + $0xaf0] sm:$0xff] %v888_v30  ;;  %891 = vst [vmem:[%s4086_s8 + $0xaf8] sm:$0xff] %v890_v31 }
  0xcb PF: > { %p3217_p7 = scmp.ge.s32.totalorder %s3997_s18, 1  ;;  %p908_p8 = scmp.lt.s32.totalorder %s3997_s18, 5 }
  0xcd   : > { %p909_p9 = pnand %p3217_p7, %p908_p8 }
  0xce   : > { %s915_s9 = sand.u32 (!%p909_p9), 1, %s3973_s12   ;;  %s954_s10 = smul.u32 (!%p909_p9), 176, %s3981_s14 }
  0xcf   : > { %912 = sbr.rel (%p909_p9) target bundleno = 876 (0x36c), region = 51  ;;  %s3219_s21 = sshll.u32 (!%p909_p9), %s3985_s15, 5 }
  0xd0   : > { %s3884_s11 = smul.u32 (!%p909_p9), 2816, %s915_s9  ;;  %p955_p10 = scmp.lt.s32.totalorder (!%p909_p9), %s954_s10, 351 }
  0xd1   : > { %p967_p11 = scmp.lt.s32.totalorder (!%p909_p9), %s3219_s21, 63  ;;  %p3221_p12 = scmp.ne.s32.totalorder (!%p909_p9), %s3981_s14, 0 }
  0xd2   : > { %s4804_s12 = scalar_lea.vmem (!%p909_p9), [#allocation3], %s3884_s11 }
  0xd6   : > { %s5742_s10 = smov (!%p955_p10, %s954_s10), 351  ;;  %s5744_s21 = smov (!%p967_p11, %s3219_s21), 63 }
  0xd7   : > { %s3218_s22 = sshll.u32 %s5742_s10, 3  ;;  %s3220_s27 = sshll.u32 %s5744_s21, 3  ;;  %v3999_v32 = vmov (!%p3221_p12), 0.0  }
  0xd8   : > { %s4797_s26 = scalar_lea.vmem %s5726_s1, %s3218_s22  ;;  %s4802_s30 = scalar_lea.vmem %s5728_s3, %s3220_s27  ;;  %979 = vst [vmem:[#allocation2] sm:$0xff] (!%p3221_p12), %v3999_v32  ;;  %980 = vst [vmem:[#allocation2 + $0x8] sm:$0xff] (!%p3221_p12), %v3999_v32 }
  0xd9   : > { %978 = sbr.rel (%p3221_p12) target bundleno = 232 (0xe8), region = 59  ;;  %981 = vst [vmem:[#allocation2 + $0x10] sm:$0xff] (!%p3221_p12), %v3999_v32  ;;  %982 = vst [vmem:[#allocation2 + $0x18] sm:$0xff] (!%p3221_p12), %v3999_v32 }
  0xda   : > { %983 = vst [vmem:[#allocation2 + $0x20] sm:$0xff] (!%p3221_p12), %v3999_v32  ;;  %984 = vst [vmem:[#allocation2 + $0x28] sm:$0xff] (!%p3221_p12), %v3999_v32 }
  0xdb   : > { %985 = vst [vmem:[#allocation2 + $0x30] sm:$0xff] (!%p3221_p12), %v3999_v32  ;;  %986 = vst [vmem:[#allocation2 + $0x38] sm:$0xff] (!%p3221_p12), %v3999_v32 }
  0xdc   : > { %987 = vst [vmem:[#allocation2 + $0x40] sm:$0xff] (!%p3221_p12), %v3999_v32  ;;  %988 = vst [vmem:[#allocation2 + $0x48] sm:$0xff] (!%p3221_p12), %v3999_v32 }
  0xdd   : > { %989 = vst [vmem:[#allocation2 + $0x50] sm:$0xff] (!%p3221_p12), %v3999_v32  ;;  %990 = vst [vmem:[#allocation2 + $0x58] sm:$0xff] (!%p3221_p12), %v3999_v32 }
  0xde   : > { %991 = vst [vmem:[#allocation2 + $0x60] sm:$0xff] (!%p3221_p12), %v3999_v32  ;;  %992 = vst [vmem:[#allocation2 + $0x68] sm:$0xff] (!%p3221_p12), %v3999_v32 }
  0xdf   : > { %993 = vst [vmem:[#allocation2 + $0x70] sm:$0xff] (!%p3221_p12), %v3999_v32  ;;  %994 = vst [vmem:[#allocation2 + $0x78] sm:$0xff] (!%p3221_p12), %v3999_v32 }
  0xe0   : > { %995 = vst [vmem:[#allocation2 + $0x80] sm:$0xff] %v3999_v32  ;;  %996 = vst [vmem:[#allocation2 + $0x88] sm:$0xff] %v3999_v32 }
  0xe1   : > { %997 = vst [vmem:[#allocation2 + $0x90] sm:$0xff] %v3999_v32  ;;  %998 = vst [vmem:[#allocation2 + $0x98] sm:$0xff] %v3999_v32 }
  0xe2   : > { %999 = vst [vmem:[#allocation2 + $0xa0] sm:$0xff] %v3999_v32  ;;  %1000 = vst [vmem:[#allocation2 + $0xa8] sm:$0xff] %v3999_v32 }
  0xe3   : > { %1001 = vst [vmem:[#allocation2 + $0xb0] sm:$0xff] %v3999_v32  ;;  %1002 = vst [vmem:[#allocation2 + $0xb8] sm:$0xff] %v3999_v32 }
  0xe4   : > { %1003 = vst [vmem:[#allocation2 + $0xc0] sm:$0xff] %v3999_v32  ;;  %1004 = vst [vmem:[#allocation2 + $0xc8] sm:$0xff] %v3999_v32 }
  0xe5   : > { %1005 = vst [vmem:[#allocation2 + $0xd0] sm:$0xff] %v3999_v32  ;;  %1006 = vst [vmem:[#allocation2 + $0xd8] sm:$0xff] %v3999_v32 }
  0xe6   : > { %1007 = vst [vmem:[#allocation2 + $0xe0] sm:$0xff] %v3999_v32  ;;  %1008 = vst [vmem:[#allocation2 + $0xe8] sm:$0xff] %v3999_v32 }
  0xe7   : > { %1009 = vst [vmem:[#allocation2 + $0xf0] sm:$0xff] %v3999_v32  ;;  %1010 = vst [vmem:[#allocation2 + $0xf8] sm:$0xff] %v3999_v32 }
  0xe8 PF: > { %v1395_v33 = vld [vmem:[%s4797_s26] sm:$0xff]  ;;  %v1396_v34 = vld [vmem:[%s4797_s26 + $0x8] sm:$0xff]  ;;  %v4000_v36 = vmov 0.0|0.0   ;;  %v1397_v39 = vld [vmem:[%s4797_s26 + $0x10] sm:$0xff]  ;;  %p3222_p13 = scmp.ne.s32.totalorder %s3981_s14, 1 }
  0xe9   : > { %v1459_v35 = vld [vmem:[%s4797_s26 + $0x200] sm:$0xff]  ;;  %3354 = vmatprep.subr.bf16.mxu1 %v4000_v36  ;;  %3450 = vmatprep.subr.bf16.mxu0 %v4000_v36  ;;  %v3355_v37 = vpack.c.bf16 %v1396_v34, %v1395_v33  ;;  %v1460_v38 = vld [vmem:[%s4797_s26 + $0x208] sm:$0xff]  ;;  %v1398_v40 = vld [vmem:[%s4797_s26 + $0x18] sm:$0xff] }
  0xea   : > { %v4815_v41 = vpack.c.bf16 %v1460_v38, %v1459_v35  ;;  %v1461_v42 = vld [vmem:[%s4797_s26 + $0x210] sm:$0xff]  ;;  %v1462_v43 = vld [vmem:[%s4797_s26 + $0x218] sm:$0xff]  ;;  %v3358_v44 = vpack.c.bf16 %v1398_v40, %v1397_v39  ;;  %v1399_v46 = vld [vmem:[%s4797_s26 + $0x20] sm:$0xff] }
  0xeb   : > { %3356 = vmatpush1.bf16.msra.mxu1 %v3355_v37  ;;  %v4821_v45 = vpack.c.bf16 %v1462_v43, %v1461_v42  ;;  %v1400_v47 = vld [vmem:[%s4797_s26 + $0x28] sm:$0xff]  ;;  %v1463_v48 = vld [vmem:[%s4797_s26 + $0x220] sm:$0xff]  ;;  %v1401_v52 = vld [vmem:[%s4797_s26 + $0x30] sm:$0xff] }
  0xec   : > { %3452 = vmatpush1.bf16.msra.mxu0 %v4815_v41  ;;  %3357 = vmatprep.subr.bf16.mxu1 %v4000_v36  ;;  %v1464_v49 = vld [vmem:[%s4797_s26 + $0x228] sm:$0xff]  ;;  %v3361_v50 = vpack.c.bf16 %v1400_v47, %v1399_v46  ;;  %v1402_v53 = vld [vmem:[%s4797_s26 + $0x38] sm:$0xff]  ;;  %v1465_v54 = vld [vmem:[%s4797_s26 + $0x230] sm:$0xff] }
  0xed   : > { %3453 = vmatprep.subr.bf16.mxu0 %v4000_v36  ;;  %v4830_v51 = vpack.c.bf16 %v1464_v49, %v1463_v48  ;;  %v1466_v55 = vld [vmem:[%s4797_s26 + $0x238] sm:$0xff]  ;;  %v3364_v56 = vpack.c.bf16 %v1402_v53, %v1401_v52  ;;  %v1403_v58 = vld [vmem:[%s4797_s26 + $0x40] sm:$0xff]  ;;  %v1404_v59 = vld [vmem:[%s4797_s26 + $0x48] sm:$0xff] }
  0xee   : > { %v4839_v57 = vpack.c.bf16 %v1466_v55, %v1465_v54  ;;  %v1467_v60 = vld [vmem:[%s4797_s26 + $0x240] sm:$0xff]  ;;  %v1468_v61 = vld [vmem:[%s4797_s26 + $0x248] sm:$0xff]  ;;  %v3367_v62 = vpack.c.bf16 %v1404_v59, %v1403_v58  ;;  %v1405_v0 = vld [vmem:[%s4797_s26 + $0x50] sm:$0xff] }
  0xef   : > { %3359 = vmatpush1.bf16.msra.mxu1 %v3358_v44  ;;  %v4848_v63 = vpack.c.bf16 %v1468_v61, %v1467_v60  ;;  %v1406_v1 = vld [vmem:[%s4797_s26 + $0x58] sm:$0xff]  ;;  %v1469_v2 = vld [vmem:[%s4797_s26 + $0x250] sm:$0xff]  ;;  %v1407_v6 = vld [vmem:[%s4797_s26 + $0x60] sm:$0xff] }
  0xf0   : > { %3455 = vmatpush1.bf16.msra.mxu0 %v4821_v45  ;;  %3360 = vmatprep.subr.bf16.mxu1 %v4000_v36  ;;  %v1470_v3 = vld [vmem:[%s4797_s26 + $0x258] sm:$0xff]  ;;  %v3370_v4 = vpack.c.bf16 %v1406_v1, %v1405_v0  ;;  %v1408_v7 = vld [vmem:[%s4797_s26 + $0x68] sm:$0xff]  ;;  %v1471_v8 = vld [vmem:[%s4797_s26 + $0x260] sm:$0xff] }
  0xf1   : > { %3456 = vmatprep.subr.bf16.mxu0 %v4000_v36  ;;  %v4857_v5 = vpack.c.bf16 %v1470_v3, %v1469_v2  ;;  %v1472_v9 = vld [vmem:[%s4797_s26 + $0x268] sm:$0xff]  ;;  %v3373_v12 = vpack.c.bf16 %v1408_v7, %v1407_v6  ;;  %v1409_v14 = vld [vmem:[%s4797_s26 + $0x70] sm:$0xff]  ;;  %v1410_v15 = vld [vmem:[%s4797_s26 + $0x78] sm:$0xff] }
  0xf2   : > { %v1044_v10 = vld [vmem:[%s4804_s12 + $0x8] sm:$0xff]  ;;  %v4868_v13 = vpack.c.bf16 %v1472_v9, %v1471_v8  ;;  %v1473_v16 = vld [vmem:[%s4797_s26 + $0x270] sm:$0xff]  ;;  %v1474_v17 = vld [vmem:[%s4797_s26 + $0x278] sm:$0xff]  ;;  %v3376_v18 = vpack.c.bf16 %v1410_v15, %v1409_v14 }
  0xf3   : > { %3362 = vmatpush1.bf16.msra.mxu1 %v3361_v50  ;;  %v1048_v11 = vld [vmem:[%s4804_s12 + $0x28] sm:$0xff]  ;;  %1635 = vmatprep.mubr.f32.mxu1 %v1044_v10  ;;  %v4877_v19 = vpack.c.bf16 %v1474_v17, %v1473_v16  ;;  %v1411_v20 = vld [vmem:[%s4797_s26 + $0x80] sm:$0xff]  ;;  %v1413_v26 = vld [vmem:[%s4797_s26 + $0x90] sm:$0xff] }
  0xf4   : > { %3458 = vmatpush1.bf16.msra.mxu0 %v4830_v51  ;;  %3363 = vmatprep.subr.bf16.mxu1 %v4000_v36  ;;  %v1412_v21 = vld [vmem:[%s4797_s26 + $0x88] sm:$0xff]  ;;  %v1475_v22 = vld [vmem:[%s4797_s26 + $0x280] sm:$0xff]  ;;  %v1414_v27 = vld [vmem:[%s4797_s26 + $0x98] sm:$0xff] }
  0xf5   : > { %3459 = vmatprep.subr.bf16.mxu0 %v4000_v36  ;;  %2085 = vmatprep.mubr.f32.mxu0 %v1048_v11  ;;  %v1476_v23 = vld [vmem:[%s4797_s26 + $0x288] sm:$0xff]  ;;  %v3379_v24 = vpack.c.bf16 %v1412_v21, %v1411_v20  ;;  %v1477_v28 = vld [vmem:[%s4797_s26 + $0x290] sm:$0xff]  ;;  %v1478_v29 = vld [vmem:[%s4797_s26 + $0x298] sm:$0xff]  ;;  %v3382_v30 = vpack.c.bf16 %v1414_v27, %v1413_v26 }
  0xf6   : > { %v4886_v25 = vpack.c.bf16 %v1476_v23, %v1475_v22  ;;  %v4895_v31 = vpack.c.bf16 %v1478_v29, %v1477_v28  ;;  %v1415_v32 = vld [vmem:[%s4797_s26 + $0xa0] sm:$0xff]  ;;  %v1416_v33 = vld [vmem:[%s4797_s26 + $0xa8] sm:$0xff]  ;;  %v1417_v39 = vld [vmem:[%s4797_s26 + $0xb0] sm:$0xff] }
  0xf7   : > { %3365 = vmatpush1.bf16.msra.mxu1 %v3364_v56  ;;  %v1479_v34 = vld [vmem:[%s4797_s26 + $0x2a0] sm:$0xff]  ;;  %v1480_v35 = vld [vmem:[%s4797_s26 + $0x2a8] sm:$0xff]  ;;  %v3385_v37 = vpack.c.bf16 %v1416_v33, %v1415_v32  ;;  %v1418_v40 = vld [vmem:[%s4797_s26 + $0xb8] sm:$0xff] }
  0xf8   : > { %3461 = vmatpush1.bf16.msra.mxu0 %v4839_v57  ;;  %3366 = vmatprep.subr.bf16.mxu1 %v4000_v36  ;;  %v4904_v38 = vpack.c.bf16 %v1480_v35, %v1479_v34  ;;  %v1481_v42 = vld [vmem:[%s4797_s26 + $0x2b0] sm:$0xff]  ;;  %v1482_v43 = vld [vmem:[%s4797_s26 + $0x2b8] sm:$0xff]  ;;  %v3388_v44 = vpack.c.bf16 %v1418_v40, %v1417_v39  ;;  %v1419_v47 = vld [vmem:[%s4797_s26 + $0xc0] sm:$0xff] }
  0xf9   : > { %3462 = vmatprep.subr.bf16.mxu0 %v4000_v36  ;;  %v4913_v46 = vpack.c.bf16 %v1482_v43, %v1481_v42  ;;  %v1420_v48 = vld [vmem:[%s4797_s26 + $0xc8] sm:$0xff]  ;;  %v1483_v49 = vld [vmem:[%s4797_s26 + $0x2c0] sm:$0xff]  ;;  %v1421_v54 = vld [vmem:[%s4797_s26 + $0xd0] sm:$0xff] }
  0xfa   : > { %v1484_v50 = vld [vmem:[%s4797_s26 + $0x2c8] sm:$0xff]  ;;  %v3391_v52 = vpack.c.bf16 %v1420_v48, %v1419_v47  ;;  %v1422_v55 = vld [vmem:[%s4797_s26 + $0xd8] sm:$0xff]  ;;  %v1485_v56 = vld [vmem:[%s4797_s26 + $0x2d0] sm:$0xff] }
  0xfb   : > { %3368 = vmatpush1.bf16.msra.mxu1 %v3367_v62  ;;  %v4922_v53 = vpack.c.bf16 %v1484_v50, %v1483_v49  ;;  %v1486_v58 = vld [vmem:[%s4797_s26 + $0x2d8] sm:$0xff]  ;;  %v3394_v59 = vpack.c.bf16 %v1422_v55, %v1421_v54  ;;  %v1423_v61 = vld [vmem:[%s4797_s26 + $0xe0] sm:$0xff]  ;;  %v1424_v62 = vld [vmem:[%s4797_s26 + $0xe8] sm:$0xff] }
  0xfc   : > { %3464 = vmatpush1.bf16.msra.mxu0 %v4848_v63  ;;  %3369 = vmatprep.subr.bf16.mxu1 %v4000_v36  ;;  %v4931_v60 = vpack.c.bf16 %v1486_v58, %v1485_v56  ;;  %v1487_v0 = vld [vmem:[%s4797_s26 + $0x2e0] sm:$0xff]  ;;  %v1488_v1 = vld [vmem:[%s4797_s26 + $0x2e8] sm:$0xff]  ;;  %v3397_v2 = vpack.c.bf16 %v1424_v62, %v1423_v61  ;;  %v1426_v6 = vld [vmem:[%s4797_s26 + $0xf8] sm:$0xff] }
  0xfd   : > { %3465 = vmatprep.subr.bf16.mxu0 %v4000_v36  ;;  %v4940_v3 = vpack.c.bf16 %v1488_v1, %v1487_v0  ;;  %v1489_v7 = vld [vmem:[%s4797_s26 + $0x2f0] sm:$0xff]  ;;  %v1490_v8 = vld [vmem:[%s4797_s26 + $0x2f8] sm:$0xff]  ;;  %v1427_v11 = vld [vmem:[%s4797_s26 + $0x100] sm:$0xff] }
  0xfe   : > { %v4949_v10 = vpack.c.bf16 %v1490_v8, %v1489_v7  ;;  %v1491_v14 = vld [vmem:[%s4797_s26 + $0x300] sm:$0xff]  ;;  %v1492_v15 = vld [vmem:[%s4797_s26 + $0x308] sm:$0xff]  ;;  %v1493_v22 = vld [vmem:[%s4797_s26 + $0x310] sm:$0xff] }
  0xff   : > { %3371 = vmatpush1.bf16.msra.mxu1 %v3370_v4  ;;  %v1425_v4 = vld [vmem:[%s4797_s26 + $0xf0] sm:$0xff]  ;;  %v1043_v16 = vld [vmem:[%s4804_s12] sm:$0xff]  ;;  %v3499_v20 = vpack.c.bf16 %v1492_v15, %v1491_v14  ;;  %v1494_v23 = vld [vmem:[%s4797_s26 + $0x318] sm:$0xff] }
 0x100   : > { %3467 = vmatpush1.bf16.msra.mxu0 %v4857_v5  ;;  %3372 = vmatprep.subr.bf16.mxu1 %v4000_v36  ;;  %v3400_v9 = vpack.c.bf16 %v1426_v6, %v1425_v4  ;;  %v1055_v21 = vld [vmem:[%s4804_s12 + $0x60] sm:$0xff]  ;;  %v1429_v26 = vld [vmem:[%s4797_s26 + $0x110] sm:$0xff]  ;;  %v1430_v27 = vld [vmem:[%s4797_s26 + $0x118] sm:$0xff]  ;;  %v3502_v32 = vpack.c.bf16 %v1494_v23, %v1493_v22 }
 0x101   : > { %3468 = vmatprep.subr.bf16.mxu0 %v4000_v36  ;;  %v1054_v28 = vld [vmem:[%s4804_s12 + $0x58] sm:$0xff]  ;;  %v3406_v34 = vpack.c.bf16 %v1430_v27, %v1429_v26  ;;  %v1495_v35 = vld [vmem:[%s4797_s26 + $0x320] sm:$0xff]  ;;  %v1432_v40 = vld [vmem:[%s4797_s26 + $0x128] sm:$0xff] }
 0x102   : > { %v1058_v29 = vld [vmem:[%s4804_s12 + $0x78] sm:$0xff]  ;;  %v1431_v39 = vld [vmem:[%s4797_s26 + $0x120] sm:$0xff]  ;;  %v1065_v42 = vld [vmem:[%s4804_s12 + $0xb0] sm:$0xff] }
 0x103   : > { %3374 = vmatpush1.bf16.msra.mxu1 %v3373_v12  ;;  %v1428_v12 = vld [vmem:[%s4797_s26 + $0x108] sm:$0xff]  ;;  %v1070_v33 = vld [vmem:[%s4804_s12 + $0xd8] sm:$0xff]  ;;  %v1069_v43 = vld [vmem:[%s4804_s12 + $0xd0] sm:$0xff]  ;;  %v3409_v49 = vpack.c.bf16 %v1432_v40, %v1431_v39 }
 0x104   : > { %3470 = vmatpush1.bf16.msra.mxu0 %v4868_v13  ;;  %3375 = vmatprep.subr.bf16.mxu1 %v4000_v36  ;;  %v3403_v17 = vpack.c.bf16 %v1428_v12, %v1427_v11  ;;  %v1081_v48 = vld [vmem:[%s4804_s12 + $0x130] sm:$0xff]  ;;  %v1434_v55 = vld [vmem:[%s4797_s26 + $0x138] sm:$0xff]  ;;  %v1076_v56 = vld [vmem:[%s4804_s12 + $0x108] sm:$0xff] }
 0x105   : > { %3471 = vmatprep.subr.bf16.mxu0 %v4000_v36  ;;  %v1497_v50 = vld [vmem:[%s4797_s26 + $0x330] sm:$0xff]  ;;  %v1080_v58 = vld [vmem:[%s4804_s12 + $0x128] sm:$0xff]  ;;  %v1499_v0 = vld [vmem:[%s4797_s26 + $0x340] sm:$0xff] }
 0x106   : > { %v1433_v54 = vld [vmem:[%s4797_s26 + $0x130] sm:$0xff]  ;;  %v1092_v62 = vld [vmem:[%s4804_s12 + $0x188] sm:$0xff]  ;;  %v1435_v4 = vld [vmem:[%s4797_s26 + $0x140] sm:$0xff] }
 0x107   : > { %3377 = vmatpush1.bf16.msra.mxu1 %v3376_v18  ;;  %v1047_v18 = vld [vmem:[%s4804_s12 + $0x20] sm:$0xff]  ;;  %v1500_v1 = vld [vmem:[%s4797_s26 + $0x348] sm:$0xff]  ;;  %v1501_v14 = vld [vmem:[%s4797_s26 + $0x350] sm:$0xff] }
 0x108   : > { %3473 = vmatpush1.bf16.msra.mxu0 %v4877_v19  ;;  %3378 = vmatprep.subr.bf16.mxu1 %v4000_v36  ;;  %v1436_v6 = vld [vmem:[%s4797_s26 + $0x148] sm:$0xff]  ;;  %v1087_v7 = vld [vmem:[%s4804_s12 + $0x160] sm:$0xff]  ;;  %v3511_v11 = vpack.c.bf16 %v1500_v1, %v1499_v0  ;;  %v1502_v15 = vld [vmem:[%s4797_s26 + $0x358] sm:$0xff] }
 0x109   : > { %3474 = vmatprep.subr.bf16.mxu0 %v4000_v36  ;;  %v1091_v8 = vld [vmem:[%s4804_s12 + $0x180] sm:$0xff]  ;;  %v1110_v22 = vld [vmem:[%s4804_s12 + $0x218] sm:$0xff]  ;;  %v3514_v23 = vpack.c.bf16 %v1502_v15, %v1501_v14  ;;  %v1504_v27 = vld [vmem:[%s4797_s26 + $0x368] sm:$0xff] }
 0x10a   : > { %v1103_v12 = vld [vmem:[%s4804_s12 + $0x1e0] sm:$0xff]  ;;  %v1505_v39 = vld [vmem:[%s4797_s26 + $0x370] sm:$0xff]  ;;  %v1506_v40 = vld [vmem:[%s4797_s26 + $0x378] sm:$0xff] }
 0x10b   : > { %3380 = vmatpush1.bf16.msra.mxu1 %v3379_v24  ;;  %v1059_v24 = vld [vmem:[%s4804_s12 + $0x80] sm:$0xff]  ;;  %v1154_v14 = vld [vmem:[%s4804_s12 + $0x378] sm:$0xff] }
 0x10c   : > { %3476 = vmatpush1.bf16.msra.mxu0 %v4886_v25  ;;  %3381 = vmatprep.subr.bf16.mxu1 %v4000_v36  ;;  %v1503_v26 = vld [vmem:[%s4797_s26 + $0x360] sm:$0xff] }
 0x10d   : > { %3477 = vmatprep.subr.bf16.mxu0 %v4000_v36  ;;  %v1143_v0 = vld [vmem:[%s4804_s12 + $0x320] sm:$0xff] }
 0x10f   : > { %3383 = vmatpush1.bf16.msra.mxu1 %v3382_v30  ;;  %v1066_v30 = vld [vmem:[%s4804_s12 + $0xb8] sm:$0xff] }
 0x110   : > { %3479 = vmatpush1.bf16.msra.mxu0 %v4895_v31  ;;  %3384 = vmatprep.subr.bf16.mxu1 %v4000_v36 }
 0x111   : > { %3480 = vmatprep.subr.bf16.mxu0 %v4000_v36 }
 0x113   : > { %3386 = vmatpush1.bf16.msra.mxu1 %v3385_v37  ;;  %v1496_v37 = vld [vmem:[%s4797_s26 + $0x328] sm:$0xff] }
 0x114   : > { %3482 = vmatpush1.bf16.msra.mxu0 %v4904_v38  ;;  %3387 = vmatprep.subr.bf16.mxu1 %v4000_v36  ;;  %v3505_v47 = vpack.c.bf16 %v1496_v37, %v1495_v35  ;;  %v3517_v35 = vpack.c.bf16 %v1504_v27, %v1503_v26  ;;  %v1125_v37 = vld [vmem:[%s4804_s12 + $0x290] sm:$0xff] }
 0x115   : > { %3483 = vmatprep.subr.bf16.mxu0 %v4000_v36  ;;  %v1165_v26 = vld [vmem:[%s4804_s12 + $0x3d0] sm:$0xff] }
 0x117   : > { %3389 = vmatpush1.bf16.msra.mxu1 %v3388_v44  ;;  %v1077_v44 = vld [vmem:[%s4804_s12 + $0x110] sm:$0xff] }
 0x118   : > { %3485 = vmatpush1.bf16.msra.mxu0 %v4913_v46  ;;  %3390 = vmatprep.subr.bf16.mxu1 %v4000_v36 }
 0x119   : > { %3486 = vmatprep.subr.bf16.mxu0 %v4000_v36 }
 0x11b   : > { %3392 = vmatpush1.bf16.msra.mxu1 %v3391_v52  ;;  %v1498_v52 = vld [vmem:[%s4797_s26 + $0x338] sm:$0xff] }
 0x11c   : > { %3488 = vmatpush1.bf16.msra.mxu0 %v4922_v53  ;;  %3393 = vmatprep.subr.bf16.mxu1 %v4000_v36  ;;  %v3508_v61 = vpack.c.bf16 %v1498_v52, %v1497_v50  ;;  %v3520_v50 = vpack.c.bf16 %v1506_v40, %v1505_v39  ;;  %v1136_v52 = vld [vmem:[%s4804_s12 + $0x2e8] sm:$0xff] }
 0x11d   : > { %3489 = vmatprep.subr.bf16.mxu0 %v4000_v36  ;;  %v1176_v39 = vld [vmem:[%s4804_s12 + $0x428] sm:$0xff] }
 0x11f   : > { %3395 = vmatpush1.bf16.msra.mxu1 %v3394_v59  ;;  %v1088_v59 = vld [vmem:[%s4804_s12 + $0x168] sm:$0xff] }
 0x120   : > { %3491 = vmatpush1.bf16.msra.mxu0 %v4931_v60  ;;  %3396 = vmatprep.subr.bf16.mxu1 %v4000_v36 }
 0x121   : > { %3492 = vmatprep.subr.bf16.mxu0 %v4000_v36 }
 0x123   : > { %3398 = vmatpush1.bf16.msra.mxu1 %v3397_v2  ;;  %v3412_v2 = vpack.c.bf16 %v1434_v55, %v1433_v54  ;;  %v1507_v54 = vld [vmem:[%s4797_s26 + $0x380] sm:$0xff]  ;;  %v1508_v55 = vld [vmem:[%s4797_s26 + $0x388] sm:$0xff] }
 0x124   : > { %3494 = vmatpush1.bf16.msra.mxu0 %v4940_v3  ;;  %3399 = vmatprep.subr.bf16.mxu1 %v4000_v36  ;;  %v3523_v1 = vpack.c.bf16 %v1508_v55, %v1507_v54  ;;  %v1187_v54 = vld [vmem:[%s4804_s12 + $0x480] sm:$0xff] }
 0x125   : > { %3495 = vmatprep.subr.bf16.mxu0 %v4000_v36 }
 0x127   : > { %3401 = vmatpush1.bf16.msra.mxu1 %v3400_v9  ;;  %v1099_v9 = vld [vmem:[%s4804_s12 + $0x1c0] sm:$0xff] }
 0x128   : > { %3497 = vmatpush1.bf16.msra.mxu0 %v4949_v10  ;;  %3402 = vmatprep.subr.bf16.mxu1 %v4000_v36 }
 0x129   : > { %3498 = vmatprep.subr.bf16.mxu0 %v4000_v36 }
 0x12a   : > { %1636 = vmatmul.mubr.f32.vlgmr.msra.gmra.mrb[0].mxu1 %v1043_v16  ;;  %v3415_v16 = vpack.c.bf16 %v1436_v6, %v1435_v4  ;;  %v1509_v4 = vld [vmem:[%s4797_s26 + $0x390] sm:$0xff]  ;;  %v1510_v6 = vld [vmem:[%s4797_s26 + $0x398] sm:$0xff] }
 0x12b   : > { %2086 = vmatmul.mubr.f32.vlgmr.msra.gmra.mrb[0].mxu0 %v1047_v18  ;;  %3404 = vmatpush1.bf16.msra.mxu1 %v3403_v17  ;;  %v1437_v17 = vld [vmem:[%s4797_s26 + $0x150] sm:$0xff]  ;;  %v1438_v18 = vld [vmem:[%s4797_s26 + $0x158] sm:$0xff]  ;;  %v3526_v15 = vpack.c.bf16 %v1510_v6, %v1509_v4 }
 0x12c   : > { %3500 = vmatpush1.bf16.msra.mxu0 %v3499_v20  ;;  %1640 = vmatprep.mubr.f32.mxu1 %v1055_v21  ;;  %v1098_v20 = vld [vmem:[%s4804_s12 + $0x1b8] sm:$0xff] }
 0x12d   : > { %2090 = vmatprep.mubr.f32.mxu0 %v1059_v24  ;;  %3501 = vmatprep.subr.bf16.mxu0 %v4000_v36  ;;  %v1102_v21 = vld [vmem:[%s4804_s12 + $0x1d8] sm:$0xff] }
 0x12e   : > { %1641 = vmatmul.mubr.f32.gmra.mrb[2].mxu1 %v1054_v28  ;;  %3405 = vmatprep.subr.bf16.mxu1 %v4000_v36  ;;  %v1114_v24 = vld [vmem:[%s4804_s12 + $0x238] sm:$0xff]  ;;  %v3418_v28 = vpack.c.bf16 %v1438_v18, %v1437_v17  ;;  %v1511_v17 = vld [vmem:[%s4797_s26 + $0x3a0] sm:$0xff]  ;;  %v1512_v18 = vld [vmem:[%s4797_s26 + $0x3a8] sm:$0xff] }
 0x12f   : > { %2091 = vmatmul.mubr.f32.gmra.mrb[2].mxu0 %v1058_v29  ;;  %1645 = vmatprep.mubr.f32.mxu1 %v1066_v30  ;;  %v1439_v29 = vld [vmem:[%s4797_s26 + $0x160] sm:$0xff]  ;;  %v1440_v30 = vld [vmem:[%s4797_s26 + $0x168] sm:$0xff]  ;;  %v3529_v27 = vpack.c.bf16 %v1512_v18, %v1511_v17  ;;  %v1198_v4 = vld [vmem:[%s4804_s12 + $0x4d8] sm:$0xff] }
 0x130   : > { %2095 = vmatprep.mubr.f32.mxu0 %v1070_v33  ;;  %3503 = vmatpush1.bf16.msra.mxu0 %v3502_v32  ;;  %v1109_v32 = vld [vmem:[%s4804_s12 + $0x210] sm:$0xff] }
 0x131   : > { %3407 = vmatpush1.bf16.msra.mxu1 %v3406_v34  ;;  %3504 = vmatprep.subr.bf16.mxu0 %v4000_v36  ;;  %v1113_v33 = vld [vmem:[%s4804_s12 + $0x230] sm:$0xff] }
 0x132   : > { %1646 = vmatmul.mubr.f32.gmra.mrb[4].mxu1 %v1065_v42  ;;  %3408 = vmatprep.subr.bf16.mxu1 %v4000_v36  ;;  %v1121_v34 = vld [vmem:[%s4804_s12 + $0x270] sm:$0xff]  ;;  %v3421_v42 = vpack.c.bf16 %v1440_v30, %v1439_v29  ;;  %v1514_v30 = vld [vmem:[%s4797_s26 + $0x3b8] sm:$0xff] }
 0x133   : > { %2096 = vmatmul.mubr.f32.gmra.mrb[4].mxu0 %v1069_v43  ;;  %1650 = vmatprep.mubr.f32.mxu1 %v1077_v44  ;;  %v1441_v43 = vld [vmem:[%s4797_s26 + $0x170] sm:$0xff]  ;;  %v1442_v44 = vld [vmem:[%s4797_s26 + $0x178] sm:$0xff] }
 0x134   : > { %2100 = vmatprep.mubr.f32.mxu0 %v1081_v48  ;;  %3506 = vmatpush1.bf16.msra.mxu0 %v3505_v47  ;;  %v1120_v47 = vld [vmem:[%s4804_s12 + $0x268] sm:$0xff]  ;;  %v1513_v29 = vld [vmem:[%s4797_s26 + $0x3b0] sm:$0xff] }
 0x135   : > { %3410 = vmatpush1.bf16.msra.mxu1 %v3409_v49  ;;  %3507 = vmatprep.subr.bf16.mxu0 %v4000_v36  ;;  %v1124_v48 = vld [vmem:[%s4804_s12 + $0x288] sm:$0xff]  ;;  %v3532_v40 = vpack.c.bf16 %v1514_v30, %v1513_v29  ;;  %v1209_v17 = vld [vmem:[%s4804_s12 + $0x530] sm:$0xff] }
 0x136   : > { %1651 = vmatmul.mubr.f32.gmra.mrb[6].mxu1 %v1076_v56  ;;  %3411 = vmatprep.subr.bf16.mxu1 %v4000_v36  ;;  %v1132_v49 = vld [vmem:[%s4804_s12 + $0x2c8] sm:$0xff]  ;;  %v3424_v56 = vpack.c.bf16 %v1442_v44, %v1441_v43  ;;  %v1515_v43 = vld [vmem:[%s4797_s26 + $0x3c0] sm:$0xff] }
 0x137   : > { %2101 = vmatmul.mubr.f32.gmra.mrb[6].mxu0 %v1080_v58  ;;  %1655 = vmatprep.mubr.f32.mxu1 %v1088_v59  ;;  %v1443_v58 = vld [vmem:[%s4797_s26 + $0x180] sm:$0xff]  ;;  %v1444_v59 = vld [vmem:[%s4797_s26 + $0x188] sm:$0xff] }
 0x138   : > { %2105 = vmatprep.mubr.f32.mxu0 %v1092_v62  ;;  %3509 = vmatpush1.bf16.msra.mxu0 %v3508_v61  ;;  %v1131_v61 = vld [vmem:[%s4804_s12 + $0x2c0] sm:$0xff]  ;;  %v1516_v44 = vld [vmem:[%s4797_s26 + $0x3c8] sm:$0xff] }
 0x139   : > { %3510 = vmatprep.subr.bf16.mxu0 %v4000_v36  ;;  %3413 = vmatpush1.bf16.msra.mxu1 %v3412_v2  ;;  %v1135_v62 = vld [vmem:[%s4804_s12 + $0x2e0] sm:$0xff]  ;;  %v3535_v55 = vpack.c.bf16 %v1516_v44, %v1515_v43  ;;  %v1220_v29 = vld [vmem:[%s4804_s12 + $0x588] sm:$0xff]  ;;  %v1242_v43 = vld [vmem:[%s4804_s12 + $0x638] sm:$0xff] }
 0x13a   : > { %1656 = vmatmul.mubr.f32.gmra.mrb[8].mxu1 %v1087_v7  ;;  %3414 = vmatprep.subr.bf16.mxu1 %v4000_v36  ;;  %v1147_v2 = vld [vmem:[%s4804_s12 + $0x340] sm:$0xff]  ;;  %v3427_v7 = vpack.c.bf16 %v1444_v59, %v1443_v58  ;;  %v1517_v58 = vld [vmem:[%s4797_s26 + $0x3d0] sm:$0xff]  ;;  %v1518_v59 = vld [vmem:[%s4797_s26 + $0x3d8] sm:$0xff] }
 0x13b   : > { %2106 = vmatmul.mubr.f32.gmra.mrb[8].mxu0 %v1091_v8  ;;  %1660 = vmatprep.mubr.f32.mxu1 %v1099_v9  ;;  %v1445_v8 = vld [vmem:[%s4797_s26 + $0x190] sm:$0xff]  ;;  %v1446_v9 = vld [vmem:[%s4797_s26 + $0x198] sm:$0xff]  ;;  %v3538_v6 = vpack.c.bf16 %v1518_v59, %v1517_v58  ;;  %v1263_v58 = vld [vmem:[%s4804_s12 + $0x6e0] sm:$0xff] }
 0x13c   : > { %2110 = vmatprep.mubr.f32.mxu0 %v1103_v12  ;;  %3512 = vmatpush1.bf16.msra.mxu0 %v3511_v11  ;;  %v1142_v11 = vld [vmem:[%s4804_s12 + $0x318] sm:$0xff]  ;;  %v1267_v59 = vld [vmem:[%s4804_s12 + $0x700] sm:$0xff] }
 0x13d   : > { %3513 = vmatprep.subr.bf16.mxu0 %v4000_v36  ;;  %3416 = vmatpush1.bf16.msra.mxu1 %v3415_v16  ;;  %v1146_v12 = vld [vmem:[%s4804_s12 + $0x338] sm:$0xff] }
 0x13e   : > { %1661 = vmatmul.mubr.f32.gmra.mrb[10].mxu1 %v1098_v20  ;;  %3417 = vmatprep.subr.bf16.mxu1 %v4000_v36  ;;  %v1158_v16 = vld [vmem:[%s4804_s12 + $0x398] sm:$0xff]  ;;  %v3430_v20 = vpack.c.bf16 %v1446_v9, %v1445_v8  ;;  %v1519_v8 = vld [vmem:[%s4797_s26 + $0x3e0] sm:$0xff]  ;;  %v1520_v9 = vld [vmem:[%s4797_s26 + $0x3e8] sm:$0xff] }
 0x13f   : > { %2111 = vmatmul.mubr.f32.gmra.mrb[10].mxu0 %v1102_v21  ;;  %1665 = vmatprep.mubr.f32.mxu1 %v1110_v22  ;;  %v1447_v21 = vld [vmem:[%s4797_s26 + $0x1a0] sm:$0xff]  ;;  %v1448_v22 = vld [vmem:[%s4797_s26 + $0x1a8] sm:$0xff]  ;;  %v3541_v18 = vpack.c.bf16 %v1520_v9, %v1519_v8  ;;  %v1246_v44 = vld [vmem:[%s4804_s12 + $0x658] sm:$0xff] }
 0x140   : > { %2115 = vmatprep.mubr.f32.mxu0 %v1114_v24  ;;  %3515 = vmatpush1.bf16.msra.mxu0 %v3514_v23  ;;  %v1153_v23 = vld [vmem:[%s4804_s12 + $0x370] sm:$0xff] }
 0x141   : > { %3516 = vmatprep.subr.bf16.mxu0 %v4000_v36  ;;  %3419 = vmatpush1.bf16.msra.mxu1 %v3418_v28  ;;  %v1157_v24 = vld [vmem:[%s4804_s12 + $0x390] sm:$0xff] }
 0x142   : > { %1666 = vmatmul.mubr.f32.gmra.mrb[12].mxu1 %v1109_v32  ;;  %3420 = vmatprep.subr.bf16.mxu1 %v4000_v36  ;;  %v1169_v28 = vld [vmem:[%s4804_s12 + $0x3f0] sm:$0xff]  ;;  %v3433_v32 = vpack.c.bf16 %v1448_v22, %v1447_v21  ;;  %v1522_v22 = vld [vmem:[%s4797_s26 + $0x3f8] sm:$0xff] }
 0x143   : > { %2116 = vmatmul.mubr.f32.gmra.mrb[12].mxu0 %v1113_v33  ;;  %1670 = vmatprep.mubr.f32.mxu1 %v1121_v34  ;;  %v1449_v33 = vld [vmem:[%s4797_s26 + $0x1b0] sm:$0xff]  ;;  %v1450_v34 = vld [vmem:[%s4797_s26 + $0x1b8] sm:$0xff] }
 0x144   : > { %2120 = vmatprep.mubr.f32.mxu0 %v1125_v37  ;;  %3518 = vmatpush1.bf16.msra.mxu0 %v3517_v35  ;;  %v1164_v35 = vld [vmem:[%s4804_s12 + $0x3c8] sm:$0xff]  ;;  %v1521_v21 = vld [vmem:[%s4797_s26 + $0x3f0] sm:$0xff] }
 0x145   : > { %3519 = vmatprep.subr.bf16.mxu0 %v4000_v36  ;;  %3422 = vmatpush1.bf16.msra.mxu1 %v3421_v42  ;;  %v1168_v37 = vld [vmem:[%s4804_s12 + $0x3e8] sm:$0xff]  ;;  %v3544_v30 = vpack.c.bf16 %v1522_v22, %v1521_v21  ;;  %v1297_v8 = vld [vmem:[%s4804_s12 + $0x7f0] sm:$0xff]  ;;  %v1319_v22 = vld [vmem:[%s4804_s12 + $0x8a0] sm:$0xff] }
 0x146   : > { %1671 = vmatmul.mubr.f32.gmra.mrb[14].mxu1 %v1120_v47  ;;  %3423 = vmatprep.subr.bf16.mxu1 %v4000_v36  ;;  %v1180_v42 = vld [vmem:[%s4804_s12 + $0x448] sm:$0xff]  ;;  %v3436_v47 = vpack.c.bf16 %v1450_v34, %v1449_v33  ;;  %v1219_v34 = vld [vmem:[%s4804_s12 + $0x580] sm:$0xff]  ;;  %v1301_v9 = vld [vmem:[%s4804_s12 + $0x810] sm:$0xff] }
 0x147   : > { %2121 = vmatmul.mubr.f32.gmra.mrb[14].mxu0 %v1124_v48  ;;  %1675 = vmatprep.mubr.f32.mxu1 %v1132_v49  ;;  %v1451_v48 = vld [vmem:[%s4797_s26 + $0x1c0] sm:$0xff]  ;;  %v1452_v49 = vld [vmem:[%s4797_s26 + $0x1c8] sm:$0xff] }
 0x148   : > { %2125 = vmatprep.mubr.f32.mxu0 %v1136_v52  ;;  %3521 = vmatpush1.bf16.msra.mxu0 %v3520_v50  ;;  %v1175_v50 = vld [vmem:[%s4804_s12 + $0x420] sm:$0xff] }
 0x149   : > { %3522 = vmatprep.subr.bf16.mxu0 %v4000_v36  ;;  %3425 = vmatpush1.bf16.msra.mxu1 %v3424_v56  ;;  %v1179_v52 = vld [vmem:[%s4804_s12 + $0x440] sm:$0xff] }
 0x14a   : > { %1676 = vmatmul.mubr.f32.gmra.mrb[16].mxu1 %v1131_v61  ;;  %3426 = vmatprep.subr.bf16.mxu1 %v4000_v36  ;;  %v1191_v56 = vld [vmem:[%s4804_s12 + $0x4a0] sm:$0xff]  ;;  %v3439_v61 = vpack.c.bf16 %v1452_v49, %v1451_v48  ;;  %v1245_v48 = vld [vmem:[%s4804_s12 + $0x650] sm:$0xff] }
 0x14b   : > { %2126 = vmatmul.mubr.f32.gmra.mrb[16].mxu0 %v1135_v62  ;;  %1680 = vmatprep.mubr.f32.mxu1 %v1143_v0  ;;  %v1453_v62 = vld [vmem:[%s4797_s26 + $0x1d0] sm:$0xff]  ;;  %v1454_v0 = vld [vmem:[%s4797_s26 + $0x1d8] sm:$0xff] }
 0x14c   : > { %2130 = vmatprep.mubr.f32.mxu0 %v1147_v2  ;;  %3524 = vmatpush1.bf16.msra.mxu0 %v3523_v1  ;;  %v1186_v1 = vld [vmem:[%s4804_s12 + $0x478] sm:$0xff]  ;;  %v1253_v49 = vld [vmem:[%s4804_s12 + $0x690] sm:$0xff] }
 0x14d   : > { %3525 = vmatprep.subr.bf16.mxu0 %v4000_v36  ;;  %3428 = vmatpush1.bf16.msra.mxu1 %v3427_v7  ;;  %v1190_v2 = vld [vmem:[%s4804_s12 + $0x498] sm:$0xff] }
 0x14e   : > { %1681 = vmatmul.mubr.f32.gmra.mrb[18].mxu1 %v1142_v11  ;;  %3429 = vmatprep.subr.bf16.mxu1 %v4000_v36  ;;  %v1202_v7 = vld [vmem:[%s4804_s12 + $0x4f8] sm:$0xff]  ;;  %v3442_v11 = vpack.c.bf16 %v1454_v0, %v1453_v62  ;;  %v1279_v62 = vld [vmem:[%s4804_s12 + $0x760] sm:$0xff] }
 0x14f   : > { %2131 = vmatmul.mubr.f32.gmra.mrb[18].mxu0 %v1146_v12  ;;  %1685 = vmatprep.mubr.f32.mxu1 %v1154_v14  ;;  %v1455_v12 = vld [vmem:[%s4797_s26 + $0x1e0] sm:$0xff]  ;;  %v1456_v14 = vld [vmem:[%s4797_s26 + $0x1e8] sm:$0xff]  ;;  %v1274_v0 = vld [vmem:[%s4804_s12 + $0x738] sm:$0xff] }
 0x150   : > { %2135 = vmatprep.mubr.f32.mxu0 %v1158_v16  ;;  %3527 = vmatpush1.bf16.msra.mxu0 %v3526_v15  ;;  %v1197_v15 = vld [vmem:[%s4804_s12 + $0x4d0] sm:$0xff] }
 0x151   : > { %3528 = vmatprep.subr.bf16.mxu0 %v4000_v36  ;;  %3431 = vmatpush1.bf16.msra.mxu1 %v3430_v20  ;;  %v1201_v16 = vld [vmem:[%s4804_s12 + $0x4f0] sm:$0xff] }
 0x152   : > { %1686 = vmatmul.mubr.f32.gmra.mrb[20].mxu1 %v1153_v23  ;;  %3432 = vmatprep.subr.bf16.mxu1 %v4000_v36  ;;  %v1213_v20 = vld [vmem:[%s4804_s12 + $0x550] sm:$0xff]  ;;  %v3445_v23 = vpack.c.bf16 %v1456_v14, %v1455_v12  ;;  %v1300_v12 = vld [vmem:[%s4804_s12 + $0x808] sm:$0xff] }
 0x153   : > { %2136 = vmatmul.mubr.f32.gmra.mrb[20].mxu0 %v1157_v24  ;;  %1690 = vmatprep.mubr.f32.mxu1 %v1165_v26  ;;  %v1457_v24 = vld [vmem:[%s4797_s26 + $0x1f0] sm:$0xff]  ;;  %v1458_v26 = vld [vmem:[%s4797_s26 + $0x1f8] sm:$0xff]  ;;  %v1308_v14 = vld [vmem:[%s4804_s12 + $0x848] sm:$0xff] }
 0x154   : > { %2140 = vmatprep.mubr.f32.mxu0 %v1169_v28  ;;  %3530 = vmatpush1.bf16.msra.mxu0 %v3529_v27  ;;  %v1208_v27 = vld [vmem:[%s4804_s12 + $0x528] sm:$0xff]  ;;  %v3448_v33 = vpack.c.bf16 %v1458_v26, %v1457_v24  ;;  %v1525_v24 = vld [vmem:[%s4797_s26 + $0x410] sm:$0xff]  ;;  %v1526_v26 = vld [vmem:[%s4797_s26 + $0x418] sm:$0xff] }
 0x155   : > { %3531 = vmatprep.subr.bf16.mxu0 %v4000_v36  ;;  %3434 = vmatpush1.bf16.msra.mxu1 %v3433_v32  ;;  %v1212_v28 = vld [vmem:[%s4804_s12 + $0x548] sm:$0xff] }
 0x156   : > { %1691 = vmatmul.mubr.f32.gmra.mrb[22].mxu1 %v1164_v35  ;;  %3435 = vmatprep.subr.bf16.mxu1 %v4000_v36  ;;  %v1224_v32 = vld [vmem:[%s4804_s12 + $0x5a8] sm:$0xff]  ;;  %v1223_v35 = vld [vmem:[%s4804_s12 + $0x5a0] sm:$0xff] }
 0x157   : > { %2141 = vmatmul.mubr.f32.gmra.mrb[22].mxu0 %v1168_v37  ;;  %1695 = vmatprep.mubr.f32.mxu1 %v1176_v39  ;;  %v1231_v37 = vld [vmem:[%s4804_s12 + $0x5e0] sm:$0xff] }
 0x158   : > { %2145 = vmatprep.mubr.f32.mxu0 %v1180_v42  ;;  %3533 = vmatpush1.bf16.msra.mxu0 %v3532_v40  ;;  %v1235_v39 = vld [vmem:[%s4804_s12 + $0x600] sm:$0xff]  ;;  %v1230_v40 = vld [vmem:[%s4804_s12 + $0x5d8] sm:$0xff] }
 0x159   : > { %3534 = vmatprep.subr.bf16.mxu0 %v4000_v36  ;;  %3437 = vmatpush1.bf16.msra.mxu1 %v3436_v47  ;;  %v1234_v42 = vld [vmem:[%s4804_s12 + $0x5f8] sm:$0xff]  ;;  %v1241_v47 = vld [vmem:[%s4804_s12 + $0x630] sm:$0xff] }
 0x15a   : > { %1696 = vmatmul.mubr.f32.gmra.mrb[24].mxu1 %v1175_v50  ;;  %3438 = vmatprep.subr.bf16.mxu1 %v4000_v36  ;;  %v1257_v50 = vld [vmem:[%s4804_s12 + $0x6b0] sm:$0xff] }
 0x15b   : > { %2146 = vmatmul.mubr.f32.gmra.mrb[24].mxu0 %v1179_v52  ;;  %1700 = vmatprep.mubr.f32.mxu1 %v1187_v54  ;;  %v1252_v52 = vld [vmem:[%s4804_s12 + $0x688] sm:$0xff] }
 0x15c   : > { %2150 = vmatprep.mubr.f32.mxu0 %v1191_v56  ;;  %3536 = vmatpush1.bf16.msra.mxu0 %v3535_v55  ;;  %v1256_v54 = vld [vmem:[%s4804_s12 + $0x6a8] sm:$0xff] }
 0x15d   : > { %3537 = vmatprep.subr.bf16.mxu0 %v4000_v36  ;;  %3440 = vmatpush1.bf16.msra.mxu1 %v3439_v61  ;;  %v1264_v55 = vld [vmem:[%s4804_s12 + $0x6e8] sm:$0xff]  ;;  %v1275_v61 = vld [vmem:[%s4804_s12 + $0x740] sm:$0xff] }
 0x15e   : > { %1701 = vmatmul.mubr.f32.gmra.mrb[26].mxu1 %v1186_v1  ;;  %3441 = vmatprep.subr.bf16.mxu1 %v4000_v36  ;;  %v1268_v56 = vld [vmem:[%s4804_s12 + $0x708] sm:$0xff]  ;;  %v1278_v1 = vld [vmem:[%s4804_s12 + $0x758] sm:$0xff] }
 0x15f   : > { %2151 = vmatmul.mubr.f32.gmra.mrb[26].mxu0 %v1190_v2  ;;  %1705 = vmatprep.mubr.f32.mxu1 %v1198_v4  ;;  %v1286_v2 = vld [vmem:[%s4804_s12 + $0x798] sm:$0xff] }
 0x160   : > { %2155 = vmatprep.mubr.f32.mxu0 %v1202_v7  ;;  %3539 = vmatpush1.bf16.msra.mxu0 %v3538_v6  ;;  %v1290_v4 = vld [vmem:[%s4804_s12 + $0x7b8] sm:$0xff]  ;;  %v1285_v6 = vld [vmem:[%s4804_s12 + $0x790] sm:$0xff] }
 0x161   : > { %3540 = vmatprep.subr.bf16.mxu0 %v4000_v36  ;;  %3443 = vmatpush1.bf16.msra.mxu1 %v3442_v11  ;;  %v1289_v7 = vld [vmem:[%s4804_s12 + $0x7b0] sm:$0xff]  ;;  %v1296_v11 = vld [vmem:[%s4804_s12 + $0x7e8] sm:$0xff] }
 0x162   : > { %1706 = vmatmul.mubr.f32.gmra.mrb[28].mxu1 %v1197_v15  ;;  %3444 = vmatprep.subr.bf16.mxu1 %v4000_v36  ;;  %v1050_v15 = vld [vmem:[%s4804_s12 + $0x38] sm:$0xff] }
 0x163   : > { %2156 = vmatmul.mubr.f32.gmra.mrb[28].mxu0 %v1201_v16  ;;  %1710 = vmatprep.mubr.f32.mxu1 %v1209_v17  ;;  %v1523_v16 = vld [vmem:[%s4797_s26 + $0x400] sm:$0xff]  ;;  %v1524_v17 = vld [vmem:[%s4797_s26 + $0x408] sm:$0xff] }
 0x164   : > { %2160 = vmatprep.mubr.f32.mxu0 %v1213_v20  ;;  %3542 = vmatpush1.bf16.msra.mxu0 %v3541_v18  ;;  %v1307_v18 = vld [vmem:[%s4804_s12 + $0x840] sm:$0xff]  ;;  %v1049_v20 = vld [vmem:[%s4804_s12 + $0x30] sm:$0xff]  ;;  %v3547_v21 = vpack.c.bf16 %v1524_v17, %v1523_v16 }
 0x165   : > { %3543 = vmatprep.subr.bf16.mxu0 %v4000_v36  ;;  %3446 = vmatpush1.bf16.msra.mxu1 %v3445_v23  ;;  %v1061_v23 = vld [vmem:[%s4804_s12 + $0x90] sm:$0xff]  ;;  %v1127_v17 = vld [vmem:[%s4804_s12 + $0x2a0] sm:$0xff] }
 0x166   : > { %1711 = vmatmul.mubr.f32.gmra.mrb[30].mxu1 %v1208_v27  ;;  %3447 = vmatprep.subr.bf16.mxu1 %v4000_v36  ;;  %v1318_v27 = vld [vmem:[%s4804_s12 + $0x898] sm:$0xff] }
 0x167   : > { %2161 = vmatmul.mubr.f32.gmra.mrb[30].mxu0 %v1212_v28  ;;  %1715 = vmatprep.mubr.f32.mxu1 %v1220_v29  ;;  %v1060_v28 = vld [vmem:[%s4804_s12 + $0x88] sm:$0xff]  ;;  %v1330_v29 = vld [vmem:[%s4804_s12 + $0x8f8] sm:$0xff] }
 0x168   : > { %2165 = vmatprep.mubr.f32.mxu0 %v1224_v32  ;;  %3545 = vmatpush1.bf16.msra.mxu0 %v3544_v30  ;;  %v3550_v30 = vpack.c.bf16 %v1526_v26, %v1525_v24  ;;  %v1072_v32 = vld [vmem:[%s4804_s12 + $0xe8] sm:$0xff]  ;;  %v1138_v26 = vld [vmem:[%s4804_s12 + $0x2f8] sm:$0xff] }
 0x169   : > { %3546 = vmatprep.subr.bf16.mxu0 %v4000_v36  ;;  %3449 = vmatpush1.bf16.msra.mxu1 %v3448_v33  ;;  %v1527_v33 = vld [vmem:[%s4797_s26 + $0x420] sm:$0xff] }
 0x16a   : > { %1716 = vmatmul.mubr.f32.gmra.mrb[32].mxu1 %v1219_v34  ;;  %3626 = vmatprep.subr.bf16.mxu1 %v4000_v36  ;;  %v1528_v34 = vld [vmem:[%s4797_s26 + $0x428] sm:$0xff] }
 0x16b   : > { %2166 = vmatmul.mubr.f32.gmra.mrb[32].mxu0 %v1223_v35  ;;  %1720 = vmatprep.mubr.f32.mxu1 %v1231_v37  ;;  %v1329_v35 = vld [vmem:[%s4804_s12 + $0x8f0] sm:$0xff]  ;;  %v1071_v37 = vld [vmem:[%s4804_s12 + $0xe0] sm:$0xff] }
 0x16c   : > { %2170 = vmatprep.mubr.f32.mxu0 %v1235_v39  ;;  %v1341_v39 = vld [vmem:[%s4804_s12 + $0x950] sm:$0xff] }
 0x16e   : > { %1721 = vmatmul.mubr.f32.gmra.mrb[34].mxu1 %v1230_v40  ;;  %v3553_v40 = vpack.c.bf16 %v1528_v34, %v1527_v33  ;;  %v1149_v33 = vld [vmem:[%s4804_s12 + $0x350] sm:$0xff] }
 0x16f   : > { %2171 = vmatmul.mubr.f32.gmra.mrb[34].mxu0 %v1234_v42  ;;  %1725 = vmatprep.mubr.f32.mxu1 %v1242_v43  ;;  %v1083_v42 = vld [vmem:[%s4804_s12 + $0x140] sm:$0xff]  ;;  %v1529_v43 = vld [vmem:[%s4797_s26 + $0x430] sm:$0xff] }
 0x170   : > { %2175 = vmatprep.mubr.f32.mxu0 %v1246_v44  ;;  %v1530_v44 = vld [vmem:[%s4797_s26 + $0x438] sm:$0xff] }
 0x172   : > { %1726 = vmatmul.mubr.f32.gmra.mrb[36].mxu1 %v1241_v47  ;;  %v1340_v47 = vld [vmem:[%s4804_s12 + $0x948] sm:$0xff] }
 0x173   : > { %2176 = vmatmul.mubr.f32.gmra.mrb[36].mxu0 %v1245_v48  ;;  %1730 = vmatprep.mubr.f32.mxu1 %v1253_v49  ;;  %v1082_v48 = vld [vmem:[%s4804_s12 + $0x138] sm:$0xff]  ;;  %v1352_v49 = vld [vmem:[%s4804_s12 + $0x9a8] sm:$0xff] }
 0x174   : > { %2180 = vmatprep.mubr.f32.mxu0 %v1257_v50  ;;  %v3556_v50 = vpack.c.bf16 %v1530_v44, %v1529_v43  ;;  %v1160_v43 = vld [vmem:[%s4804_s12 + $0x3a8] sm:$0xff] }
 0x176   : > { %1731 = vmatmul.mubr.f32.gmra.mrb[38].mxu1 %v1252_v52  ;;  %v1094_v52 = vld [vmem:[%s4804_s12 + $0x198] sm:$0xff] }
 0x177   : > { %2181 = vmatmul.mubr.f32.gmra.mrb[38].mxu0 %v1256_v54  ;;  %1735 = vmatprep.mubr.f32.mxu1 %v1264_v55  ;;  %v1531_v54 = vld [vmem:[%s4797_s26 + $0x440] sm:$0xff]  ;;  %v1532_v55 = vld [vmem:[%s4797_s26 + $0x448] sm:$0xff] }
 0x178   : > { %2185 = vmatprep.mubr.f32.mxu0 %v1268_v56  ;;  %v1351_v56 = vld [vmem:[%s4804_s12 + $0x9a0] sm:$0xff] }
 0x17a   : > { %1736 = vmatmul.mubr.f32.gmra.mrb[40].mxu1 %v1263_v58  ;;  %v1093_v58 = vld [vmem:[%s4804_s12 + $0x190] sm:$0xff] }
 0x17b   : > { %2186 = vmatmul.mubr.f32.gmra.mrb[40].mxu0 %v1267_v59  ;;  %1740 = vmatprep.mubr.f32.mxu1 %v1275_v61  ;;  %v1363_v59 = vld [vmem:[%s4804_s12 + $0xa00] sm:$0xff]  ;;  %v3559_v61 = vpack.c.bf16 %v1532_v55, %v1531_v54  ;;  %v1545_v55 = vld [vmem:[%s4797_s26 + $0x4b0] sm:$0xff] }
 0x17c   : > { %2190 = vmatprep.mubr.f32.mxu0 %v1279_v62  ;;  %v1105_v62 = vld [vmem:[%s4804_s12 + $0x1f0] sm:$0xff] }
 0x17e   : > { %1741 = vmatmul.mubr.f32.gmra.mrb[42].mxu1 %v1274_v0  ;;  %v1533_v0 = vld [vmem:[%s4797_s26 + $0x450] sm:$0xff] }
 0x17f   : > { %2191 = vmatmul.mubr.f32.gmra.mrb[42].mxu0 %v1278_v1  ;;  %1745 = vmatprep.mubr.f32.mxu1 %v1286_v2  ;;  %v1534_v1 = vld [vmem:[%s4797_s26 + $0x458] sm:$0xff] }
 0x180   : > { %2195 = vmatprep.mubr.f32.mxu0 %v1290_v4  ;;  %v1362_v2 = vld [vmem:[%s4804_s12 + $0x9f8] sm:$0xff]  ;;  %v1104_v4 = vld [vmem:[%s4804_s12 + $0x1e8] sm:$0xff] }
 0x182   : > { %1746 = vmatmul.mubr.f32.gmra.mrb[44].mxu1 %v1285_v6  ;;  %v1374_v6 = vld [vmem:[%s4804_s12 + $0xa58] sm:$0xff] }
 0x183   : > { %2196 = vmatmul.mubr.f32.gmra.mrb[44].mxu0 %v1289_v7  ;;  %1750 = vmatprep.mubr.f32.mxu1 %v1297_v8  ;;  %v3562_v7 = vpack.c.bf16 %v1534_v1, %v1533_v0  ;;  %v1116_v8 = vld [vmem:[%s4804_s12 + $0x248] sm:$0xff]  ;;  %v1547_v0 = vld [vmem:[%s4797_s26 + $0x4c0] sm:$0xff] }
 0x184   : > { %2200 = vmatprep.mubr.f32.mxu0 %v1301_v9  ;;  %v1535_v9 = vld [vmem:[%s4797_s26 + $0x460] sm:$0xff]  ;;  %v1548_v1 = vld [vmem:[%s4797_s26 + $0x4c8] sm:$0xff] }
 0x186   : > { %1751 = vmatmul.mubr.f32.gmra.mrb[46].mxu1 %v1296_v11  ;;  %v1536_v11 = vld [vmem:[%s4797_s26 + $0x468] sm:$0xff] }
 0x187   : > { %2201 = vmatmul.mubr.f32.gmra.mrb[46].mxu0 %v1300_v12  ;;  %1755 = vmatprep.mubr.f32.mxu1 %v1308_v14  ;;  %v1373_v12 = vld [vmem:[%s4804_s12 + $0xa50] sm:$0xff]  ;;  %v1115_v14 = vld [vmem:[%s4804_s12 + $0x240] sm:$0xff]  ;;  %v3565_v16 = vpack.c.bf16 %v1536_v11, %v1535_v9  ;;  %v1550_v9 = vld [vmem:[%s4797_s26 + $0x4d8] sm:$0xff] }
 0x188   : > { %2310 = vmatprep.mubr.f32.mxu0 %v1050_v15  ;;  %v1385_v15 = vld [vmem:[%s4804_s12 + $0xab0] sm:$0xff]  ;;  %v1100_v11 = vld [vmem:[%s4804_s12 + $0x1c8] sm:$0xff] }
 0x18a   : > { %1756 = vmatmul.mubr.f32.gmra.mrb[48].mxu1 %v1307_v18  ;;  %v1537_v18 = vld [vmem:[%s4797_s26 + $0x470] sm:$0xff] }
 0x18b   : > { %2311 = vmatmul.mubr.f32.vlgmr.msra.gmra.mrb[0].mxu0 %v1049_v20  ;;  %1760 = vmatprep.mubr.f32.mxu1 %v1319_v22  ;;  %v1538_v20 = vld [vmem:[%s4797_s26 + $0x478] sm:$0xff] }
 0x18c   : > { %3548 = vmatpush1.bf16.msra.mxu0 %v3547_v21  ;;  %2315 = vmatprep.mubr.f32.mxu0 %v1061_v23  ;;  %v1384_v21 = vld [vmem:[%s4804_s12 + $0xaa8] sm:$0xff]  ;;  %v1126_v22 = vld [vmem:[%s4804_s12 + $0x298] sm:$0xff]  ;;  %v3568_v24 = vpack.c.bf16 %v1538_v20, %v1537_v18  ;;  %v1111_v18 = vld [vmem:[%s4804_s12 + $0x220] sm:$0xff] }
 0x18d   : > { %3549 = vmatprep.subr.bf16.mxu0 %v4000_v36  ;;  %v1046_v23 = vld [vmem:[%s4804_s12 + $0x18] sm:$0xff]  ;;  %v1123_v20 = vld [vmem:[%s4804_s12 + $0x280] sm:$0xff] }
 0x18e   : > { %1761 = vmatmul.mubr.f32.gmra.mrb[50].mxu1 %v1318_v27  ;;  %v1539_v27 = vld [vmem:[%s4797_s26 + $0x480] sm:$0xff] }
 0x18f   : > { %2316 = vmatmul.mubr.f32.gmra.mrb[2].mxu0 %v1060_v28  ;;  %1765 = vmatprep.mubr.f32.mxu1 %v1330_v29  ;;  %v1540_v28 = vld [vmem:[%s4797_s26 + $0x488] sm:$0xff]  ;;  %v1045_v29 = vld [vmem:[%s4804_s12 + $0x10] sm:$0xff] }
 0x190   : > { %2320 = vmatprep.mubr.f32.mxu0 %v1072_v32  ;;  %3551 = vmatpush1.bf16.msra.mxu0 %v3550_v30  ;;  %v1137_v30 = vld [vmem:[%s4804_s12 + $0x2f0] sm:$0xff]  ;;  %v3571_v34 = vpack.c.bf16 %v1540_v28, %v1539_v27  ;;  %v1214_v27 = vld [vmem:[%s4804_s12 + $0x558] sm:$0xff] }
 0x191   : > { %3552 = vmatprep.subr.bf16.mxu0 %v4000_v36  ;;  %v1057_v32 = vld [vmem:[%s4804_s12 + $0x70] sm:$0xff]  ;;  %v1226_v28 = vld [vmem:[%s4804_s12 + $0x5b8] sm:$0xff] }
 0x192   : > { %1766 = vmatmul.mubr.f32.gmra.mrb[52].mxu1 %v1329_v35  ;;  %v1541_v35 = vld [vmem:[%s4797_s26 + $0x490] sm:$0xff] }
 0x193   : > { %2321 = vmatmul.mubr.f32.gmra.mrb[4].mxu0 %v1071_v37  ;;  %1770 = vmatprep.mubr.f32.mxu1 %v1341_v39  ;;  %v1542_v37 = vld [vmem:[%s4797_s26 + $0x498] sm:$0xff]  ;;  %v1056_v39 = vld [vmem:[%s4804_s12 + $0x68] sm:$0xff] }
 0x194   : > { %2325 = vmatprep.mubr.f32.mxu0 %v1083_v42  ;;  %3554 = vmatpush1.bf16.msra.mxu0 %v3553_v40  ;;  %v1148_v40 = vld [vmem:[%s4804_s12 + $0x348] sm:$0xff]  ;;  %v3574_v44 = vpack.c.bf16 %v1542_v37, %v1541_v35 }
 0x195   : > { %3555 = vmatprep.subr.bf16.mxu0 %v4000_v36  ;;  %v1068_v42 = vld [vmem:[%s4804_s12 + $0xc8] sm:$0xff] }
 0x196   : > { %1771 = vmatmul.mubr.f32.gmra.mrb[54].mxu1 %v1340_v47  ;;  %v1543_v47 = vld [vmem:[%s4797_s26 + $0x4a0] sm:$0xff]  ;;  %v1236_v35 = vld [vmem:[%s4804_s12 + $0x608] sm:$0xff] }
 0x197   : > { %2326 = vmatmul.mubr.f32.gmra.mrb[6].mxu0 %v1082_v48  ;;  %1775 = vmatprep.mubr.f32.mxu1 %v1352_v49  ;;  %v1067_v48 = vld [vmem:[%s4804_s12 + $0xc0] sm:$0xff]  ;;  %v1156_v37 = vld [vmem:[%s4804_s12 + $0x388] sm:$0xff] }
 0x198   : > { %2330 = vmatprep.mubr.f32.mxu0 %v1094_v52  ;;  %3557 = vmatpush1.bf16.msra.mxu0 %v3556_v50  ;;  %v1159_v49 = vld [vmem:[%s4804_s12 + $0x3a0] sm:$0xff] }
 0x199   : > { %3558 = vmatprep.subr.bf16.mxu0 %v4000_v36  ;;  %v1079_v50 = vld [vmem:[%s4804_s12 + $0x120] sm:$0xff] }
 0x19a   : > { %1776 = vmatmul.mubr.f32.gmra.mrb[56].mxu1 %v1351_v56  ;;  %v1171_v52 = vld [vmem:[%s4804_s12 + $0x400] sm:$0xff]  ;;  %v1546_v56 = vld [vmem:[%s4797_s26 + $0x4b8] sm:$0xff] }
 0x19b   : > { %2331 = vmatmul.mubr.f32.gmra.mrb[8].mxu0 %v1093_v58  ;;  %1780 = vmatprep.mubr.f32.mxu1 %v1363_v59  ;;  %v1078_v58 = vld [vmem:[%s4804_s12 + $0x118] sm:$0xff] }
 0x19c   : > { %2335 = vmatprep.mubr.f32.mxu0 %v1105_v62  ;;  %3560 = vmatpush1.bf16.msra.mxu0 %v3559_v61  ;;  %v1090_v59 = vld [vmem:[%s4804_s12 + $0x178] sm:$0xff]  ;;  %v3580_v62 = vpack.c.bf16 %v1546_v56, %v1545_v55  ;;  %v1292_v55 = vld [vmem:[%s4804_s12 + $0x7c8] sm:$0xff]  ;;  %v1291_v56 = vld [vmem:[%s4804_s12 + $0x7c0] sm:$0xff] }
 0x19d   : > { %3561 = vmatprep.subr.bf16.mxu0 %v4000_v36  ;;  %v1182_v61 = vld [vmem:[%s4804_s12 + $0x458] sm:$0xff] }
 0x19e   : > { %1781 = vmatmul.mubr.f32.gmra.mrb[58].mxu1 %v1362_v2  ;;  %v1089_v2 = vld [vmem:[%s4804_s12 + $0x170] sm:$0xff] }
 0x19f   : > { %2336 = vmatmul.mubr.f32.gmra.mrb[10].mxu0 %v1104_v4  ;;  %1785 = vmatprep.mubr.f32.mxu1 %v1374_v6  ;;  %v1101_v4 = vld [vmem:[%s4804_s12 + $0x1d0] sm:$0xff] }
 0x1a0   : > { %2340 = vmatprep.mubr.f32.mxu0 %v1116_v8  ;;  %3563 = vmatpush1.bf16.msra.mxu0 %v3562_v7  ;;  %v1193_v6 = vld [vmem:[%s4804_s12 + $0x4b0] sm:$0xff]  ;;  %v3583_v7 = vpack.c.bf16 %v1548_v1, %v1547_v0  ;;  %v1222_v0 = vld [vmem:[%s4804_s12 + $0x598] sm:$0xff] }
 0x1a1   : > { %3564 = vmatprep.subr.bf16.mxu0 %v4000_v36  ;;  %v1549_v8 = vld [vmem:[%s4797_s26 + $0x4d0] sm:$0xff]  ;;  %v1314_v1 = vld [vmem:[%s4804_s12 + $0x878] sm:$0xff] }
 0x1a2   : > { %1786 = vmatmul.mubr.f32.gmra.mrb[60].mxu1 %v1373_v12  ;;  %v1112_v12 = vld [vmem:[%s4804_s12 + $0x228] sm:$0xff] }
 0x1a3   : > { %2341 = vmatmul.mubr.f32.gmra.mrb[12].mxu0 %v1115_v14  ;;  %1790 = vmatprep.mubr.f32.mxu1 %v1385_v15  ;;  %v1204_v14 = vld [vmem:[%s4804_s12 + $0x508] sm:$0xff]  ;;  %v3586_v15 = vpack.c.bf16 %v1550_v9, %v1549_v8  ;;  %v1335_v9 = vld [vmem:[%s4804_s12 + $0x920] sm:$0xff] }
 0x1a4   : > { %2345 = vmatprep.mubr.f32.mxu0 %v1127_v17  ;;  %3566 = vmatpush1.bf16.msra.mxu0 %v3565_v16  ;;  %v1551_v16 = vld [vmem:[%s4797_s26 + $0x4e0] sm:$0xff]  ;;  %v1552_v17 = vld [vmem:[%s4797_s26 + $0x4e8] sm:$0xff] }
 0x1a5   : > { %3567 = vmatprep.subr.bf16.mxu0 %v4000_v36  ;;  %v1336_v8 = vld [vmem:[%s4804_s12 + $0x928] sm:$0xff] }
 0x1a6   : > { %1791 = vmatmul.mubr.f32.gmra.mrb[62].mxu1 %v1384_v21  ;;  %v1215_v21 = vld [vmem:[%s4804_s12 + $0x560] sm:$0xff] }
 0x1a7   : > { %2346 = vmatmul.mubr.f32.gmra.mrb[14].mxu0 %v1126_v22  ;;  %1860 = vmatprep.mubr.f32.mxu1 %v1046_v23  ;;  %v3589_v22 = vpack.c.bf16 %v1552_v17, %v1551_v16  ;;  %v1553_v23 = vld [vmem:[%s4797_s26 + $0x4f0] sm:$0xff]  ;;  %v1358_v16 = vld [vmem:[%s4804_s12 + $0x9d8] sm:$0xff] }
 0x1a8   : > { %2350 = vmatprep.mubr.f32.mxu0 %v1138_v26  ;;  %3569 = vmatpush1.bf16.msra.mxu0 %v3568_v24  ;;  %v1554_v24 = vld [vmem:[%s4797_s26 + $0x4f8] sm:$0xff]  ;;  %v1265_v17 = vld [vmem:[%s4804_s12 + $0x6f0] sm:$0xff] }
 0x1a9   : > { %3570 = vmatprep.subr.bf16.mxu0 %v4000_v36  ;;  %v1122_v26 = vld [vmem:[%s4804_s12 + $0x278] sm:$0xff] }
 0x1aa   : > { %1861 = vmatmul.mubr.f32.vlgmr.msra.gmra.mrb[0].mxu1 %v1045_v29  ;;  %v3592_v29 = vpack.c.bf16 %v1554_v24, %v1553_v23  ;;  %v1288_v23 = vld [vmem:[%s4804_s12 + $0x7a8] sm:$0xff] }
 0x1ab   : > { %2351 = vmatmul.mubr.f32.gmra.mrb[16].mxu0 %v1137_v30  ;;  %3642 = vmatpush1.bf16.msra.mxu1 %v4815_v41  ;;  %v1544_v41 = vld [vmem:[%s4797_s26 + $0x4a8] sm:$0xff]  ;;  %v1133_v30 = vld [vmem:[%s4804_s12 + $0x2d0] sm:$0xff] }
 0x1ac   : > { %1865 = vmatprep.mubr.f32.mxu1 %v1057_v32  ;;  %2355 = vmatprep.mubr.f32.mxu0 %v1149_v33  ;;  %v3577_v54 = vpack.c.bf16 %v1544_v41, %v1543_v47  ;;  %v1225_v32 = vld [vmem:[%s4804_s12 + $0x5b0] sm:$0xff]  ;;  %v1178_v47 = vld [vmem:[%s4804_s12 + $0x438] sm:$0xff]  ;;  %v1380_v24 = vld [vmem:[%s4804_s12 + $0xa88] sm:$0xff] }
 0x1ad   : > { %3627 = vmatprep.subr.bf16.mxu1 %v4000_v36  ;;  %3572 = vmatpush1.bf16.msra.mxu0 %v3571_v34  ;;  %v1145_v33 = vld [vmem:[%s4804_s12 + $0x330] sm:$0xff]  ;;  %v1144_v34 = vld [vmem:[%s4804_s12 + $0x328] sm:$0xff]  ;;  %v1270_v41 = vld [vmem:[%s4804_s12 + $0x718] sm:$0xff] }
 0x1ae   : > { %1866 = vmatmul.mubr.f32.gmra.mrb[2].mxu1 %v1056_v39  ;;  %3573 = vmatprep.subr.bf16.mxu0 %v4000_v36  ;;  %v1248_v39 = vld [vmem:[%s4804_s12 + $0x668] sm:$0xff] }
 0x1af   : > { %2356 = vmatmul.mubr.f32.gmra.mrb[18].mxu0 %v1148_v40  ;;  %1870 = vmatprep.mubr.f32.mxu1 %v1068_v42  ;;  %v1247_v40 = vld [vmem:[%s4804_s12 + $0x660] sm:$0xff] }
 0x1b0   : > { %2360 = vmatprep.mubr.f32.mxu0 %v1160_v43  ;;  %3643 = vmatpush1.bf16.msra.mxu1 %v4821_v45  ;;  %v1170_v45 = vld [vmem:[%s4804_s12 + $0x3f8] sm:$0xff]  ;;  %v1167_v42 = vld [vmem:[%s4804_s12 + $0x3e0] sm:$0xff] }
 0x1b1   : > { %3628 = vmatprep.subr.bf16.mxu1 %v4000_v36  ;;  %3575 = vmatpush1.bf16.msra.mxu0 %v3574_v44  ;;  %v1259_v43 = vld [vmem:[%s4804_s12 + $0x6c0] sm:$0xff]  ;;  %v1258_v44 = vld [vmem:[%s4804_s12 + $0x6b8] sm:$0xff] }
 0x1b2   : > { %1871 = vmatmul.mubr.f32.gmra.mrb[4].mxu1 %v1067_v48  ;;  %3576 = vmatprep.subr.bf16.mxu0 %v4000_v36  ;;  %v1269_v48 = vld [vmem:[%s4804_s12 + $0x710] sm:$0xff] }
 0x1b3   : > { %2361 = vmatmul.mubr.f32.gmra.mrb[20].mxu0 %v1159_v49  ;;  %1875 = vmatprep.mubr.f32.mxu1 %v1079_v50  ;;  %v1189_v49 = vld [vmem:[%s4804_s12 + $0x490] sm:$0xff] }
 0x1b4   : > { %2365 = vmatprep.mubr.f32.mxu0 %v1171_v52  ;;  %3644 = vmatpush1.bf16.msra.mxu1 %v4830_v51  ;;  %v1181_v51 = vld [vmem:[%s4804_s12 + $0x450] sm:$0xff]  ;;  %v1280_v52 = vld [vmem:[%s4804_s12 + $0x768] sm:$0xff] }
 0x1b5   : > { %3629 = vmatprep.subr.bf16.mxu1 %v4000_v36  ;;  %3578 = vmatpush1.bf16.msra.mxu0 %v3577_v54  ;;  %v1281_v50 = vld [vmem:[%s4804_s12 + $0x770] sm:$0xff]  ;;  %v1200_v54 = vld [vmem:[%s4804_s12 + $0x4e8] sm:$0xff] }
 0x1b6   : > { %1876 = vmatmul.mubr.f32.gmra.mrb[6].mxu1 %v1078_v58  ;;  %3579 = vmatprep.subr.bf16.mxu0 %v4000_v36  ;;  %v1211_v58 = vld [vmem:[%s4804_s12 + $0x540] sm:$0xff] }
 0x1b7   : > { %2366 = vmatmul.mubr.f32.gmra.mrb[22].mxu0 %v1170_v45  ;;  %1880 = vmatprep.mubr.f32.mxu1 %v1090_v59  ;;  %v1303_v45 = vld [vmem:[%s4804_s12 + $0x820] sm:$0xff]  ;;  %v1556_v59 = vld [vmem:[%s4797_s26 + $0x508] sm:$0xff] }
 0x1b8   : > { %2370 = vmatprep.mubr.f32.mxu0 %v1182_v61  ;;  %3645 = vmatpush1.bf16.msra.mxu1 %v4839_v57  ;;  %v1192_v57 = vld [vmem:[%s4804_s12 + $0x4a8] sm:$0xff]  ;;  %v1210_v61 = vld [vmem:[%s4804_s12 + $0x538] sm:$0xff] }
 0x1b9   : > { %3630 = vmatprep.subr.bf16.mxu1 %v4000_v36  ;;  %3581 = vmatpush1.bf16.msra.mxu0 %v3580_v62  ;;  %v1302_v62 = vld [vmem:[%s4804_s12 + $0x818] sm:$0xff] }
 0x1ba   : > { %1881 = vmatmul.mubr.f32.gmra.mrb[8].mxu1 %v1089_v2  ;;  %3582 = vmatprep.subr.bf16.mxu0 %v4000_v36  ;;  %v1221_v2 = vld [vmem:[%s4804_s12 + $0x590] sm:$0xff] }
 0x1bb   : > { %2371 = vmatmul.mubr.f32.gmra.mrb[24].mxu0 %v1181_v51  ;;  %1885 = vmatprep.mubr.f32.mxu1 %v1101_v4  ;;  %v1313_v51 = vld [vmem:[%s4804_s12 + $0x870] sm:$0xff] }
 0x1bc   : > { %2375 = vmatprep.mubr.f32.mxu0 %v1193_v6  ;;  %3646 = vmatpush1.bf16.msra.mxu1 %v4848_v63  ;;  %v1203_v63 = vld [vmem:[%s4804_s12 + $0x500] sm:$0xff]  ;;  %v1233_v4 = vld [vmem:[%s4804_s12 + $0x5f0] sm:$0xff]  ;;  %v1324_v6 = vld [vmem:[%s4804_s12 + $0x8c8] sm:$0xff] }
 0x1bd   : > { %3631 = vmatprep.subr.bf16.mxu1 %v4000_v36  ;;  %3584 = vmatpush1.bf16.msra.mxu0 %v3583_v7  ;;  %v1244_v7 = vld [vmem:[%s4804_s12 + $0x648] sm:$0xff] }
 0x1be   : > { %1886 = vmatmul.mubr.f32.gmra.mrb[10].mxu1 %v1100_v11  ;;  %3585 = vmatprep.subr.bf16.mxu0 %v4000_v36  ;;  %v1255_v11 = vld [vmem:[%s4804_s12 + $0x6a0] sm:$0xff] }
 0x1bf   : > { %2376 = vmatmul.mubr.f32.gmra.mrb[26].mxu0 %v1192_v57  ;;  %1890 = vmatprep.mubr.f32.mxu1 %v1112_v12  ;;  %v1347_v57 = vld [vmem:[%s4804_s12 + $0x980] sm:$0xff]  ;;  %v1254_v12 = vld [vmem:[%s4804_s12 + $0x698] sm:$0xff] }
 0x1c0   : > { %2380 = vmatprep.mubr.f32.mxu0 %v1204_v14  ;;  %3647 = vmatpush1.bf16.msra.mxu1 %v4857_v5  ;;  %v1134_v5 = vld [vmem:[%s4804_s12 + $0x2d8] sm:$0xff] }
 0x1c1   : > { %3632 = vmatprep.subr.bf16.mxu1 %v4000_v36  ;;  %3587 = vmatpush1.bf16.msra.mxu0 %v3586_v15  ;;  %v1346_v14 = vld [vmem:[%s4804_s12 + $0x978] sm:$0xff] }
 0x1c2   : > { %1891 = vmatmul.mubr.f32.gmra.mrb[12].mxu1 %v1111_v18  ;;  %3588 = vmatprep.subr.bf16.mxu0 %v4000_v36  ;;  %v1266_v15 = vld [vmem:[%s4804_s12 + $0x6f8] sm:$0xff]  ;;  %v1357_v18 = vld [vmem:[%s4804_s12 + $0x9d0] sm:$0xff] }
 0x1c3   : > { %2381 = vmatmul.mubr.f32.gmra.mrb[28].mxu0 %v1203_v63  ;;  %1895 = vmatprep.mubr.f32.mxu1 %v1123_v20  ;;  %v1277_v63 = vld [vmem:[%s4804_s12 + $0x750] sm:$0xff] }
 0x1c4   : > { %2385 = vmatprep.mubr.f32.mxu0 %v1215_v21  ;;  %3648 = vmatpush1.bf16.msra.mxu1 %v4868_v13  ;;  %v1237_v13 = vld [vmem:[%s4804_s12 + $0x610] sm:$0xff]  ;;  %v1276_v21 = vld [vmem:[%s4804_s12 + $0x748] sm:$0xff] }
 0x1c5   : > { %3633 = vmatprep.subr.bf16.mxu1 %v4000_v36  ;;  %3590 = vmatpush1.bf16.msra.mxu0 %v3589_v22  ;;  %v1369_v20 = vld [vmem:[%s4804_s12 + $0xa30] sm:$0xff]  ;;  %v1368_v22 = vld [vmem:[%s4804_s12 + $0xa28] sm:$0xff] }
 0x1c6   : > { %1896 = vmatmul.mubr.f32.gmra.mrb[14].mxu1 %v1122_v26  ;;  %3591 = vmatprep.subr.bf16.mxu0 %v4000_v36  ;;  %v1287_v26 = vld [vmem:[%s4804_s12 + $0x7a0] sm:$0xff] }
 0x1c7   : > { %2386 = vmatmul.mubr.f32.gmra.mrb[30].mxu0 %v1214_v27  ;;  %1900 = vmatprep.mubr.f32.mxu1 %v1134_v5  ;;  %v1379_v27 = vld [vmem:[%s4804_s12 + $0xa80] sm:$0xff] }
 0x1c8   : > { %2390 = vmatprep.mubr.f32.mxu0 %v1226_v28  ;;  %3649 = vmatpush1.bf16.msra.mxu1 %v4877_v19  ;;  %v1155_v19 = vld [vmem:[%s4804_s12 + $0x380] sm:$0xff] }
 0x1c9   : > { %3634 = vmatprep.subr.bf16.mxu1 %v4000_v36  ;;  %3593 = vmatpush1.bf16.msra.mxu0 %v3592_v29  ;;  %v1299_v5 = vld [vmem:[%s4804_s12 + $0x800] sm:$0xff]  ;;  %v1298_v29 = vld [vmem:[%s4804_s12 + $0x7f8] sm:$0xff] }
 0x1ca   : > { %1901 = vmatmul.mubr.f32.gmra.mrb[16].mxu1 %v1133_v30  ;;  %v1391_v28 = vld [vmem:[%s4804_s12 + $0xae0] sm:$0xff]  ;;  %v1390_v30 = vld [vmem:[%s4804_s12 + $0xad8] sm:$0xff] }
 0x1cb   : > { %2391 = vmatmul.mubr.f32.gmra.mrb[32].mxu0 %v1225_v32  ;;  %1905 = vmatprep.mubr.f32.mxu1 %v1145_v33  ;;  %v1310_v32 = vld [vmem:[%s4804_s12 + $0x858] sm:$0xff]  ;;  %v1052_v33 = vld [vmem:[%s4804_s12 + $0x48] sm:$0xff] }
 0x1cc   : > { %2395 = vmatprep.mubr.f32.mxu0 %v1237_v13  ;;  %3650 = vmatpush1.bf16.msra.mxu1 %v4886_v25  ;;  %v1166_v25 = vld [vmem:[%s4804_s12 + $0x3d8] sm:$0xff]  ;;  %v1309_v13 = vld [vmem:[%s4804_s12 + $0x850] sm:$0xff] }
 0x1cd   : > { %3635 = vmatprep.subr.bf16.mxu1 %v4000_v36 }
 0x1ce   : > { %1906 = vmatmul.mubr.f32.gmra.mrb[18].mxu1 %v1144_v34  ;;  %v1051_v34 = vld [vmem:[%s4804_s12 + $0x40] sm:$0xff] }
 0x1cf   : > { %2396 = vmatmul.mubr.f32.gmra.mrb[34].mxu0 %v1236_v35  ;;  %1910 = vmatprep.mubr.f32.mxu1 %v1156_v37  ;;  %v1321_v35 = vld [vmem:[%s4804_s12 + $0x8b0] sm:$0xff]  ;;  %v1063_v37 = vld [vmem:[%s4804_s12 + $0xa0] sm:$0xff] }
 0x1d0   : > { %2400 = vmatprep.mubr.f32.mxu0 %v1248_v39  ;;  %3651 = vmatpush1.bf16.msra.mxu1 %v4895_v31  ;;  %v1177_v31 = vld [vmem:[%s4804_s12 + $0x430] sm:$0xff]  ;;  %v1320_v39 = vld [vmem:[%s4804_s12 + $0x8a8] sm:$0xff] }
 0x1d1   : > { %3636 = vmatprep.subr.bf16.mxu1 %v4000_v36 }
 0x1d2   : > { %1911 = vmatmul.mubr.f32.gmra.mrb[20].mxu1 %v1155_v19  ;;  %v1062_v19 = vld [vmem:[%s4804_s12 + $0x98] sm:$0xff] }
 0x1d3   : > { %2401 = vmatmul.mubr.f32.gmra.mrb[36].mxu0 %v1247_v40  ;;  %1915 = vmatprep.mubr.f32.mxu1 %v1167_v42  ;;  %v1332_v40 = vld [vmem:[%s4804_s12 + $0x908] sm:$0xff]  ;;  %v1074_v42 = vld [vmem:[%s4804_s12 + $0xf8] sm:$0xff] }
 0x1d4   : > { %2405 = vmatprep.mubr.f32.mxu0 %v1259_v43  ;;  %3652 = vmatpush1.bf16.msra.mxu1 %v4904_v38  ;;  %v1188_v38 = vld [vmem:[%s4804_s12 + $0x488] sm:$0xff]  ;;  %v1331_v43 = vld [vmem:[%s4804_s12 + $0x900] sm:$0xff] }
 0x1d5   : > { %3637 = vmatprep.subr.bf16.mxu1 %v4000_v36 }
 0x1d6   : > { %1916 = vmatmul.mubr.f32.gmra.mrb[22].mxu1 %v1166_v25  ;;  %v1073_v25 = vld [vmem:[%s4804_s12 + $0xf0] sm:$0xff] }
 0x1d7   : > { %2406 = vmatmul.mubr.f32.gmra.mrb[38].mxu0 %v1258_v44  ;;  %1920 = vmatprep.mubr.f32.mxu1 %v1178_v47  ;;  %v1343_v44 = vld [vmem:[%s4804_s12 + $0x960] sm:$0xff]  ;;  %v1085_v47 = vld [vmem:[%s4804_s12 + $0x150] sm:$0xff] }
 0x1d8   : > { %2410 = vmatprep.mubr.f32.mxu0 %v1270_v41  ;;  %3653 = vmatpush1.bf16.msra.mxu1 %v4913_v46  ;;  %v1199_v46 = vld [vmem:[%s4804_s12 + $0x4e0] sm:$0xff]  ;;  %v1342_v41 = vld [vmem:[%s4804_s12 + $0x958] sm:$0xff] }
 0x1d9   : > { %3638 = vmatprep.subr.bf16.mxu1 %v4000_v36 }
 0x1da   : > { %1921 = vmatmul.mubr.f32.gmra.mrb[24].mxu1 %v1177_v31  ;;  %v1084_v31 = vld [vmem:[%s4804_s12 + $0x148] sm:$0xff] }
 0x1db   : > { %2411 = vmatmul.mubr.f32.gmra.mrb[40].mxu0 %v1269_v48  ;;  %1925 = vmatprep.mubr.f32.mxu1 %v1189_v49  ;;  %v1354_v48 = vld [vmem:[%s4804_s12 + $0x9b8] sm:$0xff]  ;;  %v1096_v49 = vld [vmem:[%s4804_s12 + $0x1a8] sm:$0xff] }
 0x1dc   : > { %2415 = vmatprep.mubr.f32.mxu0 %v1281_v50  ;;  %3654 = vmatpush1.bf16.msra.mxu1 %v4922_v53  ;;  %v1555_v53 = vld [vmem:[%s4797_s26 + $0x500] sm:$0xff]  ;;  %v1353_v50 = vld [vmem:[%s4804_s12 + $0x9b0] sm:$0xff] }
 0x1dd   : > { %3639 = vmatprep.subr.bf16.mxu1 %v4000_v36 }
 0x1de   : > { %1926 = vmatmul.mubr.f32.gmra.mrb[26].mxu1 %v1188_v38  ;;  %v1095_v38 = vld [vmem:[%s4804_s12 + $0x1a0] sm:$0xff] }
 0x1df   : > { %2416 = vmatmul.mubr.f32.gmra.mrb[42].mxu0 %v1280_v52  ;;  %1930 = vmatprep.mubr.f32.mxu1 %v1200_v54  ;;  %v1365_v52 = vld [vmem:[%s4804_s12 + $0xa10] sm:$0xff]  ;;  %v1107_v54 = vld [vmem:[%s4804_s12 + $0x200] sm:$0xff] }
 0x1e0   : > { %2420 = vmatprep.mubr.f32.mxu0 %v1292_v55  ;;  %3655 = vmatpush1.bf16.msra.mxu1 %v4931_v60  ;;  %v5322_v60 = vpack.c.bf16 %v1556_v59, %v1555_v53  ;;  %v1364_v55 = vld [vmem:[%s4804_s12 + $0xa08] sm:$0xff]  ;;  %v1117_v53 = vld [vmem:[%s4804_s12 + $0x250] sm:$0xff]  ;;  %v1387_v59 = vld [vmem:[%s4804_s12 + $0xac0] sm:$0xff] }
 0x1e1   : > { %3640 = vmatprep.subr.bf16.mxu1 %v4000_v36 }
 0x1e2   : > { %1931 = vmatmul.mubr.f32.gmra.mrb[28].mxu1 %v1199_v46  ;;  %v1106_v46 = vld [vmem:[%s4804_s12 + $0x1f8] sm:$0xff] }
 0x1e3   : > { %2421 = vmatmul.mubr.f32.gmra.mrb[44].mxu0 %v1291_v56  ;;  %1935 = vmatprep.mubr.f32.mxu1 %v1211_v58  ;;  %v1376_v56 = vld [vmem:[%s4804_s12 + $0xa68] sm:$0xff]  ;;  %v1118_v58 = vld [vmem:[%s4804_s12 + $0x258] sm:$0xff] }
 0x1e4   : > { %2425 = vmatprep.mubr.f32.mxu0 %v1303_v45  ;;  %3656 = vmatpush1.bf16.msra.mxu1 %v4940_v3  ;;  %v1325_v3 = vld [vmem:[%s4804_s12 + $0x8d0] sm:$0xff]  ;;  %v1375_v45 = vld [vmem:[%s4804_s12 + $0xa60] sm:$0xff] }
 0x1e5   : > { %3641 = vmatprep.subr.bf16.mxu1 %v4000_v36  ;;  %v1232_v36 = vld [vmem:[%s4804_s12 + $0x5e8] sm:$0xff] }
 0x1e6   : > { %1936 = vmatmul.mubr.f32.gmra.mrb[30].mxu1 %v1210_v61  ;;  %v1129_v61 = vld [vmem:[%s4804_s12 + $0x2b0] sm:$0xff] }
 0x1e7   : > { %2426 = vmatmul.mubr.f32.gmra.mrb[46].mxu0 %v1302_v62  ;;  %1940 = vmatprep.mubr.f32.mxu1 %v1222_v0  ;;  %v1386_v62 = vld [vmem:[%s4804_s12 + $0xab8] sm:$0xff]  ;;  %v1128_v0 = vld [vmem:[%s4804_s12 + $0x2a8] sm:$0xff] }
 0x1e8   : > { %2430 = vmatprep.mubr.f32.mxu0 %v1314_v1  ;;  %3657 = vmatpush1.bf16.msra.mxu1 %v4949_v10  ;;  %v1243_v10 = vld [vmem:[%s4804_s12 + $0x640] sm:$0xff]  ;;  %v1312_v1 = vld [vmem:[%s4804_s12 + $0x868] sm:$0xff] }
 0x1e9   : > { %3595 = vmatprep.subr.bf16.mxu1 %v5322_v60 }
 0x1ea   : > { %1941 = vmatmul.mubr.f32.gmra.mrb[32].mxu1 %v1221_v2  ;;  %v1140_v2 = vld [vmem:[%s4804_s12 + $0x308] sm:$0xff] }
 0x1eb   : > { %2431 = vmatmul.mubr.f32.gmra.mrb[48].mxu0 %v1313_v51  ;;  %1945 = vmatprep.mubr.f32.mxu1 %v1233_v4  ;;  %v1557_v51 = vld [vmem:[%s4797_s26 + $0x510] sm:$0xff]  ;;  %v1558_v4 = vld [vmem:[%s4797_s26 + $0x518] sm:$0xff] }
 0x1ec   : > { %2435 = vmatprep.mubr.f32.mxu0 %v1325_v3  ;;  %v1311_v3 = vld [vmem:[%s4804_s12 + $0x860] sm:$0xff] }
 0x1ee   : > { %1946 = vmatmul.mubr.f32.gmra.mrb[34].mxu1 %v1232_v36  ;;  %v1139_v36 = vld [vmem:[%s4804_s12 + $0x300] sm:$0xff] }
 0x1ef   : > { %2436 = vmatmul.mubr.f32.gmra.mrb[50].mxu0 %v1324_v6  ;;  %1950 = vmatprep.mubr.f32.mxu1 %v1244_v7  ;;  %v1323_v6 = vld [vmem:[%s4804_s12 + $0x8c0] sm:$0xff] }
 0x1f0   : > { %2440 = vmatprep.mubr.f32.mxu0 %v1336_v8  ;;  %v1151_v7 = vld [vmem:[%s4804_s12 + $0x360] sm:$0xff]  ;;  %v3598_v8 = vpack.c.bf16 %v1558_v4, %v1557_v51  ;;  %v1261_v51 = vld [vmem:[%s4804_s12 + $0x6d0] sm:$0xff]  ;;  %v1130_v4 = vld [vmem:[%s4804_s12 + $0x2b8] sm:$0xff] }
 0x1f2   : > { %1951 = vmatmul.mubr.f32.gmra.mrb[36].mxu1 %v1243_v10  ;;  %v1559_v10 = vld [vmem:[%s4797_s26 + $0x520] sm:$0xff] }
 0x1f3   : > { %2441 = vmatmul.mubr.f32.gmra.mrb[52].mxu0 %v1335_v9  ;;  %1955 = vmatprep.mubr.f32.mxu1 %v1255_v11  ;;  %v1560_v9 = vld [vmem:[%s4797_s26 + $0x528] sm:$0xff]  ;;  %v1322_v11 = vld [vmem:[%s4804_s12 + $0x8b8] sm:$0xff] }
 0x1f4   : > { %2445 = vmatprep.mubr.f32.mxu0 %v1347_v57  ;;  %v1150_v57 = vld [vmem:[%s4804_s12 + $0x358] sm:$0xff] }
 0x1f6   : > { %1956 = vmatmul.mubr.f32.gmra.mrb[38].mxu1 %v1254_v12  ;;  %v1334_v12 = vld [vmem:[%s4804_s12 + $0x918] sm:$0xff] }
 0x1f7   : > { %2446 = vmatmul.mubr.f32.gmra.mrb[54].mxu0 %v1346_v14  ;;  %1960 = vmatprep.mubr.f32.mxu1 %v1266_v15  ;;  %v1162_v14 = vld [vmem:[%s4804_s12 + $0x3b8] sm:$0xff]  ;;  %v3602_v15 = vpack.c.bf16 %v1560_v9, %v1559_v10  ;;  %v1163_v10 = vld [vmem:[%s4804_s12 + $0x3c0] sm:$0xff] }
 0x1f8   : > { %2450 = vmatprep.mubr.f32.mxu0 %v1358_v16  ;;  %v1561_v16 = vld [vmem:[%s4797_s26 + $0x530] sm:$0xff]  ;;  %v1283_v9 = vld [vmem:[%s4804_s12 + $0x780] sm:$0xff] }
 0x1fa   : > { %1961 = vmatmul.mubr.f32.gmra.mrb[40].mxu1 %v1265_v17  ;;  %v1562_v17 = vld [vmem:[%s4797_s26 + $0x538] sm:$0xff] }
 0x1fb   : > { %2451 = vmatmul.mubr.f32.gmra.mrb[56].mxu0 %v1357_v18  ;;  %1965 = vmatprep.mubr.f32.mxu1 %v1277_v63  ;;  %v1161_v18 = vld [vmem:[%s4804_s12 + $0x3b0] sm:$0xff] }
 0x1fc   : > { %2455 = vmatprep.mubr.f32.mxu0 %v1369_v20  ;;  %v1345_v63 = vld [vmem:[%s4804_s12 + $0x970] sm:$0xff] }
 0x1fd   : > { %v1173_v20 = vld [vmem:[%s4804_s12 + $0x410] sm:$0xff] }
 0x1fe   : > { %1966 = vmatmul.mubr.f32.gmra.mrb[42].mxu1 %v1276_v21  ;;  %v3606_v21 = vpack.c.bf16 %v1562_v17, %v1561_v16  ;;  %v1293_v16 = vld [vmem:[%s4804_s12 + $0x7d0] sm:$0xff]  ;;  %v1207_v17 = vld [vmem:[%s4804_s12 + $0x520] sm:$0xff] }
 0x1ff   : > { %2456 = vmatmul.mubr.f32.gmra.mrb[58].mxu0 %v1368_v22  ;;  %1970 = vmatprep.mubr.f32.mxu1 %v1288_v23  ;;  %v1563_v22 = vld [vmem:[%s4797_s26 + $0x540] sm:$0xff]  ;;  %v1564_v23 = vld [vmem:[%s4797_s26 + $0x548] sm:$0xff] }
 0x200   : > { %2460 = vmatprep.mubr.f32.mxu0 %v1380_v24  ;;  %v1344_v24 = vld [vmem:[%s4804_s12 + $0x968] sm:$0xff] }
 0x202   : > { %1971 = vmatmul.mubr.f32.gmra.mrb[44].mxu1 %v1287_v26  ;;  %v1172_v26 = vld [vmem:[%s4804_s12 + $0x408] sm:$0xff] }
 0x203   : > { %2461 = vmatmul.mubr.f32.gmra.mrb[60].mxu0 %v1379_v27  ;;  %1975 = vmatprep.mubr.f32.mxu1 %v1299_v5  ;;  %v1356_v27 = vld [vmem:[%s4804_s12 + $0x9c8] sm:$0xff] }
 0x204   : > { %2465 = vmatprep.mubr.f32.mxu0 %v1391_v28  ;;  %v1184_v5 = vld [vmem:[%s4804_s12 + $0x468] sm:$0xff]  ;;  %v3610_v28 = vpack.c.bf16 %v1564_v23, %v1563_v22  ;;  %v1315_v23 = vld [vmem:[%s4804_s12 + $0x880] sm:$0xff] }
 0x205   : > { %v1240_v22 = vld [vmem:[%s4804_s12 + $0x628] sm:$0xff] }
 0x206   : > { %1976 = vmatmul.mubr.f32.gmra.mrb[46].mxu1 %v1298_v29  ;;  %v1565_v29 = vld [vmem:[%s4797_s26 + $0x550] sm:$0xff] }
 0x207   : > { %2466 = vmatmul.mubr.f32.gmra.mrb[62].mxu0 %v1390_v30  ;;  %1980 = vmatprep.mubr.f32.mxu1 %v1310_v32  ;;  %v1566_v30 = vld [vmem:[%s4797_s26 + $0x558] sm:$0xff]  ;;  %v1355_v32 = vld [vmem:[%s4804_s12 + $0x9c0] sm:$0xff] }
 0x208   : > { %2535 = vmatprep.mubr.f32.mxu0 %v1052_v33  ;;  %v1183_v33 = vld [vmem:[%s4804_s12 + $0x460] sm:$0xff] }
 0x20a   : > { %1981 = vmatmul.mubr.f32.gmra.mrb[48].mxu1 %v1309_v13  ;;  %v1367_v13 = vld [vmem:[%s4804_s12 + $0xa20] sm:$0xff] }
 0x20b   : > { %2536 = vmatmul.mubr.f32.vlgmr.msra.gmra.mrb[0].mxu0 %v1051_v34  ;;  %1985 = vmatprep.mubr.f32.mxu1 %v1321_v35  ;;  %v1195_v34 = vld [vmem:[%s4804_s12 + $0x4c0] sm:$0xff]  ;;  %v3614_v35 = vpack.c.bf16 %v1566_v30, %v1565_v29  ;;  %v1338_v29 = vld [vmem:[%s4804_s12 + $0x938] sm:$0xff]  ;;  %v1284_v30 = vld [vmem:[%s4804_s12 + $0x788] sm:$0xff] }
 0x20c   : > { %2540 = vmatprep.mubr.f32.mxu0 %v1063_v37  ;;  %v1567_v37 = vld [vmem:[%s4797_s26 + $0x560] sm:$0xff] }
 0x20e   : > { %1986 = vmatmul.mubr.f32.gmra.mrb[50].mxu1 %v1320_v39  ;;  %v1568_v39 = vld [vmem:[%s4797_s26 + $0x568] sm:$0xff] }
 0x20f   : > { %2541 = vmatmul.mubr.f32.gmra.mrb[2].mxu0 %v1062_v19  ;;  %1990 = vmatprep.mubr.f32.mxu1 %v1332_v40  ;;  %v1366_v19 = vld [vmem:[%s4804_s12 + $0xa18] sm:$0xff] }
 0x210   : > { %2545 = vmatprep.mubr.f32.mxu0 %v1074_v42  ;;  %v1194_v40 = vld [vmem:[%s4804_s12 + $0x4b8] sm:$0xff] }
 0x211   : > { %v1378_v42 = vld [vmem:[%s4804_s12 + $0xa78] sm:$0xff] }
 0x212   : > { %1991 = vmatmul.mubr.f32.gmra.mrb[52].mxu1 %v1331_v43  ;;  %v1206_v43 = vld [vmem:[%s4804_s12 + $0x518] sm:$0xff] }
 0x213   : > { %2546 = vmatmul.mubr.f32.gmra.mrb[4].mxu0 %v1073_v25  ;;  %1995 = vmatprep.mubr.f32.mxu1 %v1343_v44  ;;  %v3618_v25 = vpack.c.bf16 %v1568_v39, %v1567_v37  ;;  %v1569_v44 = vld [vmem:[%s4797_s26 + $0x570] sm:$0xff]  ;;  %v1360_v39 = vld [vmem:[%s4804_s12 + $0x9e8] sm:$0xff] }
 0x214   : > { %2550 = vmatprep.mubr.f32.mxu0 %v1085_v47  ;;  %v1570_v47 = vld [vmem:[%s4797_s26 + $0x578] sm:$0xff]  ;;  %v1317_v37 = vld [vmem:[%s4804_s12 + $0x890] sm:$0xff] }
 0x216   : > { %1996 = vmatmul.mubr.f32.gmra.mrb[54].mxu1 %v1342_v41  ;;  %v1377_v41 = vld [vmem:[%s4804_s12 + $0xa70] sm:$0xff] }
 0x217   : > { %2551 = vmatmul.mubr.f32.gmra.mrb[6].mxu0 %v1084_v31  ;;  %2000 = vmatprep.mubr.f32.mxu1 %v1354_v48  ;;  %v1205_v31 = vld [vmem:[%s4804_s12 + $0x510] sm:$0xff] }
 0x218   : > { %2555 = vmatprep.mubr.f32.mxu0 %v1096_v49  ;;  %v1389_v48 = vld [vmem:[%s4804_s12 + $0xad0] sm:$0xff] }
 0x219   : > { %v1217_v49 = vld [vmem:[%s4804_s12 + $0x570] sm:$0xff] }
 0x21a   : > { %2001 = vmatmul.mubr.f32.gmra.mrb[56].mxu1 %v1353_v50  ;;  %v3622_v50 = vpack.c.bf16 %v1570_v47, %v1569_v44  ;;  %v1370_v44 = vld [vmem:[%s4804_s12 + $0xa38] sm:$0xff]  ;;  %v1361_v47 = vld [vmem:[%s4804_s12 + $0x9f0] sm:$0xff] }
 0x21b   : > { %2556 = vmatmul.mubr.f32.gmra.mrb[8].mxu0 %v1095_v38  ;;  %2005 = vmatprep.mubr.f32.mxu1 %v1365_v52  ;;  %v1388_v38 = vld [vmem:[%s4804_s12 + $0xac8] sm:$0xff] }
 0x21c   : > { %2560 = vmatprep.mubr.f32.mxu0 %v1107_v54  ;;  %v1216_v52 = vld [vmem:[%s4804_s12 + $0x568] sm:$0xff] }
 0x21d   : > { %v1228_v54 = vld [vmem:[%s4804_s12 + $0x5c8] sm:$0xff] }
 0x21e   : > { %2006 = vmatmul.mubr.f32.gmra.mrb[58].mxu1 %v1364_v55  ;;  %v1053_v55 = vld [vmem:[%s4804_s12 + $0x50] sm:$0xff] }
 0x21f   : > { %2561 = vmatmul.mubr.f32.gmra.mrb[10].mxu0 %v1106_v46  ;;  %2010 = vmatprep.mubr.f32.mxu1 %v1376_v56  ;;  %v1064_v46 = vld [vmem:[%s4804_s12 + $0xa8] sm:$0xff]  ;;  %v1227_v56 = vld [vmem:[%s4804_s12 + $0x5c0] sm:$0xff] }
 0x220   : > { %2565 = vmatprep.mubr.f32.mxu0 %v1118_v58  ;;  %v1075_v58 = vld [vmem:[%s4804_s12 + $0x100] sm:$0xff] }
 0x222   : > { %2011 = vmatmul.mubr.f32.gmra.mrb[60].mxu1 %v1375_v45  ;;  %v1239_v45 = vld [vmem:[%s4804_s12 + $0x620] sm:$0xff] }
 0x223   : > { %2566 = vmatmul.mubr.f32.gmra.mrb[12].mxu0 %v1117_v53  ;;  %2015 = vmatprep.mubr.f32.mxu1 %v1387_v59  ;;  %v1086_v53 = vld [vmem:[%s4804_s12 + $0x158] sm:$0xff] }
 0x224   : > { %2570 = vmatprep.mubr.f32.mxu0 %v1129_v61  ;;  %v1238_v59 = vld [vmem:[%s4804_s12 + $0x618] sm:$0xff]  ;;  %v1097_v61 = vld [vmem:[%s4804_s12 + $0x1b0] sm:$0xff] }
 0x226   : > { %2016 = vmatmul.mubr.f32.gmra.mrb[62].mxu1 %v1386_v62  ;;  %v1250_v62 = vld [vmem:[%s4804_s12 + $0x678] sm:$0xff] }
 0x227   : > { %2571 = vmatmul.mubr.f32.gmra.mrb[14].mxu0 %v1128_v0  ;;  %2205 = vmatprep.mubr.f32.mxu1 %v1312_v1  ;;  %v1108_v0 = vld [vmem:[%s4804_s12 + $0x208] sm:$0xff]  ;;  %v1249_v1 = vld [vmem:[%s4804_s12 + $0x670] sm:$0xff] }
 0x228   : > { %2575 = vmatprep.mubr.f32.mxu0 %v1140_v2  ;;  %v1119_v2 = vld [vmem:[%s4804_s12 + $0x260] sm:$0xff] }
 0x22a   : > { %2206 = vmatmul.mubr.f32.vlgmr.msra.gmra.mrb[48].mxu1 %v1311_v3  ;;  %v1260_v3 = vld [vmem:[%s4804_s12 + $0x6c8] sm:$0xff] }
 0x22b   : > { %2576 = vmatmul.mubr.f32.gmra.mrb[16].mxu0 %v1139_v36  ;;  %3597 = vmatpush3.bf16.msra.mxu1 %v5322_v60  ;;  %v1333_v60 = vld [vmem:[%s4804_s12 + $0x910] sm:$0xff] }
 0x22c   : > { %2210 = vmatprep.mubr.f32.mxu1 %v1323_v6  ;;  %2580 = vmatprep.mubr.f32.mxu0 %v1151_v7  ;;  %v1141_v36 = vld [vmem:[%s4804_s12 + $0x310] sm:$0xff]  ;;  %v1272_v6 = vld [vmem:[%s4804_s12 + $0x728] sm:$0xff] }
 0x22d   : > { %3599 = vmatprep.subr.bf16.mxu1 %v3598_v8  ;;  %v1152_v7 = vld [vmem:[%s4804_s12 + $0x368] sm:$0xff] }
 0x22e   : > { %2211 = vmatmul.mubr.f32.gmra.mrb[50].mxu1 %v1322_v11  ;;  %v1174_v11 = vld [vmem:[%s4804_s12 + $0x418] sm:$0xff] }
 0x22f   : > { %2581 = vmatmul.mubr.f32.gmra.mrb[18].mxu0 %v1150_v57  ;;  %3601 = vmatpush3.bf16.msra.mxu1 %v3598_v8  ;;  %v1271_v8 = vld [vmem:[%s4804_s12 + $0x720] sm:$0xff]  ;;  %v1282_v57 = vld [vmem:[%s4804_s12 + $0x778] sm:$0xff] }
 0x230   : > { %2215 = vmatprep.mubr.f32.mxu1 %v1334_v12  ;;  %2585 = vmatprep.mubr.f32.mxu0 %v1162_v14  ;;  %v1185_v12 = vld [vmem:[%s4804_s12 + $0x470] sm:$0xff]  ;;  %v1294_v14 = vld [vmem:[%s4804_s12 + $0x7d8] sm:$0xff] }
 0x231   : > { %3603 = vmatprep.subr.bf16.mxu1 %v3602_v15 }
 0x232   : > { %2216 = vmatmul.mubr.f32.gmra.mrb[52].mxu1 %v1333_v60  ;;  %v1305_v60 = vld [vmem:[%s4804_s12 + $0x830] sm:$0xff] }
 0x233   : > { %2586 = vmatmul.mubr.f32.gmra.mrb[20].mxu0 %v1161_v18  ;;  %3605 = vmatpush3.bf16.msra.mxu1 %v3602_v15  ;;  %v1196_v15 = vld [vmem:[%s4804_s12 + $0x4c8] sm:$0xff]  ;;  %v1218_v18 = vld [vmem:[%s4804_s12 + $0x578] sm:$0xff] }
 0x234   : > { %2220 = vmatprep.mubr.f32.mxu1 %v1345_v63  ;;  %2590 = vmatprep.mubr.f32.mxu0 %v1173_v20  ;;  %v1304_v63 = vld [vmem:[%s4804_s12 + $0x828] sm:$0xff]  ;;  %v1229_v20 = vld [vmem:[%s4804_s12 + $0x5d0] sm:$0xff] }
 0x235   : > { %3607 = vmatprep.subr.bf16.mxu1 %v3606_v21 }
 0x236   : > { %2221 = vmatmul.mubr.f32.gmra.mrb[54].mxu1 %v1344_v24  ;;  %v1251_v24 = vld [vmem:[%s4804_s12 + $0x680] sm:$0xff] }
 0x237   : > { %2591 = vmatmul.mubr.f32.gmra.mrb[22].mxu0 %v1172_v26  ;;  %3609 = vmatpush3.bf16.msra.mxu1 %v3606_v21  ;;  %v1316_v21 = vld [vmem:[%s4804_s12 + $0x888] sm:$0xff]  ;;  %v1327_v26 = vld [vmem:[%s4804_s12 + $0x8e0] sm:$0xff] }
 0x238   : > { %2225 = vmatprep.mubr.f32.mxu1 %v1356_v27  ;;  %2595 = vmatprep.mubr.f32.mxu0 %v1184_v5  ;;  %v1262_v27 = vld [vmem:[%s4804_s12 + $0x6d8] sm:$0xff] }
 0x239   : > { %3611 = vmatprep.subr.bf16.mxu1 %v3610_v28  ;;  %v1326_v5 = vld [vmem:[%s4804_s12 + $0x8d8] sm:$0xff] }
 0x23a   : > { %2226 = vmatmul.mubr.f32.gmra.mrb[56].mxu1 %v1355_v32  ;;  %v1337_v32 = vld [vmem:[%s4804_s12 + $0x930] sm:$0xff] }
 0x23b   : > { %2596 = vmatmul.mubr.f32.gmra.mrb[24].mxu0 %v1183_v33  ;;  %3613 = vmatpush3.bf16.msra.mxu1 %v3610_v28  ;;  %v1273_v28 = vld [vmem:[%s4804_s12 + $0x730] sm:$0xff]  ;;  %v1295_v33 = vld [vmem:[%s4804_s12 + $0x7e0] sm:$0xff] }
 0x23c   : > { %2230 = vmatprep.mubr.f32.mxu1 %v1367_v13  ;;  %2600 = vmatprep.mubr.f32.mxu0 %v1195_v34  ;;  %v1349_v13 = vld [vmem:[%s4804_s12 + $0x990] sm:$0xff]  ;;  %v1306_v34 = vld [vmem:[%s4804_s12 + $0x838] sm:$0xff] }
 0x23d   : > { %3615 = vmatprep.subr.bf16.mxu1 %v3614_v35 }
 0x23e   : > { %2231 = vmatmul.mubr.f32.gmra.mrb[58].mxu1 %v1366_v19  ;;  %v1328_v19 = vld [vmem:[%s4804_s12 + $0x8e8] sm:$0xff] }
 0x23f   : > { %2601 = vmatmul.mubr.f32.gmra.mrb[26].mxu0 %v1194_v40  ;;  %3617 = vmatpush3.bf16.msra.mxu1 %v3614_v35  ;;  %v1348_v35 = vld [vmem:[%s4804_s12 + $0x988] sm:$0xff]  ;;  %v1359_v40 = vld [vmem:[%s4804_s12 + $0x9e0] sm:$0xff] }
 0x240   : > { %2235 = vmatprep.mubr.f32.mxu1 %v1378_v42  ;;  %2605 = vmatprep.mubr.f32.mxu0 %v1206_v43  ;;  %v1339_v42 = vld [vmem:[%s4804_s12 + $0x940] sm:$0xff] }
 0x241   : > { %3619 = vmatprep.subr.bf16.mxu1 %v3618_v25  ;;  %v1371_v43 = vld [vmem:[%s4804_s12 + $0xa40] sm:$0xff] }
 0x242   : > { %2236 = vmatmul.mubr.f32.gmra.mrb[60].mxu1 %v1377_v41 }
 0x243   : > { %2606 = vmatmul.mubr.f32.gmra.mrb[28].mxu0 %v1205_v31  ;;  %3621 = vmatpush3.bf16.msra.mxu1 %v3618_v25  ;;  %v1350_v25 = vld [vmem:[%s4804_s12 + $0x998] sm:$0xff] }
 0x244   : > { %2240 = vmatprep.mubr.f32.mxu1 %v1389_v48  ;;  %2610 = vmatprep.mubr.f32.mxu0 %v1217_v49  ;;  %v1382_v31 = vld [vmem:[%s4804_s12 + $0xa98] sm:$0xff]  ;;  %v1372_v49 = vld [vmem:[%s4804_s12 + $0xa48] sm:$0xff] }
 0x245   : > { %3623 = vmatprep.subr.bf16.mxu1 %v3622_v50 }
 0x246   : > { %2241 = vmatmul.mubr.f32.gmra.mrb[62].mxu1 %v1388_v38  ;;  %v1383_v38 = vld [vmem:[%s4804_s12 + $0xaa0] sm:$0xff] }
 0x247   : > { %2611 = vmatmul.mubr.f32.gmra.mrb[30].mxu0 %v1216_v52  ;;  %3625 = vmatpush3.bf16.msra.mxu1 %v3622_v50  ;;  %v1381_v50 = vld [vmem:[%s4804_s12 + $0xa90] sm:$0xff] }
 0x248   : > { %2615 = vmatprep.mubr.f32.mxu0 %v1228_v54  ;;  %3306 = vmatprep.mubr.f32.mxu1 %v1053_v55  ;;  %v1393_v54 = vld [vmem:[%s4804_s12 + $0xaf0] sm:$0xff] }
 0x24a   : > { %3307 = vmatmul.mubr.f32.vlgmr.msra.gmra.mrb[64].mxu1 %v1064_v46  ;;  %v1394_v46 = vld [vmem:[%s4804_s12 + $0xaf8] sm:$0xff] }
 0x24b   : > { %2616 = vmatmul.mubr.f32.gmra.mrb[32].mxu0 %v1227_v56  ;;  %3309 = vmatprep.mubr.f32.mxu1 %v1075_v58  ;;  %v1392_v56 = vld [vmem:[%s4804_s12 + $0xae8] sm:$0xff] }
 0x24c   : > { %2620 = vmatprep.mubr.f32.mxu0 %v1239_v45 }
 0x24e   : > { %3310 = vmatmul.mubr.f32.gmra.mrb[66].mxu1 %v1086_v53 }
 0x24f   : > { %2621 = vmatmul.mubr.f32.gmra.mrb[34].mxu0 %v1238_v59  ;;  %3312 = vmatprep.mubr.f32.mxu1 %v1097_v61 }
 0x250   : > { %2625 = vmatprep.mubr.f32.mxu0 %v1250_v62 }
 0x252   : > { %3313 = vmatmul.mubr.f32.gmra.mrb[68].mxu1 %v1108_v0 }
 0x253   : > { %2626 = vmatmul.mubr.f32.gmra.mrb[36].mxu0 %v1249_v1  ;;  %3315 = vmatprep.mubr.f32.mxu1 %v1119_v2 }
 0x254   : > { %2630 = vmatprep.mubr.f32.mxu0 %v1261_v51 }
 0x256   : > { %3316 = vmatmul.mubr.f32.gmra.mrb[70].mxu1 %v1130_v4 }
 0x257   : > { %2631 = vmatmul.mubr.f32.gmra.mrb[38].mxu0 %v1260_v3  ;;  %3318 = vmatprep.mubr.f32.mxu1 %v1141_v36 }
 0x258   : > { %2635 = vmatprep.mubr.f32.mxu0 %v1272_v6 }
 0x25a   : > { %3319 = vmatmul.mubr.f32.gmra.mrb[72].mxu1 %v1152_v7 }
 0x25b   : > { %2636 = vmatmul.mubr.f32.gmra.mrb[40].mxu0 %v1271_v8  ;;  %3321 = vmatprep.mubr.f32.mxu1 %v1163_v10 }
 0x25c   : > { %2640 = vmatprep.mubr.f32.mxu0 %v1283_v9 }
 0x25e   : > { %3322 = vmatmul.mubr.f32.gmra.mrb[74].mxu1 %v1174_v11 }
 0x25f   : > { %2641 = vmatmul.mubr.f32.gmra.mrb[42].mxu0 %v1282_v57  ;;  %3324 = vmatprep.mubr.f32.mxu1 %v1185_v12 }
 0x260   : > { %2645 = vmatprep.mubr.f32.mxu0 %v1294_v14 }
 0x262   : > { %3325 = vmatmul.mubr.f32.gmra.mrb[76].mxu1 %v1196_v15 }
 0x263   : > { %2646 = vmatmul.mubr.f32.gmra.mrb[44].mxu0 %v1293_v16  ;;  %3327 = vmatprep.mubr.f32.mxu1 %v1207_v17 }
 0x264   : > { %2650 = vmatprep.mubr.f32.mxu0 %v1305_v60 }
 0x266   : > { %3328 = vmatmul.mubr.f32.gmra.mrb[78].mxu1 %v1218_v18 }
 0x267   : > { %2651 = vmatmul.mubr.f32.gmra.mrb[46].mxu0 %v1304_v63  ;;  %3330 = vmatprep.mubr.f32.mxu1 %v1229_v20 }
 0x268   : > { %2655 = vmatprep.mubr.f32.mxu0 %v1316_v21 }
 0x26a   : > { %3331 = vmatmul.mubr.f32.gmra.mrb[80].mxu1 %v1240_v22 }
 0x26b   : > { %2656 = vmatmul.mubr.f32.gmra.mrb[48].mxu0 %v1315_v23  ;;  %3333 = vmatprep.mubr.f32.mxu1 %v1251_v24 }
 0x26c   : > { %2660 = vmatprep.mubr.f32.mxu0 %v1327_v26 }
 0x26e   : > { %3334 = vmatmul.mubr.f32.gmra.mrb[82].mxu1 %v1262_v27 }
 0x26f   : > { %2661 = vmatmul.mubr.f32.gmra.mrb[50].mxu0 %v1326_v5  ;;  %3336 = vmatprep.mubr.f32.mxu1 %v1273_v28 }
 0x270   : > { %2665 = vmatprep.mubr.f32.mxu0 %v1338_v29 }
 0x272   : > { %3337 = vmatmul.mubr.f32.gmra.mrb[84].mxu1 %v1284_v30 }
 0x273   : > { %2666 = vmatmul.mubr.f32.gmra.mrb[52].mxu0 %v1337_v32  ;;  %3339 = vmatprep.mubr.f32.mxu1 %v1295_v33 }
 0x274   : > { %2670 = vmatprep.mubr.f32.mxu0 %v1349_v13 }
 0x276   : > { %3340 = vmatmul.mubr.f32.gmra.mrb[86].mxu1 %v1306_v34 }
 0x277   : > { %2671 = vmatmul.mubr.f32.gmra.mrb[54].mxu0 %v1348_v35  ;;  %3342 = vmatprep.mubr.f32.mxu1 %v1317_v37 }
 0x278   : > { %2675 = vmatprep.mubr.f32.mxu0 %v1360_v39 }
 0x27a   : > { %3343 = vmatmul.mubr.f32.gmra.mrb[88].mxu1 %v1328_v19 }
 0x27b   : > { %2676 = vmatmul.mubr.f32.gmra.mrb[56].mxu0 %v1359_v40  ;;  %3345 = vmatprep.mubr.f32.mxu1 %v1339_v42 }
 0x27c   : > { %2680 = vmatprep.mubr.f32.mxu0 %v1371_v43 }
 0x27d   : > { %v5492_v41 = vpop.f32.mrb[0].mxu1 }
 0x27e   : > { %v1864_v48 = vpop.f32.mrb[1].mxu1  ;;  %3346 = vmatmul.mubr.f32.gmra.mrb[90].mxu1 %v1350_v25 }
 0x27f   : > { %2681 = vmatmul.mubr.f32.gmra.mrb[58].mxu0 %v1370_v44  ;;  %3348 = vmatprep.mubr.f32.mxu1 %v1361_v47 }
 0x280   : > { %2685 = vmatprep.mubr.f32.mxu0 %v1382_v31 }
 0x281   : > { %v1867_v52 = vpop.f32.mrb[2].mxu1 }
 0x282   : > { %v1869_v55 = vpop.f32.mrb[3].mxu1  ;;  %3349 = vmatmul.mubr.f32.gmra.mrb[92].mxu1 %v1372_v49 }
 0x283   : > { %2686 = vmatmul.mubr.f32.gmra.mrb[60].mxu0 %v1381_v50  ;;  %3351 = vmatprep.mubr.f32.mxu1 %v1383_v38 }
 0x284   : > { %2690 = vmatprep.mubr.f32.mxu0 %v1393_v54 }
 0x285   : > { %v1872_v58 = vpop.f32.mrb[4].mxu1 }
 0x286   : > { %v1874_v45 = vpop.f32.mrb[5].mxu1  ;;  %3352 = vmatmul.mubr.f32.gmra.mrb[94].mxu1 %v1394_v46 }
 0x287   : > { %2691 = vmatmul.mubr.f32.gmra.mrb[62].mxu0 %v1392_v56 }
 0x289   : > { %v1877_v53 = vpop.f32.mrb[6].mxu1 }
 0x28a   : > { %v1879_v59 = vpop.f32.mrb[7].mxu1 }
 0x28d   : > { %v1882_v61 = vpop.f32.mrb[8].mxu1 }
 0x28e   : > { %v1884_v62 = vpop.f32.mrb[9].mxu1 }
 0x291   : > { %v1887_v0 = vpop.f32.mrb[10].mxu1 }
 0x292   : > { %v1889_v1 = vpop.f32.mrb[11].mxu1 }
 0x295   : > { %v1892_v2 = vpop.f32.mrb[12].mxu1 }
 0x296   : > { %v1894_v51 = vpop.f32.mrb[13].mxu1 }
 0x299   : > { %v1897_v4 = vpop.f32.mrb[14].mxu1 }
 0x29a   : > { %v1899_v3 = vpop.f32.mrb[15].mxu1 }
 0x29d   : > { %v1902_v36 = vpop.f32.mrb[16].mxu1 }
 0x29e   : > { %v1904_v6 = vpop.f32.mrb[17].mxu1 }
 0x2a1   : > { %v1907_v7 = vpop.f32.mrb[18].mxu1 }
 0x2a2   : > { %v1909_v8 = vpop.f32.mrb[19].mxu1 }
 0x2a5   : > { %v5501_v10 = vpop.f32.mrb[20].mxu1 }
 0x2a6   : > { %v1914_v9 = vpop.f32.mrb[21].mxu1 }
 0x2a9   : > { %v5503_v11 = vpop.f32.mrb[22].mxu1 }
 0x2aa   : > { %v1919_v57 = vpop.f32.mrb[23].mxu1 }
 0x2ad   : > { %v5505_v12 = vpop.f32.mrb[24].mxu1 }
 0x2ae   : > { %v1924_v14 = vpop.f32.mrb[25].mxu1 }
 0x2b1   : > { %v5507_v15 = vpop.f32.mrb[26].mxu1 }
 0x2b2   : > { %v1929_v16 = vpop.f32.mrb[27].mxu1 }
 0x2b5   : > { %v5509_v17 = vpop.f32.mrb[28].mxu1 }
 0x2b6   : > { %v1934_v60 = vpop.f32.mrb[29].mxu1 }
 0x2b9   : > { %v5511_v18 = vpop.f32.mrb[30].mxu1 }
 0x2ba   : > { %v1939_v63 = vpop.f32.mrb[31].mxu1 }
 0x2bd   : > { %v5513_v20 = vpop.f32.mrb[32].mxu1 }
 0x2be   : > { %v1944_v21 = vpop.f32.mrb[33].mxu1 }
 0x2c1   : > { %v5515_v22 = vpop.f32.mrb[34].mxu1 }
 0x2c2   : > { %v1949_v23 = vpop.f32.mrb[35].mxu1 }
 0x2c5   : > { %v5517_v24 = vpop.f32.mrb[36].mxu1 }
 0x2c6   : > { %v1954_v26 = vpop.f32.mrb[37].mxu1 }
 0x2c9   : > { %v5519_v27 = vpop.f32.mrb[38].mxu1 }
 0x2ca   : > { %v1959_v5 = vpop.f32.mrb[39].mxu1 }
 0x2cd   : > { %v5521_v28 = vpop.f32.mrb[40].mxu1 }
 0x2ce   : > { %v1964_v29 = vpop.f32.mrb[41].mxu1 }
 0x2d1   : > { %v5523_v30 = vpop.f32.mrb[42].mxu1 }
 0x2d2   : > { %v1969_v32 = vpop.f32.mrb[43].mxu1 }
 0x2d5   : > { %v5525_v33 = vpop.f32.mrb[44].mxu1 }
 0x2d6   : > { %v1974_v13 = vpop.f32.mrb[45].mxu1 }
 0x2d9   : > { %v5527_v34 = vpop.f32.mrb[46].mxu1 }
 0x2da   : > { %v1979_v35 = vpop.f32.mrb[47].mxu1 }
 0x2de   : > { %v2537_v37 = vpop.f32.mrb[0].mxu0 }
 0x2df   : > { %v5530_v39 = vadd.f32 %v2537_v37, %v5492_v41  ;;  %v2539_v19 = vpop.f32.mrb[1].mxu0 }
 0x2e2   : > { %v2542_v40 = vpop.f32.mrb[2].mxu0 }
 0x2e3   : > { %v5532_v42 = vadd.f32 %v2542_v40, %v1867_v52  ;;  %v2544_v43 = vpop.f32.mrb[3].mxu0 }
 0x2e6   : > { %v2547_v25 = vpop.f32.mrb[4].mxu0 }
 0x2e7   : > { %v5534_v44 = vadd.f32 %v2547_v25, %v1872_v58  ;;  %v2549_v47 = vpop.f32.mrb[5].mxu0 }
 0x2ea   : > { %v2552_v31 = vpop.f32.mrb[6].mxu0 }
 0x2eb   : > { %v5536_v48 = vadd.f32 %v2552_v31, %v1877_v53  ;;  %v2554_v49 = vpop.f32.mrb[7].mxu0 }
 0x2ee   : > { %v2557_v50 = vpop.f32.mrb[8].mxu0 }
 0x2ef   : > { %v5538_v38 = vadd.f32 %v2557_v50, %v1882_v61  ;;  %v2559_v54 = vpop.f32.mrb[9].mxu0 }
 0x2f2   : > { %v2562_v55 = vpop.f32.mrb[10].mxu0 }
 0x2f3   : > { %v5540_v41 = vadd.f32 %v2562_v55, %v1887_v0  ;;  %v2564_v46 = vpop.f32.mrb[11].mxu0 }
 0x2f4   : > { %v1012_v46 = vld [vmem:[#allocation2 + $0x8] sm:$0xff] }
 0x2f6   : > { %v2567_v56 = vpop.f32.mrb[12].mxu0 }
 0x2f7   : > { %v5542_v52 = vadd.f32 %v2567_v56, %v1892_v2  ;;  %v2569_v45 = vpop.f32.mrb[13].mxu0 }
 0x2fa   : > { %v2572_v59 = vpop.f32.mrb[14].mxu0 }
 0x2fb   : > { %v5544_v58 = vadd.f32 %v2572_v59, %v1897_v4  ;;  %v2574_v62 = vpop.f32.mrb[15].mxu0  ;;  %v1011_v59 = vld [vmem:[#allocation2] sm:$0xff] }
 0x2fd   : > { %v5546_v1 = vpop.f32.mrb[48].mxu1 }
 0x2fe   : > { %v2577_v53 = vpop.f32.mrb[16].mxu0  ;;  %v2209_v51 = vpop.f32.mrb[49].mxu1 }
 0x2ff   : > { %v5548_v3 = vadd.f32 %v2577_v53, %v1902_v36  ;;  %v2579_v61 = vpop.f32.mrb[17].mxu0 }
 0x301   : > { %v5550_v6 = vpop.f32.mrb[50].mxu1 }
 0x302   : > { %v2582_v0 = vpop.f32.mrb[18].mxu0  ;;  %v2214_v8 = vpop.f32.mrb[51].mxu1 }
 0x303   : > { %v5552_v9 = vadd.f32 %v2582_v0, %v1907_v7  ;;  %v2584_v2 = vpop.f32.mrb[19].mxu0  ;;  %v1014_v8 = vld [vmem:[#allocation2 + $0x18] sm:$0xff] }
 0x305   : > { %v5554_v57 = vpop.f32.mrb[52].mxu1 }
 0x306   : > { %v2587_v14 = vpop.f32.mrb[20].mxu0  ;;  %v2219_v4 = vpop.f32.mrb[53].mxu1 }
 0x307   : > { %v5557_v16 = vadd.f32 %v2587_v14, %v5501_v10  ;;  %v2589_v60 = vpop.f32.mrb[21].mxu0  ;;  %v1013_v4 = vld [vmem:[#allocation2 + $0x10] sm:$0xff] }
 0x309   : > { %v5559_v63 = vpop.f32.mrb[54].mxu1 }
 0x30a   : > { %v2592_v36 = vpop.f32.mrb[22].mxu0  ;;  %v2224_v21 = vpop.f32.mrb[55].mxu1 }
 0x30b   : > { %v5562_v23 = vadd.f32 %v2592_v36, %v5503_v11  ;;  %v2594_v26 = vpop.f32.mrb[23].mxu0 }
 0x30d   : > { %v5564_v5 = vpop.f32.mrb[56].mxu1 }
 0x30e   : > { %v2597_v7 = vpop.f32.mrb[24].mxu0  ;;  %v2229_v29 = vpop.f32.mrb[57].mxu1 }
 0x30f   : > { %v5567_v32 = vadd.f32 %v2597_v7, %v5505_v12  ;;  %v2599_v13 = vpop.f32.mrb[25].mxu0 }
 0x311   : > { %v5569_v35 = vpop.f32.mrb[58].mxu1 }
 0x312   : > { %v2602_v10 = vpop.f32.mrb[26].mxu0  ;;  %v2234_v37 = vpop.f32.mrb[59].mxu1 }
 0x313   : > { %v5572_v19 = vadd.f32 %v2602_v10, %v5507_v15  ;;  %v2604_v40 = vpop.f32.mrb[27].mxu0  ;;  %v1015_v10 = vld [vmem:[#allocation2 + $0x20] sm:$0xff] }
 0x315   : > { %v5574_v43 = vpop.f32.mrb[60].mxu1 }
 0x316   : > { %v2607_v11 = vpop.f32.mrb[28].mxu0  ;;  %v2239_v25 = vpop.f32.mrb[61].mxu1 }
 0x317   : > { %v5577_v47 = vadd.f32 %v2607_v11, %v5509_v17  ;;  %v2609_v31 = vpop.f32.mrb[29].mxu0 }
 0x319   : > { %v5579_v49 = vpop.f32.mrb[62].mxu1 }
 0x31a   : > { %v2612_v12 = vpop.f32.mrb[30].mxu0  ;;  %v2244_v50 = vpop.f32.mrb[63].mxu1 }
 0x31b   : > { %v5582_v54 = vadd.f32 %v2612_v12, %v5511_v18  ;;  %v2614_v55 = vpop.f32.mrb[31].mxu0 }
 0x31c   : > { %v1017_v55 = vld [vmem:[#allocation2 + $0x30] sm:$0xff] }
 0x31d   : > { %v3308_v15 = vpop.f32.mrb[64].mxu1 }
 0x31e   : > { %v2617_v56 = vpop.f32.mrb[32].mxu0  ;;  %v2768_v45 = vadd.f32 %v5532_v42, %v3308_v15  ;;  %v2762_v62 = vpop.f32.mrb[65].mxu1 }
 0x31f   : > { %v5586_v53 = vadd.f32 %v2617_v56, %v5513_v20  ;;  %v2619_v17 = vpop.f32.mrb[33].mxu0  ;;  %v2763_v51 = vadd.f32 %v5530_v39, %v2762_v62  ;;  %v1016_v39 = vld [vmem:[#allocation2 + $0x28] sm:$0xff] }
 0x320   : > { %v2922_v61 = vadd.f32 %v2768_v45, %v1012_v46 }
 0x321   : > { %v2921_v0 = vadd.f32 %v2763_v51, %v1011_v59  ;;  %v3311_v2 = vpop.f32.mrb[66].mxu1  ;;  %v1019_v51 = vld [vmem:[#allocation2 + $0x40] sm:$0xff] }
 0x322   : > { %2954 = vst [vmem:[#allocation2 + $0x8] sm:$0xff] %v2922_v61  ;;  %v2622_v18 = vpop.f32.mrb[34].mxu0  ;;  %v2778_v14 = vadd.f32 %v5536_v48, %v3311_v2  ;;  %v2772_v60 = vpop.f32.mrb[67].mxu1 }
 0x323   : > { %2953 = vst [vmem:[#allocation2] sm:$0xff] %v2921_v0  ;;  %v5591_v42 = vadd.f32 %v2622_v18, %v5515_v22  ;;  %v2624_v36 = vpop.f32.mrb[35].mxu0  ;;  %v2773_v20 = vadd.f32 %v5534_v44, %v2772_v60  ;;  %v1018_v44 = vld [vmem:[#allocation2 + $0x38] sm:$0xff]  ;;  %v1021_v60 = vld [vmem:[#allocation2 + $0x50] sm:$0xff] }
 0x324   : > { %v2924_v21 = vadd.f32 %v2778_v14, %v1014_v8 }
 0x325   : > { %v2923_v26 = vadd.f32 %v2773_v20, %v1013_v4  ;;  %v3314_v7 = vpop.f32.mrb[68].mxu1 }
 0x326   : > { %2956 = vst [vmem:[#allocation2 + $0x18] sm:$0xff] %v2924_v21  ;;  %v2627_v29 = vpop.f32.mrb[36].mxu0  ;;  %v2788_v13 = vadd.f32 %v5540_v41, %v3314_v7  ;;  %v2782_v37 = vpop.f32.mrb[69].mxu1 }
 0x327   : > { %2955 = vst [vmem:[#allocation2 + $0x10] sm:$0xff] %v2923_v26  ;;  %v5596_v48 = vadd.f32 %v2627_v29, %v5517_v24  ;;  %v2629_v40 = vpop.f32.mrb[37].mxu0  ;;  %v2783_v22 = vadd.f32 %v5538_v38, %v2782_v37  ;;  %v1020_v38 = vld [vmem:[#allocation2 + $0x48] sm:$0xff] }
 0x328   : > { %v2926_v11 = vadd.f32 %v2788_v13, %v1016_v39  ;;  %v1024_v39 = vld [vmem:[#allocation2 + $0x68] sm:$0xff]  ;;  %v1023_v13 = vld [vmem:[#allocation2 + $0x60] sm:$0xff] }
 0x329   : > { %v2925_v25 = vadd.f32 %v2783_v22, %v1015_v10  ;;  %v3317_v31 = vpop.f32.mrb[70].mxu1 }
 0x32a   : > { %2958 = vst [vmem:[#allocation2 + $0x28] sm:$0xff] %v2926_v11  ;;  %v2632_v12 = vpop.f32.mrb[38].mxu0  ;;  %v2798_v50 = vadd.f32 %v5544_v58, %v3317_v31  ;;  %v2792_v46 = vpop.f32.mrb[71].mxu1  ;;  %v1025_v31 = vld [vmem:[#allocation2 + $0x70] sm:$0xff] }
 0x32b   : > { %2957 = vst [vmem:[#allocation2 + $0x20] sm:$0xff] %v2925_v25  ;;  %v5601_v41 = vadd.f32 %v2632_v12, %v5519_v27  ;;  %v2634_v15 = vpop.f32.mrb[39].mxu0  ;;  %v2793_v24 = vadd.f32 %v5542_v52, %v2792_v46  ;;  %v1022_v52 = vld [vmem:[#allocation2 + $0x58] sm:$0xff] }
 0x32c   : > { %v2928_v56 = vadd.f32 %v2798_v50, %v1018_v44  ;;  %v1028_v15 = vld [vmem:[#allocation2 + $0x88] sm:$0xff] }
 0x32d   : > { %v2927_v45 = vadd.f32 %v2793_v24, %v1017_v55  ;;  %v3320_v59 = vpop.f32.mrb[72].mxu1 }
 0x32e   : > { %2960 = vst [vmem:[#allocation2 + $0x38] sm:$0xff] %v2928_v56  ;;  %v2637_v62 = vpop.f32.mrb[40].mxu0  ;;  %v2808_v17 = vadd.f32 %v5552_v9, %v3320_v59  ;;  %v2802_v61 = vpop.f32.mrb[73].mxu1 }
 0x32f   : > { %2959 = vst [vmem:[#allocation2 + $0x30] sm:$0xff] %v2927_v45  ;;  %v5606_v58 = vadd.f32 %v2637_v62, %v5521_v28  ;;  %v2639_v0 = vpop.f32.mrb[41].mxu0  ;;  %v2803_v27 = vadd.f32 %v5548_v3, %v2802_v61  ;;  %v1027_v45 = vld [vmem:[#allocation2 + $0x80] sm:$0xff] }
 0x330   : > { %v2930_v8 = vadd.f32 %v2808_v17, %v1020_v38 }
 0x331   : > { %v2929_v2 = vadd.f32 %v2803_v27, %v1019_v51  ;;  %v3323_v18 = vpop.f32.mrb[74].mxu1  ;;  %v1030_v51 = vld [vmem:[#allocation2 + $0x98] sm:$0xff]  ;;  %v1029_v27 = vld [vmem:[#allocation2 + $0x90] sm:$0xff] }
 0x332   : > { %2962 = vst [vmem:[#allocation2 + $0x48] sm:$0xff] %v2930_v8  ;;  %v2642_v14 = vpop.f32.mrb[42].mxu0  ;;  %v2818_v4 = vadd.f32 %v5562_v23, %v3323_v18  ;;  %v2812_v36 = vpop.f32.mrb[75].mxu1 }
 0x333   : > { %2961 = vst [vmem:[#allocation2 + $0x40] sm:$0xff] %v2929_v2  ;;  %v3679_v9 = vadd.f32 %v2642_v14, %v5523_v30  ;;  %v2644_v20 = vpop.f32.mrb[43].mxu0  ;;  %v2813_v28 = vadd.f32 %v5557_v16, %v2812_v36  ;;  %v1026_v16 = vld [vmem:[#allocation2 + $0x78] sm:$0xff]  ;;  %v1032_v14 = vld [vmem:[#allocation2 + $0xa8] sm:$0xff]  ;;  %v1031_v36 = vld [vmem:[#allocation2 + $0xa0] sm:$0xff] }
 0x334   : > { %v2932_v21 = vadd.f32 %v2818_v4, %v1022_v52 }
 0x335   : > { %v2931_v26 = vadd.f32 %v2813_v28, %v1021_v60  ;;  %v3326_v3 = vpop.f32.mrb[76].mxu1 }
 0x336   : > { %2964 = vst [vmem:[#allocation2 + $0x58] sm:$0xff] %v2932_v21  ;;  %v2647_v7 = vpop.f32.mrb[44].mxu0  ;;  %v2828_v29 = vadd.f32 %v5572_v19, %v3326_v3  ;;  %v2822_v10 = vpop.f32.mrb[77].mxu1 }
 0x337   : > { %2963 = vst [vmem:[#allocation2 + $0x50] sm:$0xff] %v2931_v26  ;;  %v5614_v23 = vadd.f32 %v2647_v7, %v5525_v33  ;;  %v2649_v37 = vpop.f32.mrb[45].mxu0  ;;  %v2823_v30 = vadd.f32 %v5567_v32, %v2822_v10 }
 0x338   : > { %v2934_v40 = vadd.f32 %v2828_v29, %v1024_v39  ;;  %v1034_v39 = vld [vmem:[#allocation2 + $0xb8] sm:$0xff]  ;;  %v1033_v29 = vld [vmem:[#allocation2 + $0xb0] sm:$0xff] }
 0x339   : > { %v2933_v22 = vadd.f32 %v2823_v30, %v1023_v13  ;;  %v3329_v11 = vpop.f32.mrb[78].mxu1 }
 0x33a   : > { %2966 = vst [vmem:[#allocation2 + $0x68] sm:$0xff] %v2934_v40  ;;  %v2652_v25 = vpop.f32.mrb[46].mxu0  ;;  %v2838_v44 = vadd.f32 %v5582_v54, %v3329_v11  ;;  %v2832_v12 = vpop.f32.mrb[79].mxu1  ;;  %v1036_v40 = vld [vmem:[#allocation2 + $0xc8] sm:$0xff]  ;;  %v1035_v11 = vld [vmem:[#allocation2 + $0xc0] sm:$0xff] }
 0x33b   : > { %2965 = vst [vmem:[#allocation2 + $0x60] sm:$0xff] %v2933_v22  ;;  %v3681_v19 = vadd.f32 %v2652_v25, %v5527_v34  ;;  %v2654_v50 = vpop.f32.mrb[47].mxu0  ;;  %v2833_v33 = vadd.f32 %v5577_v47, %v2832_v12 }
 0x33c   : > { %v2936_v55 = vadd.f32 %v2838_v44, %v1026_v16 }
 0x33d   : > { %v2935_v46 = vadd.f32 %v2833_v33, %v1025_v31  ;;  %v3332_v32 = vpop.f32.mrb[80].mxu1 }
 0x33e   : > { %2968 = vst [vmem:[#allocation2 + $0x78] sm:$0xff] %v2936_v55  ;;  %v2657_v24 = vpop.f32.mrb[48].mxu0  ;;  %v2848_v56 = vadd.f32 %v5591_v42, %v3332_v32  ;;  %v2842_v38 = vpop.f32.mrb[81].mxu1 }
 0x33f   : > { %2967 = vst [vmem:[#allocation2 + $0x70] sm:$0xff] %v2935_v46  ;;  %v3682_v54 = vadd.f32 %v2657_v24, %v5546_v1  ;;  %v2659_v59 = vpop.f32.mrb[49].mxu0  ;;  %v2843_v62 = vadd.f32 %v5586_v53, %v2842_v38  ;;  %v1037_v46 = vld [vmem:[#allocation2 + $0xd0] sm:$0xff] }
 0x340   : > { %v2938_v34 = vadd.f32 %v2848_v56, %v1028_v15  ;;  %v1040_v59 = vld [vmem:[#allocation2 + $0xe8] sm:$0xff] }
 0x341   : > { %v2937_v17 = vadd.f32 %v2843_v62, %v1027_v45  ;;  %v3335_v47 = vpop.f32.mrb[82].mxu1 }
 0x342   : > { %2970 = vst [vmem:[#allocation2 + $0x88] sm:$0xff] %v2938_v34  ;;  %v2662_v61 = vpop.f32.mrb[50].mxu0  ;;  %v2858_v0 = vadd.f32 %v5601_v41, %v3335_v47  ;;  %v2852_v8 = vpop.f32.mrb[83].mxu1  ;;  %v1039_v34 = vld [vmem:[#allocation2 + $0xe0] sm:$0xff] }
 0x343   : > { %2969 = vst [vmem:[#allocation2 + $0x80] sm:$0xff] %v2937_v17  ;;  %v3683_v42 = vadd.f32 %v2662_v61, %v5550_v6  ;;  %v2664_v2 = vpop.f32.mrb[51].mxu0  ;;  %v2853_v52 = vadd.f32 %v5596_v48, %v2852_v8 }
 0x344   : > { %v2940_v1 = vadd.f32 %v2858_v0, %v1030_v51 }
 0x345   : > { %v2939_v18 = vadd.f32 %v2853_v52, %v1029_v27  ;;  %v3338_v53 = vpop.f32.mrb[84].mxu1 }
 0x346   : > { %2972 = vst [vmem:[#allocation2 + $0x98] sm:$0xff] %v2940_v1  ;;  %v2667_v4 = vpop.f32.mrb[52].mxu0  ;;  %v2868_v60 = vadd.f32 %v3679_v9, %v3338_v53  ;;  %v2862_v20 = vpop.f32.mrb[85].mxu1 }
 0x347   : > { %2971 = vst [vmem:[#allocation2 + $0x90] sm:$0xff] %v2939_v18  ;;  %v3684_v41 = vadd.f32 %v2667_v4, %v5554_v57  ;;  %v2669_v28 = vpop.f32.mrb[53].mxu0  ;;  %v2863_v21 = vadd.f32 %v5606_v58, %v2862_v20 }
 0x348   : > { %v2942_v26 = vadd.f32 %v2868_v60, %v1032_v14  ;;  %v1042_v14 = vld [vmem:[#allocation2 + $0xf8] sm:$0xff]  ;;  %v2991_v28 = vld [vmem:[#allocation2 + $0x10] sm:$0xff] (!%p3222_p13) }
 0x349   : > { %v2941_v6 = vadd.f32 %v2863_v21, %v1031_v36  ;;  %v3341_v3 = vpop.f32.mrb[86].mxu1  ;;  %v5638_v36 = vld [vmem:[%s5727_s2] ss:$0 sm:$0xff] (!%p3222_p13)  ;;  %v2992_v21 = vld [vmem:[#allocation2 + $0x18] sm:$0xff] (!%p3222_p13) }
 0x34a   : > { %2974 = vst [vmem:[#allocation2 + $0xa8] sm:$0xff] %v2942_v26  ;;  %v2672_v48 = vpop.f32.mrb[54].mxu0  ;;  %v2878_v7 = vadd.f32 %v3681_v19, %v3341_v3  ;;  %v2872_v13 = vpop.f32.mrb[87].mxu1  ;;  %v2993_v26 = vld [vmem:[#allocation2 + $0x20] sm:$0xff] (!%p3222_p13) }
 0x34b   : > { %2973 = vst [vmem:[#allocation2 + $0xa0] sm:$0xff] %v2941_v6  ;;  %v3685_v9 = vadd.f32 %v2672_v48, %v5559_v63  ;;  %v2674_v10 = vpop.f32.mrb[55].mxu0  ;;  %v2873_v37 = vadd.f32 %v5614_v23, %v2872_v13  ;;  %v1038_v63 = vld [vmem:[#allocation2 + $0xd8] sm:$0xff]  ;;  %v3030_v6 = vadd.f32 (!%p3222_p13), %v5638_v36, %v2991_v28  ;;  %v3032_v3 = vadd.f32 (!%p3222_p13), %v5638_v36, %v2993_v26  ;;  %v2994_v48 = vld [vmem:[#allocation2 + $0x28] sm:$0xff] (!%p3222_p13) }
 0x34c   : > { %v2944_v30 = vadd.f32 %v2878_v7, %v1034_v39  ;;  %v3031_v39 = vadd.f32 (!%p3222_p13), %v5638_v36, %v2992_v21  ;;  %v2995_v7 = vld [vmem:[#allocation2 + $0x30] sm:$0xff] (!%p3222_p13)  ;;  %v3033_v13 = vadd.f32 (!%p3222_p13), %v5638_v36, %v2994_v48 }
 0x34d   : > { %v2943_v57 = vadd.f32 %v2873_v37, %v1033_v29  ;;  %v3344_v22 = vpop.f32.mrb[88].mxu1  ;;  %v2996_v29 = vld [vmem:[#allocation2 + $0x38] sm:$0xff] (!%p3222_p13)  ;;  %v2997_v37 = vld [vmem:[#allocation2 + $0x40] sm:$0xff] (!%p3222_p13)  ;;  %3062 = vst [vmem:[%s4802_s30 + $0x10] sm:$0xff] (!%p3222_p13), %v3030_v6  ;;  %3064 = vst [vmem:[%s4802_s30 + $0x20] sm:$0xff] (!%p3222_p13), %v3032_v3 }
 0x34e   : > { %2976 = vst [vmem:[#allocation2 + $0xb8] sm:$0xff] %v2944_v30  ;;  %v2677_v58 = vpop.f32.mrb[56].mxu0  ;;  %v2888_v16 = vadd.f32 %v3683_v42, %v3344_v22  ;;  %v2882_v25 = vpop.f32.mrb[89].mxu1  ;;  %v1041_v42 = vld [vmem:[#allocation2 + $0xf0] sm:$0xff]  ;;  %v3035_v10 = vadd.f32 (!%p3222_p13), %v5638_v36, %v2996_v29  ;;  %v2998_v30 = vld [vmem:[#allocation2 + $0x48] sm:$0xff] (!%p3222_p13)  ;;  %3063 = vst [vmem:[%s4802_s30 + $0x18] sm:$0xff] (!%p3222_p13), %v3031_v39 }
 0x34f   : > { %2975 = vst [vmem:[#allocation2 + $0xb0] sm:$0xff] %v2943_v57  ;;  %v3686_v44 = vadd.f32 %v2677_v58, %v5564_v5  ;;  %v2679_v31 = vpop.f32.mrb[57].mxu0  ;;  %v2883_v12 = vadd.f32 %v3682_v54, %v2882_v25  ;;  %v2999_v57 = vld [vmem:[#allocation2 + $0x50] sm:$0xff] (!%p3222_p13)  ;;  %v3037_v22 = vadd.f32 (!%p3222_p13), %v5638_v36, %v2998_v30  ;;  %v3002_v25 = vld [vmem:[#allocation2 + $0x68] sm:$0xff] (!%p3222_p13)  ;;  %3065 = vst [vmem:[%s4802_s30 + $0x28] sm:$0xff] (!%p3222_p13), %v3033_v13 }
 0x350   : > { %v2946_v19 = vadd.f32 %v2888_v16, %v1036_v40  ;;  %v3036_v40 = vadd.f32 (!%p3222_p13), %v5638_v36, %v2997_v37  ;;  %v3038_v58 = vadd.f32 (!%p3222_p13), %v5638_v36, %v2999_v57  ;;  %v3000_v16 = vld [vmem:[#allocation2 + $0x58] sm:$0xff] (!%p3222_p13)  ;;  %3067 = vst [vmem:[%s4802_s30 + $0x38] sm:$0xff] (!%p3222_p13), %v3035_v10 }
 0x351   : > { %v2945_v50 = vadd.f32 %v2883_v12, %v1035_v11  ;;  %v3347_v33 = vpop.f32.mrb[90].mxu1  ;;  %v3001_v11 = vld [vmem:[#allocation2 + $0x60] sm:$0xff] (!%p3222_p13)  ;;  %v3041_v12 = vadd.f32 (!%p3222_p13), %v5638_v36, %v3002_v25  ;;  %3069 = vst [vmem:[%s4802_s30 + $0x48] sm:$0xff] (!%p3222_p13), %v3037_v22 }
 0x352   : > { %2978 = vst [vmem:[#allocation2 + $0xc8] sm:$0xff] %v2946_v19  ;;  %v2682_v23 = vpop.f32.mrb[58].mxu0  ;;  %v2898_v55 = vadd.f32 %v3685_v9, %v3347_v33  ;;  %v2892_v15 = vpop.f32.mrb[91].mxu1  ;;  %v3034_v9 = vadd.f32 (!%p3222_p13), %v5638_v36, %v2995_v7  ;;  %v3040_v31 = vadd.f32 (!%p3222_p13), %v5638_v36, %v3001_v11  ;;  %v3003_v19 = vld [vmem:[#allocation2 + $0x70] sm:$0xff] (!%p3222_p13)  ;;  %3068 = vst [vmem:[%s4802_s30 + $0x40] sm:$0xff] (!%p3222_p13), %v3036_v40 }
 0x353   : > { %2977 = vst [vmem:[#allocation2 + $0xc0] sm:$0xff] %v2945_v50  ;;  %v3687_v32 = vadd.f32 %v2682_v23, %v5569_v35  ;;  %v2684_v24 = vpop.f32.mrb[59].mxu0  ;;  %v2893_v56 = vadd.f32 %v3684_v41, %v2892_v15  ;;  %v3004_v50 = vld [vmem:[#allocation2 + $0x78] sm:$0xff] (!%p3222_p13)  ;;  %3070 = vst [vmem:[%s4802_s30 + $0x50] sm:$0xff] (!%p3222_p13), %v3038_v58  ;;  %v3042_v33 = vadd.f32 (!%p3222_p13), %v5638_v36, %v3003_v19  ;;  %v3007_v15 = vld [vmem:[#allocation2 + $0x90] sm:$0xff] (!%p3222_p13) }
 0x354   : > { %v2948_v45 = vadd.f32 %v2898_v55, %v1038_v63  ;;  %3066 = vst [vmem:[%s4802_s30 + $0x30] sm:$0xff] (!%p3222_p13), %v3034_v9  ;;  %v3005_v63 = vld [vmem:[#allocation2 + $0x80] sm:$0xff] (!%p3222_p13)  ;;  %v3043_v23 = vadd.f32 (!%p3222_p13), %v5638_v36, %v3004_v50  ;;  %3072 = vst [vmem:[%s4802_s30 + $0x60] sm:$0xff] (!%p3222_p13), %v3040_v31 }
 0x355   : > { %v2947_v38 = vadd.f32 %v2893_v56, %v1037_v46  ;;  %v3350_v5 = vpop.f32.mrb[92].mxu1  ;;  %v3044_v55 = vadd.f32 (!%p3222_p13), %v5638_v36, %v3005_v63  ;;  %v3006_v46 = vld [vmem:[#allocation2 + $0x88] sm:$0xff] (!%p3222_p13)  ;;  %3073 = vst [vmem:[%s4802_s30 + $0x68] sm:$0xff] (!%p3222_p13), %v3041_v12  ;;  %v3046_v56 = vadd.f32 (!%p3222_p13), %v5638_v36, %v3007_v15  ;;  %3074 = vst [vmem:[%s4802_s30 + $0x70] sm:$0xff] (!%p3222_p13), %v3042_v33 }
 0x356   : > { %2980 = vst [vmem:[#allocation2 + $0xd8] sm:$0xff] %v2948_v45  ;;  %v2687_v54 = vpop.f32.mrb[60].mxu0  ;;  %v2908_v62 = vadd.f32 %v3687_v32, %v3350_v5  ;;  %v2902_v17 = vpop.f32.mrb[93].mxu1  ;;  %v3008_v32 = vld [vmem:[#allocation2 + $0x98] sm:$0xff] (!%p3222_p13)  ;;  %v3045_v24 = vadd.f32 (!%p3222_p13), %v5638_v36, %v3006_v46  ;;  %v3011_v5 = vld [vmem:[#allocation2 + $0xb0] sm:$0xff] (!%p3222_p13)  ;;  %3075 = vst [vmem:[%s4802_s30 + $0x78] sm:$0xff] (!%p3222_p13), %v3043_v23 }
 0x357   : > { %2979 = vst [vmem:[#allocation2 + $0xd0] sm:$0xff] %v2947_v38  ;;  %v3688_v51 = vadd.f32 %v2687_v54, %v5574_v43  ;;  %v2689_v47 = vpop.f32.mrb[61].mxu0  ;;  %v2903_v61 = vadd.f32 %v3686_v44, %v2902_v17  ;;  %v2989_v43 = vld [vmem:[#allocation2] sm:$0xff] (!%p3222_p13)  ;;  %v3039_v44 = vadd.f32 (!%p3222_p13), %v5638_v36, %v3000_v16  ;;  %v3047_v45 = vadd.f32 (!%p3222_p13), %v5638_v36, %v3008_v32  ;;  %v3012_v17 = vld [vmem:[#allocation2 + $0xb8] sm:$0xff] (!%p3222_p13) }
 0x358   : > { %v2950_v0 = vadd.f32 %v2908_v62, %v1040_v59  ;;  %v3028_v20 = vadd.f32 (!%p3222_p13), %v5638_v36, %v2989_v43  ;;  %v3009_v38 = vld [vmem:[#allocation2 + $0xa0] sm:$0xff] (!%p3222_p13)  ;;  %v3010_v59 = vld [vmem:[#allocation2 + $0xa8] sm:$0xff] (!%p3222_p13)  ;;  %3076 = vst [vmem:[%s4802_s30 + $0x80] sm:$0xff] (!%p3222_p13), %v3044_v55  ;;  %3077 = vst [vmem:[%s4802_s30 + $0x88] sm:$0xff] (!%p3222_p13), %v3045_v24 }
 0x359   : > { %v2949_v27 = vadd.f32 %v2903_v61, %v1039_v34  ;;  %v3353_v8 = vpop.f32.mrb[94].mxu1  ;;  %3071 = vst [vmem:[%s4802_s30 + $0x58] sm:$0xff] (!%p3222_p13), %v3039_v44  ;;  %v3048_v54 = vadd.f32 (!%p3222_p13), %v5638_v36, %v3009_v38  ;;  %v3049_v62 = vadd.f32 (!%p3222_p13), %v5638_v36, %v3010_v59  ;;  %v3050_v34 = vadd.f32 (!%p3222_p13), %v5638_v36, %v3011_v5  ;;  %v3014_v47 = vld [vmem:[#allocation2 + $0xc8] sm:$0xff] (!%p3222_p13) }
 0x35a   : > { %2982 = vst [vmem:[#allocation2 + $0xe8] sm:$0xff] %v2950_v0  ;;  %v2692_v35 = vpop.f32.mrb[62].mxu0  ;;  %v2912_v2 = vpop.f32.mrb[95].mxu1  ;;  %3060 = vst [vmem:[%s4802_s30] sm:$0xff] (!%p3222_p13), %v3028_v20  ;;  %v3051_v61 = vadd.f32 (!%p3222_p13), %v5638_v36, %v3012_v17 }
 0x35b   : > { %2981 = vst [vmem:[#allocation2 + $0xe0] sm:$0xff] %v2949_v27  ;;  %v3689_v52 = vadd.f32 %v2692_v35, %v5579_v49  ;;  %v2694_v1 = vpop.f32.mrb[63].mxu0  ;;  %v2913_v18 = vadd.f32 %v3688_v51, %v2912_v2  ;;  %2988 = sbr.rel (%p3222_p13) target bundleno = 876 (0x36c), region = 63  ;;  %v2990_v49 = vld [vmem:[#allocation2 + $0x8] sm:$0xff] (!%p3222_p13)  ;;  %v3013_v51 = vld [vmem:[#allocation2 + $0xc0] sm:$0xff] (!%p3222_p13)  ;;  %3078 = vst [vmem:[%s4802_s30 + $0x90] sm:$0xff] (!%p3222_p13), %v3046_v56  ;;  %v3053_v27 = vadd.f32 (!%p3222_p13), %v5638_v36, %v3014_v47 }
 0x35c   : > { %v3029_v41 = vadd.f32 (!%p3222_p13), %v5638_v36, %v2990_v49  ;;  %3079 = vst [vmem:[%s4802_s30 + $0x98] sm:$0xff] (!%p3222_p13), %v3047_v45  ;;  %v3052_v0 = vadd.f32 (!%p3222_p13), %v5638_v36, %v3013_v51  ;;  %3080 = vst [vmem:[%s4802_s30 + $0xa0] sm:$0xff] (!%p3222_p13), %v3048_v54 }
 0x35d   : > { %v2918_v53 = vadd.f32 %v3689_v52, %v3353_v8  ;;  %v2951_v4 = vadd.f32 %v2913_v18, %v1041_v42  ;;  %v3016_v35 = vld [vmem:[#allocation2 + $0xd8] sm:$0xff] (!%p3222_p13)  ;;  %3081 = vst [vmem:[%s4802_s30 + $0xa8] sm:$0xff] (!%p3222_p13), %v3049_v62  ;;  %3082 = vst [vmem:[%s4802_s30 + $0xb0] sm:$0xff] (!%p3222_p13), %v3050_v34 }
 0x35e   : > { %3061 = vst [vmem:[%s4802_s30 + $0x8] sm:$0xff] (!%p3222_p13), %v3029_v41  ;;  %v3015_v8 = vld [vmem:[#allocation2 + $0xd0] sm:$0xff] (!%p3222_p13)  ;;  %v3055_v52 = vadd.f32 (!%p3222_p13), %v5638_v36, %v3016_v35  ;;  %3083 = vst [vmem:[%s4802_s30 + $0xb8] sm:$0xff] (!%p3222_p13), %v3051_v61 }
 0x35f   : > { %v2952_v60 = vadd.f32 %v2918_v53, %v1042_v14  ;;  %2983 = vst [vmem:[#allocation2 + $0xf0] sm:$0xff] %v2951_v4  ;;  %v3054_v2 = vadd.f32 (!%p3222_p13), %v5638_v36, %v3015_v8  ;;  %3084 = vst [vmem:[%s4802_s30 + $0xc0] sm:$0xff] (!%p3222_p13), %v3052_v0 }
 0x360   : > { %3085 = vst [vmem:[%s4802_s30 + $0xc8] sm:$0xff] (!%p3222_p13), %v3053_v27  ;;  %3087 = vst [vmem:[%s4802_s30 + $0xd8] sm:$0xff] (!%p3222_p13), %v3055_v52 }
 0x361   : > { %2984 = vst [vmem:[#allocation2 + $0xf8] sm:$0xff] %v2952_v60  ;;  %v3018_v18 = vld [vmem:[#allocation2 + $0xe8] sm:$0xff] (!%p3222_p13)  ;;  %3086 = vst [vmem:[%s4802_s30 + $0xd0] sm:$0xff] (!%p3222_p13), %v3054_v2 }
 0x362   : > { %v3017_v42 = vld [vmem:[#allocation2 + $0xe0] sm:$0xff]  ;;  %v3057_v4 = vadd.f32 %v5638_v36, %v3018_v18 }
 0x363   : > { %v3056_v1 = vadd.f32 %v5638_v36, %v3017_v42 }
 0x364   : > { %3089 = vst [vmem:[%s4802_s30 + $0xe8] sm:$0xff] %v3057_v4 }
 0x365   : > { %3088 = vst [vmem:[%s4802_s30 + $0xe0] sm:$0xff] %v3056_v1 }
 0x366   : > { %v3019_v14 = vld [vmem:[#allocation2 + $0xf0] sm:$0xff] }
 0x367   : > { %v3058_v60 = vadd.f32 %v5638_v36, %v3019_v14 }
 0x368   : > { %v3020_v53 = vld [vmem:[#allocation2 + $0xf8] sm:$0xff] }
 0x369   : > { %v3059_v43 = vadd.f32 %v5638_v36, %v3020_v53  ;;  %3090 = vst [vmem:[%s4802_s30 + $0xf0] sm:$0xff] %v3058_v60 }
 0x36b   : > { %3091 = vst [vmem:[%s4802_s30 + $0xf8] sm:$0xff] %v3059_v43 }
 0x36c PF: > { %s13_s18 = sadd.s32 1, %s3997_s18   ;;  %s5729_s12 = smov %s3977_s13 }
 0x36d   : > { %p10_p0 = scmp.ge.s32.totalorder %s13_s18, 6   ;;  %s5730_s13 = smov %s4072_s25 }
 0x36e   : > { %s5731_s14 = smov %s3989_s16  ;;  %s5732_s15 = smov %s3993_s17 }
 0x36f   : > { %s5733_s16 = smov %s5736_s19  ;;  %s5734_s17 = smov %s5740_s20 }
 0x370   :  { %12 = sbr.rel (!%p10_p0) target bundleno = 4 (0x4), region = 104 }

</bundles_post_ra>
